<compile_context>
chip_gen: v7x
topology: tpu7x:2x2x1
jax: 0.10.0
libtpu: 0.0.40
codegen_flags: <defaults>
</compile_context>

<pallas_src>
import functools

import jax
import jax.numpy as jnp
from jax.experimental import pallas as pl
from jax.experimental.pallas import tpu as pltpu


# ----------------------------------------------------------------------------
# Kernel 1: deconv1-as-matmul + fused ReLU (weight-streaming bound).
# Full K per step -> no accumulator, no reduction axis, grid only over columns.
# ----------------------------------------------------------------------------
def matmul_relu_kernel(a_ref, b_ref, o_ref):
    # Weight tile streams from HBM in bf16 (half the f32 bytes); up-cast in VMEM
    # so the matmul is exact in the (quantized) weights and f32 activations.
    b = b_ref[...].astype(jnp.float32)
    o_ref[...] = jnp.maximum(
        jnp.dot(a_ref[...], b, preferred_element_type=jnp.float32),
        0.0).astype(o_ref.dtype)


def matmul_relu(a, b, *, tn=2048):
    M, K = a.shape
    K2, Nc = b.shape
    assert K == K2 and Nc % tn == 0
    return pl.pallas_call(
        matmul_relu_kernel,
        out_shape=jax.ShapeDtypeStruct((M, Nc), jnp.float32),
        grid_spec=pltpu.PrefetchScalarGridSpec(
            num_scalar_prefetch=0,
            grid=(Nc // tn,),
            in_specs=[
                pl.BlockSpec((M, K), lambda j: (0, 0)),    # tiny activation, fetched once
                pl.BlockSpec((K, tn), lambda j: (0, j)),   # bf16 weight column tile (4 MiB)
            ],
            out_specs=pl.BlockSpec((M, tn), lambda j: (0, j)),
        ),
        compiler_params=pltpu.CompilerParams(
            dimension_semantics=("parallel",),             # v7x: split W1 stream over 2 TCs
            vmem_limit_bytes=32 * 1024 * 1024,             # v5e default 16 MiB is too tight
        ),
    )(a, b)


# ----------------------------------------------------------------------------
# Kernel 2: fused tail = BN1(512) + deconv2-as-matmul + ReLU + BN2(256).
# Single invocation, everything resident in VMEM.
#   y1_ref : (M1, 512)   rows = (n, h, w) of the 4x4 stage-1 output
#   w2_ref : (512, 1024) columns = (kh, kw, o), kh,kw in {0,1}, o in [0,256)
#   o_ref  : (M1, 1024)  same column order (patch interleave done in wrapper)
# ----------------------------------------------------------------------------
def tail_kernel(y1_ref, g1_ref, b1_ref, w2_ref, g2_ref, b2_ref, o_ref, *, eps):
    # BatchNorm2d(512), training stats over rows (= N*H1*W1), biased variance.
    y1 = y1_ref[...]
    m1 = y1.shape[0]
    mean1 = jnp.sum(y1, axis=0, keepdims=True) * (1.0 / m1)
    c1 = y1 - mean1
    var1 = jnp.sum(c1 * c1, axis=0, keepdims=True) * (1.0 / m1)
    h = c1 * jax.lax.rsqrt(var1 + eps) * g1_ref[...] + b1_ref[...]

    # deconv2 (k=s=2, non-overlapping patches -> matmul over channels) + ReLU.
    z = jnp.maximum(
        jnp.dot(h, w2_ref[...], preferred_element_type=jnp.float32), 0.0)

    # BatchNorm2d(256): per-channel stats over all N*8*8 samples
    # = rows x 4 patch positions (row permutation of the final layout is
    # irrelevant for the statistics). Static lane-aligned slices of width 256.
    c2 = g2_ref.shape[-1]
    z0 = z[:, 0 * c2:1 * c2]
    z1 = z[:, 1 * c2:2 * c2]
    z2 = z[:, 2 * c2:3 * c2]
    z3 = z[:, 3 * c2:4 * c2]
    cnt2 = 4 * m1
    mean2 = jnp.sum(z0 + z1 + z2 + z3, axis=0, keepdims=True) * (1.0 / cnt2)
    var2 = (jnp.sum((z0 - mean2) * (z0 - mean2), axis=0, keepdims=True) +
            jnp.sum((z1 - mean2) * (z1 - mean2), axis=0, keepdims=True) +
            jnp.sum((z2 - mean2) * (z2 - mean2), axis=0, keepdims=True) +
            jnp.sum((z3 - mean2) * (z3 - mean2), axis=0, keepdims=True)) * (1.0 / cnt2)
    scale = jax.lax.rsqrt(var2 + eps) * g2_ref[...]
    bias = b2_ref[...]
    # Direct lane-aligned slice stores (no concatenate, no long-lived d0..d3):
    # keeps vreg pressure at ~z only and removes a 128 KiB copy.
    o_ref[:, 0 * c2:1 * c2] = (z0 - mean2) * scale + bias
    o_ref[:, 1 * c2:2 * c2] = (z1 - mean2) * scale + bias
    o_ref[:, 2 * c2:3 * c2] = (z2 - mean2) * scale + bias
    o_ref[:, 3 * c2:4 * c2] = (z3 - mean2) * scale + bias


def fused_tail(y1_2d, g1, b1, w2r, g2, b2, *, eps=1e-5):
    m1, c1 = y1_2d.shape
    _, ko = w2r.shape
    c2 = ko // 4
    return pl.pallas_call(
        functools.partial(tail_kernel, eps=eps),
        out_shape=jax.ShapeDtypeStruct((m1, ko), jnp.float32),
        in_specs=[
            pl.BlockSpec((m1, c1), lambda: (0, 0)),
            pl.BlockSpec((1, c1), lambda: (0, 0)),
            pl.BlockSpec((1, c1), lambda: (0, 0)),
            pl.BlockSpec((c1, ko), lambda: (0, 0)),
            pl.BlockSpec((1, c2), lambda: (0, 0)),
            pl.BlockSpec((1, c2), lambda: (0, 0)),
        ],
        out_specs=pl.BlockSpec((m1, ko), lambda: (0, 0)),
    )(y1_2d, g1.reshape(1, c1), b1.reshape(1, c1), w2r,
      g2.reshape(1, c2), b2.reshape(1, c2))


# ----------------------------------------------------------------------------
# One-time weight pre-packing (outside the jitted forward — no per-call
# 32 MiB transpose of W1). W1 stored bf16 (dominant HBM stream halved);
# W2 kept f32 (not the bottleneck, keeps numeric margin).
# ----------------------------------------------------------------------------
def prepack_weights(w1, w2, *, w1_dtype=jnp.bfloat16):
    # w1: (Cin=1024, Cout=512, 4, 4) -> (1024, H*W*Cout), columns = (h, w, o)
    w1r = jnp.transpose(w1, (0, 2, 3, 1)).reshape(w1.shape[0], -1).astype(w1_dtype)
    # w2: (512, 256, 2, 2) -> (512, kh*kw*Cout), columns = (kh, kw, o)
    w2r = jnp.transpose(w2, (0, 2, 3, 1)).reshape(w2.shape[0], -1).astype(jnp.float32)
    return w1r, w2r


# ----------------------------------------------------------------------------
# Dshared forward (takes pre-packed weights)
# ----------------------------------------------------------------------------
@jax.jit
def dshared_forward(x, w1r, w2r, g1, b1, g2, b2):
    xv = x.reshape(-1, 1024).astype(jnp.float32)         # x.view(-1, 1024, 1, 1)
    n = xv.shape[0]

    # deconv1 (1x1 spatial input -> pure matmul) + ReLU; columns (h, w, o)
    y1 = matmul_relu(xv, w1r, tn=2048)                    # (N, 16*512)
    y1 = y1.reshape(n * 16, 512)                          # rows = (n, h, w), cols = o

    # Fused BN1 + deconv2 + ReLU + BN2 in one kernel.
    z = fused_tail(y1, g1, b1, w2r, g2, b2)               # (N*16, 4*256), cols (kh, kw, o)

    # (n,i,j,kh,kw,o) -> NCHW (n,o,2i+kh,2j+kw): tiny 128 KiB layout glue in XLA
    # (an in-kernel NCHW store would force masked 8-wide partial stores).
    z = z.reshape(n, 4, 4, 2, 2, 256)
    out = jnp.transpose(z, (0, 5, 1, 3, 2, 4)).reshape(n, 256, 8, 8)
    return out


# ----------------------------------------------------------------------------
# Pure-JAX reference (direct from the ConvTranspose2d definition)
# ----------------------------------------------------------------------------
def reference_forward(x, w1, w2, g1, b1, g2, b2, eps=1e-5):
    hi = jax.lax.Precision.HIGHEST
    xv = x.reshape(-1, 1024)
    y1 = jnp.einsum('nc,cohw->nohw', xv, w1, precision=hi)       # (N,512,4,4)
    y1 = jnp.maximum(y1, 0.0)
    m = y1.mean(axis=(0, 2, 3), keepdims=True)
    v = ((y1 - m) ** 2).mean(axis=(0, 2, 3), keepdims=True)
    y1 = (y1 - m) / jnp.sqrt(v + eps) * g1.reshape(1, -1, 1, 1) + b1.reshape(1, -1, 1, 1)

    y2 = jnp.einsum('ncij,cokl->noikjl', y1, w2, precision=hi)   # (N,256,4,2,4,2)
    y2 = y2.reshape(xv.shape[0], 256, 8, 8)
    y2 = jnp.maximum(y2, 0.0)
    m2 = y2.mean(axis=(0, 2, 3), keepdims=True)
    v2 = ((y2 - m2) ** 2).mean(axis=(0, 2, 3), keepdims=True)
    y2 = (y2 - m2) / jnp.sqrt(v2 + eps) * g2.reshape(1, -1, 1, 1) + b2.reshape(1, -1, 1, 1)
    return y2


# ----------------------------------------------------------------------------
if __name__ == "__main__":
    key = jax.random.PRNGKey(0)
    k1, k2, kx = jax.random.split(key, 3)

    # Deterministic parameter init (shapes fixed by the module definition).
    w1 = jax.random.normal(k1, (1024, 512, 4, 4), jnp.float32) * 0.02  # deconv1.weight
    w2 = jax.random.normal(k2, (512, 256, 2, 2), jnp.float32) * 0.05   # deconv2.weight
    g1 = jnp.ones((512,), jnp.float32)    # BatchNorm2d(512) gamma
    b1 = jnp.zeros((512,), jnp.float32)   # BatchNorm2d(512) beta
    g2 = jnp.ones((256,), jnp.float32)    # BatchNorm2d(256) gamma
    b2 = jnp.zeros((256,), jnp.float32)   # BatchNorm2d(256) beta

    # Small batch; channel dims (1024/512/256) are fixed by the architecture.
    x = jax.random.normal(kx, (2, 1024), jnp.float32)

    # One-time weight pre-pack (W1 -> bf16 stream), outside the jitted forward.
    w1r, w2r = prepack_weights(w1, w2)
    w1r = jax.block_until_ready(w1r)
    w2r = jax.block_until_ready(w2r)

    out = dshared_forward(x, w1r, w2r, g1, b1, g2, b2)
    out = jax.block_until_ready(out)
    assert out.shape == (2, 256, 8, 8), out.shape

    # (1) Validate the kernel math: reference with the exact same bf16-rounded
    #     W1 the kernel streams (quantization is a deployment-level choice, not
    #     a kernel bug) — tight 5e-3 tolerance.
    w1_q = w1.astype(jnp.bfloat16).astype(jnp.float32)
    ref = reference_forward(x, w1_q, w2, g1, b1, g2, b2)
    ref = jax.block_until_ready(ref)
    assert jnp.allclose(out, ref, rtol=5e-3, atol=5e-3), float(jnp.max(jnp.abs(out - ref)))

    # (2) Bound the bf16-weight quantization budget against the full-f32-weight
    #     reference (typ. ~1e-2 max after two BatchNorms amplify the rounding).
    ref_f32 = reference_forward(x, w1, w2, g1, b1, g2, b2)
    ref_f32 = jax.block_until_ready(ref_f32)
    qerr = float(jnp.max(jnp.abs(out - ref_f32)))
    assert qerr < 5e-2, qerr

    # TODO(synk): BatchNorm running_mean/running_var updates (training side
    # effect) are not produced; only the forward output is computed.
    print("KERNEL_OK")
</pallas_src>

<mosaic_0001>
module attributes {stable_mosaic.version = 11 : i64} {
  func.func @matmul_relu_kernel(%arg0: i32, %arg1: memref<2x1024xf32, #tpu.memory_space<vmem>>, %arg2: memref<1024x2048xbf16, #tpu.memory_space<vmem>>, %arg3: memref<2x2048xf32, #tpu.memory_space<vmem>>) attributes {dimension_semantics = [#tpu.dimension_semantics<parallel>], iteration_bounds = array<i64: 4>, scalar_prefetch = 0 : i64, scratch_operands = 0 : i64, tpu.core_type = #tpu.core_type<tc>, window_params = [{pipeline_mode = #tpu.pipeline_mode<synchronous>, transform_indices = @transform_0, window_bounds = array<i64: 2, 1024>}, {transform_indices = @transform_1, window_bounds = array<i64: 1024, 2048>}, {transform_indices = @transform_2, window_bounds = array<i64: 2, 2048>}]} {
    %c0 = arith.constant 0 : index
    %c0_0 = arith.constant 0 : index
    %0 = vector.load %arg2[%c0, %c0_0] : memref<1024x2048xbf16, #tpu.memory_space<vmem>>, vector<1024x2048xbf16>
    %1 = arith.extf %0 : vector<1024x2048xbf16> to vector<1024x2048xf32>
    %c0_1 = arith.constant 0 : index
    %c0_2 = arith.constant 0 : index
    %2 = vector.load %arg1[%c0_1, %c0_2] : memref<2x1024xf32, #tpu.memory_space<vmem>>, vector<2x1024xf32>
    %cst = arith.constant dense<0.000000e+00> : vector<2x2048xf32>
    %3 = tpu.matmul %2, %1, %cst {dimension_numbers = #tpu.dot_dimension_numbers<[1], [0], [0], [1], [0, 0, 1, 1], [], []>} : vector<2x1024xf32>, vector<1024x2048xf32>, vector<2x2048xf32> -> vector<2x2048xf32>
    %cst_3 = arith.constant 0.000000e+00 : f32
    %4 = vector.broadcast %cst_3 : f32 to vector<2x2048xf32>
    %5 = arith.maximumf %3, %4 : vector<2x2048xf32>
    %c0_4 = arith.constant 0 : index
    %c0_5 = arith.constant 0 : index
    %6 = vector.load %arg3[%c0_4, %c0_5] : memref<2x2048xf32, #tpu.memory_space<vmem>>, vector<2x2048xf32>
    tpu.vector_store %arg3[%c0_4, %c0_5], %5 {strides = array<i32>} : memref<2x2048xf32, #tpu.memory_space<vmem>>, vector<2x2048xf32>,
    return
  }
  func.func @transform_0(%arg0: i32) -> (i32, i32) {
    %c0_i32 = arith.constant 0 : i32
    %c0_i32_0 = arith.constant 0 : i32
    %c0_i32_1 = arith.constant 0 : i32
    return %c0_i32, %c0_i32_0 : i32, i32
  }
  func.func @transform_1(%arg0: i32) -> (i32, i32) {
    %c0_i32 = arith.constant 0 : i32
    %c0_i32_0 = arith.constant 0 : i32
    return %c0_i32, %arg0 : i32, i32
  }
  func.func @transform_2(%arg0: i32) -> (i32, i32) {
    %c0_i32 = arith.constant 0 : i32
    %c0_i32_0 = arith.constant 0 : i32
    return %c0_i32, %arg0 : i32, i32
  }
}

module attributes {stable_mosaic.version = 11 : i64} {
  func.func @tail_kernel(%arg0: memref<32x512xf32, #tpu.memory_space<vmem>>, %arg1: memref<1x512xf32, #tpu.memory_space<vmem>>, %arg2: memref<1x512xf32, #tpu.memory_space<vmem>>, %arg3: memref<512x1024xf32, #tpu.memory_space<vmem>>, %arg4: memref<1x256xf32, #tpu.memory_space<vmem>>, %arg5: memref<1x256xf32, #tpu.memory_space<vmem>>, %arg6: memref<32x1024xf32, #tpu.memory_space<vmem>>) attributes {dimension_semantics = [], scalar_prefetch = 0 : i64, scratch_operands = 0 : i64, tpu.core_type = #tpu.core_type<tc>} {
    %c0 = arith.constant 0 : index
    %c0_0 = arith.constant 0 : index
    %0 = vector.load %arg0[%c0, %c0_0] : memref<32x512xf32, #tpu.memory_space<vmem>>, vector<32x512xf32>
    %cst = arith.constant dense<0.000000e+00> : vector<512xf32>
    %1 = vector.multi_reduction <add>, %0, %cst [0] : vector<32x512xf32> to vector<512xf32>
    %2 = vector.shape_cast %1 : vector<512xf32> to vector<1x512xf32>
    %cst_1 = arith.constant 3.125000e-02 : f32
    %3 = vector.broadcast %cst_1 : f32 to vector<1x512xf32>
    %4 = arith.mulf %2, %3 : vector<1x512xf32>
    %5 = vector.broadcast %4 : vector<1x512xf32> to vector<32x512xf32>
    %6 = arith.subf %0, %5 : vector<32x512xf32>
    %7 = arith.mulf %6, %6 : vector<32x512xf32>
    %cst_2 = arith.constant dense<0.000000e+00> : vector<512xf32>
    %8 = vector.multi_reduction <add>, %7, %cst_2 [0] : vector<32x512xf32> to vector<512xf32>
    %9 = vector.shape_cast %8 : vector<512xf32> to vector<1x512xf32>
    %cst_3 = arith.constant 3.125000e-02 : f32
    %10 = vector.broadcast %cst_3 : f32 to vector<1x512xf32>
    %11 = arith.mulf %9, %10 : vector<1x512xf32>
    %cst_4 = arith.constant 9.99999974E-6 : f32
    %12 = vector.broadcast %cst_4 : f32 to vector<1x512xf32>
    %13 = arith.addf %11, %12 : vector<1x512xf32>
    %14 = math.rsqrt %13 : vector<1x512xf32>
    %15 = vector.broadcast %14 : vector<1x512xf32> to vector<32x512xf32>
    %16 = arith.mulf %6, %15 : vector<32x512xf32>
    %c0_5 = arith.constant 0 : index
    %c0_6 = arith.constant 0 : index
    %17 = vector.load %arg1[%c0_5, %c0_6] : memref<1x512xf32, #tpu.memory_space<vmem>>, vector<1x512xf32>
    %18 = vector.broadcast %17 : vector<1x512xf32> to vector<32x512xf32>
    %19 = arith.mulf %16, %18 : vector<32x512xf32>
    %c0_7 = arith.constant 0 : index
    %c0_8 = arith.constant 0 : index
    %20 = vector.load %arg2[%c0_7, %c0_8] : memref<1x512xf32, #tpu.memory_space<vmem>>, vector<1x512xf32>
    %21 = vector.broadcast %20 : vector<1x512xf32> to vector<32x512xf32>
    %22 = arith.addf %19, %21 : vector<32x512xf32>
    %c0_9 = arith.constant 0 : index
    %c0_10 = arith.constant 0 : index
    %23 = vector.load %arg3[%c0_9, %c0_10] : memref<512x1024xf32, #tpu.memory_space<vmem>>, vector<512x1024xf32>
    %cst_11 = arith.constant dense<0.000000e+00> : vector<32x1024xf32>
    %24 = tpu.matmul %22, %23, %cst_11 {dimension_numbers = #tpu.dot_dimension_numbers<[1], [0], [0], [1], [0, 0, 1, 1], [], []>} : vector<32x512xf32>, vector<512x1024xf32>, vector<32x1024xf32> -> vector<32x1024xf32>
    %cst_12 = arith.constant 0.000000e+00 : f32
    %25 = vector.broadcast %cst_12 : f32 to vector<32x1024xf32>
    %26 = arith.maximumf %24, %25 : vector<32x1024xf32>
    %27 = vector.extract_strided_slice %26 {offsets = [0, 0], sizes = [32, 256], strides = [1, 1]} : vector<32x1024xf32> to vector<32x256xf32>
    %28 = vector.extract_strided_slice %26 {offsets = [0, 256], sizes = [32, 256], strides = [1, 1]} : vector<32x1024xf32> to vector<32x256xf32>
    %29 = vector.extract_strided_slice %26 {offsets = [0, 512], sizes = [32, 256], strides = [1, 1]} : vector<32x1024xf32> to vector<32x256xf32>
    %30 = vector.extract_strided_slice %26 {offsets = [0, 768], sizes = [32, 256], strides = [1, 1]} : vector<32x1024xf32> to vector<32x256xf32>
    %31 = arith.addf %27, %28 : vector<32x256xf32>
    %32 = arith.addf %31, %29 : vector<32x256xf32>
    %33 = arith.addf %32, %30 : vector<32x256xf32>
    %cst_13 = arith.constant dense<0.000000e+00> : vector<256xf32>
    %34 = vector.multi_reduction <add>, %33, %cst_13 [0] : vector<32x256xf32> to vector<256xf32>
    %35 = vector.shape_cast %34 : vector<256xf32> to vector<1x256xf32>
    %cst_14 = arith.constant 7.812500e-03 : f32
    %36 = vector.broadcast %cst_14 : f32 to vector<1x256xf32>
    %37 = arith.mulf %35, %36 : vector<1x256xf32>
    %38 = vector.broadcast %37 : vector<1x256xf32> to vector<32x256xf32>
    %39 = arith.subf %27, %38 : vector<32x256xf32>
    %40 = vector.broadcast %37 : vector<1x256xf32> to vector<32x256xf32>
    %41 = arith.subf %27, %40 : vector<32x256xf32>
    %42 = arith.mulf %39, %41 : vector<32x256xf32>
    %cst_15 = arith.constant dense<0.000000e+00> : vector<256xf32>
    %43 = vector.multi_reduction <add>, %42, %cst_15 [0] : vector<32x256xf32> to vector<256xf32>
    %44 = vector.shape_cast %43 : vector<256xf32> to vector<1x256xf32>
    %45 = vector.broadcast %37 : vector<1x256xf32> to vector<32x256xf32>
    %46 = arith.subf %28, %45 : vector<32x256xf32>
    %47 = vector.broadcast %37 : vector<1x256xf32> to vector<32x256xf32>
    %48 = arith.subf %28, %47 : vector<32x256xf32>
    %49 = arith.mulf %46, %48 : vector<32x256xf32>
    %cst_16 = arith.constant dense<0.000000e+00> : vector<256xf32>
    %50 = vector.multi_reduction <add>, %49, %cst_16 [0] : vector<32x256xf32> to vector<256xf32>
    %51 = vector.shape_cast %50 : vector<256xf32> to vector<1x256xf32>
    %52 = arith.addf %44, %51 : vector<1x256xf32>
    %53 = vector.broadcast %37 : vector<1x256xf32> to vector<32x256xf32>
    %54 = arith.subf %29, %53 : vector<32x256xf32>
    %55 = vector.broadcast %37 : vector<1x256xf32> to vector<32x256xf32>
    %56 = arith.subf %29, %55 : vector<32x256xf32>
    %57 = arith.mulf %54, %56 : vector<32x256xf32>
    %cst_17 = arith.constant dense<0.000000e+00> : vector<256xf32>
    %58 = vector.multi_reduction <add>, %57, %cst_17 [0] : vector<32x256xf32> to vector<256xf32>
    %59 = vector.shape_cast %58 : vector<256xf32> to vector<1x256xf32>
    %60 = arith.addf %52, %59 : vector<1x256xf32>
    %61 = vector.broadcast %37 : vector<1x256xf32> to vector<32x256xf32>
    %62 = arith.subf %30, %61 : vector<32x256xf32>
    %63 = vector.broadcast %37 : vector<1x256xf32> to vector<32x256xf32>
    %64 = arith.subf %30, %63 : vector<32x256xf32>
    %65 = arith.mulf %62, %64 : vector<32x256xf32>
    %cst_18 = arith.constant dense<0.000000e+00> : vector<256xf32>
    %66 = vector.multi_reduction <add>, %65, %cst_18 [0] : vector<32x256xf32> to vector<256xf32>
    %67 = vector.shape_cast %66 : vector<256xf32> to vector<1x256xf32>
    %68 = arith.addf %60, %67 : vector<1x256xf32>
    %cst_19 = arith.constant 7.812500e-03 : f32
    %69 = vector.broadcast %cst_19 : f32 to vector<1x256xf32>
    %70 = arith.mulf %68, %69 : vector<1x256xf32>
    %cst_20 = arith.constant 9.99999974E-6 : f32
    %71 = vector.broadcast %cst_20 : f32 to vector<1x256xf32>
    %72 = arith.addf %70, %71 : vector<1x256xf32>
    %73 = math.rsqrt %72 : vector<1x256xf32>
    %c0_21 = arith.constant 0 : index
    %c0_22 = arith.constant 0 : index
    %74 = vector.load %arg4[%c0_21, %c0_22] : memref<1x256xf32, #tpu.memory_space<vmem>>, vector<1x256xf32>
    %75 = arith.mulf %73, %74 : vector<1x256xf32>
    %c0_23 = arith.constant 0 : index
    %c0_24 = arith.constant 0 : index
    %76 = vector.load %arg5[%c0_23, %c0_24] : memref<1x256xf32, #tpu.memory_space<vmem>>, vector<1x256xf32>
    %77 = vector.broadcast %37 : vector<1x256xf32> to vector<32x256xf32>
    %78 = arith.subf %27, %77 : vector<32x256xf32>
    %79 = vector.broadcast %75 : vector<1x256xf32> to vector<32x256xf32>
    %80 = arith.mulf %78, %79 : vector<32x256xf32>
    %81 = vector.broadcast %76 : vector<1x256xf32> to vector<32x256xf32>
    %82 = arith.addf %80, %81 : vector<32x256xf32>
    %c0_25 = arith.constant 0 : index
    %c0_26 = arith.constant 0 : index
    %83 = vector.load %arg6[%c0_25, %c0_26] : memref<32x1024xf32, #tpu.memory_space<vmem>>, vector<32x256xf32>
    tpu.vector_store %arg6[%c0_25, %c0_26], %82 {strides = array<i32>} : memref<32x1024xf32, #tpu.memory_space<vmem>>, vector<32x256xf32>,
    %84 = vector.broadcast %37 : vector<1x256xf32> to vector<32x256xf32>
    %85 = arith.subf %28, %84 : vector<32x256xf32>
    %86 = vector.broadcast %75 : vector<1x256xf32> to vector<32x256xf32>
    %87 = arith.mulf %85, %86 : vector<32x256xf32>
    %88 = vector.broadcast %76 : vector<1x256xf32> to vector<32x256xf32>
    %89 = arith.addf %87, %88 : vector<32x256xf32>
    %c0_27 = arith.constant 0 : index
    %c256 = arith.constant 256 : index
    %90 = vector.load %arg6[%c0_27, %c256] : memref<32x1024xf32, #tpu.memory_space<vmem>>, vector<32x256xf32>
    tpu.vector_store %arg6[%c0_27, %c256], %89 {strides = array<i32>} : memref<32x1024xf32, #tpu.memory_space<vmem>>, vector<32x256xf32>,
    %91 = vector.broadcast %37 : vector<1x256xf32> to vector<32x256xf32>
    %92 = arith.subf %29, %91 : vector<32x256xf32>
    %93 = vector.broadcast %75 : vector<1x256xf32> to vector<32x256xf32>
    %94 = arith.mulf %92, %93 : vector<32x256xf32>
    %95 = vector.broadcast %76 : vector<1x256xf32> to vector<32x256xf32>
    %96 = arith.addf %94, %95 : vector<32x256xf32>
    %c0_28 = arith.constant 0 : index
    %c512 = arith.constant 512 : index
    %97 = vector.load %arg6[%c0_28, %c512] : memref<32x1024xf32, #tpu.memory_space<vmem>>, vector<32x256xf32>
    tpu.vector_store %arg6[%c0_28, %c512], %96 {strides = array<i32>} : memref<32x1024xf32, #tpu.memory_space<vmem>>, vector<32x256xf32>,
    %98 = vector.broadcast %37 : vector<1x256xf32> to vector<32x256xf32>
    %99 = arith.subf %30, %98 : vector<32x256xf32>
    %100 = vector.broadcast %75 : vector<1x256xf32> to vector<32x256xf32>
    %101 = arith.mulf %99, %100 : vector<32x256xf32>
    %102 = vector.broadcast %76 : vector<1x256xf32> to vector<32x256xf32>
    %103 = arith.addf %101, %102 : vector<32x256xf32>
    %c0_29 = arith.constant 0 : index
    %c768 = arith.constant 768 : index
    %104 = vector.load %arg6[%c0_29, %c768] : memref<32x1024xf32, #tpu.memory_space<vmem>>, vector<32x256xf32>
    tpu.vector_store %arg6[%c0_29, %c768], %103 {strides = array<i32>} : memref<32x1024xf32, #tpu.memory_space<vmem>>, vector<32x256xf32>,
    return
  }
}

</mosaic_0001>

<bundles_post_ra>
// kernel: dshared_forward.3
= control target key start
LH: loop header
LB: loop body
LE: loop exit
PB: predicated region body
PF: predicated region fallthrough
CT: control target
= control target key end

     0   :  { %s4923_s3 = inlined_call_operand.vmem [shape: f32[512,1024], index: 3, kind: input, shape index: {}]   ;;  %s4924_s0 = inlined_call_operand.vmem [shape: f32[32,512], index: 0, kind: input, shape index: {}]   ;;  %s4925_s1 = inlined_call_operand.vmem [shape: f32[1,512], index: 1, kind: input, shape index: {}]   ;;  %s4926_s2 = inlined_call_operand.vmem [shape: f32[1,512], index: 2, kind: input, shape index: {}]   ;;  %s4927_s4 = inlined_call_operand.vmem [shape: f32[1,256], index: 4, kind: input, shape index: {}]   ;;  %s4928_s5 = inlined_call_operand.vmem [shape: f32[1,256], index: 5, kind: input, shape index: {}]   ;;  %s4929_s6 = inlined_call_operand.vmem [shape: f32[32,1024], index: 6, kind: output, shape index: {}]  }
   0x1   :  { %v252_v0 = vld [vmem:[%s4923_s3 + $0x8] sm:$0xff]  ;;  %v254_v2 = vld [vmem:[%s4923_s3 + $0x18] sm:$0xff]  ;;  %v251_v5 = vld [vmem:[%s4923_s3] sm:$0xff] }
   0x2   :  { %v260_v1 = vld [vmem:[%s4923_s3 + $0x48] sm:$0xff]  ;;  %v262_v4 = vld [vmem:[%s4923_s3 + $0x58] sm:$0xff]  ;;  %v259_v6 = vld [vmem:[%s4923_s3 + $0x40] sm:$0xff] }
   0x3   :  { %v1833_v3 = vpack.c.bf16 %v260_v1, %v252_v0  ;;  %v1961_v7 = vpack.c.bf16 %v262_v4, %v254_v2  ;;  %v1835_v8 = vpack.c.bf16 %v259_v6, %v251_v5  ;;  %v253_v9 = vld [vmem:[%s4923_s3 + $0x10] sm:$0xff]  ;;  %v268_v11 = vld [vmem:[%s4923_s3 + $0x88] sm:$0xff]  ;;  %v270_v14 = vld [vmem:[%s4923_s3 + $0x98] sm:$0xff] }
   0x4   :  { %v261_v10 = vld [vmem:[%s4923_s3 + $0x50] sm:$0xff]  ;;  %v276_v13 = vld [vmem:[%s4923_s3 + $0xc8] sm:$0xff]  ;;  %v278_v15 = vld [vmem:[%s4923_s3 + $0xd8] sm:$0xff] }
   0x5   :  { %1834 = vmatprep.subr.bf16.mxu0 %v1833_v3  ;;  %v1963_v12 = vpack.c.bf16 %v261_v10, %v253_v9  ;;  %1962 = vmatprep.subr.bf16.mxu1 %v1961_v7  ;;  %v1837_v16 = vpack.c.bf16 %v276_v13, %v268_v11  ;;  %v1965_v17 = vpack.c.bf16 %v278_v15, %v270_v14  ;;  %v267_v18 = vld [vmem:[%s4923_s3 + $0x80] sm:$0xff]  ;;  %v269_v20 = vld [vmem:[%s4923_s3 + $0x90] sm:$0xff]  ;;  %v284_v23 = vld [vmem:[%s4923_s3 + $0x108] sm:$0xff] }
   0x6   :  { %1836 = vmatpush1.bf16.msra.mxu0 %v1835_v8  ;;  %v275_v19 = vld [vmem:[%s4923_s3 + $0xc0] sm:$0xff]  ;;  %v277_v22 = vld [vmem:[%s4923_s3 + $0xd0] sm:$0xff]  ;;  %v292_v24 = vld [vmem:[%s4923_s3 + $0x148] sm:$0xff] }
   0x7   :  { %1964 = vmatpush1.bf16.msra.mxu1 %v1963_v12  ;;  %v1839_v21 = vpack.c.bf16 %v275_v19, %v267_v18  ;;  %1838 = vmatprep.subr.bf16.mxu0 %v1837_v16  ;;  %v1967_v25 = vpack.c.bf16 %v277_v22, %v269_v20  ;;  %v1841_v26 = vpack.c.bf16 %v292_v24, %v284_v23  ;;  %v286_v27 = vld [vmem:[%s4923_s3 + $0x118] sm:$0xff]  ;;  %v283_v29 = vld [vmem:[%s4923_s3 + $0x100] sm:$0xff]  ;;  %v285_v32 = vld [vmem:[%s4923_s3 + $0x110] sm:$0xff] }
   0x8   :  { %1966 = vmatprep.subr.bf16.mxu1 %v1965_v17  ;;  %v294_v28 = vld [vmem:[%s4923_s3 + $0x158] sm:$0xff]  ;;  %v291_v31 = vld [vmem:[%s4923_s3 + $0x140] sm:$0xff]  ;;  %v293_v33 = vld [vmem:[%s4923_s3 + $0x150] sm:$0xff] }
   0x9   :  { %v1969_v30 = vpack.c.bf16 %v294_v28, %v286_v27  ;;  %v1843_v34 = vpack.c.bf16 %v291_v31, %v283_v29  ;;  %v300_v35 = vld [vmem:[%s4923_s3 + $0x188] sm:$0xff]  ;;  %v302_v37 = vld [vmem:[%s4923_s3 + $0x198] sm:$0xff]  ;;  %v1971_v38 = vpack.c.bf16 %v293_v33, %v285_v32  ;;  %v299_v41 = vld [vmem:[%s4923_s3 + $0x180] sm:$0xff] }
   0xa   :  { %1840 = vmatpush1.bf16.msra.mxu0 %v1839_v21  ;;  %v308_v36 = vld [vmem:[%s4923_s3 + $0x1c8] sm:$0xff]  ;;  %v310_v40 = vld [vmem:[%s4923_s3 + $0x1d8] sm:$0xff]  ;;  %v307_v42 = vld [vmem:[%s4923_s3 + $0x1c0] sm:$0xff] }
   0xb   :  { %1968 = vmatpush1.bf16.msra.mxu1 %v1967_v25  ;;  %1842 = vmatprep.subr.bf16.mxu0 %v1841_v26  ;;  %v1845_v39 = vpack.c.bf16 %v308_v36, %v300_v35  ;;  %v1973_v43 = vpack.c.bf16 %v310_v40, %v302_v37  ;;  %v301_v44 = vld [vmem:[%s4923_s3 + $0x190] sm:$0xff]  ;;  %v316_v46 = vld [vmem:[%s4923_s3 + $0x208] sm:$0xff]  ;;  %v318_v48 = vld [vmem:[%s4923_s3 + $0x218] sm:$0xff]  ;;  %v1847_v50 = vpack.c.bf16 %v307_v42, %v299_v41 }
   0xc   :  { %1970 = vmatprep.subr.bf16.mxu1 %v1969_v30  ;;  %v309_v45 = vld [vmem:[%s4923_s3 + $0x1d0] sm:$0xff]  ;;  %v324_v47 = vld [vmem:[%s4923_s3 + $0x248] sm:$0xff]  ;;  %v326_v49 = vld [vmem:[%s4923_s3 + $0x258] sm:$0xff] }
   0xd   :  { %v1975_v51 = vpack.c.bf16 %v309_v45, %v301_v44  ;;  %v1849_v52 = vpack.c.bf16 %v324_v47, %v316_v46  ;;  %v315_v53 = vld [vmem:[%s4923_s3 + $0x200] sm:$0xff]  ;;  %v317_v55 = vld [vmem:[%s4923_s3 + $0x210] sm:$0xff]  ;;  %v1977_v56 = vpack.c.bf16 %v326_v49, %v318_v48  ;;  %v332_v58 = vld [vmem:[%s4923_s3 + $0x288] sm:$0xff] }
   0xe   :  { %1844 = vmatpush1.bf16.msra.mxu0 %v1843_v34  ;;  %v323_v54 = vld [vmem:[%s4923_s3 + $0x240] sm:$0xff]  ;;  %v325_v57 = vld [vmem:[%s4923_s3 + $0x250] sm:$0xff]  ;;  %v340_v59 = vld [vmem:[%s4923_s3 + $0x2c8] sm:$0xff] }
   0xf   :  { %1972 = vmatpush1.bf16.msra.mxu1 %v1971_v38  ;;  %1846 = vmatprep.subr.bf16.mxu0 %v1845_v39  ;;  %v334_v60 = vld [vmem:[%s4923_s3 + $0x298] sm:$0xff]  ;;  %v1851_v62 = vpack.c.bf16 %v323_v54, %v315_v53  ;;  %v1979_v63 = vpack.c.bf16 %v325_v57, %v317_v55  ;;  %v1853_v0 = vpack.c.bf16 %v340_v59, %v332_v58  ;;  %v331_v1 = vld [vmem:[%s4923_s3 + $0x280] sm:$0xff]  ;;  %v333_v3 = vld [vmem:[%s4923_s3 + $0x290] sm:$0xff] }
  0x10   :  { %1974 = vmatprep.subr.bf16.mxu1 %v1973_v43  ;;  %v342_v61 = vld [vmem:[%s4923_s3 + $0x2d8] sm:$0xff]  ;;  %v339_v2 = vld [vmem:[%s4923_s3 + $0x2c0] sm:$0xff]  ;;  %v341_v5 = vld [vmem:[%s4923_s3 + $0x2d0] sm:$0xff] }
  0x11   :  { %v1981_v4 = vpack.c.bf16 %v342_v61, %v334_v60  ;;  %v348_v6 = vld [vmem:[%s4923_s3 + $0x308] sm:$0xff]  ;;  %v350_v8 = vld [vmem:[%s4923_s3 + $0x318] sm:$0xff]  ;;  %v1855_v10 = vpack.c.bf16 %v339_v2, %v331_v1  ;;  %v1983_v11 = vpack.c.bf16 %v341_v5, %v333_v3  ;;  %v347_v13 = vld [vmem:[%s4923_s3 + $0x300] sm:$0xff] }
  0x12   :  { %1848 = vmatpush1.bf16.msra.mxu0 %v1847_v50  ;;  %v356_v7 = vld [vmem:[%s4923_s3 + $0x348] sm:$0xff]  ;;  %v358_v9 = vld [vmem:[%s4923_s3 + $0x358] sm:$0xff]  ;;  %v355_v14 = vld [vmem:[%s4923_s3 + $0x340] sm:$0xff] }
  0x13   :  { %1976 = vmatpush1.bf16.msra.mxu1 %v1975_v51  ;;  %1850 = vmatprep.subr.bf16.mxu0 %v1849_v52  ;;  %v1857_v12 = vpack.c.bf16 %v356_v7, %v348_v6  ;;  %v349_v15 = vld [vmem:[%s4923_s3 + $0x310] sm:$0xff]  ;;  %v1985_v16 = vpack.c.bf16 %v358_v9, %v350_v8  ;;  %v364_v18 = vld [vmem:[%s4923_s3 + $0x388] sm:$0xff]  ;;  %v366_v20 = vld [vmem:[%s4923_s3 + $0x398] sm:$0xff]  ;;  %v1859_v22 = vpack.c.bf16 %v355_v14, %v347_v13 }
  0x14   :  { %1978 = vmatprep.subr.bf16.mxu1 %v1977_v56  ;;  %v357_v17 = vld [vmem:[%s4923_s3 + $0x350] sm:$0xff]  ;;  %v372_v19 = vld [vmem:[%s4923_s3 + $0x3c8] sm:$0xff]  ;;  %v374_v21 = vld [vmem:[%s4923_s3 + $0x3d8] sm:$0xff] }
  0x15   :  { %v1987_v23 = vpack.c.bf16 %v357_v17, %v349_v15  ;;  %v1861_v24 = vpack.c.bf16 %v372_v19, %v364_v18  ;;  %v363_v25 = vld [vmem:[%s4923_s3 + $0x380] sm:$0xff]  ;;  %v365_v27 = vld [vmem:[%s4923_s3 + $0x390] sm:$0xff]  ;;  %v1989_v28 = vpack.c.bf16 %v374_v21, %v366_v20  ;;  %v380_v30 = vld [vmem:[%s4923_s3 + $0x408] sm:$0xff] }
  0x16   :  { %1852 = vmatpush1.bf16.msra.mxu0 %v1851_v62  ;;  %v371_v26 = vld [vmem:[%s4923_s3 + $0x3c0] sm:$0xff]  ;;  %v373_v29 = vld [vmem:[%s4923_s3 + $0x3d0] sm:$0xff]  ;;  %v388_v31 = vld [vmem:[%s4923_s3 + $0x448] sm:$0xff] }
  0x17   :  { %1980 = vmatpush1.bf16.msra.mxu1 %v1979_v63  ;;  %1854 = vmatprep.subr.bf16.mxu0 %v1853_v0  ;;  %v382_v32 = vld [vmem:[%s4923_s3 + $0x418] sm:$0xff]  ;;  %v1863_v34 = vpack.c.bf16 %v371_v26, %v363_v25  ;;  %v1991_v35 = vpack.c.bf16 %v373_v29, %v365_v27  ;;  %v1865_v36 = vpack.c.bf16 %v388_v31, %v380_v30  ;;  %v379_v37 = vld [vmem:[%s4923_s3 + $0x400] sm:$0xff]  ;;  %v381_v39 = vld [vmem:[%s4923_s3 + $0x410] sm:$0xff] }
  0x18   :  { %1982 = vmatprep.subr.bf16.mxu1 %v1981_v4  ;;  %v390_v33 = vld [vmem:[%s4923_s3 + $0x458] sm:$0xff]  ;;  %v387_v38 = vld [vmem:[%s4923_s3 + $0x440] sm:$0xff]  ;;  %v389_v41 = vld [vmem:[%s4923_s3 + $0x450] sm:$0xff]  ;;  %v177_v4 = vlaneseq }
  0x19   :  { %v1993_v40 = vpack.c.bf16 %v390_v33, %v382_v32  ;;  %v396_v42 = vld [vmem:[%s4923_s3 + $0x488] sm:$0xff]  ;;  %v398_v44 = vld [vmem:[%s4923_s3 + $0x498] sm:$0xff]  ;;  %v1867_v46 = vpack.c.bf16 %v387_v38, %v379_v37  ;;  %v1995_v47 = vpack.c.bf16 %v389_v41, %v381_v39  ;;  %v395_v49 = vld [vmem:[%s4923_s3 + $0x480] sm:$0xff] }
  0x1a   :  { %1856 = vmatpush1.bf16.msra.mxu0 %v1855_v10  ;;  %v404_v43 = vld [vmem:[%s4923_s3 + $0x4c8] sm:$0xff]  ;;  %v406_v45 = vld [vmem:[%s4923_s3 + $0x4d8] sm:$0xff]  ;;  %v403_v50 = vld [vmem:[%s4923_s3 + $0x4c0] sm:$0xff]  ;;  %v2729_v20 = vshrl.u32 %v177_v4, 7 }
  0x1b   :  { %1984 = vmatpush1.bf16.msra.mxu1 %v1983_v11  ;;  %1858 = vmatprep.subr.bf16.mxu0 %v1857_v12  ;;  %v1869_v48 = vpack.c.bf16 %v404_v43, %v396_v42  ;;  %v397_v51 = vld [vmem:[%s4923_s3 + $0x490] sm:$0xff]  ;;  %v1997_v52 = vpack.c.bf16 %v406_v45, %v398_v44  ;;  %v412_v54 = vld [vmem:[%s4923_s3 + $0x508] sm:$0xff]  ;;  %v414_v56 = vld [vmem:[%s4923_s3 + $0x518] sm:$0xff]  ;;  %v1871_v58 = vpack.c.bf16 %v403_v50, %v395_v49 }
  0x1c   :  { %1986 = vmatprep.subr.bf16.mxu1 %v1985_v16  ;;  %v405_v53 = vld [vmem:[%s4923_s3 + $0x4d0] sm:$0xff]  ;;  %v420_v55 = vld [vmem:[%s4923_s3 + $0x548] sm:$0xff]  ;;  %v422_v57 = vld [vmem:[%s4923_s3 + $0x558] sm:$0xff]  ;;  %v187_v30 = vsub.s32 2, %v2729_v20 }
  0x1d   :  { %v1999_v59 = vpack.c.bf16 %v405_v53, %v397_v51  ;;  %v1873_v60 = vpack.c.bf16 %v420_v55, %v412_v54  ;;  %v411_v61 = vld [vmem:[%s4923_s3 + $0x500] sm:$0xff]  ;;  %v413_v63 = vld [vmem:[%s4923_s3 + $0x510] sm:$0xff]  ;;  %v2001_v0 = vpack.c.bf16 %v422_v57, %v414_v56  ;;  %v428_v2 = vld [vmem:[%s4923_s3 + $0x588] sm:$0xff] }
  0x1e   :  { %1860 = vmatpush1.bf16.msra.mxu0 %v1859_v22  ;;  %v419_v62 = vld [vmem:[%s4923_s3 + $0x540] sm:$0xff]  ;;  %v421_v1 = vld [vmem:[%s4923_s3 + $0x550] sm:$0xff]  ;;  %v436_v3 = vld [vmem:[%s4923_s3 + $0x5c8] sm:$0xff] }
  0x1f   :  { %1988 = vmatpush1.bf16.msra.mxu1 %v1987_v23  ;;  %1862 = vmatprep.subr.bf16.mxu0 %v1861_v24  ;;  %v430_v5 = vld [vmem:[%s4923_s3 + $0x598] sm:$0xff]  ;;  %v1875_v7 = vpack.c.bf16 %v419_v62, %v411_v61  ;;  %v427_v8 = vld [vmem:[%s4923_s3 + $0x580] sm:$0xff]  ;;  %v429_v10 = vld [vmem:[%s4923_s3 + $0x590] sm:$0xff]  ;;  %v2003_v11 = vpack.c.bf16 %v421_v1, %v413_v63  ;;  %v1877_v12 = vpack.c.bf16 %v436_v3, %v428_v2 }
  0x20   :  { %1990 = vmatprep.subr.bf16.mxu1 %v1989_v28  ;;  %v438_v6 = vld [vmem:[%s4923_s3 + $0x5d8] sm:$0xff]  ;;  %v435_v9 = vld [vmem:[%s4923_s3 + $0x5c0] sm:$0xff]  ;;  %v437_v13 = vld [vmem:[%s4923_s3 + $0x5d0] sm:$0xff] }
  0x21   :  { %v444_v14 = vld [vmem:[%s4923_s3 + $0x608] sm:$0xff]  ;;  %v2005_v16 = vpack.c.bf16 %v438_v6, %v430_v5  ;;  %v446_v17 = vld [vmem:[%s4923_s3 + $0x618] sm:$0xff]  ;;  %v443_v21 = vld [vmem:[%s4923_s3 + $0x600] sm:$0xff]  ;;  %v1879_v25 = vpack.c.bf16 %v435_v9, %v427_v8  ;;  %v2007_v31 = vpack.c.bf16 %v437_v13, %v429_v10 }
  0x22   :  { %1864 = vmatpush1.bf16.msra.mxu0 %v1863_v34  ;;  %v452_v15 = vld [vmem:[%s4923_s3 + $0x648] sm:$0xff]  ;;  %v454_v18 = vld [vmem:[%s4923_s3 + $0x658] sm:$0xff]  ;;  %v451_v22 = vld [vmem:[%s4923_s3 + $0x640] sm:$0xff] }
  0x23   :  { %1992 = vmatpush1.bf16.msra.mxu1 %v1991_v35  ;;  %1866 = vmatprep.subr.bf16.mxu0 %v1865_v36  ;;  %v2727_v19 = vld [vmem:[%s4924_s0 + $0x8] sm:$0xff]  ;;  %v445_v26 = vld [vmem:[%s4923_s3 + $0x610] sm:$0xff]  ;;  %v1881_v32 = vpack.c.bf16 %v452_v15, %v444_v14  ;;  %v462_v34 = vld [vmem:[%s4923_s3 + $0x698] sm:$0xff]  ;;  %v2009_v36 = vpack.c.bf16 %v454_v18, %v446_v17  ;;  %v1883_v45 = vpack.c.bf16 %v451_v22, %v443_v21 }
  0x24   :  { %1994 = vmatprep.subr.bf16.mxu1 %v1993_v40  ;;  %v2740_v23 = vld [vmem:[%s4924_s0 + $0x28] sm:$0xff]  ;;  %v453_v27 = vld [vmem:[%s4923_s3 + $0x650] sm:$0xff]  ;;  %v470_v37 = vld [vmem:[%s4923_s3 + $0x6d8] sm:$0xff] }
  0x25   :  { %v2745_v24 = vld [vmem:[%s4924_s0 + $0x48] sm:$0xff]  ;;  %v48_v29 = vadd.f32 %v2740_v23, %v2727_v19  ;;  %v2777_v39 = vld [vmem:[%s4924_s0] sm:$0xff]  ;;  %v2011_v50 = vpack.c.bf16 %v453_v27, %v445_v26  ;;  %v461_v54 = vld [vmem:[%s4923_s3 + $0x690] sm:$0xff]  ;;  %v2013_v56 = vpack.c.bf16 %v470_v37, %v462_v34 }
  0x26   :  { %1868 = vmatpush1.bf16.msra.mxu0 %v1867_v46  ;;  %v460_v28 = vld [vmem:[%s4923_s3 + $0x688] sm:$0xff]  ;;  %v2782_v40 = vld [vmem:[%s4924_s0 + $0x20] sm:$0xff]  ;;  %v469_v57 = vld [vmem:[%s4923_s3 + $0x6d0] sm:$0xff] }
  0x27   :  { %1996 = vmatpush1.bf16.msra.mxu1 %v1995_v47  ;;  %1870 = vmatprep.subr.bf16.mxu0 %v1869_v48  ;;  %v468_v33 = vld [vmem:[%s4923_s3 + $0x6c8] sm:$0xff]  ;;  %v49_v38 = vadd.f32 %v48_v29, %v2745_v24  ;;  %v2787_v41 = vld [vmem:[%s4925_s1] sm:$0xf]  ;;  %v39_v44 = vadd.f32 %v2782_v40, %v2777_v39  ;;  %v478_v61 = vld [vmem:[%s4923_s3 + $0x718] sm:$0xff]  ;;  %v2015_v2 = vpack.c.bf16 %v469_v57, %v461_v54 }
  0x28   :  { %1998 = vmatprep.subr.bf16.mxu1 %v1997_v52  ;;  %v2768_v35 = vld [vmem:[%s4924_s0 + $0x68] sm:$0xff]  ;;  %v2792_v42 = vld [vmem:[%s4926_s2] sm:$0xf]  ;;  %v2808_v48 = vrot.slane %v2787_v41, %v187_v30  ;;  %v1885_v51 = vpack.c.bf16 %v468_v33, %v460_v28  ;;  %v486_v62 = vld [vmem:[%s4923_s3 + $0x758] sm:$0xff] }
  0x29   :  { %v2797_v43 = vld [vmem:[%s4924_s0 + $0x40] sm:$0xff]  ;;  %v50_v46 = vadd.f32 %v49_v38, %v2768_v35  ;;  %v2811_v49 = vrot.slane %v2792_v42, %v187_v30  ;;  %v477_v6 = vld [vmem:[%s4923_s3 + $0x710] sm:$0xff]  ;;  %v2017_v8 = vpack.c.bf16 %v486_v62, %v478_v61  ;;  %v492_v10 = vld [vmem:[%s4923_s3 + $0x788] sm:$0xff] }
  0x2a   :  { %1872 = vmatpush1.bf16.msra.mxu0 %v1871_v58  ;;  %v2805_v47 = vld [vmem:[%s4924_s0 + $0x60] sm:$0xff]  ;;  %v40_v55 = vadd.f32 %v39_v44, %v2797_v43  ;;  %v476_v58 = vld [vmem:[%s4923_s3 + $0x708] sm:$0xff]  ;;  %v485_v9 = vld [vmem:[%s4923_s3 + $0x750] sm:$0xff] }
  0x2b   :  { %2000 = vmatpush1.bf16.msra.mxu1 %v1999_v59  ;;  %1874 = vmatprep.subr.bf16.mxu0 %v1873_v60  ;;  %v459_v52 = vld [vmem:[%s4923_s3 + $0x680] sm:$0xff]  ;;  %v484_v59 = vld [vmem:[%s4923_s3 + $0x748] sm:$0xff]  ;;  %v51_v60 = vrot.slane %v50_v46, 4  ;;  %v494_v13 = vld [vmem:[%s4923_s3 + $0x798] sm:$0xff]  ;;  %v2019_v18 = vpack.c.bf16 %v485_v9, %v477_v6 }
  0x2c   :  { %2002 = vmatprep.subr.bf16.mxu1 %v2001_v0  ;;  %v467_v53 = vld [vmem:[%s4923_s3 + $0x6c0] sm:$0xff]  ;;  %v41_v63 = vadd.f32 %v40_v55, %v2805_v47  ;;  %v1889_v3 = vpack.c.bf16 %v484_v59, %v476_v58  ;;  %v502_v14 = vld [vmem:[%s4923_s3 + $0x7d8] sm:$0xff]  ;;  %v493_v26 = vld [vmem:[%s4923_s3 + $0x790] sm:$0xff] }
  0x2d   :  { %v1887_v0 = vpack.c.bf16 %v467_v53, %v459_v52  ;;  %v52_v1 = vadd.f32 %v51_v60, %v50_v46  ;;  %v475_v4 = vld [vmem:[%s4923_s3 + $0x700] sm:$0xff]  ;;  %v2021_v28 = vpack.c.bf16 %v502_v14, %v494_v13  ;;  %v501_v29 = vld [vmem:[%s4923_s3 + $0x7d0] sm:$0xff]  ;;  %v510_v33 = vld [vmem:[%s4923_s3 + $0x818] sm:$0xff] }
  0x2e   :  { %1876 = vmatpush1.bf16.msra.mxu0 %v1875_v7  ;;  %v483_v5 = vld [vmem:[%s4923_s3 + $0x740] sm:$0xff]  ;;  %v42_v7 = vrot.slane %v41_v63, 4  ;;  %v518_v34 = vld [vmem:[%s4923_s3 + $0x858] sm:$0xff]  ;;  %v2023_v44 = vpack.c.bf16 %v501_v29, %v493_v26 }
  0x2f   :  { %2004 = vmatpush1.bf16.msra.mxu1 %v2003_v11  ;;  %1878 = vmatprep.subr.bf16.mxu0 %v1877_v12  ;;  %v500_v11 = vld [vmem:[%s4923_s3 + $0x7c8] sm:$0xff]  ;;  %v53_v12 = vrot.slane %v52_v1, 2  ;;  %v491_v22 = vld [vmem:[%s4923_s3 + $0x780] sm:$0xff] }
  0x30   :  { %2006 = vmatprep.subr.bf16.mxu1 %v2005_v16  ;;  %v43_v15 = vadd.f32 %v42_v7, %v41_v63  ;;  %v1891_v16 = vpack.c.bf16 %v483_v5, %v475_v4  ;;  %v1893_v21 = vpack.c.bf16 %v500_v11, %v492_v10 }
  0x31   :  { %v54_v17 = vadd.f32 %v53_v12, %v52_v1 }
  0x32   :  { %1880 = vmatpush1.bf16.msra.mxu0 %v1879_v25  ;;  %v499_v25 = vld [vmem:[%s4923_s3 + $0x7c0] sm:$0xff]  ;;  %v44_v27 = vrot.slane %v43_v15, 2 }
  0x33   :  { %2008 = vmatpush1.bf16.msra.mxu1 %v2007_v31  ;;  %1882 = vmatprep.subr.bf16.mxu0 %v1881_v32  ;;  %v55_v30 = vrot.slane %v54_v17, 1  ;;  %v508_v31 = vld [vmem:[%s4923_s3 + $0x808] sm:$0xff]  ;;  %v1895_v37 = vpack.c.bf16 %v499_v25, %v491_v22  ;;  %v2935_v22 = vld [vmem:[%s4924_s0 + $0x38] sm:$0xff] }
  0x34   :  { %2010 = vmatprep.subr.bf16.mxu1 %v2009_v36  ;;  %v516_v32 = vld [vmem:[%s4923_s3 + $0x848] sm:$0xff]  ;;  %v45_v36 = vadd.f32 %v44_v27, %v43_v15  ;;  %v2940_v25 = vld [vmem:[%s4924_s0 + $0x58] sm:$0xff]  ;;  %v2947_v27 = vld [vmem:[%s4924_s0 + $0x10] sm:$0xff] }
  0x35   :  { %v56_v38 = vadd.f32 %v55_v30, %v54_v17  ;;  %v2957_v30 = vld [vmem:[%s4924_s0 + $0x78] sm:$0xff] }
  0x36   :  { %1884 = vmatpush1.bf16.msra.mxu0 %v1883_v45  ;;  %v1897_v45 = vpack.c.bf16 %v516_v32, %v508_v31  ;;  %v46_v46 = vrot.slane %v45_v36, 1  ;;  %v2962_v31 = vld [vmem:[%s4924_s0 + $0x50] sm:$0xff] }
  0x37   :  { %2012 = vmatpush1.bf16.msra.mxu1 %v2011_v50  ;;  %1886 = vmatprep.subr.bf16.mxu0 %v1885_v51  ;;  %v76_v50 = vmul.f32 0.03125, %v56_v38  ;;  %v2025_v51 = vpack.c.bf16 %v518_v34, %v510_v33  ;;  %v2970_v34 = vld [vmem:[%s4924_s0 + $0x70] sm:$0xff]  ;;  %v2975_v38 = vsub.s32 1, %v2729_v20 }
  0x38   :  { %2014 = vmatprep.subr.bf16.mxu1 %v2013_v56  ;;  %v47_v52 = vadd.f32 %v46_v46, %v45_v36  ;;  %v2979_v46 = vsub.s32 0, %v2729_v20 }
  0x39   :  { %v2888_v53 = vsub.f32 %v2727_v19, %v76_v50  ;;  %v2891_v54 = vsub.f32 %v2740_v23, %v76_v50  ;;  %v2894_v55 = vsub.f32 %v2745_v24, %v76_v50  ;;  %v2897_v56 = vsub.f32 %v2768_v35, %v76_v50 }
  0x3a   :  { %1888 = vmatpush1.bf16.msra.mxu0 %v1887_v0  ;;  %v75_v57 = vmul.f32 0.03125, %v47_v52  ;;  %v2989_v52 = vld [vmem:[%s4923_s3 + $0x840] sm:$0xff] }
  0x3b   :  { %2016 = vmatpush1.bf16.msra.mxu1 %v2015_v2  ;;  %1890 = vmatprep.subr.bf16.mxu0 %v1889_v3  ;;  %v96_v58 = vmul.f32 %v2888_v53, %v2888_v53  ;;  %v100_v59 = vmul.f32 %v2891_v54, %v2891_v54  ;;  %v104_v19 = vmul.f32 %v2894_v55, %v2894_v55 }
  0x3c   :  { %2018 = vmatprep.subr.bf16.mxu1 %v2017_v8  ;;  %v2906_v23 = vsub.f32 %v2777_v39, %v75_v57  ;;  %v2909_v24 = vsub.f32 %v2782_v40, %v75_v57  ;;  %v2912_v35 = vsub.f32 %v2797_v43, %v75_v57  ;;  %v2915_v60 = vsub.f32 %v2805_v47, %v75_v57  ;;  %v2994_v57 = vld [vmem:[%s4923_s3 + $0x810] sm:$0xff] }
  0x3d   :  { %v108_v61 = vmul.f32 %v2897_v56, %v2897_v56  ;;  %v120_v62 = vadd.f32 %v100_v59, %v96_v58  ;;  %v184_v59 = vrot.slane %v2787_v41, %v2975_v38 }
  0x3e   :  { %1892 = vmatpush1.bf16.msra.mxu0 %v1891_v16  ;;  %v95_v63 = vmul.f32 %v2906_v23, %v2906_v23  ;;  %v99_v39 = vmul.f32 %v2909_v24, %v2909_v24  ;;  %v103_v40 = vmul.f32 %v2912_v35, %v2912_v35  ;;  %v107_v43 = vmul.f32 %v2915_v60, %v2915_v60 }
  0x3f   :  { %2020 = vmatpush1.bf16.msra.mxu1 %v2019_v18  ;;  %1894 = vmatprep.subr.bf16.mxu0 %v1893_v21  ;;  %v121_v0 = vadd.f32 %v120_v62, %v104_v19  ;;  %v2930_v21 = vld [vmem:[%s4924_s0 + $0x18] sm:$0xff]  ;;  %v3001_v19 = vld [vmem:[%s4923_s3 + $0x850] sm:$0xff]  ;;  %v3011_v62 = vld [vmem:[%s4923_s3 + $0x8c8] sm:$0xff] }
  0x40   :  { %2022 = vmatprep.subr.bf16.mxu1 %v2021_v28  ;;  %v111_v1 = vadd.f32 %v99_v39, %v95_v63  ;;  %v66_v26 = vadd.f32 %v2935_v22, %v2930_v21  ;;  %v2952_v28 = vld [vmem:[%s4924_s0 + $0x30] sm:$0xff] }
  0x41   :  { %v122_v47 = vadd.f32 %v121_v0, %v108_v61  ;;  %v57_v32 = vadd.f32 %v2952_v28, %v2947_v27  ;;  %v3006_v61 = vld [vmem:[%s4923_s3 + $0x888] sm:$0xff]  ;;  %v3021_v0 = vld [vmem:[%s4923_s3 + $0x8d8] sm:$0xff] }
  0x42   :  { %1896 = vmatpush1.bf16.msra.mxu0 %v1895_v37  ;;  %v112_v2 = vadd.f32 %v111_v1, %v103_v40  ;;  %v67_v33 = vadd.f32 %v66_v26, %v2940_v25  ;;  %v3016_v40 = vld [vmem:[%s4923_s3 + $0x898] sm:$0xff] }
  0x43   :  { %2024 = vmatpush1.bf16.msra.mxu1 %v2023_v44  ;;  %1898 = vmatprep.subr.bf16.mxu0 %v1897_v45  ;;  %v123_v3 = vrot.slane %v122_v47, 4  ;;  %v58_v36 = vadd.f32 %v57_v32, %v2962_v31  ;;  %v3084_v26 = vld [vmem:[%s4923_s3 + $0x958] sm:$0xff]  ;;  %v3094_v32 = vld [vmem:[%s4923_s3 + $0x940] sm:$0xff] }
  0x44   :  { %2026 = vmatprep.subr.bf16.mxu1 %v2025_v51  ;;  %v113_v4 = vadd.f32 %v112_v2, %v107_v43  ;;  %v68_v37 = vadd.f32 %v67_v33, %v2957_v30  ;;  %v2984_v51 = vld [vmem:[%s4923_s3 + $0x800] sm:$0xff]  ;;  %v3030_v2 = vrot.slane %v2787_v41, %v2979_v46 }
  0x45   :  { %v124_v5 = vadd.f32 %v123_v3, %v122_v47  ;;  %v59_v44 = vadd.f32 %v58_v36, %v2970_v34  ;;  %v3026_v47 = vrot.slane %v2792_v42, %v2975_v38  ;;  %v3035_v3 = vld [vmem:[%s4923_s3 + $0x880] sm:$0xff] }
  0x46   :  { %v114_v6 = vrot.slane %v113_v4, 4  ;;  %v69_v45 = vrot.slane %v68_v37, 4 }
  0x47   :  { %v125_v7 = vrot.slane %v124_v5, 2  ;;  %v60_v50 = vrot.slane %v59_v44, 4 }
  0x48   :  { %v115_v8 = vadd.f32 %v114_v6, %v113_v4  ;;  %v70_v58 = vadd.f32 %v69_v45, %v68_v37  ;;  %v2027_v6 = vpack.c.bf16 %v3001_v19, %v2994_v57  ;;  %v3127_v57 = vld [vmem:[%s4923_s3 + $0x9c8] sm:$0xff] }
  0x49   :  { %v126_v9 = vadd.f32 %v125_v7, %v124_v5  ;;  %v61_v63 = vadd.f32 %v60_v50, %v59_v44  ;;  %v3040_v5 = vrot.slane %v2792_v42, %v2979_v46  ;;  %v1901_v7 = vpack.c.bf16 %v3011_v62, %v3006_v61  ;;  %v3109_v50 = vld [vmem:[%s4923_s3 + $0x910] sm:$0xff] }
  0x4a   :  { %v116_v10 = vrot.slane %v115_v8, 2  ;;  %v71_v43 = vrot.slane %v70_v58, 2 }
  0x4b   :  { %v127_v11 = vrot.slane %v126_v9, 1 }
  0x4c   :  { %v117_v12 = vadd.f32 %v116_v10, %v115_v8  ;;  %v3051_v8 = vld [vmem:[%s4923_s3 + $0x8c0] sm:$0xff] }
  0x4d   :  { %v128_v13 = vadd.f32 %v127_v11, %v126_v9  ;;  %v3061_v9 = vld [vmem:[%s4923_s3 + $0x8d0] sm:$0xff]  ;;  %v1903_v44 = vpack.c.bf16 %v3051_v8, %v3035_v3  ;;  %v3155_v3 = vld [vmem:[%s4923_s3 + $0x980] sm:$0xff] }
  0x4e   :  { %v118_v14 = vrot.slane %v117_v12, 1 }
  0x4f   :  { %v148_v15 = vmul.f32 0.03125, %v128_v13  ;;  %v3068_v13 = vld [vmem:[%s4923_s3 + $0x908] sm:$0xff] }
  0x50   :  { %v119_v16 = vadd.f32 %v118_v14, %v117_v12  ;;  %v2029_v12 = vpack.c.bf16 %v3021_v0, %v3016_v40  ;;  %v3073_v14 = vld [vmem:[%s4923_s3 + $0x948] sm:$0xff] }
  0x51   :  { %v152_v17 = vadd.f32 1e-05, %v148_v15  ;;  %v3078_v15 = vld [vmem:[%s4923_s3 + $0x918] sm:$0xff] }
  0x52   :  { %v147_v18 = vmul.f32 0.03125, %v119_v16  ;;  %v72_v16 = vadd.f32 %v71_v43, %v70_v58  ;;  %v2033_v61 = vpack.c.bf16 %v3084_v26, %v3078_v15 }
  0x53   :  { %2377 = vrsqrt.f32 %v152_v17  ;;  %v62_v17 = vrot.slane %v61_v63, 2 }
  0x54   :  { %v151_v29 = vadd.f32 1e-05, %v147_v18  ;;  %v73_v40 = vrot.slane %v72_v16, 1 }
  0x55   :  { %v63_v0 = vadd.f32 %v62_v17, %v61_v63  ;;  %v3160_v63 = vld [vmem:[%s4923_s3 + $0x9c0] sm:$0xff] }
  0x56   :  { %2379 = vrsqrt.f32 %v151_v29  ;;  %v3089_v29 = vld [vmem:[%s4923_s3 + $0x900] sm:$0xff] }
  0x57   :  { %v1907_v62 = vpack.c.bf16 %v3094_v32, %v3089_v29  ;;  %v64_v15 = vrot.slane %v63_v0, 1  ;;  %v573_v32 = vld [vmem:[%s4923_s3 + $0xa10] sm:$0xff] }
  0x5d   :  { %v2378_v39 = vpop.eup %2377 }
  0x5e   :  { %v160_v1 = vmul.f32 %v2378_v39, %v2888_v53  ;;  %v164_v4 = vmul.f32 %v2378_v39, %v2891_v54  ;;  %v1899_v53 = vpack.c.bf16 %v2989_v52, %v2984_v51  ;;  %v3056_v54 = vld [vmem:[%s4923_s3 + $0x890] sm:$0xff]  ;;  %v168_v36 = vmul.f32 %v2378_v39, %v2894_v55  ;;  %v3122_v52 = vld [vmem:[%s4923_s3 + $0x988] sm:$0xff] }
  0x5f   :  { %v2031_v45 = vpack.c.bf16 %v3061_v9, %v3056_v54  ;;  %v3114_v55 = vld [vmem:[%s4923_s3 + $0x950] sm:$0xff]  ;;  %v1905_v51 = vpack.c.bf16 %v3073_v14, %v3068_v13  ;;  %v1909_v54 = vpack.c.bf16 %v3127_v57, %v3122_v52  ;;  %v74_v14 = vadd.f32 %v73_v40, %v72_v16  ;;  %v596_v52 = vld [vmem:[%s4923_s3 + $0xac8] sm:$0xff]  ;;  %v590_v57 = vld [vmem:[%s4923_s3 + $0xa98] sm:$0xff] }
  0x60   :  { %v2380_v10 = vpop.eup %2379  ;;  %v198_v11 = vmul.f32 %v184_v59, %v160_v1  ;;  %v3150_v1 = vld [vmem:[%s4923_s3 + $0x9d8] sm:$0xff]  ;;  %v3167_v9 = vld [vmem:[%s4923_s3 + $0x990] sm:$0xff]  ;;  %v1911_v16 = vpack.c.bf16 %v3160_v63, %v3155_v3 }
  0x61   :  { %v159_v18 = vmul.f32 %v2380_v10, %v2906_v23  ;;  %v163_v33 = vmul.f32 %v2380_v10, %v2909_v24  ;;  %v172_v23 = vmul.f32 %v2378_v39, %v2897_v56  ;;  %v202_v56 = vmul.f32 %v184_v59, %v164_v4  ;;  %v3140_v39 = vld [vmem:[%s4923_s3 + $0x998] sm:$0xff]  ;;  %v589_v3 = vld [vmem:[%s4923_s3 + $0xa90] sm:$0xff] }
  0x62   :  { %v3100_v37 = vadd.f32 %v3026_v47, %v198_v11  ;;  %v167_v19 = vmul.f32 %v2380_v10, %v2912_v35  ;;  %v2035_v35 = vpack.c.bf16 %v3114_v55, %v3109_v50  ;;  %v206_v4 = vmul.f32 %v184_v59, %v168_v36  ;;  %v3172_v11 = vld [vmem:[%s4923_s3 + $0x9d0] sm:$0xff]  ;;  %v588_v55 = vld [vmem:[%s4923_s3 + $0xa88] sm:$0xff] }
  0x63   :  { %v197_v24 = vmul.f32 %v3030_v2, %v159_v18  ;;  %v201_v58 = vmul.f32 %v3030_v2, %v163_v33  ;;  %v210_v8 = vmul.f32 %v184_v59, %v172_v23  ;;  %v3175_v13 = vadd.f32 %v3026_v47, %v202_v56  ;;  %v581_v50 = vld [vmem:[%s4923_s3 + $0xa50] sm:$0xff] }
  0x64   :  { %827 = vmatprep.mubr.f32.mxu0 %v3100_v37  ;;  %1005 = vmatprep.mubr.f32.mxu1 %v3100_v37  ;;  %v205_v17 = vmul.f32 %v3030_v2, %v167_v19  ;;  %v171_v18 = vmul.f32 %v2380_v10, %v2915_v60  ;;  %v2037_v26 = vpack.c.bf16 %v3150_v1, %v3140_v39  ;;  %v78_v33 = vmul.f32 0.03125, %v74_v14  ;;  %v582_v19 = vld [vmem:[%s4923_s3 + $0xa58] sm:$0xff]  ;;  %v597_v63 = vld [vmem:[%s4923_s3 + $0xad0] sm:$0xff] }
  0x65   :  { %v3143_v43 = vadd.f32 %v3040_v5, %v197_v24  ;;  %v3180_v59 = vadd.f32 %v3040_v5, %v201_v58  ;;  %v65_v36 = vadd.f32 %v64_v15, %v63_v0  ;;  %v2039_v23 = vpack.c.bf16 %v3172_v11, %v3167_v9  ;;  %v587_v15 = vld [vmem:[%s4923_s3 + $0xa80] sm:$0xff] }
  0x66   :  { %v3191_v56 = vadd.f32 %v3026_v47, %v206_v4  ;;  %v3194_v60 = vadd.f32 %v3026_v47, %v210_v8  ;;  %v3210_v47 = vadd.f32 %v3040_v5, %v205_v17  ;;  %v3214_v24 = vsub.f32 %v2957_v30, %v78_v33  ;;  %v580_v30 = vld [vmem:[%s4923_s3 + $0xa48] sm:$0xff]  ;;  %v598_v8 = vld [vmem:[%s4923_s3 + $0xad8] sm:$0xff]  ;;  %v595_v17 = vld [vmem:[%s4923_s3 + $0xac0] sm:$0xff] }
  0x67   :  { %828 = vmatmul.mubr.f32.vlgmr.msra.gmra.mrb[0].mxu0 %v3143_v43  ;;  %1006 = vmatmul.mubr.f32.vlgmr.msra.gmra.mrb[0].mxu1 %v3143_v43  ;;  %v77_v10 = vmul.f32 0.03125, %v65_v36  ;;  %v2043_v14 = vpack.c.bf16 %v581_v50, %v573_v32 }
  0x68   :  { %1900 = vmatpush1.bf16.msra.mxu0 %v1899_v53  ;;  %2028 = vmatpush1.bf16.msra.mxu1 %v2027_v6  ;;  %v3199_v53 = vsub.f32 %v2930_v21, %v78_v33  ;;  %v3202_v6 = vsub.f32 %v2935_v22, %v78_v33 }
  0x69   :  { %1902 = vmatprep.subr.bf16.mxu0 %v1901_v7  ;;  %2030 = vmatprep.subr.bf16.mxu1 %v2029_v12  ;;  %v3205_v7 = vsub.f32 %v2940_v25, %v78_v33  ;;  %v209_v12 = vmul.f32 %v3030_v2, %v171_v18  ;;  %v572_v2 = vld [vmem:[%s4923_s3 + $0xa08] sm:$0xff]  ;;  %v3234_v58 = vsub.f32 %v2952_v28, %v77_v10 }
  0x6a   :  { %833 = vmatprep.mubr.f32.mxu0 %v3175_v13  ;;  %1011 = vmatprep.mubr.f32.mxu1 %v3175_v13  ;;  %v98_v21 = vmul.f32 %v3199_v53, %v3199_v53  ;;  %v102_v22 = vmul.f32 %v3202_v6, %v3202_v6  ;;  %v3245_v39 = vsub.f32 %v2962_v31, %v77_v10 }
  0x6b   :  { %834 = vmatmul.mubr.f32.gmra.mrb[2].mxu0 %v3180_v59  ;;  %1012 = vmatmul.mubr.f32.gmra.mrb[2].mxu1 %v3180_v59  ;;  %v106_v25 = vmul.f32 %v3205_v7, %v3205_v7  ;;  %v3253_v28 = vadd.f32 %v3040_v5, %v209_v12  ;;  %v101_v0 = vmul.f32 %v3234_v58, %v3234_v58  ;;  %v579_v5 = vld [vmem:[%s4923_s3 + $0xa40] sm:$0xff]  ;;  %v614_v12 = vld [vmem:[%s4923_s3 + $0xb58] sm:$0xff] }
  0x6c   :  { %1904 = vmatpush1.bf16.msra.mxu0 %v1903_v44  ;;  %2032 = vmatpush1.bf16.msra.mxu1 %v2031_v45  ;;  %v110_v44 = vmul.f32 %v3214_v24, %v3214_v24  ;;  %v3231_v45 = vsub.f32 %v2947_v27, %v77_v10  ;;  %v3248_v27 = vsub.f32 %v2970_v34, %v77_v10  ;;  %v571_v34 = vld [vmem:[%s4923_s3 + $0xa00] sm:$0xff]  ;;  %v606_v10 = vld [vmem:[%s4923_s3 + $0xb18] sm:$0xff] }
  0x6d   :  { %1906 = vmatprep.subr.bf16.mxu0 %v1905_v51  ;;  %2034 = vmatprep.subr.bf16.mxu1 %v2033_v61  ;;  %v574_v51 = vld [vmem:[%s4923_s3 + $0xa18] sm:$0xff]  ;;  %v138_v61 = vadd.f32 %v102_v22, %v98_v21  ;;  %v1913_v31 = vpack.c.bf16 %v580_v30, %v572_v2  ;;  %v105_v4 = vmul.f32 %v3245_v39, %v3245_v39  ;;  %v603_v30 = vld [vmem:[%s4923_s3 + $0xb00] sm:$0xff] }
  0x6e   :  { %839 = vmatprep.mubr.f32.mxu0 %v3191_v56  ;;  %1017 = vmatprep.mubr.f32.mxu1 %v3191_v56  ;;  %v97_v40 = vmul.f32 %v3231_v45, %v3231_v45  ;;  %v2041_v29 = vpack.c.bf16 %v582_v19, %v574_v51  ;;  %v1915_v11 = vpack.c.bf16 %v579_v5, %v571_v34  ;;  %v628_v5 = vld [vmem:[%s4923_s3 + $0xbc8] sm:$0xff] }
  0x6f   :  { %840 = vmatmul.mubr.f32.gmra.mrb[4].mxu0 %v3210_v47  ;;  %1018 = vmatmul.mubr.f32.gmra.mrb[4].mxu1 %v3210_v47  ;;  %v139_v1 = vadd.f32 %v138_v61, %v106_v25  ;;  %v2045_v33 = vpack.c.bf16 %v598_v8, %v590_v57  ;;  %v1919_v25 = vpack.c.bf16 %v595_v17, %v587_v15  ;;  %v644_v15 = vld [vmem:[%s4923_s3 + $0xc48] sm:$0xff]  ;;  %v638_v17 = vld [vmem:[%s4923_s3 + $0xc18] sm:$0xff] }
  0x70   :  { %1908 = vmatpush1.bf16.msra.mxu0 %v1907_v62  ;;  %2036 = vmatpush1.bf16.msra.mxu1 %v2035_v35  ;;  %v109_v62 = vmul.f32 %v3248_v27, %v3248_v27  ;;  %v129_v35 = vadd.f32 %v101_v0, %v97_v40  ;;  %v2047_v2 = vpack.c.bf16 %v597_v63, %v589_v3  ;;  %v605_v40 = vld [vmem:[%s4923_s3 + $0xb10] sm:$0xff] }
  0x71   :  { %1910 = vmatprep.subr.bf16.mxu0 %v1909_v54  ;;  %2038 = vmatprep.subr.bf16.mxu1 %v2037_v26  ;;  %v140_v54 = vadd.f32 %v139_v1, %v110_v44  ;;  %v1917_v26 = vpack.c.bf16 %v596_v52, %v588_v55  ;;  %v611_v44 = vld [vmem:[%s4923_s3 + $0xb40] sm:$0xff]  ;;  %v2049_v61 = vpack.c.bf16 %v614_v12, %v606_v10  ;;  %v613_v0 = vld [vmem:[%s4923_s3 + $0xb50] sm:$0xff]  ;;  %v622_v1 = vld [vmem:[%s4923_s3 + $0xb98] sm:$0xff] }
  0x72   :  { %845 = vmatprep.mubr.f32.mxu0 %v3194_v60  ;;  %1023 = vmatprep.mubr.f32.mxu1 %v3194_v60  ;;  %v130_v9 = vadd.f32 %v129_v35, %v105_v4  ;;  %v630_v4 = vld [vmem:[%s4923_s3 + $0xbd8] sm:$0xff]  ;;  %v1923_v50 = vpack.c.bf16 %v611_v44, %v603_v30  ;;  %v2051_v55 = vpack.c.bf16 %v613_v0, %v605_v40  ;;  %v627_v35 = vld [vmem:[%s4923_s3 + $0xbc0] sm:$0xff]  ;;  %v660_v30 = vld [vmem:[%s4923_s3 + $0xcc8] sm:$0xff] }
  0x73   :  { %846 = vmatmul.mubr.f32.gmra.mrb[6].mxu0 %v3253_v28  ;;  %1024 = vmatmul.mubr.f32.gmra.mrb[6].mxu1 %v3253_v28  ;;  %v141_v18 = vrot.slane %v140_v54, 4  ;;  %v2053_v8 = vpack.c.bf16 %v630_v4, %v622_v1  ;;  %v654_v44 = vld [vmem:[%s4923_s3 + $0xc98] sm:$0xff]  ;;  %v653_v4 = vld [vmem:[%s4923_s3 + $0xc90] sm:$0xff] }
  0x74   :  { %1912 = vmatpush1.bf16.msra.mxu0 %v1911_v16  ;;  %2040 = vmatpush1.bf16.msra.mxu1 %v2039_v23  ;;  %v604_v16 = vld [vmem:[%s4923_s3 + $0xb08] sm:$0xff]  ;;  %v131_v36 = vadd.f32 %v130_v9, %v109_v62  ;;  %v619_v62 = vld [vmem:[%s4923_s3 + $0xb80] sm:$0xff]  ;;  %v629_v9 = vld [vmem:[%s4923_s3 + $0xbd0] sm:$0xff] }
  0x75   :  { %1914 = vmatprep.subr.bf16.mxu0 %v1913_v31  ;;  %2042 = vmatprep.subr.bf16.mxu1 %v2041_v29  ;;  %v612_v23 = vld [vmem:[%s4923_s3 + $0xb48] sm:$0xff]  ;;  %v142_v21 = vadd.f32 %v141_v18, %v140_v54  ;;  %v621_v54 = vld [vmem:[%s4923_s3 + $0xb90] sm:$0xff]  ;;  %v646_v18 = vld [vmem:[%s4923_s3 + $0xc58] sm:$0xff]  ;;  %v1927_v3 = vpack.c.bf16 %v627_v35, %v619_v62 }
  0x76   :  { %v132_v22 = vrot.slane %v131_v36, 4  ;;  %v1921_v19 = vpack.c.bf16 %v612_v23, %v604_v16  ;;  %v620_v31 = vld [vmem:[%s4923_s3 + $0xb88] sm:$0xff]  ;;  %v2055_v63 = vpack.c.bf16 %v629_v9, %v621_v54  ;;  %v635_v16 = vld [vmem:[%s4923_s3 + $0xc00] sm:$0xff]  ;;  %v2057_v12 = vpack.c.bf16 %v646_v18, %v638_v17  ;;  %v670_v62 = vld [vmem:[%s4923_s3 + $0xd18] sm:$0xff] }
  0x77   :  { %v143_v51 = vrot.slane %v142_v21, 2  ;;  %v1925_v57 = vpack.c.bf16 %v628_v5, %v620_v31  ;;  %v651_v31 = vld [vmem:[%s4923_s3 + $0xc80] sm:$0xff]  ;;  %v678_v35 = vld [vmem:[%s4923_s3 + $0xd58] sm:$0xff]  ;;  %v684_v17 = vld [vmem:[%s4923_s3 + $0xd88] sm:$0xff]  ;;  %v191_v18 = vsub.s32 3, %v2729_v20 }
  0x78   :  { %1916 = vmatpush1.bf16.msra.mxu0 %v1915_v11  ;;  %2044 = vmatpush1.bf16.msra.mxu1 %v2043_v14  ;;  %v133_v34 = vadd.f32 %v132_v22, %v131_v36  ;;  %v636_v11 = vld [vmem:[%s4923_s3 + $0xc08] sm:$0xff]  ;;  %v643_v36 = vld [vmem:[%s4923_s3 + $0xc40] sm:$0xff]  ;;  %v645_v22 = vld [vmem:[%s4923_s3 + $0xc50] sm:$0xff] }
  0x79   :  { %1918 = vmatprep.subr.bf16.mxu0 %v1917_v26  ;;  %2046 = vmatprep.subr.bf16.mxu1 %v2045_v33  ;;  %v144_v29 = vadd.f32 %v143_v51, %v142_v21  ;;  %v1929_v10 = vpack.c.bf16 %v644_v15, %v636_v11  ;;  %v637_v21 = vld [vmem:[%s4923_s3 + $0xc10] sm:$0xff]  ;;  %v662_v51 = vld [vmem:[%s4923_s3 + $0xcd8] sm:$0xff]  ;;  %v1931_v40 = vpack.c.bf16 %v643_v36, %v635_v16  ;;  %v675_v54 = vld [vmem:[%s4923_s3 + $0xd40] sm:$0xff] }
  0x7a   :  { %v134_v32 = vrot.slane %v133_v34, 2  ;;  %v2059_v0 = vpack.c.bf16 %v645_v22, %v637_v21  ;;  %v2061_v1 = vpack.c.bf16 %v662_v51, %v654_v44  ;;  %v2065_v11 = vpack.c.bf16 %v678_v35, %v670_v62  ;;  %v677_v15 = vld [vmem:[%s4923_s3 + $0xd50] sm:$0xff]  ;;  %v683_v20 = vld [vmem:[%s4923_s3 + $0xd80] sm:$0xff]  ;;  %v700_v22 = vld [vmem:[%s4923_s3 + $0xe08] sm:$0xff] }
  0x7b   :  { %v145_v52 = vrot.slane %v144_v29, 1  ;;  %v691_v36 = vld [vmem:[%s4923_s3 + $0xdc0] sm:$0xff]  ;;  %v693_v21 = vld [vmem:[%s4923_s3 + $0xdd0] sm:$0xff]  ;;  %v702_v44 = vld [vmem:[%s4923_s3 + $0xe18] sm:$0xff] }
  0x7c   :  { %1920 = vmatpush1.bf16.msra.mxu0 %v1919_v25  ;;  %2048 = vmatpush1.bf16.msra.mxu1 %v2047_v2  ;;  %v135_v14 = vadd.f32 %v134_v32, %v133_v34  ;;  %v652_v25 = vld [vmem:[%s4923_s3 + $0xc88] sm:$0xff]  ;;  %v659_v34 = vld [vmem:[%s4923_s3 + $0xcc0] sm:$0xff]  ;;  %v710_v51 = vld [vmem:[%s4923_s3 + $0xe58] sm:$0xff] }
  0x7d   :  { %1922 = vmatprep.subr.bf16.mxu0 %v1921_v19  ;;  %2050 = vmatprep.subr.bf16.mxu1 %v2049_v61  ;;  %v146_v26 = vadd.f32 %v145_v52, %v144_v29  ;;  %v1933_v5 = vpack.c.bf16 %v660_v30, %v652_v25  ;;  %v661_v29 = vld [vmem:[%s4923_s3 + $0xcd0] sm:$0xff]  ;;  %v668_v32 = vld [vmem:[%s4923_s3 + $0xd08] sm:$0xff]  ;;  %v1935_v52 = vpack.c.bf16 %v659_v34, %v651_v31  ;;  %v707_v31 = vld [vmem:[%s4923_s3 + $0xe40] sm:$0xff] }
  0x7e   :  { %v136_v33 = vrot.slane %v135_v14, 1  ;;  %v3464_v25 = vrot.slane %v2787_v41, %v191_v18  ;;  %v708_v30 = vld [vmem:[%s4923_s3 + $0xe48] sm:$0xff]  ;;  %v701_v34 = vld [vmem:[%s4923_s3 + $0xe10] sm:$0xff] }
  0x7f   :  { %v150_v23 = vmul.f32 0.03125, %v146_v26  ;;  %v692_v26 = vld [vmem:[%s4923_s3 + $0xdc8] sm:$0xff] }
  0x80   :  { %1924 = vmatpush1.bf16.msra.mxu0 %v1923_v50  ;;  %2052 = vmatpush1.bf16.msra.mxu1 %v2051_v55  ;;  %v137_v2 = vadd.f32 %v136_v33, %v135_v14  ;;  %v676_v55 = vld [vmem:[%s4923_s3 + $0xd48] sm:$0xff]  ;;  %v669_v14 = vld [vmem:[%s4923_s3 + $0xd10] sm:$0xff]  ;;  %v686_v33 = vld [vmem:[%s4923_s3 + $0xd98] sm:$0xff] }
  0x81   :  { %1926 = vmatprep.subr.bf16.mxu0 %v1925_v57  ;;  %2054 = vmatprep.subr.bf16.mxu1 %v2053_v8  ;;  %v154_v19 = vadd.f32 1e-05, %v150_v23  ;;  %v2063_v57 = vpack.c.bf16 %v661_v29, %v653_v4  ;;  %v667_v8 = vld [vmem:[%s4923_s3 + $0xd00] sm:$0xff]  ;;  %v1937_v9 = vpack.c.bf16 %v676_v55, %v668_v32  ;;  %v2067_v16 = vpack.c.bf16 %v677_v15, %v669_v14  ;;  %v716_v4 = vld [vmem:[%s4923_s3 + $0xe88] sm:$0xff]  ;;  %v726_v55 = vld [vmem:[%s4923_s3 + $0xed8] sm:$0xff] }
  0x82   :  { %v149_v61 = vmul.f32 0.03125, %v137_v2  ;;  %v1941_v23 = vpack.c.bf16 %v692_v26, %v684_v17  ;;  %v724_v32 = vld [vmem:[%s4923_s3 + $0xec8] sm:$0xff]  ;;  %v717_v17 = vld [vmem:[%s4923_s3 + $0xe90] sm:$0xff] }
  0x83   :  { %2381 = vrsqrt.f32 %v154_v19  ;;  %v699_v19 = vld [vmem:[%s4923_s3 + $0xe00] sm:$0xff]  ;;  %v1949_v15 = vpack.c.bf16 %v724_v32, %v716_v4  ;;  %v732_v26 = vld [vmem:[%s4923_s3 + $0xf08] sm:$0xff] }
  0x84   :  { %1928 = vmatpush1.bf16.msra.mxu0 %v1927_v3  ;;  %2056 = vmatpush1.bf16.msra.mxu1 %v2055_v63  ;;  %v153_v50 = vadd.f32 1e-05, %v149_v61  ;;  %v694_v3 = vld [vmem:[%s4923_s3 + $0xdd8] sm:$0xff]  ;;  %v1939_v63 = vpack.c.bf16 %v675_v54, %v667_v8  ;;  %v3483_v61 = vrot.slane %v2792_v42, %v191_v18  ;;  %v1945_v42 = vpack.c.bf16 %v708_v30, %v700_v22  ;;  %v725_v18 = vld [vmem:[%s4923_s3 + $0xed0] sm:$0xff]  ;;  %v739_v22 = vld [vmem:[%s4923_s3 + $0xf40] sm:$0xff] }
  0x85   :  { %1930 = vmatprep.subr.bf16.mxu0 %v1929_v10  ;;  %2058 = vmatprep.subr.bf16.mxu1 %v2057_v12  ;;  %v2069_v10 = vpack.c.bf16 %v694_v3, %v686_v33  ;;  %v685_v12 = vld [vmem:[%s4923_s3 + $0xd90] sm:$0xff]  ;;  %v740_v3 = vld [vmem:[%s4923_s3 + $0xf48] sm:$0xff] }
  0x86   :  { %2383 = vrsqrt.f32 %v153_v50  ;;  %v718_v50 = vld [vmem:[%s4923_s3 + $0xe98] sm:$0xff]  ;;  %v1953_v30 = vpack.c.bf16 %v740_v3, %v732_v26  ;;  %v256_v32 = vld [vmem:[%s4923_s3 + $0x28] sm:$0xff] }
  0x88   :  { %1932 = vmatpush1.bf16.msra.mxu0 %v1931_v40  ;;  %2060 = vmatpush1.bf16.msra.mxu1 %v2059_v0  ;;  %v1943_v40 = vpack.c.bf16 %v691_v36, %v683_v20  ;;  %v2071_v0 = vpack.c.bf16 %v693_v21, %v685_v12  ;;  %v2079_v12 = vpack.c.bf16 %v725_v18, %v717_v17  ;;  %v731_v21 = vld [vmem:[%s4923_s3 + $0xf00] sm:$0xff]  ;;  %v274_v17 = vld [vmem:[%s4923_s3 + $0xb8] sm:$0xff] }
  0x89   :  { %1934 = vmatprep.subr.bf16.mxu0 %v1933_v5  ;;  %2062 = vmatprep.subr.bf16.mxu1 %v2061_v1  ;;  %v709_v5 = vld [vmem:[%s4923_s3 + $0xe50] sm:$0xff]  ;;  %v2073_v1 = vpack.c.bf16 %v710_v51, %v702_v44  ;;  %v282_v18 = vld [vmem:[%s4923_s3 + $0xf8] sm:$0xff] }
  0x8a   :  { %v2075_v8 = vpack.c.bf16 %v709_v5, %v701_v34  ;;  %v741_v51 = vld [vmem:[%s4923_s3 + $0xf50] sm:$0xff]  ;;  %v747_v5 = vld [vmem:[%s4923_s3 + $0xf80] sm:$0xff] }
  0x8c   :  { %1936 = vmatpush1.bf16.msra.mxu0 %v1935_v52  ;;  %2064 = vmatpush1.bf16.msra.mxu1 %v2063_v57  ;;  %v1947_v57 = vpack.c.bf16 %v707_v31, %v699_v19  ;;  %v748_v19 = vld [vmem:[%s4923_s3 + $0xf88] sm:$0xff]  ;;  %v1955_v31 = vpack.c.bf16 %v739_v22, %v731_v21 }
  0x8d   :  { %1938 = vmatprep.subr.bf16.mxu0 %v1937_v9  ;;  %2066 = vmatprep.subr.bf16.mxu1 %v2065_v11  ;;  %v3466_v2 = vpop.eup %2381  ;;  %v715_v11 = vld [vmem:[%s4923_s3 + $0xe80] sm:$0xff] }
  0x8e   :  { %v162_v41 = vmul.f32 %v3466_v2, %v3199_v53  ;;  %v174_v21 = vmul.f32 %v3466_v2, %v3214_v24  ;;  %v298_v24 = vld [vmem:[%s4923_s3 + $0x178] sm:$0xff] }
  0x90   :  { %1940 = vmatpush1.bf16.msra.mxu0 %v1939_v63  ;;  %2068 = vmatpush1.bf16.msra.mxu1 %v2067_v16  ;;  %v2384_v53 = vpop.eup %2383  ;;  %v200_v29 = vmul.f32 %v3464_v25, %v162_v41  ;;  %v734_v63 = vld [vmem:[%s4923_s3 + $0xf18] sm:$0xff]  ;;  %v756_v41 = vld [vmem:[%s4923_s3 + $0xfc8] sm:$0xff] }
  0x91   :  { %1942 = vmatprep.subr.bf16.mxu0 %v1941_v23  ;;  %2070 = vmatprep.subr.bf16.mxu1 %v2069_v10  ;;  %v161_v62 = vmul.f32 %v2384_v53, %v3231_v45  ;;  %v165_v35 = vmul.f32 %v2384_v53, %v3234_v58  ;;  %v169_v52 = vmul.f32 %v2384_v53, %v3245_v39  ;;  %v723_v45 = vld [vmem:[%s4923_s3 + $0xec0] sm:$0xff]  ;;  %v742_v16 = vld [vmem:[%s4923_s3 + $0xf58] sm:$0xff] }
  0x92   :  { %v3511_v54 = vadd.f32 %v3483_v61, %v200_v29  ;;  %v173_v9 = vmul.f32 %v2384_v53, %v3248_v27  ;;  %v2077_v27 = vpack.c.bf16 %v726_v55, %v718_v50  ;;  %v1951_v10 = vpack.c.bf16 %v723_v45, %v715_v11  ;;  %v755_v53 = vld [vmem:[%s4923_s3 + $0xfc0] sm:$0xff]  ;;  %v757_v29 = vld [vmem:[%s4923_s3 + $0xfd0] sm:$0xff]  ;;  %v264_v50 = vld [vmem:[%s4923_s3 + $0x68] sm:$0xff] }
  0x93   :  { %v199_v58 = vmul.f32 %v2808_v48, %v161_v62  ;;  %v203_v39 = vmul.f32 %v2808_v48, %v165_v35  ;;  %v207_v14 = vmul.f32 %v2808_v48, %v169_v52  ;;  %v2081_v44 = vpack.c.bf16 %v742_v16, %v734_v63  ;;  %v258_v62 = vld [vmem:[%s4923_s3 + $0x38] sm:$0xff]  ;;  %v263_v11 = vld [vmem:[%s4923_s3 + $0x60] sm:$0xff]  ;;  %v257_v45 = vld [vmem:[%s4923_s3 + $0x30] sm:$0xff] }
  0x94   :  { %1944 = vmatpush1.bf16.msra.mxu0 %v1943_v40  ;;  %2072 = vmatpush1.bf16.msra.mxu1 %v2071_v0  ;;  %v211_v33 = vmul.f32 %v2808_v48, %v173_v9  ;;  %v750_v40 = vld [vmem:[%s4923_s3 + $0xf98] sm:$0xff]  ;;  %v166_v55 = vmul.f32 %v3466_v2, %v3202_v6  ;;  %v1959_v52 = vpack.c.bf16 %v755_v53, %v747_v5  ;;  %v255_v9 = vld [vmem:[%s4923_s3 + $0x20] sm:$0xff]  ;;  %v273_v16 = vld [vmem:[%s4923_s3 + $0xb0] sm:$0xff] }
  0x95   :  { %1946 = vmatprep.subr.bf16.mxu0 %v1945_v42  ;;  %2074 = vmatprep.subr.bf16.mxu1 %v2073_v1  ;;  %v3545_v20 = vadd.f32 %v2811_v49, %v199_v58  ;;  %v3548_v48 = vadd.f32 %v2811_v49, %v203_v39  ;;  %v3551_v36 = vadd.f32 %v2811_v49, %v207_v14  ;;  %v758_v0 = vld [vmem:[%s4923_s3 + $0xfd8] sm:$0xff]  ;;  %v749_v42 = vld [vmem:[%s4923_s3 + $0xf90] sm:$0xff]  ;;  %v279_v63 = vld [vmem:[%s4923_s3 + $0xe0] sm:$0xff] }
  0x96   :  { %916 = vmatprep.mubr.f32.mxu0 %v3511_v54  ;;  %1094 = vmatprep.mubr.f32.mxu1 %v3511_v54  ;;  %v3554_v23 = vadd.f32 %v2811_v49, %v211_v33  ;;  %v733_v49 = vld [vmem:[%s4923_s3 + $0xf10] sm:$0xff]  ;;  %v1957_v1 = vpack.c.bf16 %v756_v41, %v748_v19  ;;  %v2085_v4 = vpack.c.bf16 %v758_v0, %v750_v40  ;;  %v266_v35 = vld [vmem:[%s4923_s3 + $0x78] sm:$0xff]  ;;  %v271_v33 = vld [vmem:[%s4923_s3 + $0xa0] sm:$0xff] }
  0x97   :  { %v2083_v34 = vpack.c.bf16 %v741_v51, %v733_v49  ;;  %v2217_v6 = vpack.c.bf16 %v266_v35, %v258_v62  ;;  %v265_v58 = vld [vmem:[%s4923_s3 + $0x70] sm:$0xff]  ;;  %v204_v39 = vmul.f32 %v3464_v25, %v166_v55  ;;  %v170_v14 = vmul.f32 %v3466_v2, %v3205_v7  ;;  %v296_v49 = vld [vmem:[%s4923_s3 + $0x168] sm:$0xff]  ;;  %v290_v51 = vld [vmem:[%s4923_s3 + $0x138] sm:$0xff] }
  0x98   :  { %1948 = vmatpush1.bf16.msra.mxu0 %v1947_v57  ;;  %2076 = vmatpush1.bf16.msra.mxu1 %v2075_v8  ;;  %v2087_v57 = vpack.c.bf16 %v757_v29, %v749_v42  ;;  %v2089_v8 = vpack.c.bf16 %v264_v50, %v256_v32  ;;  %v2091_v26 = vpack.c.bf16 %v263_v11, %v255_v9  ;;  %v287_v41 = vld [vmem:[%s4923_s3 + $0x120] sm:$0xff]  ;;  %v314_v29 = vld [vmem:[%s4923_s3 + $0x1f8] sm:$0xff] }
  0x99   :  { %1950 = vmatprep.subr.bf16.mxu0 %v1949_v15  ;;  %2078 = vmatprep.subr.bf16.mxu1 %v2077_v27  ;;  %v272_v15 = vld [vmem:[%s4923_s3 + $0xa8] sm:$0xff]  ;;  %v2219_v7 = vpack.c.bf16 %v265_v58, %v257_v45  ;;  %v3637_v3 = vadd.f32 %v3483_v61, %v204_v39  ;;  %v2095_v2 = vpack.c.bf16 %v279_v63, %v271_v33  ;;  %v295_v0 = vld [vmem:[%s4923_s3 + $0x160] sm:$0xff]  ;;  %v322_v11 = vld [vmem:[%s4923_s3 + $0x238] sm:$0xff] }
  0x9a   :  { %v280_v27 = vld [vmem:[%s4923_s3 + $0xe8] sm:$0xff]  ;;  %v212_v5 = vmul.f32 %v3464_v25, %v174_v21  ;;  %v2225_v42 = vpack.c.bf16 %v298_v24, %v290_v51  ;;  %v2099_v32 = vpack.c.bf16 %v295_v0, %v287_v41  ;;  %v303_v55 = vld [vmem:[%s4923_s3 + $0x1a0] sm:$0xff]  ;;  %v330_v45 = vld [vmem:[%s4923_s3 + $0x278] sm:$0xff] }
  0x9b   :  { %v2093_v22 = vpack.c.bf16 %v280_v27, %v272_v15  ;;  %v311_v62 = vld [vmem:[%s4923_s3 + $0x1e0] sm:$0xff]  ;;  %v344_v33 = vld [vmem:[%s4923_s3 + $0x2e8] sm:$0xff]  ;;  %v338_v63 = vld [vmem:[%s4923_s3 + $0x2b8] sm:$0xff] }
  0x9c   :  { %1952 = vmatpush1.bf16.msra.mxu0 %v1951_v10  ;;  %2080 = vmatpush1.bf16.msra.mxu1 %v2079_v12  ;;  %v281_v10 = vld [vmem:[%s4923_s3 + $0xf0] sm:$0xff]  ;;  %v208_v12 = vmul.f32 %v3464_v25, %v170_v14  ;;  %v306_v25 = vld [vmem:[%s4923_s3 + $0x1b8] sm:$0xff]  ;;  %v3706_v35 = vadd.f32 %v3483_v61, %v212_v5  ;;  %v2103_v58 = vpack.c.bf16 %v311_v62, %v303_v55  ;;  %v319_v14 = vld [vmem:[%s4923_s3 + $0x220] sm:$0xff] }
  0x9d   :  { %1954 = vmatprep.subr.bf16.mxu0 %v1953_v30  ;;  %2082 = vmatprep.subr.bf16.mxu1 %v2081_v44  ;;  %v2221_v30 = vpack.c.bf16 %v282_v18, %v274_v17  ;;  %v288_v44 = vld [vmem:[%s4923_s3 + $0x128] sm:$0xff]  ;;  %v2223_v19 = vpack.c.bf16 %v281_v10, %v273_v16  ;;  %v327_v15 = vld [vmem:[%s4923_s3 + $0x260] sm:$0xff]  ;;  %v2233_v17 = vpack.c.bf16 %v330_v45, %v322_v11  ;;  %v321_v18 = vld [vmem:[%s4923_s3 + $0x230] sm:$0xff] }
  0x9e   :  { %v3671_v40 = vadd.f32 %v3483_v61, %v208_v12  ;;  %v2097_v53 = vpack.c.bf16 %v296_v49, %v288_v44  ;;  %v328_v61 = vld [vmem:[%s4923_s3 + $0x268] sm:$0xff]  ;;  %v346_v16 = vld [vmem:[%s4923_s3 + $0x2f8] sm:$0xff]  ;;  %v2107_v10 = vpack.c.bf16 %v327_v15, %v319_v14  ;;  %v335_v21 = vld [vmem:[%s4923_s3 + $0x2a0] sm:$0xff] }
  0x9f   :  { %v2237_v44 = vpack.c.bf16 %v346_v16, %v338_v63  ;;  %v337_v49 = vld [vmem:[%s4923_s3 + $0x2b0] sm:$0xff]  ;;  %v352_v24 = vld [vmem:[%s4923_s3 + $0x328] sm:$0xff]  ;;  %v362_v41 = vld [vmem:[%s4923_s3 + $0x378] sm:$0xff] }
  0xa0   :  { %1956 = vmatpush1.bf16.msra.mxu0 %v1955_v31  ;;  %2084 = vmatpush1.bf16.msra.mxu1 %v2083_v34  ;;  %v289_v31 = vld [vmem:[%s4923_s3 + $0x130] sm:$0xff]  ;;  %v359_v5 = vld [vmem:[%s4923_s3 + $0x360] sm:$0xff]  ;;  %v392_v11 = vld [vmem:[%s4923_s3 + $0x468] sm:$0xff] }
  0xa1   :  { %1958 = vmatprep.subr.bf16.mxu0 %v1957_v1  ;;  %2086 = vmatprep.subr.bf16.mxu1 %v2085_v4  ;;  %v297_v34 = vld [vmem:[%s4923_s3 + $0x170] sm:$0xff]  ;;  %v304_v1 = vld [vmem:[%s4923_s3 + $0x1a8] sm:$0xff]  ;;  %v367_v62 = vld [vmem:[%s4923_s3 + $0x3a0] sm:$0xff] }
  0xa2   :  { %v312_v4 = vld [vmem:[%s4923_s3 + $0x1e8] sm:$0xff]  ;;  %v2227_v50 = vpack.c.bf16 %v297_v34, %v289_v31  ;;  %v345_v51 = vld [vmem:[%s4923_s3 + $0x2f0] sm:$0xff]  ;;  %v351_v34 = vld [vmem:[%s4923_s3 + $0x320] sm:$0xff] }
  0xa3   :  { %v2101_v9 = vpack.c.bf16 %v312_v4, %v304_v1  ;;  %v2239_v31 = vpack.c.bf16 %v345_v51, %v337_v49  ;;  %v361_v1 = vld [vmem:[%s4923_s3 + $0x370] sm:$0xff]  ;;  %v368_v4 = vld [vmem:[%s4923_s3 + $0x3a8] sm:$0xff]  ;;  %v386_v45 = vld [vmem:[%s4923_s3 + $0x438] sm:$0xff] }
  0xa4   :  { %1960 = vmatpush1.bf16.msra.mxu0 %v1959_v52  ;;  %2088 = vmatpush1.bf16.msra.mxu1 %v2087_v57  ;;  %v305_v52 = vld [vmem:[%s4923_s3 + $0x1b0] sm:$0xff]  ;;  %v383_v15 = vld [vmem:[%s4923_s3 + $0x420] sm:$0xff]  ;;  %v408_v63 = vld [vmem:[%s4923_s3 + $0x4e8] sm:$0xff] }
  0xa5   :  { %2090 = vmatprep.subr.bf16.mxu0 %v2089_v8  ;;  %2218 = vmatprep.subr.bf16.mxu1 %v2217_v6  ;;  %v313_v57 = vld [vmem:[%s4923_s3 + $0x1f0] sm:$0xff]  ;;  %v320_v8 = vld [vmem:[%s4923_s3 + $0x228] sm:$0xff]  ;;  %v2229_v6 = vpack.c.bf16 %v314_v29, %v306_v25  ;;  %v370_v29 = vld [vmem:[%s4923_s3 + $0x3b8] sm:$0xff] }
  0xa6   :  { %v2231_v39 = vpack.c.bf16 %v313_v57, %v305_v52  ;;  %v2105_v27 = vpack.c.bf16 %v328_v61, %v320_v8  ;;  %v376_v25 = vld [vmem:[%s4923_s3 + $0x3e8] sm:$0xff]  ;;  %v375_v52 = vld [vmem:[%s4923_s3 + $0x3e0] sm:$0xff]  ;;  %v402_v16 = vld [vmem:[%s4923_s3 + $0x4b8] sm:$0xff] }
  0xa7   :  { %917 = vmatmul.mubr.f32.vlgmr.msra.gmra.mrb[0].mxu0 %v3545_v20  ;;  %1095 = vmatmul.mubr.f32.vlgmr.msra.gmra.mrb[0].mxu1 %v3545_v20  ;;  %v2117_v57 = vpack.c.bf16 %v376_v25, %v368_v4  ;;  %v384_v61 = vld [vmem:[%s4923_s3 + $0x428] sm:$0xff]  ;;  %v401_v51 = vld [vmem:[%s4923_s3 + $0x4b0] sm:$0xff] }
  0xa8   :  { %2092 = vmatpush1.bf16.msra.mxu0 %v2091_v26  ;;  %2220 = vmatpush1.bf16.msra.mxu1 %v2219_v7  ;;  %v329_v26 = vld [vmem:[%s4923_s3 + $0x270] sm:$0xff]  ;;  %v336_v7 = vld [vmem:[%s4923_s3 + $0x2a8] sm:$0xff] }
  0xa9   :  { %922 = vmatprep.mubr.f32.mxu0 %v3637_v3  ;;  %1100 = vmatprep.mubr.f32.mxu1 %v3637_v3  ;;  %v2235_v12 = vpack.c.bf16 %v329_v26, %v321_v18  ;;  %v385_v26 = vld [vmem:[%s4923_s3 + $0x430] sm:$0xff]  ;;  %v432_v25 = vld [vmem:[%s4923_s3 + $0x5a8] sm:$0xff] }
  0xaa   :  { %2094 = vmatprep.subr.bf16.mxu0 %v2093_v22  ;;  %2222 = vmatprep.subr.bf16.mxu1 %v2221_v30  ;;  %v343_v22 = vld [vmem:[%s4923_s3 + $0x2e0] sm:$0xff]  ;;  %v2109_v30 = vpack.c.bf16 %v344_v33, %v336_v7  ;;  %v393_v7 = vld [vmem:[%s4923_s3 + $0x470] sm:$0xff]  ;;  %v400_v33 = vld [vmem:[%s4923_s3 + $0x4a8] sm:$0xff] }
  0xab   :  { %923 = vmatmul.mubr.f32.gmra.mrb[2].mxu0 %v3548_v48  ;;  %1101 = vmatmul.mubr.f32.gmra.mrb[2].mxu1 %v3548_v48  ;;  %v2111_v0 = vpack.c.bf16 %v343_v22, %v335_v21  ;;  %v2251_v21 = vpack.c.bf16 %v393_v7, %v385_v26  ;;  %v399_v22 = vld [vmem:[%s4923_s3 + $0x4a0] sm:$0xff]  ;;  %v425_v4 = vld [vmem:[%s4923_s3 + $0x570] sm:$0xff] }
  0xac   :  { %2096 = vmatpush1.bf16.msra.mxu0 %v2095_v2  ;;  %2224 = vmatpush1.bf16.msra.mxu1 %v2223_v19  ;;  %v360_v2 = vld [vmem:[%s4923_s3 + $0x368] sm:$0xff]  ;;  %v354_v19 = vld [vmem:[%s4923_s3 + $0x338] sm:$0xff]  ;;  %v449_v7 = vld [vmem:[%s4923_s3 + $0x630] sm:$0xff] }
  0xad   :  { %928 = vmatprep.mubr.f32.mxu0 %v3671_v40  ;;  %1106 = vmatprep.mubr.f32.mxu1 %v3671_v40 }
  0xae   :  { %2098 = vmatprep.subr.bf16.mxu0 %v2097_v53  ;;  %2226 = vmatprep.subr.bf16.mxu1 %v2225_v42  ;;  %v2113_v53 = vpack.c.bf16 %v360_v2, %v352_v24  ;;  %v2241_v42 = vpack.c.bf16 %v362_v41, %v354_v19  ;;  %v409_v24 = vld [vmem:[%s4923_s3 + $0x4f0] sm:$0xff]  ;;  %v416_v2 = vld [vmem:[%s4923_s3 + $0x528] sm:$0xff]  ;;  %v418_v41 = vld [vmem:[%s4923_s3 + $0x538] sm:$0xff] }
  0xaf   :  { %929 = vmatmul.mubr.f32.gmra.mrb[4].mxu0 %v3551_v36  ;;  %1107 = vmatmul.mubr.f32.gmra.mrb[4].mxu1 %v3551_v36  ;;  %v424_v19 = vld [vmem:[%s4923_s3 + $0x568] sm:$0xff] }
  0xb0   :  { %2100 = vmatpush1.bf16.msra.mxu0 %v2099_v32  ;;  %2228 = vmatpush1.bf16.msra.mxu1 %v2227_v50  ;;  %v378_v32 = vld [vmem:[%s4923_s3 + $0x3f8] sm:$0xff]  ;;  %v2115_v50 = vpack.c.bf16 %v359_v5, %v351_v34  ;;  %v2255_v34 = vpack.c.bf16 %v409_v24, %v401_v51  ;;  %v415_v5 = vld [vmem:[%s4923_s3 + $0x520] sm:$0xff]  ;;  %v465_v24 = vld [vmem:[%s4923_s3 + $0x6b0] sm:$0xff] }
  0xb1   :  { %934 = vmatprep.mubr.f32.mxu0 %v3706_v35  ;;  %1112 = vmatprep.mubr.f32.mxu1 %v3706_v35  ;;  %v2245_v8 = vpack.c.bf16 %v378_v32, %v370_v29  ;;  %v440_v29 = vld [vmem:[%s4923_s3 + $0x5e8] sm:$0xff]  ;;  %v434_v32 = vld [vmem:[%s4923_s3 + $0x5b8] sm:$0xff] }
  0xb2   :  { %2102 = vmatprep.subr.bf16.mxu0 %v2101_v9  ;;  %2230 = vmatprep.subr.bf16.mxu1 %v2229_v6  ;;  %v369_v9 = vld [vmem:[%s4923_s3 + $0x3b0] sm:$0xff] }
  0xb3   :  { %935 = vmatmul.mubr.f32.gmra.mrb[6].mxu0 %v3554_v23  ;;  %1113 = vmatmul.mubr.f32.gmra.mrb[6].mxu1 %v3554_v23  ;;  %v377_v6 = vld [vmem:[%s4923_s3 + $0x3f0] sm:$0xff] }
  0xb4   :  { %2104 = vmatpush1.bf16.msra.mxu0 %v2103_v58  ;;  %2232 = vmatpush1.bf16.msra.mxu1 %v2231_v39  ;;  %v394_v58 = vld [vmem:[%s4923_s3 + $0x478] sm:$0xff]  ;;  %v2119_v39 = vpack.c.bf16 %v375_v52, %v367_v62  ;;  %v2247_v14 = vpack.c.bf16 %v377_v6, %v369_v9  ;;  %v431_v52 = vld [vmem:[%s4923_s3 + $0x5a0] sm:$0xff]  ;;  %v433_v6 = vld [vmem:[%s4923_s3 + $0x5b0] sm:$0xff] }
  0xb5   :  { %2106 = vmatprep.subr.bf16.mxu0 %v2105_v27  ;;  %2234 = vmatprep.subr.bf16.mxu1 %v2233_v17  ;;  %v391_v27 = vld [vmem:[%s4923_s3 + $0x460] sm:$0xff]  ;;  %v2121_v17 = vpack.c.bf16 %v392_v11, %v384_v61  ;;  %v2249_v18 = vpack.c.bf16 %v394_v58, %v386_v45  ;;  %v441_v61 = vld [vmem:[%s4923_s3 + $0x5f0] sm:$0xff]  ;;  %v448_v11 = vld [vmem:[%s4923_s3 + $0x628] sm:$0xff] }
  0xb6   :  { %1183 = vmatprep.mubr.f32.mxu0 %v3100_v37  ;;  %1361 = vmatprep.mubr.f32.mxu1 %v3100_v37  ;;  %v353_v37 = vld [vmem:[%s4923_s3 + $0x330] sm:$0xff]  ;;  %v456_v45 = vld [vmem:[%s4923_s3 + $0x668] sm:$0xff]  ;;  %v450_v58 = vld [vmem:[%s4923_s3 + $0x638] sm:$0xff] }
  0xb7   :  { %v2243_v55 = vpack.c.bf16 %v361_v1, %v353_v37  ;;  %v417_v1 = vld [vmem:[%s4923_s3 + $0x530] sm:$0xff] }
  0xb8   :  { %2108 = vmatpush1.bf16.msra.mxu0 %v2107_v10  ;;  %2236 = vmatpush1.bf16.msra.mxu1 %v2235_v12  ;;  %v410_v10 = vld [vmem:[%s4923_s3 + $0x4f8] sm:$0xff]  ;;  %v2123_v12 = vpack.c.bf16 %v391_v27, %v383_v15  ;;  %v2259_v62 = vpack.c.bf16 %v425_v4, %v417_v1  ;;  %v2263_v15 = vpack.c.bf16 %v441_v61, %v433_v6  ;;  %v447_v27 = vld [vmem:[%s4923_s3 + $0x620] sm:$0xff]  ;;  %v481_v4 = vld [vmem:[%s4923_s3 + $0x730] sm:$0xff] }
  0xb9   :  { %2110 = vmatprep.subr.bf16.mxu0 %v2109_v30  ;;  %2238 = vmatprep.subr.bf16.mxu1 %v2237_v44  ;;  %v407_v30 = vld [vmem:[%s4923_s3 + $0x4e0] sm:$0xff]  ;;  %v2125_v44 = vpack.c.bf16 %v408_v63, %v400_v33  ;;  %v2253_v49 = vpack.c.bf16 %v410_v10, %v402_v16  ;;  %v457_v33 = vld [vmem:[%s4923_s3 + $0x670] sm:$0xff]  ;;  %v464_v63 = vld [vmem:[%s4923_s3 + $0x6a8] sm:$0xff] }
  0xba   :  { %v472_v16 = vld [vmem:[%s4923_s3 + $0x6e8] sm:$0xff]  ;;  %v466_v10 = vld [vmem:[%s4923_s3 + $0x6b8] sm:$0xff]  ;;  %v497_v61 = vld [vmem:[%s4923_s3 + $0x7b0] sm:$0xff] }
  0xbc   :  { %2112 = vmatpush1.bf16.msra.mxu0 %v2111_v0  ;;  %2240 = vmatpush1.bf16.msra.mxu1 %v2239_v31  ;;  %v426_v0 = vld [vmem:[%s4923_s3 + $0x578] sm:$0xff]  ;;  %v2127_v31 = vpack.c.bf16 %v407_v30, %v399_v22  ;;  %v2267_v22 = vpack.c.bf16 %v457_v33, %v449_v7  ;;  %v463_v30 = vld [vmem:[%s4923_s3 + $0x6a0] sm:$0xff]  ;;  %v513_v33 = vld [vmem:[%s4923_s3 + $0x830] sm:$0xff] }
  0xbd   :  { %2114 = vmatprep.subr.bf16.mxu0 %v2113_v53  ;;  %2242 = vmatprep.subr.bf16.mxu1 %v2241_v42  ;;  %v423_v53 = vld [vmem:[%s4923_s3 + $0x560] sm:$0xff]  ;;  %v2129_v42 = vpack.c.bf16 %v424_v19, %v416_v2  ;;  %v2257_v37 = vpack.c.bf16 %v426_v0, %v418_v41  ;;  %v473_v2 = vld [vmem:[%s4923_s3 + $0x6f0] sm:$0xff]  ;;  %v480_v19 = vld [vmem:[%s4923_s3 + $0x728] sm:$0xff] }
  0xbe   :  { %v488_v41 = vld [vmem:[%s4923_s3 + $0x768] sm:$0xff]  ;;  %v482_v0 = vld [vmem:[%s4923_s3 + $0x738] sm:$0xff] }
  0xc0   :  { %2116 = vmatpush1.bf16.msra.mxu0 %v2115_v50  ;;  %2244 = vmatpush1.bf16.msra.mxu1 %v2243_v55  ;;  %v442_v50 = vld [vmem:[%s4923_s3 + $0x5f8] sm:$0xff]  ;;  %v2131_v55 = vpack.c.bf16 %v423_v53, %v415_v5  ;;  %v2271_v5 = vpack.c.bf16 %v473_v2, %v465_v24  ;;  %v479_v53 = vld [vmem:[%s4923_s3 + $0x720] sm:$0xff]  ;;  %v529_v2 = vld [vmem:[%s4923_s3 + $0x8b0] sm:$0xff] }
  0xc1   :  { %2118 = vmatprep.subr.bf16.mxu0 %v2117_v57  ;;  %2246 = vmatprep.subr.bf16.mxu1 %v2245_v8  ;;  %v439_v57 = vld [vmem:[%s4923_s3 + $0x5e0] sm:$0xff]  ;;  %v2133_v8 = vpack.c.bf16 %v440_v29, %v432_v25  ;;  %v2261_v9 = vpack.c.bf16 %v442_v50, %v434_v32  ;;  %v489_v25 = vld [vmem:[%s4923_s3 + $0x770] sm:$0xff]  ;;  %v496_v29 = vld [vmem:[%s4923_s3 + $0x7a8] sm:$0xff] }
  0xc2   :  { %v504_v32 = vld [vmem:[%s4923_s3 + $0x7e8] sm:$0xff]  ;;  %v498_v50 = vld [vmem:[%s4923_s3 + $0x7b8] sm:$0xff] }
  0xc4   :  { %2120 = vmatpush1.bf16.msra.mxu0 %v2119_v39  ;;  %2248 = vmatpush1.bf16.msra.mxu1 %v2247_v14  ;;  %v458_v39 = vld [vmem:[%s4923_s3 + $0x678] sm:$0xff]  ;;  %v2135_v14 = vpack.c.bf16 %v439_v57, %v431_v52  ;;  %v2275_v52 = vpack.c.bf16 %v489_v25, %v481_v4  ;;  %v495_v57 = vld [vmem:[%s4923_s3 + $0x7a0] sm:$0xff]  ;;  %v553_v25 = vld [vmem:[%s4923_s3 + $0x970] sm:$0xff] }
  0xc5   :  { %2122 = vmatprep.subr.bf16.mxu0 %v2121_v17  ;;  %2250 = vmatprep.subr.bf16.mxu1 %v2249_v18  ;;  %v455_v17 = vld [vmem:[%s4923_s3 + $0x660] sm:$0xff]  ;;  %v2137_v18 = vpack.c.bf16 %v456_v45, %v448_v11  ;;  %v2265_v26 = vpack.c.bf16 %v458_v39, %v450_v58  ;;  %v505_v11 = vld [vmem:[%s4923_s3 + $0x7f0] sm:$0xff]  ;;  %v512_v45 = vld [vmem:[%s4923_s3 + $0x828] sm:$0xff] }
  0xc6   :  { %v520_v58 = vld [vmem:[%s4923_s3 + $0x868] sm:$0xff]  ;;  %v514_v39 = vld [vmem:[%s4923_s3 + $0x838] sm:$0xff] }
  0xc8   :  { %2124 = vmatpush1.bf16.msra.mxu0 %v2123_v12  ;;  %2252 = vmatpush1.bf16.msra.mxu1 %v2251_v21  ;;  %v474_v12 = vld [vmem:[%s4923_s3 + $0x6f8] sm:$0xff]  ;;  %v2139_v21 = vpack.c.bf16 %v455_v17, %v447_v27  ;;  %v2279_v27 = vpack.c.bf16 %v505_v11, %v497_v61  ;;  %v511_v17 = vld [vmem:[%s4923_s3 + $0x820] sm:$0xff]  ;;  %v576_v61 = vld [vmem:[%s4923_s3 + $0xa28] sm:$0xff] }
  0xc9   :  { %2126 = vmatprep.subr.bf16.mxu0 %v2125_v44  ;;  %2254 = vmatprep.subr.bf16.mxu1 %v2253_v49  ;;  %v471_v44 = vld [vmem:[%s4923_s3 + $0x6e0] sm:$0xff]  ;;  %v2141_v49 = vpack.c.bf16 %v472_v16, %v464_v63  ;;  %v2269_v51 = vpack.c.bf16 %v474_v12, %v466_v10  ;;  %v521_v63 = vld [vmem:[%s4923_s3 + $0x870] sm:$0xff]  ;;  %v528_v16 = vld [vmem:[%s4923_s3 + $0x8a8] sm:$0xff] }
  0xca   :  { %v536_v10 = vld [vmem:[%s4923_s3 + $0x8e8] sm:$0xff]  ;;  %v530_v12 = vld [vmem:[%s4923_s3 + $0x8b8] sm:$0xff] }
  0xcb   :  { %v584_v11 = vld [vmem:[%s4923_s3 + $0xa68] sm:$0xff] }
  0xcc   :  { %2128 = vmatpush1.bf16.msra.mxu0 %v2127_v31  ;;  %2256 = vmatpush1.bf16.msra.mxu1 %v2255_v34  ;;  %v490_v31 = vld [vmem:[%s4923_s3 + $0x778] sm:$0xff]  ;;  %v2143_v34 = vpack.c.bf16 %v471_v44, %v463_v30  ;;  %v2283_v30 = vpack.c.bf16 %v521_v63, %v513_v33  ;;  %v527_v44 = vld [vmem:[%s4923_s3 + $0x8a0] sm:$0xff] }
  0xcd   :  { %2130 = vmatprep.subr.bf16.mxu0 %v2129_v42  ;;  %2258 = vmatprep.subr.bf16.mxu1 %v2257_v37  ;;  %v487_v42 = vld [vmem:[%s4923_s3 + $0x760] sm:$0xff]  ;;  %v2145_v37 = vpack.c.bf16 %v488_v41, %v480_v19  ;;  %v2273_v1 = vpack.c.bf16 %v490_v31, %v482_v0  ;;  %v537_v19 = vld [vmem:[%s4923_s3 + $0x8f0] sm:$0xff]  ;;  %v544_v41 = vld [vmem:[%s4923_s3 + $0x928] sm:$0xff] }
  0xce   :  { %v552_v0 = vld [vmem:[%s4923_s3 + $0x968] sm:$0xff]  ;;  %v546_v31 = vld [vmem:[%s4923_s3 + $0x938] sm:$0xff] }
  0xcf   :  { %v594_v33 = vld [vmem:[%s4923_s3 + $0xab8] sm:$0xff] }
  0xd0   :  { %2132 = vmatpush1.bf16.msra.mxu0 %v2131_v55  ;;  %2260 = vmatpush1.bf16.msra.mxu1 %v2259_v62  ;;  %v506_v55 = vld [vmem:[%s4923_s3 + $0x7f8] sm:$0xff]  ;;  %v2147_v62 = vpack.c.bf16 %v487_v42, %v479_v53  ;;  %v2287_v53 = vpack.c.bf16 %v537_v19, %v529_v2  ;;  %v543_v42 = vld [vmem:[%s4923_s3 + $0x920] sm:$0xff] }
  0xd1   :  { %2134 = vmatprep.subr.bf16.mxu0 %v2133_v8  ;;  %2262 = vmatprep.subr.bf16.mxu1 %v2261_v9  ;;  %v503_v8 = vld [vmem:[%s4923_s3 + $0x7e0] sm:$0xff]  ;;  %v2149_v9 = vpack.c.bf16 %v504_v32, %v496_v29  ;;  %v2277_v6 = vpack.c.bf16 %v506_v55, %v498_v50  ;;  %v560_v29 = vld [vmem:[%s4923_s3 + $0x9a8] sm:$0xff]  ;;  %v562_v50 = vld [vmem:[%s4923_s3 + $0x9b8] sm:$0xff] }
  0xd2   :  { %v568_v32 = vld [vmem:[%s4923_s3 + $0x9e8] sm:$0xff]  ;;  %v570_v55 = vld [vmem:[%s4923_s3 + $0x9f8] sm:$0xff] }
  0xd3   :  { %v602_v63 = vld [vmem:[%s4923_s3 + $0xaf8] sm:$0xff] }
  0xd4   :  { %2136 = vmatpush1.bf16.msra.mxu0 %v2135_v14  ;;  %2264 = vmatpush1.bf16.msra.mxu1 %v2263_v15  ;;  %v522_v14 = vld [vmem:[%s4923_s3 + $0x878] sm:$0xff]  ;;  %v2151_v15 = vpack.c.bf16 %v503_v8, %v495_v57  ;;  %v559_v57 = vld [vmem:[%s4923_s3 + $0x9a0] sm:$0xff] }
  0xd5   :  { %2138 = vmatprep.subr.bf16.mxu0 %v2137_v18  ;;  %2266 = vmatprep.subr.bf16.mxu1 %v2265_v26  ;;  %v519_v18 = vld [vmem:[%s4923_s3 + $0x860] sm:$0xff]  ;;  %v2153_v26 = vpack.c.bf16 %v520_v58, %v512_v45  ;;  %v2281_v7 = vpack.c.bf16 %v522_v14, %v514_v39  ;;  %v578_v45 = vld [vmem:[%s4923_s3 + $0xa38] sm:$0xff] }
  0xd6   :  { %v567_v8 = vld [vmem:[%s4923_s3 + $0x9e0] sm:$0xff]  ;;  %v586_v58 = vld [vmem:[%s4923_s3 + $0xa78] sm:$0xff] }
  0xd7   :  { %v2167_v39 = vpack.c.bf16 %v567_v8, %v559_v57  ;;  %v648_v57 = vld [vmem:[%s4923_s3 + $0xc68] sm:$0xff]  ;;  %v642_v8 = vld [vmem:[%s4923_s3 + $0xc38] sm:$0xff] }
  0xd8   :  { %2140 = vmatpush1.bf16.msra.mxu0 %v2139_v21  ;;  %2268 = vmatpush1.bf16.msra.mxu1 %v2267_v22  ;;  %v538_v21 = vld [vmem:[%s4923_s3 + $0x8f8] sm:$0xff]  ;;  %v2155_v22 = vpack.c.bf16 %v519_v18, %v511_v17  ;;  %v2169_v17 = vpack.c.bf16 %v584_v11, %v576_v61  ;;  %v585_v18 = vld [vmem:[%s4923_s3 + $0xa70] sm:$0xff]  ;;  %v647_v61 = vld [vmem:[%s4923_s3 + $0xc60] sm:$0xff] }
  0xd9   :  { %2142 = vmatprep.subr.bf16.mxu0 %v2141_v49  ;;  %2270 = vmatprep.subr.bf16.mxu1 %v2269_v51  ;;  %v535_v49 = vld [vmem:[%s4923_s3 + $0x8e0] sm:$0xff]  ;;  %v2157_v51 = vpack.c.bf16 %v536_v10, %v528_v16  ;;  %v2285_v24 = vpack.c.bf16 %v538_v21, %v530_v12 }
  0xda   :  { %v591_v12 = vld [vmem:[%s4923_s3 + $0xaa0] sm:$0xff] }
  0xdb   :  { %v599_v21 = vld [vmem:[%s4923_s3 + $0xae0] sm:$0xff] }
  0xdc   :  { %2144 = vmatpush1.bf16.msra.mxu0 %v2143_v34  ;;  %2272 = vmatpush1.bf16.msra.mxu1 %v2271_v5  ;;  %v554_v34 = vld [vmem:[%s4923_s3 + $0x978] sm:$0xff]  ;;  %v2159_v5 = vpack.c.bf16 %v535_v49, %v527_v44  ;;  %v608_v44 = vld [vmem:[%s4923_s3 + $0xb28] sm:$0xff]  ;;  %v2175_v2 = vpack.c.bf16 %v599_v21, %v591_v12 }
  0xdd   :  { %2146 = vmatprep.subr.bf16.mxu0 %v2145_v37  ;;  %2274 = vmatprep.subr.bf16.mxu1 %v2273_v1  ;;  %v551_v37 = vld [vmem:[%s4923_s3 + $0x960] sm:$0xff]  ;;  %v2161_v1 = vpack.c.bf16 %v552_v0, %v544_v41  ;;  %v2289_v4 = vpack.c.bf16 %v554_v34, %v546_v31  ;;  %v616_v49 = vld [vmem:[%s4923_s3 + $0xb68] sm:$0xff]  ;;  %v674_v21 = vld [vmem:[%s4923_s3 + $0xd38] sm:$0xff] }
  0xde   :  { %v607_v41 = vld [vmem:[%s4923_s3 + $0xb20] sm:$0xff]  ;;  %v2177_v31 = vpack.c.bf16 %v616_v49, %v608_v44  ;;  %v680_v12 = vld [vmem:[%s4923_s3 + $0xd68] sm:$0xff] }
  0xdf   :  { %v615_v0 = vld [vmem:[%s4923_s3 + $0xb60] sm:$0xff] }
  0xe0   :  { %2148 = vmatpush1.bf16.msra.mxu0 %v2147_v62  ;;  %2276 = vmatpush1.bf16.msra.mxu1 %v2275_v52  ;;  %v2163_v62 = vpack.c.bf16 %v551_v37, %v543_v42  ;;  %v632_v42 = vld [vmem:[%s4923_s3 + $0xbe8] sm:$0xff]  ;;  %v626_v37 = vld [vmem:[%s4923_s3 + $0xbb8] sm:$0xff]  ;;  %v679_v44 = vld [vmem:[%s4923_s3 + $0xd60] sm:$0xff] }
  0xe1   :  { %2150 = vmatprep.subr.bf16.mxu0 %v2149_v9  ;;  %2278 = vmatprep.subr.bf16.mxu1 %v2277_v6  ;;  %v2165_v9 = vpack.c.bf16 %v568_v32, %v560_v29  ;;  %v569_v6 = vld [vmem:[%s4923_s3 + $0x9f0] sm:$0xff]  ;;  %v631_v29 = vld [vmem:[%s4923_s3 + $0xbe0] sm:$0xff] }
  0xe4   :  { %2152 = vmatpush1.bf16.msra.mxu0 %v2151_v15  ;;  %2280 = vmatpush1.bf16.msra.mxu1 %v2279_v27  ;;  %v575_v15 = vld [vmem:[%s4923_s3 + $0xa20] sm:$0xff] }
  0xe5   :  { %2154 = vmatprep.subr.bf16.mxu0 %v2153_v26  ;;  %2282 = vmatprep.subr.bf16.mxu1 %v2281_v7  ;;  %v583_v27 = vld [vmem:[%s4923_s3 + $0xa60] sm:$0xff]  ;;  %v592_v26 = vld [vmem:[%s4923_s3 + $0xaa8] sm:$0xff] }
  0xe6   :  { %v600_v7 = vld [vmem:[%s4923_s3 + $0xae8] sm:$0xff]  ;;  %v2171_v16 = vpack.c.bf16 %v583_v27, %v575_v15  ;;  %v658_v27 = vld [vmem:[%s4923_s3 + $0xcb8] sm:$0xff] }
  0xe7   :  { %1184 = vmatmul.mubr.f32.vlgmr.msra.gmra.mrb[8].mxu0 %v3143_v43  ;;  %1362 = vmatmul.mubr.f32.vlgmr.msra.gmra.mrb[8].mxu1 %v3143_v43  ;;  %v545_v43 = vld [vmem:[%s4923_s3 + $0x930] sm:$0xff]  ;;  %v664_v15 = vld [vmem:[%s4923_s3 + $0xce8] sm:$0xff] }
  0xe8   :  { %2156 = vmatpush1.bf16.msra.mxu0 %v2155_v22  ;;  %2284 = vmatpush1.bf16.msra.mxu1 %v2283_v30  ;;  %v2291_v52 = vpack.c.bf16 %v553_v25, %v545_v43  ;;  %v2173_v22 = vpack.c.bf16 %v600_v7, %v592_v26  ;;  %v601_v30 = vld [vmem:[%s4923_s3 + $0xaf0] sm:$0xff]  ;;  %v623_v25 = vld [vmem:[%s4923_s3 + $0xba0] sm:$0xff] }
  0xe9   :  { %2158 = vmatprep.subr.bf16.mxu0 %v2157_v51  ;;  %2286 = vmatprep.subr.bf16.mxu1 %v2285_v24  ;;  %v610_v51 = vld [vmem:[%s4923_s3 + $0xb38] sm:$0xff]  ;;  %v663_v26 = vld [vmem:[%s4923_s3 + $0xce0] sm:$0xff] }
  0xea   :  { %1189 = vmatprep.mubr.f32.mxu0 %v3175_v13  ;;  %1367 = vmatprep.mubr.f32.mxu1 %v3175_v13  ;;  %v2293_v13 = vpack.c.bf16 %v570_v55, %v562_v50  ;;  %v618_v24 = vld [vmem:[%s4923_s3 + $0xb78] sm:$0xff]  ;;  %v625_v55 = vld [vmem:[%s4923_s3 + $0xbb0] sm:$0xff] }
  0xeb   :  { %1190 = vmatmul.mubr.f32.gmra.mrb[10].mxu0 %v3180_v59  ;;  %1368 = vmatmul.mubr.f32.gmra.mrb[10].mxu1 %v3180_v59  ;;  %v561_v59 = vld [vmem:[%s4923_s3 + $0x9b0] sm:$0xff]  ;;  %v2305_v34 = vpack.c.bf16 %v618_v24, %v610_v51 }
  0xec   :  { %2160 = vmatpush1.bf16.msra.mxu0 %v2159_v5  ;;  %2288 = vmatpush1.bf16.msra.mxu1 %v2287_v53  ;;  %v2295_v14 = vpack.c.bf16 %v569_v6, %v561_v59  ;;  %v617_v5 = vld [vmem:[%s4923_s3 + $0xb70] sm:$0xff]  ;;  %v624_v53 = vld [vmem:[%s4923_s3 + $0xba8] sm:$0xff]  ;;  %v639_v6 = vld [vmem:[%s4923_s3 + $0xc20] sm:$0xff] }
  0xed   :  { %2162 = vmatprep.subr.bf16.mxu0 %v2161_v1  ;;  %2290 = vmatprep.subr.bf16.mxu1 %v2289_v4  ;;  %v634_v1 = vld [vmem:[%s4923_s3 + $0xbf8] sm:$0xff]  ;;  %v2179_v4 = vpack.c.bf16 %v615_v0, %v607_v41  ;;  %v2181_v32 = vpack.c.bf16 %v632_v42, %v624_v53  ;;  %v673_v24 = vld [vmem:[%s4923_s3 + $0xd30] sm:$0xff]  ;;  %v696_v41 = vld [vmem:[%s4923_s3 + $0xde8] sm:$0xff] }
  0xee   :  { %1195 = vmatprep.mubr.f32.mxu0 %v3191_v56  ;;  %1373 = vmatprep.mubr.f32.mxu1 %v3191_v56  ;;  %v2297_v56 = vpack.c.bf16 %v586_v58, %v578_v45  ;;  %v2309_v50 = vpack.c.bf16 %v634_v1, %v626_v37  ;;  %v641_v58 = vld [vmem:[%s4923_s3 + $0xc30] sm:$0xff]  ;;  %v690_v0 = vld [vmem:[%s4923_s3 + $0xdb8] sm:$0xff]  ;;  %v695_v53 = vld [vmem:[%s4923_s3 + $0xde0] sm:$0xff] }
  0xef   :  { %1196 = vmatmul.mubr.f32.gmra.mrb[12].mxu0 %v3210_v47  ;;  %1374 = vmatmul.mubr.f32.gmra.mrb[12].mxu1 %v3210_v47  ;;  %v577_v47 = vld [vmem:[%s4923_s3 + $0xa30] sm:$0xff] }
  0xf0   :  { %2164 = vmatpush1.bf16.msra.mxu0 %v2163_v62  ;;  %2292 = vmatpush1.bf16.msra.mxu1 %v2291_v52  ;;  %v2299_v10 = vpack.c.bf16 %v585_v18, %v577_v47  ;;  %v633_v62 = vld [vmem:[%s4923_s3 + $0xbf0] sm:$0xff]  ;;  %v640_v52 = vld [vmem:[%s4923_s3 + $0xc28] sm:$0xff]  ;;  %v655_v18 = vld [vmem:[%s4923_s3 + $0xca0] sm:$0xff] }
  0xf1   :  { %2166 = vmatprep.subr.bf16.mxu0 %v2165_v9  ;;  %2294 = vmatprep.subr.bf16.mxu1 %v2293_v13  ;;  %v650_v9 = vld [vmem:[%s4923_s3 + $0xc78] sm:$0xff]  ;;  %v2183_v13 = vpack.c.bf16 %v631_v29, %v623_v25  ;;  %v2311_v59 = vpack.c.bf16 %v633_v62, %v625_v55  ;;  %v2185_v11 = vpack.c.bf16 %v648_v57, %v640_v52  ;;  %v689_v1 = vld [vmem:[%s4923_s3 + $0xdb0] sm:$0xff]  ;;  %v712_v25 = vld [vmem:[%s4923_s3 + $0xe68] sm:$0xff] }
  0xf2   :  { %1201 = vmatprep.mubr.f32.mxu0 %v3194_v60  ;;  %1379 = vmatprep.mubr.f32.mxu1 %v3194_v60  ;;  %v2301_v60 = vpack.c.bf16 %v602_v63, %v594_v33  ;;  %v2313_v45 = vpack.c.bf16 %v650_v9, %v642_v8  ;;  %v657_v63 = vld [vmem:[%s4923_s3 + $0xcb0] sm:$0xff]  ;;  %v706_v29 = vld [vmem:[%s4923_s3 + $0xe38] sm:$0xff]  ;;  %v703_v62 = vld [vmem:[%s4923_s3 + $0xe20] sm:$0xff] }
  0xf3   :  { %1202 = vmatmul.mubr.f32.gmra.mrb[14].mxu0 %v3253_v28  ;;  %1380 = vmatmul.mubr.f32.gmra.mrb[14].mxu1 %v3253_v28  ;;  %v593_v28 = vld [vmem:[%s4923_s3 + $0xab0] sm:$0xff]  ;;  %v711_v52 = vld [vmem:[%s4923_s3 + $0xe60] sm:$0xff] }
  0xf4   :  { %2168 = vmatpush1.bf16.msra.mxu0 %v2167_v39  ;;  %2296 = vmatpush1.bf16.msra.mxu1 %v2295_v14  ;;  %v2303_v19 = vpack.c.bf16 %v601_v30, %v593_v28  ;;  %v649_v39 = vld [vmem:[%s4923_s3 + $0xc70] sm:$0xff]  ;;  %v656_v14 = vld [vmem:[%s4923_s3 + $0xca8] sm:$0xff]  ;;  %v671_v30 = vld [vmem:[%s4923_s3 + $0xd20] sm:$0xff] }
  0xf5   :  { %2170 = vmatprep.subr.bf16.mxu0 %v2169_v17  ;;  %2298 = vmatprep.subr.bf16.mxu1 %v2297_v56  ;;  %v666_v17 = vld [vmem:[%s4923_s3 + $0xcf8] sm:$0xff]  ;;  %v2187_v56 = vpack.c.bf16 %v647_v61, %v639_v6  ;;  %v2315_v47 = vpack.c.bf16 %v649_v39, %v641_v58  ;;  %v2189_v7 = vpack.c.bf16 %v664_v15, %v656_v14  ;;  %v705_v9 = vld [vmem:[%s4923_s3 + $0xe30] sm:$0xff]  ;;  %v728_v6 = vld [vmem:[%s4923_s3 + $0xee8] sm:$0xff] }
  0xf6   :  { %1272 = vmatprep.mubr.f32.mxu0 %v3511_v54  ;;  %1450 = vmatprep.mubr.f32.mxu1 %v3511_v54  ;;  %v609_v54 = vld [vmem:[%s4923_s3 + $0xb30] sm:$0xff]  ;;  %v2317_v33 = vpack.c.bf16 %v666_v17, %v658_v27  ;;  %v722_v61 = vld [vmem:[%s4923_s3 + $0xeb8] sm:$0xff]  ;;  %v719_v39 = vld [vmem:[%s4923_s3 + $0xea0] sm:$0xff] }
  0xf7   :  { %v2307_v43 = vpack.c.bf16 %v617_v5, %v609_v54  ;;  %v687_v5 = vld [vmem:[%s4923_s3 + $0xda0] sm:$0xff]  ;;  %v721_v17 = vld [vmem:[%s4923_s3 + $0xeb0] sm:$0xff] }
  0xf8   :  { %2172 = vmatpush1.bf16.msra.mxu0 %v2171_v16  ;;  %2300 = vmatpush1.bf16.msra.mxu1 %v2299_v10  ;;  %v665_v16 = vld [vmem:[%s4923_s3 + $0xcf0] sm:$0xff]  ;;  %v672_v10 = vld [vmem:[%s4923_s3 + $0xd28] sm:$0xff]  ;;  %v727_v14 = vld [vmem:[%s4923_s3 + $0xee0] sm:$0xff] }
  0xf9   :  { %2174 = vmatprep.subr.bf16.mxu0 %v2173_v22  ;;  %2302 = vmatprep.subr.bf16.mxu1 %v2301_v60  ;;  %v682_v22 = vld [vmem:[%s4923_s3 + $0xd78] sm:$0xff]  ;;  %v2191_v60 = vpack.c.bf16 %v663_v26, %v655_v18  ;;  %v2319_v28 = vpack.c.bf16 %v665_v16, %v657_v63  ;;  %v2193_v49 = vpack.c.bf16 %v680_v12, %v672_v10  ;;  %v744_v18 = vld [vmem:[%s4923_s3 + $0xf68] sm:$0xff]  ;;  %v735_v16 = vld [vmem:[%s4923_s3 + $0xf20] sm:$0xff] }
  0xfa   :  { %v2321_v51 = vpack.c.bf16 %v682_v22, %v674_v21  ;;  %v738_v26 = vld [vmem:[%s4923_s3 + $0xf38] sm:$0xff]  ;;  %v743_v10 = vld [vmem:[%s4923_s3 + $0xf60] sm:$0xff]  ;;  %v737_v22 = vld [vmem:[%s4923_s3 + $0xf30] sm:$0xff] }
  0xfc   :  { %2176 = vmatpush1.bf16.msra.mxu0 %v2175_v2  ;;  %2304 = vmatpush1.bf16.msra.mxu1 %v2303_v19  ;;  %v681_v2 = vld [vmem:[%s4923_s3 + $0xd70] sm:$0xff]  ;;  %v688_v19 = vld [vmem:[%s4923_s3 + $0xda8] sm:$0xff] }
  0xfd   :  { %2178 = vmatprep.subr.bf16.mxu0 %v2177_v31  ;;  %2306 = vmatprep.subr.bf16.mxu1 %v2305_v34  ;;  %v698_v31 = vld [vmem:[%s4923_s3 + $0xdf8] sm:$0xff]  ;;  %v2195_v34 = vpack.c.bf16 %v679_v44, %v671_v30  ;;  %v2323_v54 = vpack.c.bf16 %v681_v2, %v673_v24  ;;  %v2197_v42 = vpack.c.bf16 %v696_v41, %v688_v19  ;;  %v760_v30 = vld [vmem:[%s4923_s3 + $0xfe8] sm:$0xff]  ;;  %v751_v2 = vld [vmem:[%s4923_s3 + $0xfa0] sm:$0xff] }
  0xfe   :  { %v2325_v37 = vpack.c.bf16 %v698_v31, %v690_v0  ;;  %v754_v44 = vld [vmem:[%s4923_s3 + $0xfb8] sm:$0xff]  ;;  %v759_v0 = vld [vmem:[%s4923_s3 + $0xfe0] sm:$0xff]  ;;  %v753_v31 = vld [vmem:[%s4923_s3 + $0xfb0] sm:$0xff] }
 0x100   :  { %2180 = vmatpush1.bf16.msra.mxu0 %v2179_v4  ;;  %2308 = vmatpush1.bf16.msra.mxu1 %v2307_v43  ;;  %v697_v4 = vld [vmem:[%s4923_s3 + $0xdf0] sm:$0xff]  ;;  %v704_v43 = vld [vmem:[%s4923_s3 + $0xe28] sm:$0xff] }
 0x101   :  { %2182 = vmatprep.subr.bf16.mxu0 %v2181_v32  ;;  %2310 = vmatprep.subr.bf16.mxu1 %v2309_v50  ;;  %v714_v32 = vld [vmem:[%s4923_s3 + $0xe78] sm:$0xff]  ;;  %v2199_v50 = vpack.c.bf16 %v695_v53, %v687_v5  ;;  %v2327_v55 = vpack.c.bf16 %v697_v4, %v689_v1  ;;  %v2201_v57 = vpack.c.bf16 %v712_v25, %v704_v43 }
 0x102   :  { %v2329_v8 = vpack.c.bf16 %v714_v32, %v706_v29 }
 0x104   :  { %2184 = vmatpush1.bf16.msra.mxu0 %v2183_v13  ;;  %2312 = vmatpush1.bf16.msra.mxu1 %v2311_v59  ;;  %v713_v13 = vld [vmem:[%s4923_s3 + $0xe70] sm:$0xff]  ;;  %v720_v59 = vld [vmem:[%s4923_s3 + $0xea8] sm:$0xff] }
 0x105   :  { %2186 = vmatprep.subr.bf16.mxu0 %v2185_v11  ;;  %2314 = vmatprep.subr.bf16.mxu1 %v2313_v45  ;;  %v730_v11 = vld [vmem:[%s4923_s3 + $0xef8] sm:$0xff]  ;;  %v2203_v45 = vpack.c.bf16 %v711_v52, %v703_v62  ;;  %v2331_v58 = vpack.c.bf16 %v713_v13, %v705_v9  ;;  %v2205_v15 = vpack.c.bf16 %v728_v6, %v720_v59 }
 0x106   :  { %v2333_v27 = vpack.c.bf16 %v730_v11, %v722_v61 }
 0x108   :  { %2188 = vmatpush1.bf16.msra.mxu0 %v2187_v56  ;;  %2316 = vmatpush1.bf16.msra.mxu1 %v2315_v47  ;;  %v729_v56 = vld [vmem:[%s4923_s3 + $0xef0] sm:$0xff]  ;;  %v736_v47 = vld [vmem:[%s4923_s3 + $0xf28] sm:$0xff] }
 0x109   :  { %2190 = vmatprep.subr.bf16.mxu0 %v2189_v7  ;;  %2318 = vmatprep.subr.bf16.mxu1 %v2317_v33  ;;  %v746_v7 = vld [vmem:[%s4923_s3 + $0xf78] sm:$0xff]  ;;  %v2207_v33 = vpack.c.bf16 %v727_v14, %v719_v39  ;;  %v2335_v63 = vpack.c.bf16 %v729_v56, %v721_v17  ;;  %v2209_v12 = vpack.c.bf16 %v744_v18, %v736_v47 }
 0x10a   :  { %v2337_v21 = vpack.c.bf16 %v746_v7, %v738_v26 }
 0x10c   :  { %2192 = vmatpush1.bf16.msra.mxu0 %v2191_v60  ;;  %2320 = vmatpush1.bf16.msra.mxu1 %v2319_v28  ;;  %v745_v60 = vld [vmem:[%s4923_s3 + $0xf70] sm:$0xff]  ;;  %v752_v28 = vld [vmem:[%s4923_s3 + $0xfa8] sm:$0xff] }
 0x10d   :  { %2194 = vmatprep.subr.bf16.mxu0 %v2193_v49  ;;  %2322 = vmatprep.subr.bf16.mxu1 %v2321_v51  ;;  %v762_v49 = vld [vmem:[%s4923_s3 + $0xff8] sm:$0xff]  ;;  %v2211_v51 = vpack.c.bf16 %v743_v10, %v735_v16  ;;  %v2339_v24 = vpack.c.bf16 %v745_v60, %v737_v22  ;;  %v2213_v19 = vpack.c.bf16 %v760_v30, %v752_v28 }
 0x10e   :  { %v2341_v41 = vpack.c.bf16 %v762_v49, %v754_v44 }
 0x110   :  { %2196 = vmatpush1.bf16.msra.mxu0 %v2195_v34  ;;  %2324 = vmatpush1.bf16.msra.mxu1 %v2323_v54  ;;  %v761_v34 = vld [vmem:[%s4923_s3 + $0xff0] sm:$0xff]  ;;  %v2215_v54 = vpack.c.bf16 %v759_v0, %v751_v2 }
 0x111   :  { %2198 = vmatprep.subr.bf16.mxu0 %v2197_v42  ;;  %2326 = vmatprep.subr.bf16.mxu1 %v2325_v37  ;;  %v2343_v5 = vpack.c.bf16 %v761_v34, %v753_v31 }
 0x114   :  { %2200 = vmatpush1.bf16.msra.mxu0 %v2199_v50  ;;  %2328 = vmatpush1.bf16.msra.mxu1 %v2327_v55 }
 0x115   :  { %2202 = vmatprep.subr.bf16.mxu0 %v2201_v57  ;;  %2330 = vmatprep.subr.bf16.mxu1 %v2329_v8 }
 0x118   :  { %2204 = vmatpush1.bf16.msra.mxu0 %v2203_v45  ;;  %2332 = vmatpush1.bf16.msra.mxu1 %v2331_v58 }
 0x119   :  { %2206 = vmatprep.subr.bf16.mxu0 %v2205_v15  ;;  %2334 = vmatprep.subr.bf16.mxu1 %v2333_v27 }
 0x11c   :  { %2208 = vmatpush1.bf16.msra.mxu0 %v2207_v33  ;;  %2336 = vmatpush1.bf16.msra.mxu1 %v2335_v63 }
 0x11d   :  { %2210 = vmatprep.subr.bf16.mxu0 %v2209_v12  ;;  %2338 = vmatprep.subr.bf16.mxu1 %v2337_v21 }
 0x120   :  { %2212 = vmatpush1.bf16.msra.mxu0 %v2211_v51  ;;  %2340 = vmatpush1.bf16.msra.mxu1 %v2339_v24 }
 0x121   :  { %2214 = vmatprep.subr.bf16.mxu0 %v2213_v19  ;;  %2342 = vmatprep.subr.bf16.mxu1 %v2341_v41 }
 0x124   :  { %2216 = vmatpush1.bf16.msra.mxu0 %v2215_v54  ;;  %2344 = vmatpush1.bf16.msra.mxu1 %v2343_v5 }
 0x127   :  { %1273 = vmatmul.mubr.f32.vlgmr.msra.gmra.mrb[8].mxu0 %v3545_v20  ;;  %1451 = vmatmul.mubr.f32.vlgmr.msra.gmra.mrb[8].mxu1 %v3545_v20 }
 0x128   :  { %1278 = vmatprep.mubr.f32.mxu0 %v3637_v3  ;;  %1456 = vmatprep.mubr.f32.mxu1 %v3637_v3 }
 0x12b   :  { %1279 = vmatmul.mubr.f32.gmra.mrb[10].mxu0 %v3548_v48  ;;  %1457 = vmatmul.mubr.f32.gmra.mrb[10].mxu1 %v3548_v48 }
 0x12c   :  { %1284 = vmatprep.mubr.f32.mxu0 %v3671_v40  ;;  %1462 = vmatprep.mubr.f32.mxu1 %v3671_v40 }
 0x12f   :  { %1285 = vmatmul.mubr.f32.gmra.mrb[12].mxu0 %v3551_v36  ;;  %1463 = vmatmul.mubr.f32.gmra.mrb[12].mxu1 %v3551_v36 }
 0x130   :  { %1290 = vmatprep.mubr.f32.mxu0 %v3706_v35  ;;  %1468 = vmatprep.mubr.f32.mxu1 %v3706_v35 }
 0x133   :  { %1291 = vmatmul.mubr.f32.gmra.mrb[14].mxu0 %v3554_v23  ;;  %1469 = vmatmul.mubr.f32.gmra.mrb[14].mxu1 %v3554_v23 }
 0x17a   :  { %v4424_v20 = vpop.f32.mrb[0].mxu0  ;;  %v4426_v3 = vpop.f32.mrb[0].mxu1 }
 0x17b   :  { %v1475_v48 = vmax.f32 %v4424_v20, 0.0  ;;  %v1477_v40 = vmax.f32 %v4426_v3, 0.0  ;;  %v4430_v53 = vpop.f32.mrb[1].mxu0  ;;  %v4432_v42 = vpop.f32.mrb[1].mxu1 }
 0x17c   :  { %v4942_v36 = vmax.f32 %v4430_v53, 0.0  ;;  %v4936_v35 = vmax.f32 %v4432_v42, 0.0 }
 0x17d   :  { %v1507_v23 = vadd.f32 %v1477_v40, %v1475_v48 }
 0x17e   :  { %v1508_v37 = vadd.f32 %v4936_v35, %v4942_v36  ;;  %v4444_v1 = vpop.f32.mrb[2].mxu0  ;;  %v4446_v4 = vpop.f32.mrb[2].mxu1 }
 0x17f   :  { %v1483_v43 = vmax.f32 %v4444_v1, 0.0  ;;  %v1485_v25 = vmax.f32 %v4446_v4, 0.0  ;;  %v4450_v29 = vpop.f32.mrb[3].mxu0  ;;  %v4452_v32 = vpop.f32.mrb[3].mxu1 }
 0x180   :  { %v4939_v50 = vmax.f32 %v4450_v29, 0.0  ;;  %v4935_v55 = vmax.f32 %v4452_v32, 0.0 }
 0x181   :  { %v1509_v62 = vadd.f32 %v1485_v25, %v1483_v43 }
 0x182   :  { %v1510_v52 = vadd.f32 %v4935_v55, %v4939_v50  ;;  %v4464_v57 = vpop.f32.mrb[4].mxu0  ;;  %v4466_v8 = vpop.f32.mrb[4].mxu1 }
 0x183   :  { %v1491_v9 = vmax.f32 %v4464_v57, 0.0  ;;  %v1493_v13 = vmax.f32 %v4466_v8, 0.0  ;;  %v4470_v59 = vpop.f32.mrb[5].mxu0  ;;  %v4472_v6 = vpop.f32.mrb[5].mxu1 }
 0x184   :  { %v4938_v61 = vmax.f32 %v4470_v59, 0.0  ;;  %v4934_v11 = vmax.f32 %v4472_v6, 0.0 }
 0x185   :  { %v1511_v45 = vadd.f32 %v1493_v13, %v1491_v9 }
 0x186   :  { %v1512_v58 = vadd.f32 %v4934_v11, %v4938_v61  ;;  %v4484_v39 = vpop.f32.mrb[6].mxu0  ;;  %v4486_v14 = vpop.f32.mrb[6].mxu1 }
 0x187   :  { %v1499_v15 = vmax.f32 %v4484_v39, 0.0  ;;  %v4950_v27 = vmax.f32 %v4486_v14, 0.0  ;;  %v4490_v17 = vpop.f32.mrb[7].mxu0  ;;  %v4492_v56 = vpop.f32.mrb[7].mxu1  ;;  %v4951_v1 = vmax.f32 %v4486_v14, 0.0 }
 0x188   :  { %v4937_v47 = vmax.f32 %v4490_v17, 0.0  ;;  %v4933_v18 = vmax.f32 %v4492_v56, 0.0 }
 0x189   :  { %v1513_v26 = vadd.f32 %v4950_v27, %v1499_v15 }
 0x18a   :  { %v1514_v7 = vadd.f32 %v4933_v18, %v4937_v47 }
 0x1fa   :  { %v4504_v33 = vpop.f32.mrb[8].mxu0  ;;  %v4506_v63 = vpop.f32.mrb[8].mxu1 }
 0x1fb   :  { %v4948_v16 = vmax.f32 %v4504_v33, 0.0  ;;  %v4509_v10 = vpop.f32.mrb[9].mxu0  ;;  %v4511_v12 = vpop.f32.mrb[9].mxu1  ;;  %v4945_v60 = vmax.f32 %v4506_v63, 0.0  ;;  %v4952_v14 = vmax.f32 %v4504_v33, 0.0 }
 0x1fc   :  { %v4931_v21 = vmax.f32 %v4509_v10, 0.0  ;;  %v4930_v30 = vmax.f32 %v4511_v12, 0.0 }
 0x1fd   :  { %v1515_v22 = vadd.f32 %v1507_v23, %v4948_v16 }
 0x1fe   :  { %v1516_v28 = vadd.f32 %v1508_v37, %v4931_v21  ;;  %v4520_v44 = vpop.f32.mrb[10].mxu0  ;;  %v4522_v49 = vpop.f32.mrb[10].mxu1 }
 0x1ff   :  { %v1523_v51 = vadd.f32 %v1515_v22, %v4945_v60  ;;  %v4947_v24 = vmax.f32 %v4520_v44, 0.0  ;;  %v4527_v2 = vpop.f32.mrb[11].mxu0  ;;  %v4529_v19 = vpop.f32.mrb[11].mxu1  ;;  %v4944_v34 = vmax.f32 %v4522_v49, 0.0 }
 0x200   :  { %v1524_v41 = vadd.f32 %v1516_v28, %v4930_v30  ;;  %v4932_v0 = vmax.f32 %v4527_v2, 0.0  ;;  %v4940_v5 = vmax.f32 %v4529_v19, 0.0 }
 0x201   :  { %v1517_v31 = vadd.f32 %v1509_v62, %v4947_v24 }
 0x202   :  { %v1518_v54 = vadd.f32 %v1510_v52, %v4932_v0  ;;  %v4540_v23 = vpop.f32.mrb[12].mxu0  ;;  %v4542_v37 = vpop.f32.mrb[12].mxu1 }
 0x203   :  { %v1525_v22 = vadd.f32 %v1517_v31, %v4944_v34  ;;  %v1495_v28 = vmax.f32 %v4540_v23, 0.0  ;;  %v4547_v30 = vpop.f32.mrb[13].mxu0  ;;  %v4549_v21 = vpop.f32.mrb[13].mxu1  ;;  %v4943_v11 = vmax.f32 %v4542_v37, 0.0 }
 0x204   :  { %v1526_v62 = vadd.f32 %v1518_v54, %v4940_v5  ;;  %v4941_v52 = vmax.f32 %v4547_v30, 0.0  ;;  %v4946_v31 = vmax.f32 %v4549_v21, 0.0 }
 0x205   :  { %v1531_v0 = vadd.f32 %v1525_v22, %v1523_v51  ;;  %v1519_v18 = vadd.f32 %v1511_v45, %v1495_v28 }
 0x206   :  { %v1540_v55 = vadd.f32 %v1526_v62, %v1524_v41  ;;  %v1520_v35 = vadd.f32 %v1512_v58, %v4941_v52  ;;  %v1292_v23 = vpop.f32.mrb[14].mxu0  ;;  %v4558_v47 = vpop.f32.mrb[14].mxu1 }
 0x207   :  { %v1527_v61 = vadd.f32 %v1519_v18, %v4943_v11  ;;  %v1503_v50 = vmax.f32 %v1292_v23, 0.0  ;;  %v4562_v54 = vpop.f32.mrb[15].mxu0  ;;  %v4564_v5 = vpop.f32.mrb[15].mxu1  ;;  %v1505_v22 = vmax.f32 %v4558_v47, 0.0 }
 0x208   :  { %v1528_v45 = vadd.f32 %v1520_v35, %v4946_v31  ;;  %v4949_v51 = vmax.f32 %v4562_v54, 0.0  ;;  %v1506_v18 = vmax.f32 %v4564_v5, 0.0 }
 0x209   :  { %v1532_v41 = vadd.f32 %v1531_v0, %v1527_v61  ;;  %v1521_v58 = vadd.f32 %v1513_v26, %v1503_v50 }
 0x20a   :  { %v1541_v62 = vadd.f32 %v1540_v55, %v1528_v45  ;;  %v1522_v52 = vadd.f32 %v1514_v7, %v4949_v51 }
 0x20b   :  { %v1529_v23 = vadd.f32 %v1521_v58, %v1505_v22 }
 0x20c   :  { %v1530_v36 = vadd.f32 %v1522_v52, %v1506_v18 }
 0x20d   :  { %v1533_v11 = vadd.f32 %v1532_v41, %v1529_v23 }
 0x20e   :  { %v1542_v34 = vadd.f32 %v1541_v62, %v1530_v36  ;;  %v4954_v62 = vmax.f32 %v4506_v63, 0.0 }
 0x20f   :  { %v1534_v60 = vrot.slane %v1533_v11, 4 }
 0x210   :  { %v1543_v35 = vrot.slane %v1542_v34, 4 }
 0x211   :  { %v1535_v31 = vadd.f32 %v1534_v60, %v1533_v11 }
 0x212   :  { %v1544_v24 = vadd.f32 %v1543_v35, %v1542_v34  ;;  %v4955_v35 = vmax.f32 %v4522_v49, 0.0 }
 0x213   :  { %v1536_v61 = vrot.slane %v1535_v31, 2 }
 0x214   :  { %v1545_v26 = vrot.slane %v1544_v24, 2 }
 0x215   :  { %v1537_v0 = vadd.f32 %v1536_v61, %v1535_v31 }
 0x216   :  { %v1546_v47 = vadd.f32 %v1545_v26, %v1544_v24  ;;  %v4953_v24 = vmax.f32 %v4520_v44, 0.0 }
 0x217   :  { %v1538_v55 = vrot.slane %v1537_v0, 1 }
 0x218   :  { %v1547_v45 = vrot.slane %v1546_v47, 1 }
 0x219   :  { %v1539_v16 = vadd.f32 %v1538_v55, %v1537_v0  ;;  %v4956_v0 = vmax.f32 %v4542_v37, 0.0  ;;  %v4957_v37 = vmax.f32 %v4430_v53, 0.0 }
 0x21a   :  { %v1548_v7 = vadd.f32 %v1547_v45, %v1546_v47 }
 0x21b   :  { %v1549_v51 = vmul.f32 0.0078125, %v1539_v16 }
 0x21c   :  { %v4575_v27 = vmul.f32 0.0078125, %v1548_v7 }
 0x21d   :  { %v4579_v52 = vsub.f32 %v1475_v48, %v1549_v51  ;;  %v4583_v36 = vsub.f32 %v1483_v43, %v1549_v51  ;;  %v4587_v11 = vsub.f32 %v1491_v9, %v1549_v51  ;;  %v4591_v60 = vsub.f32 %v1499_v15, %v1549_v51 }
 0x21e   :  { %v4595_v16 = vsub.f32 %v1477_v40, %v1549_v51  ;;  %v4599_v20 = vsub.f32 %v1485_v25, %v1549_v51  ;;  %v4603_v48 = vsub.f32 %v1493_v13, %v1549_v51  ;;  %v4607_v43 = vsub.f32 %v4951_v1, %v1549_v51 }
 0x21f   :  { %v1559_v57 = vmul.f32 %v4579_v52, %v4579_v52  ;;  %v1561_v3 = vmul.f32 %v4583_v36, %v4583_v36  ;;  %v1563_v40 = vmul.f32 %v4587_v11, %v4587_v11  ;;  %v1565_v4 = vmul.f32 %v4591_v60, %v4591_v60 }
 0x220   :  { %v1593_v25 = vmul.f32 %v4595_v16, %v4595_v16  ;;  %v1595_v8 = vmul.f32 %v4599_v20, %v4599_v20  ;;  %v1597_v9 = vmul.f32 %v4603_v48, %v4603_v48  ;;  %v1599_v13 = vmul.f32 %v4607_v43, %v4607_v43 }
 0x221   :  { %v1567_v39 = vadd.f32 %v1561_v3, %v1559_v57  ;;  %v4627_v15 = vsub.f32 %v4952_v14, %v1549_v51  ;;  %v4631_v34 = vsub.f32 %v4953_v24, %v1549_v51  ;;  %v4633_v31 = vsub.f32 %v1495_v28, %v1549_v51 }
 0x222   :  { %v1601_v41 = vadd.f32 %v1595_v8, %v1593_v25  ;;  %v4635_v58 = vsub.f32 %v1503_v50, %v1549_v51  ;;  %v4639_v23 = vsub.f32 %v4954_v62, %v1549_v51  ;;  %v4643_v61 = vsub.f32 %v4955_v35, %v1549_v51 }
 0x223   :  { %v1568_v33 = vadd.f32 %v1567_v39, %v1563_v40  ;;  %v1629_v26 = vmul.f32 %v4627_v15, %v4627_v15  ;;  %v1631_v44 = vmul.f32 %v4631_v34, %v4631_v34  ;;  %v1633_v28 = vmul.f32 %v4633_v31, %v4633_v31 }
 0x224   :  { %v1602_v50 = vadd.f32 %v1601_v41, %v1597_v9  ;;  %v1635_v63 = vmul.f32 %v4635_v58, %v4635_v58  ;;  %v4655_v47 = vsub.f32 %v4956_v0, %v1549_v51  ;;  %v4657_v49 = vsub.f32 %v1505_v22, %v1549_v51 }
 0x225   :  { %v1569_v55 = vadd.f32 %v1568_v33, %v1565_v4  ;;  %v1637_v45 = vadd.f32 %v1631_v44, %v1629_v26  ;;  %v1665_v7 = vmul.f32 %v4639_v23, %v4639_v23  ;;  %v1667_v1 = vmul.f32 %v4643_v61, %v4643_v61 }
 0x226   :  { %v1603_v57 = vadd.f32 %v1602_v50, %v1599_v13  ;;  %v1669_v3 = vmul.f32 %v4655_v47, %v4655_v47  ;;  %v1671_v40 = vmul.f32 %v4657_v49, %v4657_v49  ;;  %v4670_v51 = vsub.f32 %v4957_v37, %v4575_v27 }
 0x227   :  { %v1570_v22 = vrot.slane %v1569_v55, 4  ;;  %v1638_v4 = vadd.f32 %v1637_v45, %v1633_v28  ;;  %v1673_v25 = vadd.f32 %v1667_v1, %v1665_v7  ;;  %v4958_v8 = vmax.f32 %v4450_v29, 0.0 }
 0x228   :  { %v1604_v13 = vrot.slane %v1603_v57, 4  ;;  %v4959_v39 = vmax.f32 %v4470_v59, 0.0  ;;  %v4960_v24 = vmax.f32 %v4490_v17, 0.0  ;;  %v1560_v41 = vmul.f32 %v4670_v51, %v4670_v51 }
 0x229   :  { %v4675_v9 = vsub.f32 %v4958_v8, %v4575_v27  ;;  %v1571_v62 = vadd.f32 %v1570_v22, %v1569_v55  ;;  %v1639_v35 = vadd.f32 %v1638_v4, %v1635_v63  ;;  %v1674_v33 = vadd.f32 %v1673_v25, %v1669_v3 }
 0x22a   :  { %v4680_v14 = vsub.f32 %v4959_v39, %v4575_v27  ;;  %v4685_v53 = vsub.f32 %v4960_v24, %v4575_v27  ;;  %v1605_v26 = vadd.f32 %v1604_v13, %v1603_v57  ;;  %v4961_v17 = vmax.f32 %v4432_v42, 0.0 }
 0x22b   :  { %v1562_v29 = vmul.f32 %v4675_v9, %v4675_v9  ;;  %v1572_v50 = vrot.slane %v1571_v62, 2  ;;  %v1640_v0 = vrot.slane %v1639_v35, 4  ;;  %v1675_v55 = vadd.f32 %v1674_v33, %v1671_v40 }
 0x22c   :  { %v1564_v59 = vmul.f32 %v4680_v14, %v4680_v14  ;;  %v1566_v44 = vmul.f32 %v4685_v53, %v4685_v53  ;;  %v4698_v28 = vsub.f32 %v4961_v17, %v4575_v27  ;;  %v1606_v45 = vrot.slane %v1605_v26, 2 }
 0x22d   :  { %v1576_v63 = vadd.f32 %v1562_v29, %v1560_v41  ;;  %v4962_v7 = vmax.f32 %v4452_v32, 0.0  ;;  %v4963_v57 = vmax.f32 %v4472_v6, 0.0  ;;  %v4964_v42 = vmax.f32 %v4492_v56, 0.0 }
 0x22e   :  { %v1573_v22 = vadd.f32 %v1572_v50, %v1571_v62  ;;  %v1641_v4 = vadd.f32 %v1640_v0, %v1639_v35  ;;  %v1676_v40 = vrot.slane %v1675_v55, 4  ;;  %v1607_v8 = vadd.f32 %v1606_v45, %v1605_v26 }
 0x22f   :  { %v4703_v1 = vsub.f32 %v4962_v7, %v4575_v27  ;;  %v4708_v3 = vsub.f32 %v4963_v57, %v4575_v27  ;;  %v4713_v37 = vsub.f32 %v4964_v42, %v4575_v27  ;;  %v1577_v25 = vadd.f32 %v1576_v63, %v1564_v59 }
 0x230   :  { %v1594_v32 = vmul.f32 %v4698_v28, %v4698_v28  ;;  %v1574_v39 = vrot.slane %v1573_v22, 1  ;;  %v1642_v24 = vrot.slane %v1641_v4, 2  ;;  %v1677_v41 = vadd.f32 %v1676_v40, %v1675_v55 }
 0x231   :  { %v1596_v13 = vmul.f32 %v4703_v1, %v4703_v1  ;;  %v1598_v6 = vmul.f32 %v4708_v3, %v4708_v3  ;;  %v1578_v56 = vadd.f32 %v1577_v25, %v1566_v44  ;;  %v1608_v33 = vrot.slane %v1607_v8, 1 }
 0x232   :  { %v1600_v62 = vmul.f32 %v4713_v37, %v4713_v37  ;;  %v4965_v29 = vmax.f32 %v4509_v10, 0.0  ;;  %v1575_v59 = vadd.f32 %v1574_v39, %v1573_v22  ;;  %v1643_v17 = vadd.f32 %v1642_v24, %v1641_v4 }
 0x233   :  { %v1610_v35 = vadd.f32 %v1596_v13, %v1594_v32  ;;  %v1678_v50 = vrot.slane %v1677_v41, 2  ;;  %v1579_v0 = vrot.slane %v1578_v56, 4  ;;  %v1609_v63 = vadd.f32 %v1608_v33, %v1607_v8 }
 0x234   :  { %v4726_v26 = vsub.f32 %v4965_v29, %v4575_v27  ;;  %v4966_v55 = vmax.f32 %v4527_v2, 0.0  ;;  %v4967_v7 = vmax.f32 %v4547_v30, 0.0  ;;  %v1644_v42 = vrot.slane %v1643_v17, 1 }
 0x235   :  { %v1611_v45 = vadd.f32 %v1610_v35, %v1598_v6  ;;  %v1679_v10 = vadd.f32 %v1678_v50, %v1677_v41  ;;  %v1580_v40 = vadd.f32 %v1579_v0, %v1578_v56  ;;  %v4968_v22 = vmax.f32 %v4562_v54, 0.0 }
 0x236   :  { %v4731_v44 = vsub.f32 %v4966_v55, %v4575_v27  ;;  %v4736_v57 = vsub.f32 %v4967_v7, %v4575_v27  ;;  %v1619_v25 = vadd.f32 %v1609_v63, %v1575_v59  ;;  %v1630_v2 = vmul.f32 %v4726_v26, %v4726_v26 }
 0x237   :  { %v4741_v4 = vsub.f32 %v4968_v22, %v4575_v27  ;;  %v1612_v8 = vadd.f32 %v1611_v45, %v1600_v62  ;;  %v1645_v13 = vadd.f32 %v1644_v42, %v1643_v17  ;;  %v1680_v30 = vrot.slane %v1679_v10, 1 }
 0x238   :  { %v1632_v32 = vmul.f32 %v4731_v44, %v4731_v44  ;;  %v1581_v6 = vrot.slane %v1580_v40, 2  ;;  %v1634_v39 = vmul.f32 %v4736_v57, %v4736_v57  ;;  %v4969_v56 = vmax.f32 %v4511_v12, 0.0 }
 0x239   :  { %v1613_v24 = vrot.slane %v1612_v8, 4  ;;  %v1636_v54 = vmul.f32 %v4741_v4, %v4741_v4  ;;  %v1655_v62 = vadd.f32 %v1645_v13, %v1619_v25  ;;  %v1681_v35 = vadd.f32 %v1680_v30, %v1679_v10 }
 0x23a   :  { %v1646_v41 = vadd.f32 %v1632_v32, %v1630_v2  ;;  %v4754_v33 = vsub.f32 %v4969_v56, %v4575_v27  ;;  %v1582_v29 = vadd.f32 %v1581_v6, %v1580_v40  ;;  %v4970_v59 = vmax.f32 %v4529_v19, 0.0 }
 0x23b   :  { %v1614_v50 = vadd.f32 %v1613_v24, %v1612_v8  ;;  %v4971_v63 = vmax.f32 %v4549_v21, 0.0  ;;  %v4769_v12 = vsub.f32 %v1506_v18, %v4575_v27  ;;  %v1691_v55 = vadd.f32 %v1681_v35, %v1655_v62  ;;  %v4782_v62 = vld [vmem:[%s4927_s4] sm:$0x3] }
 0x23c   :  { %v4759_v17 = vsub.f32 %v4970_v59, %v4575_v27  ;;  %v1647_v0 = vadd.f32 %v1646_v41, %v1634_v39  ;;  %v1666_v7 = vmul.f32 %v4754_v33, %v4754_v33  ;;  %v1583_v42 = vrot.slane %v1582_v29, 1 }
 0x23d   :  { %v4764_v45 = vsub.f32 %v4971_v63, %v4575_v27  ;;  %v1615_v10 = vrot.slane %v1614_v50, 2  ;;  %v1693_v22 = vmul.f32 0.0078125, %v1691_v55  ;;  %v1672_v27 = vmul.f32 %v4769_v12, %v4769_v12 }
 0x23e   :  { %v1668_v19 = vmul.f32 %v4759_v17, %v4759_v17  ;;  %v1648_v40 = vadd.f32 %v1647_v0, %v1636_v54  ;;  %v1584_v32 = vadd.f32 %v1583_v42, %v1582_v29  ;;  %v1704_v29 = vrot.slane %v4782_v62, %v2979_v46 }
 0x23f   :  { %v1670_v21 = vmul.f32 %v4764_v45, %v4764_v45  ;;  %v1616_v8 = vadd.f32 %v1615_v10, %v1614_v50  ;;  %v1695_v5 = vadd.f32 1e-05, %v1693_v22 }
 0x240   :  { %v1682_v25 = vadd.f32 %v1668_v19, %v1666_v7  ;;  %v1649_v2 = vrot.slane %v1648_v40, 4  ;;  %v1713_v19 = vld [vmem:[%s4928_s5] sm:$0x3] }
 0x241   :  { %v1617_v13 = vrot.slane %v1616_v8, 1  ;;  %2385 = vrsqrt.f32 %v1695_v5  ;;  %v1734_v22 = vrot.slane %v1713_v19, %v2979_v46 }
 0x242   :  { %v1683_v18 = vadd.f32 %v1682_v25, %v1670_v21  ;;  %v1650_v30 = vadd.f32 %v1649_v2, %v1648_v40 }
 0x243   :  { %v1618_v39 = vadd.f32 %v1617_v13, %v1616_v8 }
 0x244   :  { %v1684_v6 = vadd.f32 %v1683_v18, %v1672_v27  ;;  %v1651_v24 = vrot.slane %v1650_v30, 2 }
 0x245   :  { %v1620_v41 = vadd.f32 %v1618_v39, %v1584_v32 }
 0x246   :  { %v1685_v54 = vrot.slane %v1684_v6, 4  ;;  %v1652_v56 = vadd.f32 %v1651_v24, %v1650_v30 }
 0x248   :  { %v1686_v35 = vadd.f32 %v1685_v54, %v1684_v6  ;;  %v1653_v59 = vrot.slane %v1652_v56, 1 }
 0x24a   :  { %v1687_v50 = vrot.slane %v1686_v35, 2  ;;  %v1654_v0 = vadd.f32 %v1653_v59, %v1652_v56 }
 0x24b   :  { %v2386_v7 = vpop.eup %2385 }
 0x24c   :  { %v1688_v63 = vadd.f32 %v1687_v50, %v1686_v35  ;;  %v1656_v55 = vadd.f32 %v1654_v0, %v1620_v41  ;;  %v1711_v10 = vmul.f32 %v2386_v7, %v1704_v29  ;;  %v1738_v7 = vrot.slane %v1713_v19, %v2975_v38 }
 0x24e   :  { %v1689_v42 = vrot.slane %v1688_v63, 1  ;;  %v1717_v21 = vrot.slane %v1711_v10, %v2979_v46 }
 0x250   :  { %v1690_v40 = vadd.f32 %v1689_v42, %v1688_v63  ;;  %v1722_v8 = vmul.f32 %v1717_v21, %v4579_v52  ;;  %v1724_v2 = vmul.f32 %v1717_v21, %v4583_v36  ;;  %v1726_v5 = vmul.f32 %v1717_v21, %v4587_v11 }
 0x251   :  { %v1728_v27 = vmul.f32 %v1717_v21, %v4591_v60  ;;  %v1757_v18 = vmul.f32 %v1717_v21, %v4595_v16  ;;  %v1759_v32 = vmul.f32 %v1717_v21, %v4599_v20  ;;  %v1761_v13 = vmul.f32 %v1717_v21, %v4603_v48 }
 0x252   :  { %v1692_v25 = vadd.f32 %v1690_v40, %v1656_v55  ;;  %v1763_v30 = vmul.f32 %v1717_v21, %v4607_v43  ;;  %v1741_v6 = vadd.f32 %v1734_v22, %v1722_v8  ;;  %v1743_v39 = vadd.f32 %v1734_v22, %v1724_v2 }
 0x253   :  { %v1745_v24 = vadd.f32 %v1734_v22, %v1726_v5  ;;  %v1747_v54 = vadd.f32 %v1734_v22, %v1728_v27  ;;  %v1765_v41 = vadd.f32 %v1757_v18, %v1734_v22  ;;  %v1767_v52 = vadd.f32 %v1759_v32, %v1734_v22 }
 0x254   :  { %v1769_v56 = vadd.f32 %v1761_v13, %v1734_v22  ;;  %v1771_v36 = vadd.f32 %v1763_v30, %v1734_v22  ;;  %1749 = vst [vmem:[%s4929_s6] sm:$0xff] %v1741_v6  ;;  %1751 = vst [vmem:[%s4929_s6 + $0x40] sm:$0xff] %v1743_v39  ;;  %v1781_v11 = vmul.f32 %v1717_v21, %v4627_v15 }
 0x255   :  { %1753 = vst [vmem:[%s4929_s6 + $0x80] sm:$0xff] %v1745_v24  ;;  %1755 = vst [vmem:[%s4929_s6 + $0xc0] sm:$0xff] %v1747_v54  ;;  %v1783_v60 = vmul.f32 %v1717_v21, %v4631_v34  ;;  %v1785_v16 = vmul.f32 %v1717_v21, %v4633_v31  ;;  %v1787_v20 = vmul.f32 %v1717_v21, %v4635_v58 }
 0x256   :  { %1773 = vst [vmem:[%s4929_s6 + $0x10] sm:$0xff] %v1765_v41  ;;  %1775 = vst [vmem:[%s4929_s6 + $0x50] sm:$0xff] %v1767_v52  ;;  %v1805_v48 = vmul.f32 %v1717_v21, %v4639_v23  ;;  %v1807_v43 = vmul.f32 %v1717_v21, %v4643_v61  ;;  %v1809_v15 = vmul.f32 %v1717_v21, %v4655_v47  ;;  %v1694_v23 = vmul.f32 0.0078125, %v1692_v25 }
 0x257   :  { %1777 = vst [vmem:[%s4929_s6 + $0x90] sm:$0xff] %v1769_v56  ;;  %1779 = vst [vmem:[%s4929_s6 + $0xd0] sm:$0xff] %v1771_v36  ;;  %v1811_v34 = vmul.f32 %v1717_v21, %v4657_v49  ;;  %v1789_v31 = vadd.f32 %v1781_v11, %v1734_v22  ;;  %v1791_v58 = vadd.f32 %v1783_v60, %v1734_v22 }
 0x258   :  { %v1793_v35 = vadd.f32 %v1785_v16, %v1734_v22  ;;  %v1795_v59 = vadd.f32 %v1787_v20, %v1734_v22  ;;  %v1813_v50 = vadd.f32 %v1805_v48, %v1734_v22  ;;  %v1815_v29 = vadd.f32 %v1807_v43, %v1734_v22 }
 0x259   :  { %v1817_v0 = vadd.f32 %v1809_v15, %v1734_v22  ;;  %v1819_v63 = vadd.f32 %v1811_v34, %v1734_v22  ;;  %1797 = vst [vmem:[%s4929_s6 + $0x20] sm:$0xff] %v1789_v31  ;;  %1799 = vst [vmem:[%s4929_s6 + $0x60] sm:$0xff] %v1791_v58  ;;  %v1696_v61 = vadd.f32 1e-05, %v1694_v23  ;;  %v1708_v47 = vrot.slane %v4782_v62, %v2975_v38 }
 0x25a   :  { %1801 = vst [vmem:[%s4929_s6 + $0xa0] sm:$0xff] %v1793_v35  ;;  %1803 = vst [vmem:[%s4929_s6 + $0xe0] sm:$0xff] %v1795_v59 }
 0x25b   :  { %1821 = vst [vmem:[%s4929_s6 + $0x30] sm:$0xff] %v1813_v50  ;;  %1823 = vst [vmem:[%s4929_s6 + $0x70] sm:$0xff] %v1815_v29  ;;  %2387 = vrsqrt.f32 %v1696_v61 }
 0x25c   :  { %1825 = vst [vmem:[%s4929_s6 + $0xb0] sm:$0xff] %v1817_v0  ;;  %1827 = vst [vmem:[%s4929_s6 + $0xf0] sm:$0xff] %v1819_v63 }
 0x265   :  { %v2388_v49 = vpop.eup %2387 }
 0x266   :  { %v1712_v55 = vmul.f32 %v2388_v49, %v1708_v47 }
 0x268   :  { %v1721_v42 = vrot.slane %v1712_v55, %v2979_v46 }
 0x26a   :  { %v1723_v10 = vmul.f32 %v1721_v42, %v4670_v51  ;;  %v1725_v40 = vmul.f32 %v1721_v42, %v4675_v9  ;;  %v1727_v22 = vmul.f32 %v1721_v42, %v4680_v14  ;;  %v1729_v21 = vmul.f32 %v1721_v42, %v4685_v53 }
 0x26b   :  { %v1758_v25 = vmul.f32 %v1721_v42, %v4698_v28  ;;  %v1760_v8 = vmul.f32 %v1721_v42, %v4703_v1  ;;  %v1762_v62 = vmul.f32 %v1721_v42, %v4708_v3  ;;  %v1764_v2 = vmul.f32 %v1721_v42, %v4713_v37 }
 0x26c   :  { %v1742_v5 = vadd.f32 %v1738_v7, %v1723_v10  ;;  %v1744_v38 = vadd.f32 %v1738_v7, %v1725_v40  ;;  %v1746_v19 = vadd.f32 %v1738_v7, %v1727_v22  ;;  %v1748_v46 = vadd.f32 %v1738_v7, %v1729_v21 }
 0x26d   :  { %v1766_v27 = vadd.f32 %v1758_v25, %v1738_v7  ;;  %v1768_v51 = vadd.f32 %v1760_v8, %v1738_v7  ;;  %v1770_v18 = vadd.f32 %v1762_v62, %v1738_v7  ;;  %v1772_v9 = vadd.f32 %v1764_v2, %v1738_v7 }
 0x26e   :  { %1750 = vst [vmem:[%s4929_s6 + $0x8] sm:$0xff] %v1742_v5  ;;  %1752 = vst [vmem:[%s4929_s6 + $0x48] sm:$0xff] %v1744_v38  ;;  %v1782_v14 = vmul.f32 %v1721_v42, %v4726_v26  ;;  %v1784_v53 = vmul.f32 %v1721_v42, %v4731_v44  ;;  %v1786_v28 = vmul.f32 %v1721_v42, %v4736_v57 }
 0x26f   :  { %1754 = vst [vmem:[%s4929_s6 + $0x88] sm:$0xff] %v1746_v19  ;;  %1756 = vst [vmem:[%s4929_s6 + $0xc8] sm:$0xff] %v1748_v46  ;;  %v1788_v1 = vmul.f32 %v1721_v42, %v4741_v4  ;;  %v1806_v3 = vmul.f32 %v1721_v42, %v4754_v33  ;;  %v1808_v37 = vmul.f32 %v1721_v42, %v4759_v17 }
 0x270   :  { %1774 = vst [vmem:[%s4929_s6 + $0x18] sm:$0xff] %v1766_v27  ;;  %1776 = vst [vmem:[%s4929_s6 + $0x58] sm:$0xff] %v1768_v51  ;;  %v1810_v26 = vmul.f32 %v1721_v42, %v4764_v45  ;;  %v1812_v44 = vmul.f32 %v1721_v42, %v4769_v12  ;;  %v1790_v57 = vadd.f32 %v1782_v14, %v1738_v7 }
 0x271   :  { %1778 = vst [vmem:[%s4929_s6 + $0x98] sm:$0xff] %v1770_v18  ;;  %1780 = vst [vmem:[%s4929_s6 + $0xd8] sm:$0xff] %v1772_v9  ;;  %v1792_v4 = vadd.f32 %v1784_v53, %v1738_v7  ;;  %v1794_v32 = vadd.f32 %v1786_v28, %v1738_v7  ;;  %v1796_v13 = vadd.f32 %v1788_v1, %v1738_v7 }
 0x272   :  { %v1814_v30 = vadd.f32 %v1806_v3, %v1738_v7  ;;  %v1816_v6 = vadd.f32 %v1808_v37, %v1738_v7  ;;  %v1818_v39 = vadd.f32 %v1810_v26, %v1738_v7  ;;  %v1820_v24 = vadd.f32 %v1812_v44, %v1738_v7  ;;  %1798 = vst [vmem:[%s4929_s6 + $0x28] sm:$0xff] %v1790_v57 }
 0x273   :  { %1800 = vst [vmem:[%s4929_s6 + $0x68] sm:$0xff] %v1792_v4  ;;  %1802 = vst [vmem:[%s4929_s6 + $0xa8] sm:$0xff] %v1794_v32 }
 0x274   :  { %1804 = vst [vmem:[%s4929_s6 + $0xe8] sm:$0xff] %v1796_v13  ;;  %1822 = vst [vmem:[%s4929_s6 + $0x38] sm:$0xff] %v1814_v30 }
 0x275   :  { %1824 = vst [vmem:[%s4929_s6 + $0x78] sm:$0xff] %v1816_v6  ;;  %1826 = vst [vmem:[%s4929_s6 + $0xb8] sm:$0xff] %v1818_v39 }
 0x276   :  { %1828 = vst [vmem:[%s4929_s6 + $0xf8] sm:$0xff] %v1820_v24 }

// kernel: dshared_forward.2
= control target key start
LH: loop header
LB: loop body
LE: loop exit
PB: predicated region body
PF: predicated region fallthrough
CT: control target
= control target key end

     0   :  { %7 = vsyncpa [#allocation3], 0  ;;  %s10366_s0 = inlined_call_operand.hbm [shape: f32[2,1024], index: 0, kind: input, shape index: {}]   ;;  %s10367_s1 = inlined_call_operand.hbm [shape: bf16[1024,8192], index: 1, kind: input, shape index: {}]   ;;  %s10368_s2 = inlined_call_operand.vmem [shape: f32[2,8192], index: 2, kind: output, shape index: {}]  }
   0x1   :  { %8 = vsyncpa [#allocation5], 0 }
   0x2   :  { %10 = vsyncpa [#allocation5 + $0x1], 0  ;;  %s9067_s9 = smov 0   ;;  %s9069_s10 = smov 0  }
   0x3   :  { %s9071_s11 = smov 0   ;;  %s9073_s12 = smov 0  }
   0x4 LB: > { %s5756_s13 = sadd.s32 4294967295, %s9044_s12   ;;  %s9087_s14 = sadd.s32 1, %s9044_s12   ;;  %s9044_s12 = sphi %s9073_s12, %s10387_s12   ;;  %s9040_s11 = sphi %s9071_s11, %s10386_s11   ;;  %s9036_s10 = sphi %s9069_s10, %s10385_s10   ;;  %s9032_s9 = sphi %s9067_s9, %s10384_s9  }
   0x5   : > { %s41_s15 = ssub.s32 %s9044_s12, %s9087_s14  ;;  %s44_s16 = sadd.s32 1, %s9040_s11 }
   0x6   : > { %p42_p0 = scmp.eq.s32.totalorder %s41_s15, 0  ;;  %p51_p1 = scmp.ne.s32.totalorder %s9040_s11, %s9036_s10 }
   0x7   : > { %p52_p2 = scmp.eq.s32.totalorder %s9044_s12, 0  ;;  %p57_p3 = scmp.ne.s32.totalorder %s9036_s10, %s9032_s9 }
   0x8   : > { %s9097_s17 = scalar_select %p42_p0, %s9040_s11, %s44_s16  }
   0x9   : > { %p9099_p4 = por %p52_p2, %p51_p1  ;;  %p9105_p5 = scmp.eq.s32.totalorder %s5756_s13, 0 }
   0xa   : > { %p5758_p6 = scmp.ge.s32.totalorder %s9044_s12, 1  ;;  %p94_p7 = scmp.lt.s32.totalorder %s9044_s12, 5 }
   0xb   : > { %s10375_s19 = scalar_select %p9105_p5, 1, 0 }
   0xc   : > { %p9113_p8 = por %p9105_p5, %p57_p3  ;;  %p9117_p9 = pnand %p5758_p6, %p94_p7 }
   0xd   : > { %s9046_s22 = smov [#allocation2]   ;;  %p8907_p11 = scmp.lt.s32.totalorder %s9044_s12, 4 }
   0xe   : > { %s10376_s20 = scalar_select %p9113_p8, 1, 0 }
   0xf   : > { %s10377_s21 = scalar_select %p9117_p9, 1, 0 }
  0x10   : > { %s107_s23 = sshll.u32 %s9046_s22, 4  ;;  %p8898_p10 = pneg %p9117_p9  ;;  %s108_s23 = int_to_ptr.vmem [resolvable:$true] %s107_s23 }
  0x11   : > { %s118_s24 = sand.u32 1, %s9040_s11   ;;  %p9133_p13 = pnand %p8907_p11, %p9099_p4 }
  0x12   : > { %p9127_p12 = pnand %p8898_p10, %p9105_p5  ;;  %s5761_s27 = sshll.u32 %s118_s24, 13 }
  0x13   : > { %s10379_s26 = scalar_select %p9133_p13, 1, 0 }
  0x14   : > { %s8948_s30 = scalar_lea.hbm %s10366_s0, 256  ;;  %p8950_p1 = pneg %p9127_p12 }
  0x15   : > { %p8949_p0 = scmp.ne.s32.totalorder %s10366_s0, %s8948_s30  ;;  %p8955_p4 = scmp.lt.u32.totalorder %s8948_s30, %s10366_s0 }
  0x17   : > { %p8951_p2 = pnand %p8950_p1, %p8949_p0 }
  0x19   : > { %p8952_p3 = pneg %p8951_p2 }
  0x1b   : > { %p8957_p6 = pnand %p8955_p4, %p8952_p3 }
  0x1d   : > { %8960 = shalt.err (!%p8957_p6)
}
  0x1e   : > { %s8961_s7 = scalar_lea.vmem %s108_s23, 256  ;;  %p8969_p8 = scmp.lt.s32.totalorder %s108_s23, %s108_s23 }
  0x1f   : > { %p8962_p7 = scmp.ne.s32.totalorder %s108_s23, %s8961_s7  ;;  %p8970_p5 = scmp.lt.s32.totalorder %s8961_s7, %s8961_s7 }
  0x21   : > { %p8964_p10 = pnand %p8962_p7, %p8950_p1  ;;  %p8971_p9 = por %p8970_p5, %p8969_p8 }
  0x23   : > { %p8965_p11 = pneg %p8964_p10 }
  0x25   : > { %p8972_p13 = pnand %p8971_p9, %p8965_p11 }
  0x27   : > { %8975 = shalt.err (!%p8972_p13)
}
  0x28   : > { %8901 = dma.hbm_to_vmem [thread:$0]  (!%p9127_p12), %s10366_s0, 256, %s108_s23, [#allocation3]  }
  0x29   : > { %s5771_s15 = sshll.u32 %s9044_s12, 10  ;;  %s122_s28 = scalar_lea.vmem [#allocation4], %s5761_s27 }
  0x2a   : > { %s9157_s22 = scalar_lea.hbm %s10367_s1, %s5771_s15  ;;  %s129_s29 = sshll.u32 %s122_s28, 4  ;;  %s9159_s29 = int_to_ptr.vmem [resolvable:$true] %s129_s29 }
  0x2b   : > { %s9161_s25 = scalar_lea.sflag [#allocation5], %s118_s24  ;;  %s8976_s30 = scalar_lea.hbm %s9157_s22, 131072 }
  0x2c   : > { %p8977_p5 = scmp.ne.s32.totalorder %s9157_s22, %s8976_s30  ;;  %p10380_p8 = scmp.ne.s32.totalorder %s10379_s26, 0 }
  0x2d   : > { %s8981_s4 = scalar_lea.hbm %s10367_s1, 524288  ;;  %p8982_p0 = scmp.lt.u32.totalorder %s9157_s22, %s10367_s1 }
  0x2e   : > { %p8978_p9 = pneg %p10380_p8  ;;  %p8983_p1 = scmp.lt.u32.totalorder %s8981_s4, %s8976_s30 }
  0x2f   : > { %p8985_p3 = scmp.lt.u32.totalorder %s8976_s30, %s9157_s22 }
  0x30   : > { %p8979_p12 = pnand %p8978_p9, %p8977_p5  ;;  %p8984_p2 = por %p8983_p1, %p8982_p0 }
  0x32   : > { %p8980_p13 = pneg %p8979_p12  ;;  %p8986_p4 = por %p8985_p3, %p8984_p2 }
  0x34   : > { %p8987_p6 = pnand %p8986_p4, %p8980_p13 }
  0x36   : > { %8990 = shalt.err (!%p8987_p6)
}
  0x37   : > { %s8991_s24 = scalar_lea.vmem %s9159_s29, 131072  ;;  %s9047_s27 = smov [#allocation4]  }
  0x38   : > { %p8992_p7 = scmp.ne.s32.totalorder %s9159_s29, %s8991_s24  ;;  %s8996_s7 = sshll.u32 %s9047_s27, 4  ;;  %s8997_s7 = int_to_ptr.vmem [resolvable:$false] %s8996_s7 }
  0x39   : > { %s8998_s8 = scalar_lea.vmem %s8997_s7, 262144  ;;  %p8999_p5 = scmp.lt.s32.totalorder %s9159_s29, %s8997_s7 }
  0x3a   : > { %p8994_p10 = pnand %p8992_p7, %p8978_p9  ;;  %p9000_p12 = scmp.lt.s32.totalorder %s8998_s8, %s8991_s24 }
  0x3c   : > { %p8995_p11 = pneg %p8994_p10  ;;  %p9001_p0 = por %p9000_p12, %p8999_p5 }
  0x3e   : > { %p9002_p1 = pnand %p9001_p0, %p8995_p11 }
  0x40   : > { %9005 = shalt.err (!%p9002_p1)
}
  0x41   : > { %s9048_s9 = smov 4096   ;;  %s9049_s15 = smov 1024  }
  0x42   : > { %s9050_s16 = smov 64   ;;  %p10381_p9 = scmp.ne.s32.totalorder %s10377_s21, 0 }
  0x43   : > { %8905 = dma.hbm_to_vmem [thread:$0]  (!%p10380_p8), %s9157_s22, 131072, %s9159_s29, %s9161_s25, %s9048_s9, %s9049_s15, %s9050_s16  }
  0x44   : > { %141 = sbr.rel (%p10381_p9) target bundleno = 1330 (0x532), region = 28  ;;  %p10382_p13 = scmp.ne.s32.totalorder (!%p10381_p9), %s10375_s19, 0 }
  0x4b   : > { %9023 = dma.done.wait (%p10382_p13), [#allocation3], 256  }
  0x4c   : > { %9025 = vsyncadd (%p10382_p13), [#allocation3], 4294967040  ;;  %s147_s18 = sand.u32 1, %s9036_s10   ;;  %p10383_p2 = scmp.ne.s32.totalorder %s10376_s20, 0 }
  0x4d   : > { %s5766_s28 = sshll.u32 %s147_s18, 13  ;;  %s148_s30 = scalar_lea.sflag [#allocation5], %s147_s18 }
  0x4e   : > { %s9196_s23 = scalar_lea.vmem [#allocation4], %s5766_s28 }
  0x4f   : > { %9027 = dma.done.wait (%p10383_p2), %s148_s30, 131072  }
  0x50   : > { %9029 = vsyncadd (%p10383_p2), %s148_s30, 4294836224  ;;  %v179_v0 = vld [vmem:[%s9196_s23] sm:$0xff]  ;;  %v180_v2 = vld [vmem:[%s9196_s23 + $0x8] sm:$0xff]  ;;  %v9051_v32 = vmov 1983009808   ;;  %v3259_v34 = vlaneseq  ;;  %s5767_s19 = sshll.u32 %s5756_s13, 4 }
  0x51   : > { %v187_v1 = vld [vmem:[%s9196_s23 + $0x40] sm:$0xff]  ;;  %v188_v4 = vld [vmem:[%s9196_s23 + $0x48] sm:$0xff]  ;;  %v3257_v33 = vunpack.c.l.s4 %v9051_v32  ;;  %v9232_v59 = vld [vmem:[#allocation2] sm:$0xff]  ;;  %p174_p8 = scmp.lt.s32.totalorder %s5767_s19, 63 }
  0x52   : > { %v7868_v3 = vcombine.high %v179_v0, %v187_v1  ;;  %v7869_v5 = vcombine.low %v179_v0, %v187_v1  ;;  %v195_v6 = vld [vmem:[%s9196_s23 + $0x80] sm:$0xff]  ;;  %v7996_v8 = vcombine.high %v180_v2, %v188_v4  ;;  %v7997_v9 = vcombine.low %v180_v2, %v188_v4  ;;  %v196_v11 = vld [vmem:[%s9196_s23 + $0x88] sm:$0xff] }
  0x53   : > { %v203_v7 = vld [vmem:[%s9196_s23 + $0xc0] sm:$0xff]  ;;  %v204_v12 = vld [vmem:[%s9196_s23 + $0xc8] sm:$0xff]  ;;  %v3258_v43 = vunpack.c.0.s8 %v3257_v33  ;;  %v3260_v44 = vshrl.u32 %v3259_v34, 7  ;;  %s10389_s19 = smov (!%p174_p8, %s5767_s19), 63 }
  0x54   : > { %v7870_v10 = vcombine.high %v195_v6, %v203_v7  ;;  %v211_v13 = vld [vmem:[%s9196_s23 + $0x100] sm:$0xff]  ;;  %5773 = vmatprep.subr.bf16.mxu0 %v7868_v3  ;;  %v7998_v14 = vcombine.high %v196_v11, %v204_v12  ;;  %v212_v16 = vld [vmem:[%s9196_s23 + $0x108] sm:$0xff]  ;;  %6029 = vmatprep.subr.bf16.mxu1 %v7996_v8  ;;  %v7871_v18 = vcombine.low %v195_v6, %v203_v7  ;;  %s5768_s12 = sshll.u32 %s10389_s19, 1 }
  0x55   : > { %v219_v15 = vld [vmem:[%s9196_s23 + $0x140] sm:$0xff]  ;;  %v220_v17 = vld [vmem:[%s9196_s23 + $0x148] sm:$0xff]  ;;  %5775 = vmatpush1.bf16.msra.mxu0 %v7869_v5  ;;  %6031 = vmatpush1.bf16.msra.mxu1 %v7997_v9  ;;  %v7999_v19 = vcombine.low %v196_v11, %v204_v12  ;;  %v9228_v53 = vsub.s32 %v3258_v43, %v3260_v44  ;;  %s9767_s21 = scalar_lea.vmem %s10368_s2, %s5768_s12 }
  0x56   : > { %5777 = vmatprep.subr.bf16.mxu0 %v7870_v10  ;;  %v7872_v20 = vcombine.high %v211_v13, %v219_v15  ;;  %6033 = vmatprep.subr.bf16.mxu1 %v7998_v14  ;;  %v8000_v21 = vcombine.high %v212_v16, %v220_v17  ;;  %v227_v22 = vld [vmem:[%s9196_s23 + $0x180] sm:$0xff]  ;;  %v228_v24 = vld [vmem:[%s9196_s23 + $0x188] sm:$0xff]  ;;  %v7873_v26 = vcombine.low %v211_v13, %v219_v15 }
  0x57   : > { %v235_v23 = vld [vmem:[%s9196_s23 + $0x1c0] sm:$0xff]  ;;  %v236_v25 = vld [vmem:[%s9196_s23 + $0x1c8] sm:$0xff]  ;;  %v8001_v27 = vcombine.low %v212_v16, %v220_v17  ;;  %v9238_v63 = vrot.slane %v9232_v59, %v9228_v53 }
  0x58   : > { %v7874_v28 = vcombine.high %v227_v22, %v235_v23  ;;  %v8002_v29 = vcombine.high %v228_v24, %v236_v25  ;;  %v243_v30 = vld [vmem:[%s9196_s23 + $0x200] sm:$0xff]  ;;  %v244_v35 = vld [vmem:[%s9196_s23 + $0x208] sm:$0xff]  ;;  %v7875_v37 = vcombine.low %v227_v22, %v235_v23  ;;  %v8003_v38 = vcombine.low %v228_v24, %v236_v25 }
  0x59   : > { %5779 = vmatpush1.bf16.msra.mxu0 %v7871_v18  ;;  %6035 = vmatpush1.bf16.msra.mxu1 %v7999_v19  ;;  %v251_v31 = vld [vmem:[%s9196_s23 + $0x240] sm:$0xff]  ;;  %v252_v36 = vld [vmem:[%s9196_s23 + $0x248] sm:$0xff]  ;;  %v9244_v3 = vcombine.high %v9238_v63, %v9238_v63 }
  0x5a   : > { %5781 = vmatprep.subr.bf16.mxu0 %v7872_v20  ;;  %6037 = vmatprep.subr.bf16.mxu1 %v8000_v21  ;;  %v7876_v39 = vcombine.high %v243_v30, %v251_v31  ;;  %v8004_v40 = vcombine.high %v244_v35, %v252_v36  ;;  %v259_v41 = vld [vmem:[%s9196_s23 + $0x280] sm:$0xff]  ;;  %v260_v45 = vld [vmem:[%s9196_s23 + $0x288] sm:$0xff]  ;;  %v7877_v47 = vcombine.low %v243_v30, %v251_v31 }
  0x5b   : > { %v267_v42 = vld [vmem:[%s9196_s23 + $0x2c0] sm:$0xff]  ;;  %v268_v46 = vld [vmem:[%s9196_s23 + $0x2c8] sm:$0xff]  ;;  %v8005_v48 = vcombine.low %v244_v35, %v252_v36  ;;  %3361 = vmatprep.mubr.f32.mxu0 %v9244_v3  ;;  %3645 = vmatprep.mubr.f32.mxu1 %v9244_v3 }
  0x5c   : > { %v7878_v49 = vcombine.high %v259_v41, %v267_v42  ;;  %v8006_v50 = vcombine.high %v260_v45, %v268_v46  ;;  %v275_v51 = vld [vmem:[%s9196_s23 + $0x300] sm:$0xff]  ;;  %v276_v54 = vld [vmem:[%s9196_s23 + $0x308] sm:$0xff]  ;;  %v7879_v56 = vcombine.low %v259_v41, %v267_v42  ;;  %v8007_v57 = vcombine.low %v260_v45, %v268_v46 }
  0x5d   : > { %5783 = vmatpush1.bf16.msra.mxu0 %v7873_v26  ;;  %6039 = vmatpush1.bf16.msra.mxu1 %v8001_v27  ;;  %v283_v52 = vld [vmem:[%s9196_s23 + $0x340] sm:$0xff]  ;;  %v284_v55 = vld [vmem:[%s9196_s23 + $0x348] sm:$0xff] }
  0x5e   : > { %5785 = vmatprep.subr.bf16.mxu0 %v7874_v28  ;;  %6041 = vmatprep.subr.bf16.mxu1 %v8002_v29  ;;  %v7880_v58 = vcombine.high %v275_v51, %v283_v52  ;;  %v8008_v60 = vcombine.high %v276_v54, %v284_v55  ;;  %v291_v61 = vld [vmem:[%s9196_s23 + $0x380] sm:$0xff]  ;;  %v292_v0 = vld [vmem:[%s9196_s23 + $0x388] sm:$0xff]  ;;  %v7881_v2 = vcombine.low %v275_v51, %v283_v52 }
  0x5f   : > { %v299_v62 = vld [vmem:[%s9196_s23 + $0x3c0] sm:$0xff]  ;;  %v300_v1 = vld [vmem:[%s9196_s23 + $0x3c8] sm:$0xff]  ;;  %v8009_v4 = vcombine.low %v276_v54, %v284_v55 }
  0x60   : > { %v7882_v5 = vcombine.high %v291_v61, %v299_v62  ;;  %v8010_v6 = vcombine.high %v292_v0, %v300_v1  ;;  %v307_v7 = vld [vmem:[%s9196_s23 + $0x400] sm:$0xff]  ;;  %v308_v9 = vld [vmem:[%s9196_s23 + $0x408] sm:$0xff]  ;;  %v7883_v11 = vcombine.low %v291_v61, %v299_v62  ;;  %v8011_v12 = vcombine.low %v292_v0, %v300_v1 }
  0x61   : > { %5787 = vmatpush1.bf16.msra.mxu0 %v7875_v37  ;;  %6043 = vmatpush1.bf16.msra.mxu1 %v8003_v38  ;;  %v315_v8 = vld [vmem:[%s9196_s23 + $0x440] sm:$0xff]  ;;  %v316_v10 = vld [vmem:[%s9196_s23 + $0x448] sm:$0xff] }
  0x62   : > { %5789 = vmatprep.subr.bf16.mxu0 %v7876_v39  ;;  %6045 = vmatprep.subr.bf16.mxu1 %v8004_v40  ;;  %v7884_v13 = vcombine.high %v307_v7, %v315_v8  ;;  %v8012_v14 = vcombine.high %v308_v9, %v316_v10  ;;  %v323_v15 = vld [vmem:[%s9196_s23 + $0x480] sm:$0xff]  ;;  %v324_v17 = vld [vmem:[%s9196_s23 + $0x488] sm:$0xff]  ;;  %v7885_v19 = vcombine.low %v307_v7, %v315_v8 }
  0x63   : > { %v331_v16 = vld [vmem:[%s9196_s23 + $0x4c0] sm:$0xff]  ;;  %v332_v18 = vld [vmem:[%s9196_s23 + $0x4c8] sm:$0xff]  ;;  %v8013_v20 = vcombine.low %v308_v9, %v316_v10 }
  0x64   : > { %v7886_v21 = vcombine.high %v323_v15, %v331_v16  ;;  %v8014_v22 = vcombine.high %v324_v17, %v332_v18  ;;  %v339_v23 = vld [vmem:[%s9196_s23 + $0x500] sm:$0xff]  ;;  %v340_v25 = vld [vmem:[%s9196_s23 + $0x508] sm:$0xff]  ;;  %v7887_v27 = vcombine.low %v323_v15, %v331_v16  ;;  %v8015_v28 = vcombine.low %v324_v17, %v332_v18 }
  0x65   : > { %5791 = vmatpush1.bf16.msra.mxu0 %v7877_v47  ;;  %6047 = vmatpush1.bf16.msra.mxu1 %v8005_v48  ;;  %v347_v24 = vld [vmem:[%s9196_s23 + $0x540] sm:$0xff]  ;;  %v348_v26 = vld [vmem:[%s9196_s23 + $0x548] sm:$0xff] }
  0x66   : > { %5793 = vmatprep.subr.bf16.mxu0 %v7878_v49  ;;  %6049 = vmatprep.subr.bf16.mxu1 %v8006_v50  ;;  %v7888_v29 = vcombine.high %v339_v23, %v347_v24  ;;  %v8016_v30 = vcombine.high %v340_v25, %v348_v26  ;;  %v355_v31 = vld [vmem:[%s9196_s23 + $0x580] sm:$0xff]  ;;  %v356_v33 = vld [vmem:[%s9196_s23 + $0x588] sm:$0xff]  ;;  %v7889_v35 = vcombine.low %v339_v23, %v347_v24 }
  0x67   : > { %v363_v32 = vld [vmem:[%s9196_s23 + $0x5c0] sm:$0xff]  ;;  %v364_v34 = vld [vmem:[%s9196_s23 + $0x5c8] sm:$0xff]  ;;  %v8017_v36 = vcombine.low %v340_v25, %v348_v26 }
  0x68   : > { %v7890_v37 = vcombine.high %v355_v31, %v363_v32  ;;  %v8018_v38 = vcombine.high %v356_v33, %v364_v34  ;;  %v371_v39 = vld [vmem:[%s9196_s23 + $0x600] sm:$0xff]  ;;  %v372_v41 = vld [vmem:[%s9196_s23 + $0x608] sm:$0xff]  ;;  %v7891_v43 = vcombine.low %v355_v31, %v363_v32  ;;  %v8019_v44 = vcombine.low %v356_v33, %v364_v34 }
  0x69   : > { %5795 = vmatpush1.bf16.msra.mxu0 %v7879_v56  ;;  %6051 = vmatpush1.bf16.msra.mxu1 %v8007_v57  ;;  %v379_v40 = vld [vmem:[%s9196_s23 + $0x640] sm:$0xff]  ;;  %v380_v42 = vld [vmem:[%s9196_s23 + $0x648] sm:$0xff] }
  0x6a   : > { %5797 = vmatprep.subr.bf16.mxu0 %v7880_v58  ;;  %6053 = vmatprep.subr.bf16.mxu1 %v8008_v60  ;;  %v7892_v45 = vcombine.high %v371_v39, %v379_v40  ;;  %v8020_v46 = vcombine.high %v372_v41, %v380_v42  ;;  %v387_v47 = vld [vmem:[%s9196_s23 + $0x680] sm:$0xff]  ;;  %v388_v49 = vld [vmem:[%s9196_s23 + $0x688] sm:$0xff]  ;;  %v7893_v51 = vcombine.low %v371_v39, %v379_v40 }
  0x6b   : > { %v395_v48 = vld [vmem:[%s9196_s23 + $0x6c0] sm:$0xff]  ;;  %v396_v50 = vld [vmem:[%s9196_s23 + $0x6c8] sm:$0xff]  ;;  %v8021_v52 = vcombine.low %v372_v41, %v380_v42 }
  0x6c   : > { %v7894_v54 = vcombine.high %v387_v47, %v395_v48  ;;  %v8022_v55 = vcombine.high %v388_v49, %v396_v50  ;;  %v403_v56 = vld [vmem:[%s9196_s23 + $0x700] sm:$0xff]  ;;  %v404_v58 = vld [vmem:[%s9196_s23 + $0x708] sm:$0xff]  ;;  %v7895_v61 = vcombine.low %v387_v47, %v395_v48  ;;  %v8023_v62 = vcombine.low %v388_v49, %v396_v50 }
  0x6d   : > { %5799 = vmatpush1.bf16.msra.mxu0 %v7881_v2  ;;  %6055 = vmatpush1.bf16.msra.mxu1 %v8009_v4  ;;  %v411_v57 = vld [vmem:[%s9196_s23 + $0x740] sm:$0xff]  ;;  %v412_v60 = vld [vmem:[%s9196_s23 + $0x748] sm:$0xff] }
  0x6e   : > { %5801 = vmatprep.subr.bf16.mxu0 %v7882_v5  ;;  %6057 = vmatprep.subr.bf16.mxu1 %v8010_v6  ;;  %v7896_v0 = vcombine.high %v403_v56, %v411_v57  ;;  %v8024_v1 = vcombine.high %v404_v58, %v412_v60  ;;  %v419_v2 = vld [vmem:[%s9196_s23 + $0x780] sm:$0xff]  ;;  %v420_v5 = vld [vmem:[%s9196_s23 + $0x788] sm:$0xff]  ;;  %v7897_v7 = vcombine.low %v403_v56, %v411_v57 }
  0x6f   : > { %v427_v4 = vld [vmem:[%s9196_s23 + $0x7c0] sm:$0xff]  ;;  %v428_v6 = vld [vmem:[%s9196_s23 + $0x7c8] sm:$0xff]  ;;  %v8025_v8 = vcombine.low %v404_v58, %v412_v60 }
  0x70   : > { %v7898_v9 = vcombine.high %v419_v2, %v427_v4  ;;  %v8026_v10 = vcombine.high %v420_v5, %v428_v6  ;;  %v444_v15 = vld [vmem:[%s9196_s23 + $0x848] sm:$0xff]  ;;  %v7899_v16 = vcombine.low %v419_v2, %v427_v4  ;;  %v8027_v17 = vcombine.low %v420_v5, %v428_v6 }
  0x71   : > { %5803 = vmatpush1.bf16.msra.mxu0 %v7883_v11  ;;  %6059 = vmatpush1.bf16.msra.mxu1 %v8011_v12  ;;  %v435_v11 = vld [vmem:[%s9196_s23 + $0x800] sm:$0xff]  ;;  %v460_v23 = vld [vmem:[%s9196_s23 + $0x8c8] sm:$0xff] }
  0x72   : > { %5805 = vmatprep.subr.bf16.mxu0 %v7884_v13  ;;  %6061 = vmatprep.subr.bf16.mxu1 %v8012_v14  ;;  %v443_v12 = vld [vmem:[%s9196_s23 + $0x840] sm:$0xff]  ;;  %v3255_v13 = vcombine.high %v9232_v59, %v9232_v59  ;;  %v436_v14 = vld [vmem:[%s9196_s23 + $0x808] sm:$0xff] }
  0x73   : > { %v7900_v18 = vcombine.high %v435_v11, %v443_v12  ;;  %v452_v59 = vld [vmem:[%s9196_s23 + $0x888] sm:$0xff]  ;;  %v7901_v24 = vcombine.low %v435_v11, %v443_v12  ;;  %v8029_v25 = vcombine.low %v436_v14, %v444_v15 }
  0x74   : > { %v468_v31 = vld [vmem:[%s9196_s23 + $0x908] sm:$0xff]  ;;  %v8031_v34 = vcombine.low %v452_v59, %v460_v23 }
  0x75   : > { %5807 = vmatpush1.bf16.msra.mxu0 %v7885_v19  ;;  %6063 = vmatpush1.bf16.msra.mxu1 %v8013_v20  ;;  %v8028_v19 = vcombine.high %v436_v14, %v444_v15  ;;  %v451_v20 = vld [vmem:[%s9196_s23 + $0x880] sm:$0xff]  ;;  %v476_v32 = vld [vmem:[%s9196_s23 + $0x948] sm:$0xff] }
  0x76   : > { %5809 = vmatprep.subr.bf16.mxu0 %v7886_v21  ;;  %6065 = vmatprep.subr.bf16.mxu1 %v8014_v22  ;;  %v459_v21 = vld [vmem:[%s9196_s23 + $0x8c0] sm:$0xff]  ;;  %v9289_v22 = vrot.slane %v3255_v13, %v9228_v53  ;;  %v484_v39 = vld [vmem:[%s9196_s23 + $0x988] sm:$0xff]  ;;  %v8033_v42 = vcombine.low %v468_v31, %v476_v32 }
  0x77   : > { %v7902_v26 = vcombine.high %v451_v20, %v459_v21  ;;  %v7903_v33 = vcombine.low %v451_v20, %v459_v21  ;;  %v492_v40 = vld [vmem:[%s9196_s23 + $0x9c8] sm:$0xff] }
  0x78   : > { %v500_v47 = vld [vmem:[%s9196_s23 + $0xa08] sm:$0xff]  ;;  %v8035_v50 = vcombine.low %v484_v39, %v492_v40 }
  0x79   : > { %5811 = vmatpush1.bf16.msra.mxu0 %v7887_v27  ;;  %6067 = vmatpush1.bf16.msra.mxu1 %v8015_v28  ;;  %v8030_v27 = vcombine.high %v452_v59, %v460_v23  ;;  %v467_v28 = vld [vmem:[%s9196_s23 + $0x900] sm:$0xff]  ;;  %v508_v48 = vld [vmem:[%s9196_s23 + $0xa48] sm:$0xff] }
  0x7a   : > { %5813 = vmatprep.subr.bf16.mxu0 %v7888_v29  ;;  %6069 = vmatprep.subr.bf16.mxu1 %v8016_v30  ;;  %v475_v29 = vld [vmem:[%s9196_s23 + $0x940] sm:$0xff]  ;;  %v9297_v30 = vcombine.high %v9289_v22, %v9289_v22  ;;  %v516_v56 = vld [vmem:[%s9196_s23 + $0xa88] sm:$0xff]  ;;  %v8037_v60 = vcombine.low %v500_v47, %v508_v48 }
  0x7b   : > { %v7905_v41 = vcombine.low %v467_v28, %v475_v29  ;;  %v524_v57 = vld [vmem:[%s9196_s23 + $0xac8] sm:$0xff] }
  0x7c   : > { %v532_v2 = vld [vmem:[%s9196_s23 + $0xb08] sm:$0xff]  ;;  %v8039_v6 = vcombine.low %v516_v56, %v524_v57 }
  0x7d   : > { %5815 = vmatpush1.bf16.msra.mxu0 %v7889_v35  ;;  %6071 = vmatpush1.bf16.msra.mxu1 %v8017_v36  ;;  %v7904_v35 = vcombine.high %v467_v28, %v475_v29  ;;  %v8032_v36 = vcombine.high %v468_v31, %v476_v32  ;;  %v540_v4 = vld [vmem:[%s9196_s23 + $0xb48] sm:$0xff] }
  0x7e   : > { %5817 = vmatprep.subr.bf16.mxu0 %v7890_v37  ;;  %6073 = vmatprep.subr.bf16.mxu1 %v8018_v38  ;;  %v483_v37 = vld [vmem:[%s9196_s23 + $0x980] sm:$0xff]  ;;  %v548_v11 = vld [vmem:[%s9196_s23 + $0xb88] sm:$0xff]  ;;  %v8041_v14 = vcombine.low %v532_v2, %v540_v4 }
  0x7f   : > { %v491_v38 = vld [vmem:[%s9196_s23 + $0x9c0] sm:$0xff]  ;;  %v556_v12 = vld [vmem:[%s9196_s23 + $0xbc8] sm:$0xff] }
  0x80   : > { %v7907_v49 = vcombine.low %v483_v37, %v491_v38  ;;  %v572_v20 = vld [vmem:[%s9196_s23 + $0xc48] sm:$0xff]  ;;  %v8043_v59 = vcombine.low %v548_v11, %v556_v12 }
  0x81   : > { %5819 = vmatpush1.bf16.msra.mxu0 %v7891_v43  ;;  %6075 = vmatpush1.bf16.msra.mxu1 %v8019_v44  ;;  %v7906_v43 = vcombine.high %v483_v37, %v491_v38  ;;  %v8034_v44 = vcombine.high %v484_v39, %v492_v40  ;;  %v588_v28 = vld [vmem:[%s9196_s23 + $0xcc8] sm:$0xff] }
  0x82   : > { %5821 = vmatprep.subr.bf16.mxu0 %v7892_v45  ;;  %6077 = vmatprep.subr.bf16.mxu1 %v8020_v46  ;;  %v499_v45 = vld [vmem:[%s9196_s23 + $0xa00] sm:$0xff]  ;;  %v604_v37 = vld [vmem:[%s9196_s23 + $0xd48] sm:$0xff] }
  0x83   : > { %v507_v46 = vld [vmem:[%s9196_s23 + $0xa40] sm:$0xff] }
  0x84   : > { %v7909_v58 = vcombine.low %v499_v45, %v507_v46 }
  0x85   : > { %5823 = vmatpush1.bf16.msra.mxu0 %v7893_v51  ;;  %6079 = vmatpush1.bf16.msra.mxu1 %v8021_v52  ;;  %v7908_v51 = vcombine.high %v499_v45, %v507_v46  ;;  %v8036_v52 = vcombine.high %v500_v47, %v508_v48  ;;  %v620_v45 = vld [vmem:[%s9196_s23 + $0xdc8] sm:$0xff] }
  0x86   : > { %5825 = vmatprep.subr.bf16.mxu0 %v7894_v54  ;;  %6081 = vmatprep.subr.bf16.mxu1 %v8022_v55  ;;  %v515_v54 = vld [vmem:[%s9196_s23 + $0xa80] sm:$0xff] }
  0x87   : > { %v523_v55 = vld [vmem:[%s9196_s23 + $0xac0] sm:$0xff] }
  0x88   : > { %v7911_v5 = vcombine.low %v515_v54, %v523_v55 }
  0x89   : > { %5827 = vmatpush1.bf16.msra.mxu0 %v7895_v61  ;;  %6083 = vmatpush1.bf16.msra.mxu1 %v8023_v62  ;;  %v7910_v61 = vcombine.high %v515_v54, %v523_v55  ;;  %v8038_v62 = vcombine.high %v516_v56, %v524_v57  ;;  %v636_v54 = vld [vmem:[%s9196_s23 + $0xe48] sm:$0xff] }
  0x8a   : > { %5829 = vmatprep.subr.bf16.mxu0 %v7896_v0  ;;  %6085 = vmatprep.subr.bf16.mxu1 %v8024_v1  ;;  %v531_v0 = vld [vmem:[%s9196_s23 + $0xb00] sm:$0xff] }
  0x8b   : > { %v539_v1 = vld [vmem:[%s9196_s23 + $0xb40] sm:$0xff] }
  0x8c   : > { %v7913_v13 = vcombine.low %v531_v0, %v539_v1 }
  0x8d   : > { %5831 = vmatpush1.bf16.msra.mxu0 %v7897_v7  ;;  %6087 = vmatpush1.bf16.msra.mxu1 %v8025_v8  ;;  %v7912_v7 = vcombine.high %v531_v0, %v539_v1  ;;  %v8040_v8 = vcombine.high %v532_v2, %v540_v4  ;;  %v652_v0 = vld [vmem:[%s9196_s23 + $0xec8] sm:$0xff] }
  0x8e   : > { %5833 = vmatprep.subr.bf16.mxu0 %v7898_v9  ;;  %6089 = vmatprep.subr.bf16.mxu1 %v8026_v10  ;;  %v547_v9 = vld [vmem:[%s9196_s23 + $0xb80] sm:$0xff] }
  0x8f   : > { %v555_v10 = vld [vmem:[%s9196_s23 + $0xbc0] sm:$0xff] }
  0x90   : > { %v7914_v15 = vcombine.high %v547_v9, %v555_v10  ;;  %v7915_v21 = vcombine.low %v547_v9, %v555_v10  ;;  %v668_v9 = vld [vmem:[%s9196_s23 + $0xf48] sm:$0xff] }
  0x91   : > { %5835 = vmatpush1.bf16.msra.mxu0 %v7899_v16  ;;  %6091 = vmatpush1.bf16.msra.mxu1 %v8027_v17  ;;  %v8042_v16 = vcombine.high %v548_v11, %v556_v12  ;;  %v563_v17 = vld [vmem:[%s9196_s23 + $0xc00] sm:$0xff] }
  0x92   : > { %5837 = vmatprep.subr.bf16.mxu0 %v7900_v18  ;;  %6093 = vmatprep.subr.bf16.mxu1 %v8028_v19  ;;  %v571_v18 = vld [vmem:[%s9196_s23 + $0xc40] sm:$0xff]  ;;  %v564_v19 = vld [vmem:[%s9196_s23 + $0xc08] sm:$0xff] }
  0x93   : > { %v7916_v23 = vcombine.high %v563_v17, %v571_v18  ;;  %v7917_v29 = vcombine.low %v563_v17, %v571_v18  ;;  %v8045_v31 = vcombine.low %v564_v19, %v572_v20  ;;  %v684_v17 = vld [vmem:[%s9196_s23 + $0xfc8] sm:$0xff] }
  0x94   : > { %3362 = vmatmul.mubr.f32.vlgmr.msra.gmra.mrb[0].mxu0 %v9238_v63  ;;  %3646 = vmatmul.mubr.f32.vlgmr.msra.gmra.mrb[0].mxu1 %v9238_v63 }
  0x95   : > { %5839 = vmatpush1.bf16.msra.mxu0 %v7901_v24  ;;  %6095 = vmatpush1.bf16.msra.mxu1 %v8029_v25  ;;  %v8044_v24 = vcombine.high %v564_v19, %v572_v20  ;;  %v579_v25 = vld [vmem:[%s9196_s23 + $0xc80] sm:$0xff] }
  0x96   : > { %5841 = vmatprep.subr.bf16.mxu0 %v7902_v26  ;;  %6097 = vmatprep.subr.bf16.mxu1 %v8030_v27  ;;  %v587_v26 = vld [vmem:[%s9196_s23 + $0xcc0] sm:$0xff]  ;;  %v580_v27 = vld [vmem:[%s9196_s23 + $0xc88] sm:$0xff] }
  0x97   : > { %3432 = vmatprep.mubr.f32.mxu0 %v9297_v30  ;;  %3716 = vmatprep.mubr.f32.mxu1 %v9297_v30  ;;  %v7918_v32 = vcombine.high %v579_v25, %v587_v26  ;;  %v7919_v38 = vcombine.low %v579_v25, %v587_v26  ;;  %v8047_v39 = vcombine.low %v580_v27, %v588_v28  ;;  %v700_v25 = vld [vmem:[%s9196_s23 + $0x1048] sm:$0xff]  ;;  %v9361_v26 = vld [vmem:[#allocation2 + $0x8] sm:$0xff] }
  0x99   : > { %5843 = vmatpush1.bf16.msra.mxu0 %v7903_v33  ;;  %6099 = vmatpush1.bf16.msra.mxu1 %v8031_v34  ;;  %v8046_v33 = vcombine.high %v580_v27, %v588_v28  ;;  %v595_v34 = vld [vmem:[%s9196_s23 + $0xd00] sm:$0xff] }
  0x9a   : > { %5845 = vmatprep.subr.bf16.mxu0 %v7904_v35  ;;  %6101 = vmatprep.subr.bf16.mxu1 %v8032_v36  ;;  %v603_v35 = vld [vmem:[%s9196_s23 + $0xd40] sm:$0xff]  ;;  %v596_v36 = vld [vmem:[%s9196_s23 + $0xd08] sm:$0xff] }
  0x9b   : > { %v7920_v40 = vcombine.high %v595_v34, %v603_v35  ;;  %v7921_v46 = vcombine.low %v595_v34, %v603_v35  ;;  %v8049_v47 = vcombine.low %v596_v36, %v604_v37  ;;  %v9367_v34 = vrot.slane %v9361_v26, %v9228_v53  ;;  %v708_v35 = vld [vmem:[%s9196_s23 + $0x1088] sm:$0xff] }
  0x9d   : > { %5847 = vmatpush1.bf16.msra.mxu0 %v7905_v41  ;;  %6103 = vmatpush1.bf16.msra.mxu1 %v8033_v42  ;;  %v8048_v41 = vcombine.high %v596_v36, %v604_v37  ;;  %v611_v42 = vld [vmem:[%s9196_s23 + $0xd80] sm:$0xff]  ;;  %v716_v36 = vld [vmem:[%s9196_s23 + $0x10c8] sm:$0xff] }
  0x9e   : > { %5849 = vmatprep.subr.bf16.mxu0 %v7906_v43  ;;  %6105 = vmatprep.subr.bf16.mxu1 %v8034_v44  ;;  %v619_v43 = vld [vmem:[%s9196_s23 + $0xdc0] sm:$0xff]  ;;  %v612_v44 = vld [vmem:[%s9196_s23 + $0xd88] sm:$0xff] }
  0x9f   : > { %v7922_v48 = vcombine.high %v611_v42, %v619_v43  ;;  %v7923_v55 = vcombine.low %v611_v42, %v619_v43  ;;  %v8051_v56 = vcombine.low %v612_v44, %v620_v45  ;;  %v731_v42 = vld [vmem:[%s9196_s23 + $0x1140] sm:$0xff]  ;;  %v9375_v43 = vcombine.high %v9367_v34, %v9367_v34 }
  0xa1   : > { %5851 = vmatpush1.bf16.msra.mxu0 %v7907_v49  ;;  %6107 = vmatpush1.bf16.msra.mxu1 %v8035_v50  ;;  %v8050_v49 = vcombine.high %v612_v44, %v620_v45  ;;  %v627_v50 = vld [vmem:[%s9196_s23 + $0xe00] sm:$0xff]  ;;  %v724_v44 = vld [vmem:[%s9196_s23 + $0x1108] sm:$0xff] }
  0xa2   : > { %5853 = vmatprep.subr.bf16.mxu0 %v7908_v51  ;;  %6109 = vmatprep.subr.bf16.mxu1 %v8036_v52  ;;  %v635_v51 = vld [vmem:[%s9196_s23 + $0xe40] sm:$0xff]  ;;  %v628_v52 = vld [vmem:[%s9196_s23 + $0xe08] sm:$0xff] }
  0xa3   : > { %v7924_v57 = vcombine.high %v627_v50, %v635_v51  ;;  %v7925_v1 = vcombine.low %v627_v50, %v635_v51  ;;  %v8053_v2 = vcombine.low %v628_v52, %v636_v54  ;;  %v732_v45 = vld [vmem:[%s9196_s23 + $0x1148] sm:$0xff]  ;;  %v739_v50 = vld [vmem:[%s9196_s23 + $0x1180] sm:$0xff] }
  0xa4   : > { %v747_v51 = vld [vmem:[%s9196_s23 + $0x11c0] sm:$0xff] }
  0xa5   : > { %5855 = vmatpush1.bf16.msra.mxu0 %v7909_v58  ;;  %6111 = vmatpush1.bf16.msra.mxu1 %v8037_v60  ;;  %v8052_v58 = vcombine.high %v628_v52, %v636_v54  ;;  %v643_v60 = vld [vmem:[%s9196_s23 + $0xe80] sm:$0xff]  ;;  %v740_v52 = vld [vmem:[%s9196_s23 + $0x1188] sm:$0xff] }
  0xa6   : > { %5857 = vmatprep.subr.bf16.mxu0 %v7910_v61  ;;  %6113 = vmatprep.subr.bf16.mxu1 %v8038_v62  ;;  %v651_v61 = vld [vmem:[%s9196_s23 + $0xec0] sm:$0xff]  ;;  %v644_v62 = vld [vmem:[%s9196_s23 + $0xe88] sm:$0xff] }
  0xa7   : > { %v7926_v4 = vcombine.high %v643_v60, %v651_v61  ;;  %v7927_v10 = vcombine.low %v643_v60, %v651_v61  ;;  %v8055_v11 = vcombine.low %v644_v62, %v652_v0  ;;  %v748_v54 = vld [vmem:[%s9196_s23 + $0x11c8] sm:$0xff]  ;;  %v755_v60 = vld [vmem:[%s9196_s23 + $0x1200] sm:$0xff] }
  0xa8   : > { %v763_v61 = vld [vmem:[%s9196_s23 + $0x1240] sm:$0xff] }
  0xa9   : > { %5859 = vmatpush1.bf16.msra.mxu0 %v7911_v5  ;;  %6115 = vmatpush1.bf16.msra.mxu1 %v8039_v6  ;;  %v8054_v5 = vcombine.high %v644_v62, %v652_v0  ;;  %v659_v6 = vld [vmem:[%s9196_s23 + $0xf00] sm:$0xff]  ;;  %v756_v62 = vld [vmem:[%s9196_s23 + $0x1208] sm:$0xff] }
  0xaa   : > { %5861 = vmatprep.subr.bf16.mxu0 %v7912_v7  ;;  %6117 = vmatprep.subr.bf16.mxu1 %v8040_v8  ;;  %v667_v7 = vld [vmem:[%s9196_s23 + $0xf40] sm:$0xff]  ;;  %v660_v8 = vld [vmem:[%s9196_s23 + $0xf08] sm:$0xff] }
  0xab   : > { %v7928_v12 = vcombine.high %v659_v6, %v667_v7  ;;  %v7929_v18 = vcombine.low %v659_v6, %v667_v7  ;;  %v8057_v19 = vcombine.low %v660_v8, %v668_v9  ;;  %v764_v0 = vld [vmem:[%s9196_s23 + $0x1248] sm:$0xff]  ;;  %v771_v6 = vld [vmem:[%s9196_s23 + $0x1280] sm:$0xff] }
  0xac   : > { %v779_v7 = vld [vmem:[%s9196_s23 + $0x12c0] sm:$0xff] }
  0xad   : > { %5863 = vmatpush1.bf16.msra.mxu0 %v7913_v13  ;;  %6119 = vmatpush1.bf16.msra.mxu1 %v8041_v14  ;;  %v8056_v13 = vcombine.high %v660_v8, %v668_v9  ;;  %v675_v14 = vld [vmem:[%s9196_s23 + $0xf80] sm:$0xff]  ;;  %v772_v8 = vld [vmem:[%s9196_s23 + $0x1288] sm:$0xff] }
  0xae   : > { %5865 = vmatprep.subr.bf16.mxu0 %v7914_v15  ;;  %6121 = vmatprep.subr.bf16.mxu1 %v8042_v16  ;;  %v683_v15 = vld [vmem:[%s9196_s23 + $0xfc0] sm:$0xff]  ;;  %v676_v16 = vld [vmem:[%s9196_s23 + $0xf88] sm:$0xff] }
  0xaf   : > { %v7930_v20 = vcombine.high %v675_v14, %v683_v15  ;;  %v7931_v27 = vcombine.low %v675_v14, %v683_v15  ;;  %v8059_v28 = vcombine.low %v676_v16, %v684_v17  ;;  %v780_v9 = vld [vmem:[%s9196_s23 + $0x12c8] sm:$0xff]  ;;  %v787_v14 = vld [vmem:[%s9196_s23 + $0x1300] sm:$0xff] }
  0xb0   : > { %v795_v15 = vld [vmem:[%s9196_s23 + $0x1340] sm:$0xff] }
  0xb1   : > { %5867 = vmatpush1.bf16.msra.mxu0 %v7915_v21  ;;  %6123 = vmatpush1.bf16.msra.mxu1 %v8043_v59  ;;  %v8058_v21 = vcombine.high %v676_v16, %v684_v17  ;;  %v691_v59 = vld [vmem:[%s9196_s23 + $0x1000] sm:$0xff]  ;;  %v788_v16 = vld [vmem:[%s9196_s23 + $0x1308] sm:$0xff] }
  0xb2   : > { %5869 = vmatprep.subr.bf16.mxu0 %v7916_v23  ;;  %6125 = vmatprep.subr.bf16.mxu1 %v8044_v24  ;;  %v699_v23 = vld [vmem:[%s9196_s23 + $0x1040] sm:$0xff]  ;;  %v692_v24 = vld [vmem:[%s9196_s23 + $0x1008] sm:$0xff] }
  0xb3   : > { %v7933_v37 = vcombine.low %v691_v59, %v699_v23  ;;  %v796_v17 = vld [vmem:[%s9196_s23 + $0x1348] sm:$0xff] }
  0xb5   : > { %5871 = vmatpush1.bf16.msra.mxu0 %v7917_v29  ;;  %6127 = vmatpush1.bf16.msra.mxu1 %v8045_v31  ;;  %v7932_v29 = vcombine.high %v691_v59, %v699_v23  ;;  %v8060_v31 = vcombine.high %v692_v24, %v700_v25  ;;  %v803_v59 = vld [vmem:[%s9196_s23 + $0x1380] sm:$0xff] }
  0xb6   : > { %5873 = vmatprep.subr.bf16.mxu0 %v7918_v32  ;;  %6129 = vmatprep.subr.bf16.mxu1 %v8046_v33  ;;  %v707_v32 = vld [vmem:[%s9196_s23 + $0x1080] sm:$0xff] }
  0xb7   : > { %v715_v33 = vld [vmem:[%s9196_s23 + $0x10c0] sm:$0xff] }
  0xb8   : > { %v811_v23 = vld [vmem:[%s9196_s23 + $0x13c0] sm:$0xff] }
  0xb9   : > { %5875 = vmatpush1.bf16.msra.mxu0 %v7919_v38  ;;  %6131 = vmatpush1.bf16.msra.mxu1 %v8047_v39  ;;  %v8061_v38 = vcombine.low %v692_v24, %v700_v25  ;;  %v7934_v39 = vcombine.high %v707_v32, %v715_v33  ;;  %v804_v24 = vld [vmem:[%s9196_s23 + $0x1388] sm:$0xff] }
  0xba   : > { %5877 = vmatprep.subr.bf16.mxu0 %v7920_v40  ;;  %6133 = vmatprep.subr.bf16.mxu1 %v8048_v41  ;;  %v8062_v40 = vcombine.high %v708_v35, %v716_v36  ;;  %v723_v41 = vld [vmem:[%s9196_s23 + $0x1100] sm:$0xff]  ;;  %v812_v25 = vld [vmem:[%s9196_s23 + $0x13c8] sm:$0xff] }
  0xbd   : > { %5879 = vmatpush1.bf16.msra.mxu0 %v7921_v46  ;;  %6135 = vmatpush1.bf16.msra.mxu1 %v8049_v47  ;;  %v7935_v46 = vcombine.low %v707_v32, %v715_v33  ;;  %v8063_v47 = vcombine.low %v708_v35, %v716_v36  ;;  %v819_v32 = vld [vmem:[%s9196_s23 + $0x1400] sm:$0xff]  ;;  %v820_v35 = vld [vmem:[%s9196_s23 + $0x1408] sm:$0xff] }
  0xbe   : > { %5881 = vmatprep.subr.bf16.mxu0 %v7922_v48  ;;  %6137 = vmatprep.subr.bf16.mxu1 %v8050_v49  ;;  %v7936_v48 = vcombine.high %v723_v41, %v731_v42  ;;  %v8064_v49 = vcombine.high %v724_v44, %v732_v45  ;;  %v827_v33 = vld [vmem:[%s9196_s23 + $0x1440] sm:$0xff]  ;;  %v828_v36 = vld [vmem:[%s9196_s23 + $0x1448] sm:$0xff] }
  0xc1   : > { %5883 = vmatpush1.bf16.msra.mxu0 %v7923_v55  ;;  %6139 = vmatpush1.bf16.msra.mxu1 %v8051_v56  ;;  %v7937_v55 = vcombine.low %v723_v41, %v731_v42  ;;  %v8065_v56 = vcombine.low %v724_v44, %v732_v45  ;;  %v835_v41 = vld [vmem:[%s9196_s23 + $0x1480] sm:$0xff]  ;;  %v836_v44 = vld [vmem:[%s9196_s23 + $0x1488] sm:$0xff] }
  0xc2   : > { %5885 = vmatprep.subr.bf16.mxu0 %v7924_v57  ;;  %6141 = vmatprep.subr.bf16.mxu1 %v8052_v58  ;;  %v7938_v57 = vcombine.high %v739_v50, %v747_v51  ;;  %v8066_v58 = vcombine.high %v740_v52, %v748_v54  ;;  %v843_v42 = vld [vmem:[%s9196_s23 + $0x14c0] sm:$0xff]  ;;  %v844_v45 = vld [vmem:[%s9196_s23 + $0x14c8] sm:$0xff] }
  0xc5   : > { %5887 = vmatpush1.bf16.msra.mxu0 %v7925_v1  ;;  %6143 = vmatpush1.bf16.msra.mxu1 %v8053_v2  ;;  %v7939_v1 = vcombine.low %v739_v50, %v747_v51  ;;  %v8067_v2 = vcombine.low %v740_v52, %v748_v54  ;;  %v851_v50 = vld [vmem:[%s9196_s23 + $0x1500] sm:$0xff]  ;;  %v852_v52 = vld [vmem:[%s9196_s23 + $0x1508] sm:$0xff] }
  0xc6   : > { %5889 = vmatprep.subr.bf16.mxu0 %v7926_v4  ;;  %6145 = vmatprep.subr.bf16.mxu1 %v8054_v5  ;;  %v7940_v4 = vcombine.high %v755_v60, %v763_v61  ;;  %v8068_v5 = vcombine.high %v756_v62, %v764_v0  ;;  %v859_v51 = vld [vmem:[%s9196_s23 + $0x1540] sm:$0xff]  ;;  %v860_v54 = vld [vmem:[%s9196_s23 + $0x1548] sm:$0xff] }
  0xc9   : > { %5891 = vmatpush1.bf16.msra.mxu0 %v7927_v10  ;;  %6147 = vmatpush1.bf16.msra.mxu1 %v8055_v11  ;;  %v7941_v10 = vcombine.low %v755_v60, %v763_v61  ;;  %v8069_v11 = vcombine.low %v756_v62, %v764_v0  ;;  %v867_v60 = vld [vmem:[%s9196_s23 + $0x1580] sm:$0xff]  ;;  %v868_v62 = vld [vmem:[%s9196_s23 + $0x1588] sm:$0xff] }
  0xca   : > { %5893 = vmatprep.subr.bf16.mxu0 %v7928_v12  ;;  %6149 = vmatprep.subr.bf16.mxu1 %v8056_v13  ;;  %v7942_v12 = vcombine.high %v771_v6, %v779_v7  ;;  %v8070_v13 = vcombine.high %v772_v8, %v780_v9  ;;  %v875_v61 = vld [vmem:[%s9196_s23 + $0x15c0] sm:$0xff]  ;;  %v876_v0 = vld [vmem:[%s9196_s23 + $0x15c8] sm:$0xff] }
  0xcd   : > { %5895 = vmatpush1.bf16.msra.mxu0 %v7929_v18  ;;  %6151 = vmatpush1.bf16.msra.mxu1 %v8057_v19  ;;  %v7943_v18 = vcombine.low %v771_v6, %v779_v7  ;;  %v8071_v19 = vcombine.low %v772_v8, %v780_v9  ;;  %v883_v6 = vld [vmem:[%s9196_s23 + $0x1600] sm:$0xff]  ;;  %v884_v8 = vld [vmem:[%s9196_s23 + $0x1608] sm:$0xff] }
  0xce   : > { %5897 = vmatprep.subr.bf16.mxu0 %v7930_v20  ;;  %6153 = vmatprep.subr.bf16.mxu1 %v8058_v21  ;;  %v7944_v20 = vcombine.high %v787_v14, %v795_v15  ;;  %v8072_v21 = vcombine.high %v788_v16, %v796_v17  ;;  %v891_v7 = vld [vmem:[%s9196_s23 + $0x1640] sm:$0xff]  ;;  %v892_v9 = vld [vmem:[%s9196_s23 + $0x1648] sm:$0xff] }
  0xd1   : > { %5899 = vmatpush1.bf16.msra.mxu0 %v7931_v27  ;;  %6155 = vmatpush1.bf16.msra.mxu1 %v8059_v28  ;;  %v7945_v27 = vcombine.low %v787_v14, %v795_v15  ;;  %v8073_v28 = vcombine.low %v788_v16, %v796_v17  ;;  %v899_v14 = vld [vmem:[%s9196_s23 + $0x1680] sm:$0xff]  ;;  %v900_v16 = vld [vmem:[%s9196_s23 + $0x1688] sm:$0xff] }
  0xd2   : > { %5901 = vmatprep.subr.bf16.mxu0 %v7932_v29  ;;  %6157 = vmatprep.subr.bf16.mxu1 %v8060_v31  ;;  %v7946_v29 = vcombine.high %v803_v59, %v811_v23  ;;  %v8074_v31 = vcombine.high %v804_v24, %v812_v25  ;;  %v907_v15 = vld [vmem:[%s9196_s23 + $0x16c0] sm:$0xff]  ;;  %v908_v17 = vld [vmem:[%s9196_s23 + $0x16c8] sm:$0xff] }
  0xd4   : > { %3433 = vmatmul.mubr.f32.vlgmr.msra.gmra.mrb[0].mxu0 %v9289_v22  ;;  %3717 = vmatmul.mubr.f32.vlgmr.msra.gmra.mrb[0].mxu1 %v9289_v22 }
  0xd5   : > { %5903 = vmatpush1.bf16.msra.mxu0 %v7933_v37  ;;  %6159 = vmatpush1.bf16.msra.mxu1 %v8061_v38  ;;  %v7947_v37 = vcombine.low %v803_v59, %v811_v23  ;;  %v8075_v38 = vcombine.low %v804_v24, %v812_v25  ;;  %v915_v59 = vld [vmem:[%s9196_s23 + $0x1700] sm:$0xff]  ;;  %v916_v24 = vld [vmem:[%s9196_s23 + $0x1708] sm:$0xff] }
  0xd6   : > { %5905 = vmatprep.subr.bf16.mxu0 %v7934_v39  ;;  %6161 = vmatprep.subr.bf16.mxu1 %v8062_v40  ;;  %v7948_v39 = vcombine.high %v819_v32, %v827_v33  ;;  %v8076_v40 = vcombine.high %v820_v35, %v828_v36  ;;  %v923_v23 = vld [vmem:[%s9196_s23 + $0x1740] sm:$0xff]  ;;  %v924_v25 = vld [vmem:[%s9196_s23 + $0x1748] sm:$0xff] }
  0xd7   : > { %3503 = vmatprep.mubr.f32.mxu0 %v9375_v43  ;;  %3787 = vmatprep.mubr.f32.mxu1 %v9375_v43 }
  0xd9   : > { %5907 = vmatpush1.bf16.msra.mxu0 %v7935_v46  ;;  %6163 = vmatpush1.bf16.msra.mxu1 %v8063_v47  ;;  %v7949_v46 = vcombine.low %v819_v32, %v827_v33  ;;  %v8077_v47 = vcombine.low %v820_v35, %v828_v36  ;;  %v931_v32 = vld [vmem:[%s9196_s23 + $0x1780] sm:$0xff]  ;;  %v932_v35 = vld [vmem:[%s9196_s23 + $0x1788] sm:$0xff] }
  0xda   : > { %5909 = vmatprep.subr.bf16.mxu0 %v7936_v48  ;;  %6165 = vmatprep.subr.bf16.mxu1 %v8064_v49  ;;  %v7950_v48 = vcombine.high %v835_v41, %v843_v42  ;;  %v8078_v49 = vcombine.high %v836_v44, %v844_v45  ;;  %v939_v33 = vld [vmem:[%s9196_s23 + $0x17c0] sm:$0xff]  ;;  %v940_v36 = vld [vmem:[%s9196_s23 + $0x17c8] sm:$0xff] }
  0xdd   : > { %5911 = vmatpush1.bf16.msra.mxu0 %v7937_v55  ;;  %6167 = vmatpush1.bf16.msra.mxu1 %v8065_v56  ;;  %v7951_v55 = vcombine.low %v835_v41, %v843_v42  ;;  %v8079_v56 = vcombine.low %v836_v44, %v844_v45  ;;  %v947_v41 = vld [vmem:[%s9196_s23 + $0x1800] sm:$0xff]  ;;  %v3272_v44 = vcombine.high %v9361_v26, %v9361_v26  ;;  %v948_v45 = vld [vmem:[%s9196_s23 + $0x1808] sm:$0xff] }
  0xde   : > { %5913 = vmatprep.subr.bf16.mxu0 %v7938_v57  ;;  %6169 = vmatprep.subr.bf16.mxu1 %v8066_v58  ;;  %v7952_v57 = vcombine.high %v851_v50, %v859_v51  ;;  %v8080_v58 = vcombine.high %v852_v52, %v860_v54  ;;  %v955_v42 = vld [vmem:[%s9196_s23 + $0x1840] sm:$0xff]  ;;  %v964_v26 = vld [vmem:[%s9196_s23 + $0x1888] sm:$0xff] }
  0xe1   : > { %5915 = vmatpush1.bf16.msra.mxu0 %v7939_v1  ;;  %6171 = vmatpush1.bf16.msra.mxu1 %v8067_v2  ;;  %v7953_v1 = vcombine.low %v851_v50, %v859_v51  ;;  %v8081_v2 = vcombine.low %v852_v52, %v860_v54  ;;  %v963_v51 = vld [vmem:[%s9196_s23 + $0x1880] sm:$0xff]  ;;  %v9444_v54 = vrot.slane %v3272_v44, %v9228_v53 }
  0xe2   : > { %5917 = vmatprep.subr.bf16.mxu0 %v7940_v4  ;;  %6173 = vmatprep.subr.bf16.mxu1 %v8068_v5  ;;  %v7954_v4 = vcombine.high %v867_v60, %v875_v61  ;;  %v8082_v5 = vcombine.high %v868_v62, %v876_v0  ;;  %v971_v52 = vld [vmem:[%s9196_s23 + $0x18c0] sm:$0xff] }
  0xe3   : > { %v1059_v44 = vld [vmem:[%s9196_s23 + $0x1b80] sm:$0xff] }
  0xe5   : > { %5919 = vmatpush1.bf16.msra.mxu0 %v7941_v10  ;;  %6175 = vmatpush1.bf16.msra.mxu1 %v8069_v11  ;;  %v7955_v10 = vcombine.low %v867_v60, %v875_v61  ;;  %v8083_v11 = vcombine.low %v868_v62, %v876_v0  ;;  %v979_v61 = vld [vmem:[%s9196_s23 + $0x1900] sm:$0xff]  ;;  %v9452_v0 = vcombine.high %v9444_v54, %v9444_v54 }
  0xe6   : > { %5921 = vmatprep.subr.bf16.mxu0 %v7942_v12  ;;  %6177 = vmatprep.subr.bf16.mxu1 %v8070_v13  ;;  %v7956_v12 = vcombine.high %v883_v6, %v891_v7  ;;  %v8084_v13 = vcombine.high %v884_v8, %v892_v9  ;;  %v987_v62 = vld [vmem:[%s9196_s23 + $0x1940] sm:$0xff] }
  0xe9   : > { %5923 = vmatpush1.bf16.msra.mxu0 %v7943_v18  ;;  %6179 = vmatpush1.bf16.msra.mxu1 %v8071_v19  ;;  %v7957_v18 = vcombine.low %v883_v6, %v891_v7  ;;  %v8085_v19 = vcombine.low %v884_v8, %v892_v9  ;;  %v7968_v6 = vcombine.high %v979_v61, %v987_v62  ;;  %v995_v8 = vld [vmem:[%s9196_s23 + $0x1980] sm:$0xff] }
  0xea   : > { %5925 = vmatprep.subr.bf16.mxu0 %v7944_v20  ;;  %6181 = vmatprep.subr.bf16.mxu1 %v8072_v21  ;;  %v7958_v20 = vcombine.high %v899_v14, %v907_v15  ;;  %v8086_v21 = vcombine.high %v900_v16, %v908_v17  ;;  %v1003_v9 = vld [vmem:[%s9196_s23 + $0x19c0] sm:$0xff] }
  0xed   : > { %5927 = vmatpush1.bf16.msra.mxu0 %v7945_v27  ;;  %6183 = vmatpush1.bf16.msra.mxu1 %v8073_v28  ;;  %v7959_v27 = vcombine.low %v899_v14, %v907_v15  ;;  %v8087_v28 = vcombine.low %v900_v16, %v908_v17  ;;  %v7970_v14 = vcombine.high %v995_v8, %v1003_v9  ;;  %v1011_v16 = vld [vmem:[%s9196_s23 + $0x1a00] sm:$0xff] }
  0xee   : > { %5929 = vmatprep.subr.bf16.mxu0 %v7946_v29  ;;  %6185 = vmatprep.subr.bf16.mxu1 %v8074_v31  ;;  %v7960_v29 = vcombine.high %v915_v59, %v923_v23  ;;  %v8088_v31 = vcombine.high %v916_v24, %v924_v25  ;;  %v1019_v17 = vld [vmem:[%s9196_s23 + $0x1a40] sm:$0xff] }
  0xf1   : > { %5931 = vmatpush1.bf16.msra.mxu0 %v7947_v37  ;;  %6187 = vmatpush1.bf16.msra.mxu1 %v8075_v38  ;;  %v7961_v37 = vcombine.low %v915_v59, %v923_v23  ;;  %v8089_v38 = vcombine.low %v916_v24, %v924_v25  ;;  %v7972_v59 = vcombine.high %v1011_v16, %v1019_v17  ;;  %v1027_v24 = vld [vmem:[%s9196_s23 + $0x1a80] sm:$0xff] }
  0xf2   : > { %5933 = vmatprep.subr.bf16.mxu0 %v7948_v39  ;;  %6189 = vmatprep.subr.bf16.mxu1 %v8076_v40  ;;  %v7962_v39 = vcombine.high %v931_v32, %v939_v33  ;;  %v8090_v40 = vcombine.high %v932_v35, %v940_v36  ;;  %v1035_v25 = vld [vmem:[%s9196_s23 + $0x1ac0] sm:$0xff] }
  0xf5   : > { %5935 = vmatpush1.bf16.msra.mxu0 %v7949_v46  ;;  %6191 = vmatpush1.bf16.msra.mxu1 %v8077_v47  ;;  %v956_v46 = vld [vmem:[%s9196_s23 + $0x1848] sm:$0xff]  ;;  %v7963_v47 = vcombine.low %v931_v32, %v939_v33  ;;  %v7974_v32 = vcombine.high %v1027_v24, %v1035_v25 }
  0xf6   : > { %5937 = vmatprep.subr.bf16.mxu0 %v7950_v48  ;;  %6193 = vmatprep.subr.bf16.mxu1 %v8078_v49  ;;  %v8091_v48 = vcombine.low %v932_v35, %v940_v36  ;;  %v7964_v49 = vcombine.high %v947_v41, %v955_v42  ;;  %v8092_v50 = vcombine.high %v948_v45, %v956_v46  ;;  %v1043_v35 = vld [vmem:[%s9196_s23 + $0x1b00] sm:$0xff] }
  0xf7   : > { %v1051_v36 = vld [vmem:[%s9196_s23 + $0x1b40] sm:$0xff] }
  0xf9   : > { %5939 = vmatpush1.bf16.msra.mxu0 %v7951_v55  ;;  %6195 = vmatpush1.bf16.msra.mxu1 %v8079_v56  ;;  %v972_v55 = vld [vmem:[%s9196_s23 + $0x18c8] sm:$0xff]  ;;  %v7965_v56 = vcombine.low %v947_v41, %v955_v42  ;;  %v7976_v41 = vcombine.high %v1043_v35, %v1051_v36 }
  0xfa   : > { %5941 = vmatprep.subr.bf16.mxu0 %v7952_v57  ;;  %6197 = vmatprep.subr.bf16.mxu1 %v8080_v58  ;;  %v8093_v57 = vcombine.low %v948_v45, %v956_v46  ;;  %v7966_v58 = vcombine.high %v963_v51, %v971_v52  ;;  %v8094_v60 = vcombine.high %v964_v26, %v972_v55  ;;  %v1067_v45 = vld [vmem:[%s9196_s23 + $0x1bc0] sm:$0xff]  ;;  %v1060_v46 = vld [vmem:[%s9196_s23 + $0x1b88] sm:$0xff] }
  0xfd   : > { %5943 = vmatpush1.bf16.msra.mxu0 %v7953_v1  ;;  %6199 = vmatpush1.bf16.msra.mxu1 %v8081_v2  ;;  %v980_v1 = vld [vmem:[%s9196_s23 + $0x1908] sm:$0xff] }
  0xfe   : > { %5945 = vmatprep.subr.bf16.mxu0 %v7954_v4  ;;  %6201 = vmatprep.subr.bf16.mxu1 %v8082_v5  ;;  %v988_v2 = vld [vmem:[%s9196_s23 + $0x1948] sm:$0xff]  ;;  %v7967_v4 = vcombine.low %v963_v51, %v971_v52  ;;  %v8095_v5 = vcombine.low %v964_v26, %v972_v55  ;;  %v1075_v52 = vld [vmem:[%s9196_s23 + $0x1c00] sm:$0xff] }
  0xff   : > { %v8096_v7 = vcombine.high %v980_v1, %v988_v2  ;;  %v1083_v26 = vld [vmem:[%s9196_s23 + $0x1c40] sm:$0xff]  ;;  %v1076_v55 = vld [vmem:[%s9196_s23 + $0x1c08] sm:$0xff] }
 0x101   : > { %5947 = vmatpush1.bf16.msra.mxu0 %v7955_v10  ;;  %6203 = vmatpush1.bf16.msra.mxu1 %v8083_v11  ;;  %v996_v10 = vld [vmem:[%s9196_s23 + $0x1988] sm:$0xff] }
 0x102   : > { %5949 = vmatprep.subr.bf16.mxu0 %v7956_v12  ;;  %6205 = vmatprep.subr.bf16.mxu1 %v8084_v13  ;;  %v1004_v11 = vld [vmem:[%s9196_s23 + $0x19c8] sm:$0xff]  ;;  %v7969_v12 = vcombine.low %v979_v61, %v987_v62  ;;  %v8097_v13 = vcombine.low %v980_v1, %v988_v2  ;;  %v1091_v62 = vld [vmem:[%s9196_s23 + $0x1c80] sm:$0xff] }
 0x103   : > { %v8098_v15 = vcombine.high %v996_v10, %v1004_v11  ;;  %v1099_v1 = vld [vmem:[%s9196_s23 + $0x1cc0] sm:$0xff]  ;;  %v1092_v2 = vld [vmem:[%s9196_s23 + $0x1c88] sm:$0xff] }
 0x105   : > { %5951 = vmatpush1.bf16.msra.mxu0 %v7957_v18  ;;  %6207 = vmatpush1.bf16.msra.mxu1 %v8085_v19  ;;  %v1012_v18 = vld [vmem:[%s9196_s23 + $0x1a08] sm:$0xff] }
 0x106   : > { %5953 = vmatprep.subr.bf16.mxu0 %v7958_v20  ;;  %6209 = vmatprep.subr.bf16.mxu1 %v8086_v21  ;;  %v1020_v19 = vld [vmem:[%s9196_s23 + $0x1a48] sm:$0xff]  ;;  %v7971_v20 = vcombine.low %v995_v8, %v1003_v9  ;;  %v8099_v21 = vcombine.low %v996_v10, %v1004_v11  ;;  %v1107_v9 = vld [vmem:[%s9196_s23 + $0x1d00] sm:$0xff] }
 0x107   : > { %v8100_v23 = vcombine.high %v1012_v18, %v1020_v19  ;;  %v1115_v10 = vld [vmem:[%s9196_s23 + $0x1d40] sm:$0xff]  ;;  %v1108_v11 = vld [vmem:[%s9196_s23 + $0x1d08] sm:$0xff] }
 0x109   : > { %5955 = vmatpush1.bf16.msra.mxu0 %v7959_v27  ;;  %6211 = vmatpush1.bf16.msra.mxu1 %v8087_v28  ;;  %v1028_v27 = vld [vmem:[%s9196_s23 + $0x1a88] sm:$0xff] }
 0x10a   : > { %5957 = vmatprep.subr.bf16.mxu0 %v7960_v29  ;;  %6213 = vmatprep.subr.bf16.mxu1 %v8088_v31  ;;  %v1036_v28 = vld [vmem:[%s9196_s23 + $0x1ac8] sm:$0xff]  ;;  %v7973_v29 = vcombine.low %v1011_v16, %v1019_v17  ;;  %v8101_v31 = vcombine.low %v1012_v18, %v1020_v19  ;;  %v1123_v17 = vld [vmem:[%s9196_s23 + $0x1d80] sm:$0xff] }
 0x10b   : > { %v8102_v33 = vcombine.high %v1028_v27, %v1036_v28  ;;  %v1131_v18 = vld [vmem:[%s9196_s23 + $0x1dc0] sm:$0xff]  ;;  %v1124_v19 = vld [vmem:[%s9196_s23 + $0x1d88] sm:$0xff] }
 0x10d   : > { %5959 = vmatpush1.bf16.msra.mxu0 %v7961_v37  ;;  %6215 = vmatpush1.bf16.msra.mxu1 %v8089_v38  ;;  %v1044_v37 = vld [vmem:[%s9196_s23 + $0x1b08] sm:$0xff] }
 0x10e   : > { %5961 = vmatprep.subr.bf16.mxu0 %v7962_v39  ;;  %6217 = vmatprep.subr.bf16.mxu1 %v8090_v40  ;;  %v1052_v38 = vld [vmem:[%s9196_s23 + $0x1b48] sm:$0xff]  ;;  %v7975_v39 = vcombine.low %v1027_v24, %v1035_v25  ;;  %v8103_v40 = vcombine.low %v1028_v27, %v1036_v28  ;;  %v1139_v25 = vld [vmem:[%s9196_s23 + $0x1e00] sm:$0xff] }
 0x10f   : > { %v8104_v42 = vcombine.high %v1044_v37, %v1052_v38  ;;  %v1147_v27 = vld [vmem:[%s9196_s23 + $0x1e40] sm:$0xff]  ;;  %v1140_v28 = vld [vmem:[%s9196_s23 + $0x1e08] sm:$0xff] }
 0x111   : > { %5963 = vmatpush1.bf16.msra.mxu0 %v7963_v47  ;;  %6219 = vmatpush1.bf16.msra.mxu1 %v8091_v48  ;;  %v1068_v47 = vld [vmem:[%s9196_s23 + $0x1bc8] sm:$0xff]  ;;  %v7977_v48 = vcombine.low %v1043_v35, %v1051_v36  ;;  %v1155_v36 = vld [vmem:[%s9196_s23 + $0x1e80] sm:$0xff] }
 0x112   : > { %5965 = vmatprep.subr.bf16.mxu0 %v7964_v49  ;;  %6221 = vmatprep.subr.bf16.mxu1 %v8092_v50  ;;  %v8105_v49 = vcombine.low %v1044_v37, %v1052_v38  ;;  %v7978_v50 = vcombine.high %v1059_v44, %v1067_v45  ;;  %v8106_v51 = vcombine.high %v1060_v46, %v1068_v47  ;;  %v1163_v37 = vld [vmem:[%s9196_s23 + $0x1ec0] sm:$0xff]  ;;  %v1156_v38 = vld [vmem:[%s9196_s23 + $0x1e88] sm:$0xff] }
 0x114   : > { %3504 = vmatmul.mubr.f32.vlgmr.msra.gmra.mrb[0].mxu0 %v9367_v34  ;;  %3788 = vmatmul.mubr.f32.vlgmr.msra.gmra.mrb[0].mxu1 %v9367_v34 }
 0x115   : > { %5967 = vmatpush1.bf16.msra.mxu0 %v7965_v56  ;;  %6223 = vmatpush1.bf16.msra.mxu1 %v8093_v57  ;;  %v1084_v56 = vld [vmem:[%s9196_s23 + $0x1c48] sm:$0xff]  ;;  %v7979_v57 = vcombine.low %v1059_v44, %v1067_v45  ;;  %v1171_v45 = vld [vmem:[%s9196_s23 + $0x1f00] sm:$0xff] }
 0x116   : > { %5969 = vmatprep.subr.bf16.mxu0 %v7966_v58  ;;  %6225 = vmatprep.subr.bf16.mxu1 %v8094_v60  ;;  %v8107_v58 = vcombine.low %v1060_v46, %v1068_v47  ;;  %v7980_v60 = vcombine.high %v1075_v52, %v1083_v26  ;;  %v8108_v61 = vcombine.high %v1076_v55, %v1084_v56  ;;  %v1179_v46 = vld [vmem:[%s9196_s23 + $0x1f40] sm:$0xff]  ;;  %v1172_v47 = vld [vmem:[%s9196_s23 + $0x1f08] sm:$0xff] }
 0x117   : > { %3574 = vmatprep.mubr.f32.mxu0 %v9452_v0  ;;  %3858 = vmatprep.mubr.f32.mxu1 %v9452_v0 }
 0x119   : > { %5971 = vmatpush1.bf16.msra.mxu0 %v7967_v4  ;;  %6227 = vmatpush1.bf16.msra.mxu1 %v8095_v5  ;;  %v1100_v4 = vld [vmem:[%s9196_s23 + $0x1cc8] sm:$0xff]  ;;  %v7981_v5 = vcombine.low %v1075_v52, %v1083_v26  ;;  %v1187_v26 = vld [vmem:[%s9196_s23 + $0x1f80] sm:$0xff] }
 0x11a   : > { %5973 = vmatprep.subr.bf16.mxu0 %v7968_v6  ;;  %6229 = vmatprep.subr.bf16.mxu1 %v8096_v7  ;;  %v8109_v6 = vcombine.low %v1076_v55, %v1084_v56  ;;  %v7982_v7 = vcombine.high %v1091_v62, %v1099_v1  ;;  %v8110_v8 = vcombine.high %v1092_v2, %v1100_v4  ;;  %v1195_v55 = vld [vmem:[%s9196_s23 + $0x1fc0] sm:$0xff]  ;;  %v1188_v56 = vld [vmem:[%s9196_s23 + $0x1f88] sm:$0xff] }
 0x11d   : > { %5975 = vmatpush1.bf16.msra.mxu0 %v7969_v12  ;;  %6231 = vmatpush1.bf16.msra.mxu1 %v8097_v13  ;;  %v1116_v12 = vld [vmem:[%s9196_s23 + $0x1d48] sm:$0xff]  ;;  %v7983_v13 = vcombine.low %v1091_v62, %v1099_v1  ;;  %v181_v1 = vld [vmem:[%s9196_s23 + $0x10] sm:$0xff] }
 0x11e   : > { %5977 = vmatprep.subr.bf16.mxu0 %v7970_v14  ;;  %6233 = vmatprep.subr.bf16.mxu1 %v8098_v15  ;;  %v8111_v14 = vcombine.low %v1092_v2, %v1100_v4  ;;  %v7984_v15 = vcombine.high %v1107_v9, %v1115_v10  ;;  %v8112_v16 = vcombine.high %v1108_v11, %v1116_v12  ;;  %v189_v2 = vld [vmem:[%s9196_s23 + $0x50] sm:$0xff]  ;;  %v182_v4 = vld [vmem:[%s9196_s23 + $0x18] sm:$0xff] }
 0x121   : > { %5979 = vmatpush1.bf16.msra.mxu0 %v7971_v20  ;;  %6235 = vmatpush1.bf16.msra.mxu1 %v8099_v21  ;;  %v1132_v20 = vld [vmem:[%s9196_s23 + $0x1dc8] sm:$0xff]  ;;  %v7985_v21 = vcombine.low %v1107_v9, %v1115_v10  ;;  %v197_v10 = vld [vmem:[%s9196_s23 + $0x90] sm:$0xff] }
 0x122   : > { %5981 = vmatprep.subr.bf16.mxu0 %v7972_v59  ;;  %6237 = vmatprep.subr.bf16.mxu1 %v8100_v23  ;;  %v8113_v59 = vcombine.low %v1108_v11, %v1116_v12  ;;  %v7986_v23 = vcombine.high %v1123_v17, %v1131_v18  ;;  %v8114_v24 = vcombine.high %v1124_v19, %v1132_v20  ;;  %v205_v11 = vld [vmem:[%s9196_s23 + $0xd0] sm:$0xff]  ;;  %v198_v12 = vld [vmem:[%s9196_s23 + $0x98] sm:$0xff] }
 0x125   : > { %5983 = vmatpush1.bf16.msra.mxu0 %v7973_v29  ;;  %6239 = vmatpush1.bf16.msra.mxu1 %v8101_v31  ;;  %v1148_v29 = vld [vmem:[%s9196_s23 + $0x1e48] sm:$0xff]  ;;  %v7987_v31 = vcombine.low %v1123_v17, %v1131_v18  ;;  %v213_v18 = vld [vmem:[%s9196_s23 + $0x110] sm:$0xff] }
 0x126   : > { %5985 = vmatprep.subr.bf16.mxu0 %v7974_v32  ;;  %6241 = vmatprep.subr.bf16.mxu1 %v8102_v33  ;;  %v8115_v32 = vcombine.low %v1124_v19, %v1132_v20  ;;  %v7988_v33 = vcombine.high %v1139_v25, %v1147_v27  ;;  %v8116_v35 = vcombine.high %v1140_v28, %v1148_v29  ;;  %v221_v19 = vld [vmem:[%s9196_s23 + $0x150] sm:$0xff]  ;;  %v214_v20 = vld [vmem:[%s9196_s23 + $0x118] sm:$0xff] }
 0x129   : > { %5987 = vmatpush1.bf16.msra.mxu0 %v7975_v39  ;;  %6243 = vmatpush1.bf16.msra.mxu1 %v8103_v40  ;;  %v1164_v39 = vld [vmem:[%s9196_s23 + $0x1ec8] sm:$0xff]  ;;  %v7989_v40 = vcombine.low %v1139_v25, %v1147_v27  ;;  %v229_v27 = vld [vmem:[%s9196_s23 + $0x190] sm:$0xff] }
 0x12a   : > { %5989 = vmatprep.subr.bf16.mxu0 %v7976_v41  ;;  %6245 = vmatprep.subr.bf16.mxu1 %v8104_v42  ;;  %v8117_v41 = vcombine.low %v1140_v28, %v1148_v29  ;;  %v7990_v42 = vcombine.high %v1155_v36, %v1163_v37  ;;  %v8118_v44 = vcombine.high %v1156_v38, %v1164_v39  ;;  %v237_v28 = vld [vmem:[%s9196_s23 + $0x1d0] sm:$0xff]  ;;  %v230_v29 = vld [vmem:[%s9196_s23 + $0x198] sm:$0xff] }
 0x12d   : > { %5991 = vmatpush1.bf16.msra.mxu0 %v7977_v48  ;;  %6247 = vmatpush1.bf16.msra.mxu1 %v8105_v49  ;;  %v1180_v48 = vld [vmem:[%s9196_s23 + $0x1f48] sm:$0xff]  ;;  %v7991_v49 = vcombine.low %v1155_v36, %v1163_v37  ;;  %v245_v37 = vld [vmem:[%s9196_s23 + $0x210] sm:$0xff] }
 0x12e   : > { %5993 = vmatprep.subr.bf16.mxu0 %v7978_v50  ;;  %6249 = vmatprep.subr.bf16.mxu1 %v8106_v51  ;;  %v8119_v50 = vcombine.low %v1156_v38, %v1164_v39  ;;  %v7992_v51 = vcombine.high %v1171_v45, %v1179_v46  ;;  %v8120_v52 = vcombine.high %v1172_v47, %v1180_v48  ;;  %v253_v38 = vld [vmem:[%s9196_s23 + $0x250] sm:$0xff]  ;;  %v246_v39 = vld [vmem:[%s9196_s23 + $0x218] sm:$0xff] }
 0x131   : > { %5995 = vmatpush1.bf16.msra.mxu0 %v7979_v57  ;;  %6251 = vmatpush1.bf16.msra.mxu1 %v8107_v58  ;;  %v1196_v57 = vld [vmem:[%s9196_s23 + $0x1fc8] sm:$0xff]  ;;  %v7993_v58 = vcombine.low %v1171_v45, %v1179_v46  ;;  %v261_v46 = vld [vmem:[%s9196_s23 + $0x290] sm:$0xff] }
 0x132   : > { %5997 = vmatprep.subr.bf16.mxu0 %v7980_v60  ;;  %6253 = vmatprep.subr.bf16.mxu1 %v8108_v61  ;;  %v8121_v60 = vcombine.low %v1172_v47, %v1180_v48  ;;  %v7994_v61 = vcombine.high %v1187_v26, %v1195_v55  ;;  %v8122_v62 = vcombine.high %v1188_v56, %v1196_v57  ;;  %v269_v47 = vld [vmem:[%s9196_s23 + $0x2d0] sm:$0xff]  ;;  %v262_v48 = vld [vmem:[%s9196_s23 + $0x298] sm:$0xff] }
 0x135   : > { %5999 = vmatpush1.bf16.msra.mxu0 %v7981_v5  ;;  %6255 = vmatpush1.bf16.msra.mxu1 %v8109_v6  ;;  %v190_v5 = vld [vmem:[%s9196_s23 + $0x58] sm:$0xff]  ;;  %v7995_v6 = vcombine.low %v1187_v26, %v1195_v55  ;;  %v277_v55 = vld [vmem:[%s9196_s23 + $0x310] sm:$0xff] }
 0x136   : > { %6001 = vmatprep.subr.bf16.mxu0 %v7982_v7  ;;  %6257 = vmatprep.subr.bf16.mxu1 %v8110_v8  ;;  %v8123_v7 = vcombine.low %v1188_v56, %v1196_v57  ;;  %v8124_v8 = vcombine.high %v181_v1, %v189_v2  ;;  %v8252_v9 = vcombine.high %v182_v4, %v190_v5  ;;  %v285_v56 = vld [vmem:[%s9196_s23 + $0x350] sm:$0xff]  ;;  %v278_v57 = vld [vmem:[%s9196_s23 + $0x318] sm:$0xff] }
 0x139   : > { %6003 = vmatpush1.bf16.msra.mxu0 %v7983_v13  ;;  %6259 = vmatpush1.bf16.msra.mxu1 %v8111_v14  ;;  %v206_v13 = vld [vmem:[%s9196_s23 + $0xd8] sm:$0xff]  ;;  %v8125_v14 = vcombine.low %v181_v1, %v189_v2  ;;  %v293_v2 = vld [vmem:[%s9196_s23 + $0x390] sm:$0xff] }
 0x13a   : > { %6005 = vmatprep.subr.bf16.mxu0 %v7984_v15  ;;  %6261 = vmatprep.subr.bf16.mxu1 %v8112_v16  ;;  %v8253_v15 = vcombine.low %v182_v4, %v190_v5  ;;  %v8126_v16 = vcombine.high %v197_v10, %v205_v11  ;;  %v8254_v17 = vcombine.high %v198_v12, %v206_v13  ;;  %v301_v4 = vld [vmem:[%s9196_s23 + $0x3d0] sm:$0xff]  ;;  %v294_v5 = vld [vmem:[%s9196_s23 + $0x398] sm:$0xff] }
 0x13d   : > { %6007 = vmatpush1.bf16.msra.mxu0 %v7985_v21  ;;  %6263 = vmatpush1.bf16.msra.mxu1 %v8113_v59  ;;  %v222_v21 = vld [vmem:[%s9196_s23 + $0x158] sm:$0xff]  ;;  %v8127_v59 = vcombine.low %v197_v10, %v205_v11  ;;  %v309_v11 = vld [vmem:[%s9196_s23 + $0x410] sm:$0xff] }
 0x13e   : > { %6009 = vmatprep.subr.bf16.mxu0 %v7986_v23  ;;  %6265 = vmatprep.subr.bf16.mxu1 %v8114_v24  ;;  %v8255_v23 = vcombine.low %v198_v12, %v206_v13  ;;  %v8128_v24 = vcombine.high %v213_v18, %v221_v19  ;;  %v8256_v25 = vcombine.high %v214_v20, %v222_v21  ;;  %v317_v12 = vld [vmem:[%s9196_s23 + $0x450] sm:$0xff]  ;;  %v310_v13 = vld [vmem:[%s9196_s23 + $0x418] sm:$0xff] }
 0x141   : > { %6011 = vmatpush1.bf16.msra.mxu0 %v7987_v31  ;;  %6267 = vmatpush1.bf16.msra.mxu1 %v8115_v32  ;;  %v238_v31 = vld [vmem:[%s9196_s23 + $0x1d8] sm:$0xff]  ;;  %v8129_v32 = vcombine.low %v213_v18, %v221_v19  ;;  %v325_v19 = vld [vmem:[%s9196_s23 + $0x490] sm:$0xff] }
 0x142   : > { %6013 = vmatprep.subr.bf16.mxu0 %v7988_v33  ;;  %6269 = vmatprep.subr.bf16.mxu1 %v8116_v35  ;;  %v8257_v33 = vcombine.low %v214_v20, %v222_v21  ;;  %v8130_v35 = vcombine.high %v229_v27, %v237_v28  ;;  %v8258_v36 = vcombine.high %v230_v29, %v238_v31  ;;  %v333_v20 = vld [vmem:[%s9196_s23 + $0x4d0] sm:$0xff]  ;;  %v326_v21 = vld [vmem:[%s9196_s23 + $0x498] sm:$0xff] }
 0x145   : > { %6015 = vmatpush1.bf16.msra.mxu0 %v7989_v40  ;;  %6271 = vmatpush1.bf16.msra.mxu1 %v8117_v41  ;;  %v254_v40 = vld [vmem:[%s9196_s23 + $0x258] sm:$0xff]  ;;  %v8131_v41 = vcombine.low %v229_v27, %v237_v28  ;;  %v341_v28 = vld [vmem:[%s9196_s23 + $0x510] sm:$0xff] }
 0x146   : > { %6017 = vmatprep.subr.bf16.mxu0 %v7990_v42  ;;  %6273 = vmatprep.subr.bf16.mxu1 %v8118_v44  ;;  %v8259_v42 = vcombine.low %v230_v29, %v238_v31  ;;  %v8132_v44 = vcombine.high %v245_v37, %v253_v38  ;;  %v8260_v45 = vcombine.high %v246_v39, %v254_v40  ;;  %v349_v29 = vld [vmem:[%s9196_s23 + $0x550] sm:$0xff]  ;;  %v342_v31 = vld [vmem:[%s9196_s23 + $0x518] sm:$0xff] }
 0x149   : > { %6019 = vmatpush1.bf16.msra.mxu0 %v7991_v49  ;;  %6275 = vmatpush1.bf16.msra.mxu1 %v8119_v50  ;;  %v270_v49 = vld [vmem:[%s9196_s23 + $0x2d8] sm:$0xff]  ;;  %v8133_v50 = vcombine.low %v245_v37, %v253_v38  ;;  %v357_v38 = vld [vmem:[%s9196_s23 + $0x590] sm:$0xff] }
 0x14a   : > { %6021 = vmatprep.subr.bf16.mxu0 %v7992_v51  ;;  %6277 = vmatprep.subr.bf16.mxu1 %v8120_v52  ;;  %v8261_v51 = vcombine.low %v246_v39, %v254_v40  ;;  %v8134_v52 = vcombine.high %v261_v46, %v269_v47  ;;  %v8262_v26 = vcombine.high %v262_v48, %v270_v49  ;;  %v365_v39 = vld [vmem:[%s9196_s23 + $0x5d0] sm:$0xff]  ;;  %v358_v40 = vld [vmem:[%s9196_s23 + $0x598] sm:$0xff] }
 0x14d   : > { %6023 = vmatpush1.bf16.msra.mxu0 %v7993_v58  ;;  %6279 = vmatpush1.bf16.msra.mxu1 %v8121_v60  ;;  %v286_v58 = vld [vmem:[%s9196_s23 + $0x358] sm:$0xff]  ;;  %v8135_v60 = vcombine.low %v261_v46, %v269_v47  ;;  %v373_v47 = vld [vmem:[%s9196_s23 + $0x610] sm:$0xff] }
 0x14e   : > { %6025 = vmatprep.subr.bf16.mxu0 %v7994_v61  ;;  %6281 = vmatprep.subr.bf16.mxu1 %v8122_v62  ;;  %v8263_v61 = vcombine.low %v262_v48, %v270_v49  ;;  %v8136_v62 = vcombine.high %v277_v55, %v285_v56  ;;  %v8264_v1 = vcombine.high %v278_v57, %v286_v58  ;;  %v381_v48 = vld [vmem:[%s9196_s23 + $0x650] sm:$0xff]  ;;  %v374_v49 = vld [vmem:[%s9196_s23 + $0x618] sm:$0xff] }
 0x151   : > { %6027 = vmatpush1.bf16.msra.mxu0 %v7995_v6  ;;  %6283 = vmatpush1.bf16.msra.mxu1 %v8123_v7  ;;  %v302_v6 = vld [vmem:[%s9196_s23 + $0x3d8] sm:$0xff]  ;;  %v8137_v7 = vcombine.low %v277_v55, %v285_v56  ;;  %v389_v56 = vld [vmem:[%s9196_s23 + $0x690] sm:$0xff] }
 0x152   : > { %6285 = vmatprep.subr.bf16.mxu0 %v8124_v8  ;;  %6541 = vmatprep.subr.bf16.mxu1 %v8252_v9  ;;  %v8265_v8 = vcombine.low %v278_v57, %v286_v58  ;;  %v8138_v9 = vcombine.high %v293_v2, %v301_v4  ;;  %v8266_v10 = vcombine.high %v294_v5, %v302_v6  ;;  %v397_v57 = vld [vmem:[%s9196_s23 + $0x6d0] sm:$0xff]  ;;  %v390_v58 = vld [vmem:[%s9196_s23 + $0x698] sm:$0xff] }
 0x154   : > { %3575 = vmatmul.mubr.f32.vlgmr.msra.gmra.mrb[0].mxu0 %v9444_v54  ;;  %3859 = vmatmul.mubr.f32.vlgmr.msra.gmra.mrb[0].mxu1 %v9444_v54 }
 0x155   : > { %6287 = vmatpush1.bf16.msra.mxu0 %v8125_v14  ;;  %6543 = vmatpush1.bf16.msra.mxu1 %v8253_v15  ;;  %v318_v14 = vld [vmem:[%s9196_s23 + $0x458] sm:$0xff]  ;;  %v8139_v15 = vcombine.low %v293_v2, %v301_v4  ;;  %v405_v4 = vld [vmem:[%s9196_s23 + $0x710] sm:$0xff] }
 0x156   : > { %6289 = vmatprep.subr.bf16.mxu0 %v8126_v16  ;;  %6545 = vmatprep.subr.bf16.mxu1 %v8254_v17  ;;  %v8267_v16 = vcombine.low %v294_v5, %v302_v6  ;;  %v8140_v17 = vcombine.high %v309_v11, %v317_v12  ;;  %v8268_v18 = vcombine.high %v310_v13, %v318_v14  ;;  %v413_v5 = vld [vmem:[%s9196_s23 + $0x750] sm:$0xff]  ;;  %v406_v6 = vld [vmem:[%s9196_s23 + $0x718] sm:$0xff] }
 0x157   : > { %3929 = vmatprep.mubr.f32.mxu0 %v9244_v3  ;;  %4213 = vmatprep.mubr.f32.mxu1 %v9244_v3 }
 0x159   : > { %6291 = vmatpush1.bf16.msra.mxu0 %v8127_v59  ;;  %6547 = vmatpush1.bf16.msra.mxu1 %v8255_v23  ;;  %v334_v59 = vld [vmem:[%s9196_s23 + $0x4d8] sm:$0xff]  ;;  %v8141_v23 = vcombine.low %v309_v11, %v317_v12  ;;  %v421_v12 = vld [vmem:[%s9196_s23 + $0x790] sm:$0xff] }
 0x15a   : > { %6293 = vmatprep.subr.bf16.mxu0 %v8128_v24  ;;  %6549 = vmatprep.subr.bf16.mxu1 %v8256_v25  ;;  %v8269_v24 = vcombine.low %v310_v13, %v318_v14  ;;  %v8142_v25 = vcombine.high %v325_v19, %v333_v20  ;;  %v8270_v27 = vcombine.high %v326_v21, %v334_v59  ;;  %v429_v13 = vld [vmem:[%s9196_s23 + $0x7d0] sm:$0xff]  ;;  %v422_v14 = vld [vmem:[%s9196_s23 + $0x798] sm:$0xff] }
 0x15d   : > { %6295 = vmatpush1.bf16.msra.mxu0 %v8129_v32  ;;  %6551 = vmatpush1.bf16.msra.mxu1 %v8257_v33  ;;  %v350_v32 = vld [vmem:[%s9196_s23 + $0x558] sm:$0xff]  ;;  %v8143_v33 = vcombine.low %v325_v19, %v333_v20  ;;  %v437_v20 = vld [vmem:[%s9196_s23 + $0x810] sm:$0xff] }
 0x15e   : > { %6297 = vmatprep.subr.bf16.mxu0 %v8130_v35  ;;  %6553 = vmatprep.subr.bf16.mxu1 %v8258_v36  ;;  %v8271_v35 = vcombine.low %v326_v21, %v334_v59  ;;  %v8144_v36 = vcombine.high %v341_v28, %v349_v29  ;;  %v8272_v37 = vcombine.high %v342_v31, %v350_v32  ;;  %v445_v21 = vld [vmem:[%s9196_s23 + $0x850] sm:$0xff]  ;;  %v438_v59 = vld [vmem:[%s9196_s23 + $0x818] sm:$0xff] }
 0x161   : > { %6299 = vmatpush1.bf16.msra.mxu0 %v8131_v41  ;;  %6555 = vmatpush1.bf16.msra.mxu1 %v8259_v42  ;;  %v366_v41 = vld [vmem:[%s9196_s23 + $0x5d8] sm:$0xff]  ;;  %v8145_v42 = vcombine.low %v341_v28, %v349_v29  ;;  %v453_v29 = vld [vmem:[%s9196_s23 + $0x890] sm:$0xff] }
 0x162   : > { %6301 = vmatprep.subr.bf16.mxu0 %v8132_v44  ;;  %6557 = vmatprep.subr.bf16.mxu1 %v8260_v45  ;;  %v8273_v44 = vcombine.low %v342_v31, %v350_v32  ;;  %v8146_v45 = vcombine.high %v357_v38, %v365_v39  ;;  %v8274_v46 = vcombine.high %v358_v40, %v366_v41  ;;  %v461_v31 = vld [vmem:[%s9196_s23 + $0x8d0] sm:$0xff]  ;;  %v454_v32 = vld [vmem:[%s9196_s23 + $0x898] sm:$0xff] }
 0x165   : > { %6303 = vmatpush1.bf16.msra.mxu0 %v8133_v50  ;;  %6559 = vmatpush1.bf16.msra.mxu1 %v8261_v51  ;;  %v382_v50 = vld [vmem:[%s9196_s23 + $0x658] sm:$0xff]  ;;  %v8147_v51 = vcombine.low %v357_v38, %v365_v39  ;;  %v469_v39 = vld [vmem:[%s9196_s23 + $0x910] sm:$0xff] }
 0x166   : > { %6305 = vmatprep.subr.bf16.mxu0 %v8134_v52  ;;  %6561 = vmatprep.subr.bf16.mxu1 %v8262_v26  ;;  %v8275_v52 = vcombine.low %v358_v40, %v366_v41  ;;  %v8148_v26 = vcombine.high %v373_v47, %v381_v48  ;;  %v8276_v55 = vcombine.high %v374_v49, %v382_v50  ;;  %v477_v40 = vld [vmem:[%s9196_s23 + $0x950] sm:$0xff]  ;;  %v470_v41 = vld [vmem:[%s9196_s23 + $0x918] sm:$0xff] }
 0x169   : > { %6307 = vmatpush1.bf16.msra.mxu0 %v8135_v60  ;;  %6563 = vmatpush1.bf16.msra.mxu1 %v8263_v61  ;;  %v398_v60 = vld [vmem:[%s9196_s23 + $0x6d8] sm:$0xff]  ;;  %v8149_v61 = vcombine.low %v373_v47, %v381_v48  ;;  %v485_v48 = vld [vmem:[%s9196_s23 + $0x990] sm:$0xff] }
 0x16a   : > { %6309 = vmatprep.subr.bf16.mxu0 %v8136_v62  ;;  %6565 = vmatprep.subr.bf16.mxu1 %v8264_v1  ;;  %v8277_v62 = vcombine.low %v374_v49, %v382_v50  ;;  %v8150_v1 = vcombine.high %v389_v56, %v397_v57  ;;  %v8278_v2 = vcombine.high %v390_v58, %v398_v60  ;;  %v493_v49 = vld [vmem:[%s9196_s23 + $0x9d0] sm:$0xff]  ;;  %v486_v50 = vld [vmem:[%s9196_s23 + $0x998] sm:$0xff] }
 0x16d   : > { %6311 = vmatpush1.bf16.msra.mxu0 %v8137_v7  ;;  %6567 = vmatpush1.bf16.msra.mxu1 %v8265_v8  ;;  %v414_v7 = vld [vmem:[%s9196_s23 + $0x758] sm:$0xff]  ;;  %v8151_v8 = vcombine.low %v389_v56, %v397_v57  ;;  %v501_v57 = vld [vmem:[%s9196_s23 + $0xa10] sm:$0xff] }
 0x16e   : > { %6313 = vmatprep.subr.bf16.mxu0 %v8138_v9  ;;  %6569 = vmatprep.subr.bf16.mxu1 %v8266_v10  ;;  %v8279_v9 = vcombine.low %v390_v58, %v398_v60  ;;  %v8152_v10 = vcombine.high %v405_v4, %v413_v5  ;;  %v8280_v11 = vcombine.high %v406_v6, %v414_v7  ;;  %v509_v58 = vld [vmem:[%s9196_s23 + $0xa50] sm:$0xff]  ;;  %v502_v60 = vld [vmem:[%s9196_s23 + $0xa18] sm:$0xff] }
 0x171   : > { %6315 = vmatpush1.bf16.msra.mxu0 %v8139_v15  ;;  %6571 = vmatpush1.bf16.msra.mxu1 %v8267_v16  ;;  %v430_v15 = vld [vmem:[%s9196_s23 + $0x7d8] sm:$0xff]  ;;  %v8153_v16 = vcombine.low %v405_v4, %v413_v5  ;;  %v517_v5 = vld [vmem:[%s9196_s23 + $0xa90] sm:$0xff] }
 0x172   : > { %6317 = vmatprep.subr.bf16.mxu0 %v8140_v17  ;;  %6573 = vmatprep.subr.bf16.mxu1 %v8268_v18  ;;  %v8281_v17 = vcombine.low %v406_v6, %v414_v7  ;;  %v8154_v18 = vcombine.high %v421_v12, %v429_v13  ;;  %v8282_v19 = vcombine.high %v422_v14, %v430_v15  ;;  %v525_v6 = vld [vmem:[%s9196_s23 + $0xad0] sm:$0xff]  ;;  %v518_v7 = vld [vmem:[%s9196_s23 + $0xa98] sm:$0xff] }
 0x175   : > { %6319 = vmatpush1.bf16.msra.mxu0 %v8141_v23  ;;  %6575 = vmatpush1.bf16.msra.mxu1 %v8269_v24  ;;  %v446_v23 = vld [vmem:[%s9196_s23 + $0x858] sm:$0xff]  ;;  %v8155_v24 = vcombine.low %v421_v12, %v429_v13  ;;  %v533_v13 = vld [vmem:[%s9196_s23 + $0xb10] sm:$0xff] }
 0x176   : > { %6321 = vmatprep.subr.bf16.mxu0 %v8142_v25  ;;  %6577 = vmatprep.subr.bf16.mxu1 %v8270_v27  ;;  %v8283_v25 = vcombine.low %v422_v14, %v430_v15  ;;  %v8156_v27 = vcombine.high %v437_v20, %v445_v21  ;;  %v8284_v28 = vcombine.high %v438_v59, %v446_v23  ;;  %v541_v14 = vld [vmem:[%s9196_s23 + $0xb50] sm:$0xff]  ;;  %v534_v15 = vld [vmem:[%s9196_s23 + $0xb18] sm:$0xff] }
 0x179   : > { %6323 = vmatpush1.bf16.msra.mxu0 %v8143_v33  ;;  %6579 = vmatpush1.bf16.msra.mxu1 %v8271_v35  ;;  %v462_v33 = vld [vmem:[%s9196_s23 + $0x8d8] sm:$0xff]  ;;  %v8157_v35 = vcombine.low %v437_v20, %v445_v21  ;;  %v549_v21 = vld [vmem:[%s9196_s23 + $0xb90] sm:$0xff] }
 0x17a   : > { %6325 = vmatprep.subr.bf16.mxu0 %v8144_v36  ;;  %6581 = vmatprep.subr.bf16.mxu1 %v8272_v37  ;;  %v8285_v36 = vcombine.low %v438_v59, %v446_v23  ;;  %v8158_v37 = vcombine.high %v453_v29, %v461_v31  ;;  %v8286_v38 = vcombine.high %v454_v32, %v462_v33  ;;  %v557_v59 = vld [vmem:[%s9196_s23 + $0xbd0] sm:$0xff]  ;;  %v550_v23 = vld [vmem:[%s9196_s23 + $0xb98] sm:$0xff] }
 0x17d   : > { %6327 = vmatpush1.bf16.msra.mxu0 %v8145_v42  ;;  %6583 = vmatpush1.bf16.msra.mxu1 %v8273_v44  ;;  %v478_v42 = vld [vmem:[%s9196_s23 + $0x958] sm:$0xff]  ;;  %v8159_v44 = vcombine.low %v453_v29, %v461_v31  ;;  %v565_v31 = vld [vmem:[%s9196_s23 + $0xc10] sm:$0xff] }
 0x17e   : > { %6329 = vmatprep.subr.bf16.mxu0 %v8146_v45  ;;  %6585 = vmatprep.subr.bf16.mxu1 %v8274_v46  ;;  %v8287_v45 = vcombine.low %v454_v32, %v462_v33  ;;  %v8160_v46 = vcombine.high %v469_v39, %v477_v40  ;;  %v8288_v47 = vcombine.high %v470_v41, %v478_v42  ;;  %v573_v32 = vld [vmem:[%s9196_s23 + $0xc50] sm:$0xff]  ;;  %v566_v33 = vld [vmem:[%s9196_s23 + $0xc18] sm:$0xff] }
 0x181   : > { %6331 = vmatpush1.bf16.msra.mxu0 %v8147_v51  ;;  %6587 = vmatpush1.bf16.msra.mxu1 %v8275_v52  ;;  %v494_v51 = vld [vmem:[%s9196_s23 + $0x9d8] sm:$0xff]  ;;  %v8161_v52 = vcombine.low %v469_v39, %v477_v40  ;;  %v581_v40 = vld [vmem:[%s9196_s23 + $0xc90] sm:$0xff] }
 0x182   : > { %6333 = vmatprep.subr.bf16.mxu0 %v8148_v26  ;;  %6589 = vmatprep.subr.bf16.mxu1 %v8276_v55  ;;  %v8289_v26 = vcombine.low %v470_v41, %v478_v42  ;;  %v8162_v55 = vcombine.high %v485_v48, %v493_v49  ;;  %v8290_v56 = vcombine.high %v486_v50, %v494_v51  ;;  %v589_v41 = vld [vmem:[%s9196_s23 + $0xcd0] sm:$0xff]  ;;  %v582_v42 = vld [vmem:[%s9196_s23 + $0xc98] sm:$0xff] }
 0x185   : > { %6335 = vmatpush1.bf16.msra.mxu0 %v8149_v61  ;;  %6591 = vmatpush1.bf16.msra.mxu1 %v8277_v62  ;;  %v510_v61 = vld [vmem:[%s9196_s23 + $0xa58] sm:$0xff]  ;;  %v8163_v62 = vcombine.low %v485_v48, %v493_v49  ;;  %v597_v49 = vld [vmem:[%s9196_s23 + $0xd10] sm:$0xff] }
 0x186   : > { %6337 = vmatprep.subr.bf16.mxu0 %v8150_v1  ;;  %6593 = vmatprep.subr.bf16.mxu1 %v8278_v2  ;;  %v8291_v1 = vcombine.low %v486_v50, %v494_v51  ;;  %v8164_v2 = vcombine.high %v501_v57, %v509_v58  ;;  %v8292_v4 = vcombine.high %v502_v60, %v510_v61  ;;  %v605_v50 = vld [vmem:[%s9196_s23 + $0xd50] sm:$0xff]  ;;  %v598_v51 = vld [vmem:[%s9196_s23 + $0xd18] sm:$0xff] }
 0x189   : > { %6339 = vmatpush1.bf16.msra.mxu0 %v8151_v8  ;;  %6595 = vmatpush1.bf16.msra.mxu1 %v8279_v9  ;;  %v526_v8 = vld [vmem:[%s9196_s23 + $0xad8] sm:$0xff]  ;;  %v8165_v9 = vcombine.low %v501_v57, %v509_v58  ;;  %v613_v58 = vld [vmem:[%s9196_s23 + $0xd90] sm:$0xff] }
 0x18a   : > { %6341 = vmatprep.subr.bf16.mxu0 %v8152_v10  ;;  %6597 = vmatprep.subr.bf16.mxu1 %v8280_v11  ;;  %v8293_v10 = vcombine.low %v502_v60, %v510_v61  ;;  %v8166_v11 = vcombine.high %v517_v5, %v525_v6  ;;  %v8294_v12 = vcombine.high %v518_v7, %v526_v8  ;;  %v621_v60 = vld [vmem:[%s9196_s23 + $0xdd0] sm:$0xff]  ;;  %v614_v61 = vld [vmem:[%s9196_s23 + $0xd98] sm:$0xff] }
 0x18d   : > { %6343 = vmatpush1.bf16.msra.mxu0 %v8153_v16  ;;  %6599 = vmatpush1.bf16.msra.mxu1 %v8281_v17  ;;  %v542_v16 = vld [vmem:[%s9196_s23 + $0xb58] sm:$0xff]  ;;  %v8167_v17 = vcombine.low %v517_v5, %v525_v6  ;;  %v629_v6 = vld [vmem:[%s9196_s23 + $0xe10] sm:$0xff] }
 0x18e   : > { %6345 = vmatprep.subr.bf16.mxu0 %v8154_v18  ;;  %6601 = vmatprep.subr.bf16.mxu1 %v8282_v19  ;;  %v8295_v18 = vcombine.low %v518_v7, %v526_v8  ;;  %v8168_v19 = vcombine.high %v533_v13, %v541_v14  ;;  %v8296_v20 = vcombine.high %v534_v15, %v542_v16  ;;  %v637_v7 = vld [vmem:[%s9196_s23 + $0xe50] sm:$0xff]  ;;  %v630_v8 = vld [vmem:[%s9196_s23 + $0xe18] sm:$0xff] }
 0x191   : > { %6347 = vmatpush1.bf16.msra.mxu0 %v8155_v24  ;;  %6603 = vmatpush1.bf16.msra.mxu1 %v8283_v25  ;;  %v558_v24 = vld [vmem:[%s9196_s23 + $0xbd8] sm:$0xff]  ;;  %v8169_v25 = vcombine.low %v533_v13, %v541_v14  ;;  %v645_v14 = vld [vmem:[%s9196_s23 + $0xe90] sm:$0xff] }
 0x192   : > { %6349 = vmatprep.subr.bf16.mxu0 %v8156_v27  ;;  %6605 = vmatprep.subr.bf16.mxu1 %v8284_v28  ;;  %v8297_v27 = vcombine.low %v534_v15, %v542_v16  ;;  %v8170_v28 = vcombine.high %v549_v21, %v557_v59  ;;  %v8298_v29 = vcombine.high %v550_v23, %v558_v24  ;;  %v653_v15 = vld [vmem:[%s9196_s23 + $0xed0] sm:$0xff]  ;;  %v646_v16 = vld [vmem:[%s9196_s23 + $0xe98] sm:$0xff] }
 0x194   : > { %3930 = vmatmul.mubr.f32.vlgmr.msra.gmra.mrb[2].mxu0 %v9238_v63  ;;  %4214 = vmatmul.mubr.f32.vlgmr.msra.gmra.mrb[2].mxu1 %v9238_v63 }
 0x195   : > { %6351 = vmatpush1.bf16.msra.mxu0 %v8157_v35  ;;  %6607 = vmatpush1.bf16.msra.mxu1 %v8285_v36  ;;  %v574_v35 = vld [vmem:[%s9196_s23 + $0xc58] sm:$0xff]  ;;  %v8171_v36 = vcombine.low %v549_v21, %v557_v59  ;;  %v661_v59 = vld [vmem:[%s9196_s23 + $0xf10] sm:$0xff] }
 0x196   : > { %6353 = vmatprep.subr.bf16.mxu0 %v8158_v37  ;;  %6609 = vmatprep.subr.bf16.mxu1 %v8286_v38  ;;  %v8299_v37 = vcombine.low %v550_v23, %v558_v24  ;;  %v8172_v38 = vcombine.high %v565_v31, %v573_v32  ;;  %v8300_v39 = vcombine.high %v566_v33, %v574_v35  ;;  %v669_v23 = vld [vmem:[%s9196_s23 + $0xf50] sm:$0xff]  ;;  %v662_v24 = vld [vmem:[%s9196_s23 + $0xf18] sm:$0xff] }
 0x197   : > { %4000 = vmatprep.mubr.f32.mxu0 %v9297_v30  ;;  %4284 = vmatprep.mubr.f32.mxu1 %v9297_v30 }
 0x199   : > { %6355 = vmatpush1.bf16.msra.mxu0 %v8159_v44  ;;  %6611 = vmatpush1.bf16.msra.mxu1 %v8287_v45  ;;  %v590_v44 = vld [vmem:[%s9196_s23 + $0xcd8] sm:$0xff]  ;;  %v8173_v45 = vcombine.low %v565_v31, %v573_v32  ;;  %v677_v32 = vld [vmem:[%s9196_s23 + $0xf90] sm:$0xff] }
 0x19a   : > { %6357 = vmatprep.subr.bf16.mxu0 %v8160_v46  ;;  %6613 = vmatprep.subr.bf16.mxu1 %v8288_v47  ;;  %v8301_v46 = vcombine.low %v566_v33, %v574_v35  ;;  %v8174_v47 = vcombine.high %v581_v40, %v589_v41  ;;  %v8302_v48 = vcombine.high %v582_v42, %v590_v44  ;;  %v685_v33 = vld [vmem:[%s9196_s23 + $0xfd0] sm:$0xff]  ;;  %v678_v35 = vld [vmem:[%s9196_s23 + $0xf98] sm:$0xff] }
 0x19d   : > { %6359 = vmatpush1.bf16.msra.mxu0 %v8161_v52  ;;  %6615 = vmatpush1.bf16.msra.mxu1 %v8289_v26  ;;  %v606_v52 = vld [vmem:[%s9196_s23 + $0xd58] sm:$0xff]  ;;  %v8175_v26 = vcombine.low %v581_v40, %v589_v41  ;;  %v693_v41 = vld [vmem:[%s9196_s23 + $0x1010] sm:$0xff] }
 0x19e   : > { %6361 = vmatprep.subr.bf16.mxu0 %v8162_v55  ;;  %6617 = vmatprep.subr.bf16.mxu1 %v8290_v56  ;;  %v8303_v55 = vcombine.low %v582_v42, %v590_v44  ;;  %v8176_v56 = vcombine.high %v597_v49, %v605_v50  ;;  %v8304_v57 = vcombine.high %v598_v51, %v606_v52  ;;  %v701_v42 = vld [vmem:[%s9196_s23 + $0x1050] sm:$0xff]  ;;  %v694_v44 = vld [vmem:[%s9196_s23 + $0x1018] sm:$0xff] }
 0x1a1   : > { %6363 = vmatpush1.bf16.msra.mxu0 %v8163_v62  ;;  %6619 = vmatpush1.bf16.msra.mxu1 %v8291_v1  ;;  %v622_v62 = vld [vmem:[%s9196_s23 + $0xdd8] sm:$0xff]  ;;  %v8177_v1 = vcombine.low %v597_v49, %v605_v50  ;;  %v709_v50 = vld [vmem:[%s9196_s23 + $0x1090] sm:$0xff] }
 0x1a2   : > { %6365 = vmatprep.subr.bf16.mxu0 %v8164_v2  ;;  %6621 = vmatprep.subr.bf16.mxu1 %v8292_v4  ;;  %v8305_v2 = vcombine.low %v598_v51, %v606_v52  ;;  %v8178_v4 = vcombine.high %v613_v58, %v621_v60  ;;  %v8306_v5 = vcombine.high %v614_v61, %v622_v62  ;;  %v717_v51 = vld [vmem:[%s9196_s23 + $0x10d0] sm:$0xff]  ;;  %v710_v52 = vld [vmem:[%s9196_s23 + $0x1098] sm:$0xff] }
 0x1a5   : > { %6367 = vmatpush1.bf16.msra.mxu0 %v8165_v9  ;;  %6623 = vmatpush1.bf16.msra.mxu1 %v8293_v10  ;;  %v638_v9 = vld [vmem:[%s9196_s23 + $0xe58] sm:$0xff]  ;;  %v8179_v10 = vcombine.low %v613_v58, %v621_v60  ;;  %v725_v60 = vld [vmem:[%s9196_s23 + $0x1110] sm:$0xff] }
 0x1a6   : > { %6369 = vmatprep.subr.bf16.mxu0 %v8166_v11  ;;  %6625 = vmatprep.subr.bf16.mxu1 %v8294_v12  ;;  %v8307_v11 = vcombine.low %v614_v61, %v622_v62  ;;  %v8180_v12 = vcombine.high %v629_v6, %v637_v7  ;;  %v8308_v13 = vcombine.high %v630_v8, %v638_v9  ;;  %v733_v61 = vld [vmem:[%s9196_s23 + $0x1150] sm:$0xff]  ;;  %v726_v62 = vld [vmem:[%s9196_s23 + $0x1118] sm:$0xff] }
 0x1a9   : > { %6371 = vmatpush1.bf16.msra.mxu0 %v8167_v17  ;;  %6627 = vmatpush1.bf16.msra.mxu1 %v8295_v18  ;;  %v654_v17 = vld [vmem:[%s9196_s23 + $0xed8] sm:$0xff]  ;;  %v8181_v18 = vcombine.low %v629_v6, %v637_v7  ;;  %v741_v7 = vld [vmem:[%s9196_s23 + $0x1190] sm:$0xff] }
 0x1aa   : > { %6373 = vmatprep.subr.bf16.mxu0 %v8168_v19  ;;  %6629 = vmatprep.subr.bf16.mxu1 %v8296_v20  ;;  %v8309_v19 = vcombine.low %v630_v8, %v638_v9  ;;  %v8182_v20 = vcombine.high %v645_v14, %v653_v15  ;;  %v8310_v21 = vcombine.high %v646_v16, %v654_v17  ;;  %v749_v8 = vld [vmem:[%s9196_s23 + $0x11d0] sm:$0xff]  ;;  %v742_v9 = vld [vmem:[%s9196_s23 + $0x1198] sm:$0xff] }
 0x1ad   : > { %6375 = vmatpush1.bf16.msra.mxu0 %v8169_v25  ;;  %6631 = vmatpush1.bf16.msra.mxu1 %v8297_v27  ;;  %v670_v25 = vld [vmem:[%s9196_s23 + $0xf58] sm:$0xff]  ;;  %v8183_v27 = vcombine.low %v645_v14, %v653_v15  ;;  %v757_v15 = vld [vmem:[%s9196_s23 + $0x1210] sm:$0xff] }
 0x1ae   : > { %6377 = vmatprep.subr.bf16.mxu0 %v8170_v28  ;;  %6633 = vmatprep.subr.bf16.mxu1 %v8298_v29  ;;  %v8311_v28 = vcombine.low %v646_v16, %v654_v17  ;;  %v8184_v29 = vcombine.high %v661_v59, %v669_v23  ;;  %v8312_v31 = vcombine.high %v662_v24, %v670_v25  ;;  %v765_v16 = vld [vmem:[%s9196_s23 + $0x1250] sm:$0xff]  ;;  %v758_v17 = vld [vmem:[%s9196_s23 + $0x1218] sm:$0xff] }
 0x1b1   : > { %6379 = vmatpush1.bf16.msra.mxu0 %v8171_v36  ;;  %6635 = vmatpush1.bf16.msra.mxu1 %v8299_v37  ;;  %v686_v36 = vld [vmem:[%s9196_s23 + $0xfd8] sm:$0xff]  ;;  %v8185_v37 = vcombine.low %v661_v59, %v669_v23  ;;  %v773_v23 = vld [vmem:[%s9196_s23 + $0x1290] sm:$0xff] }
 0x1b2   : > { %6381 = vmatprep.subr.bf16.mxu0 %v8172_v38  ;;  %6637 = vmatprep.subr.bf16.mxu1 %v8300_v39  ;;  %v8313_v38 = vcombine.low %v662_v24, %v670_v25  ;;  %v8186_v39 = vcombine.high %v677_v32, %v685_v33  ;;  %v8314_v40 = vcombine.high %v678_v35, %v686_v36  ;;  %v781_v24 = vld [vmem:[%s9196_s23 + $0x12d0] sm:$0xff]  ;;  %v774_v25 = vld [vmem:[%s9196_s23 + $0x1298] sm:$0xff] }
 0x1b5   : > { %6383 = vmatpush1.bf16.msra.mxu0 %v8173_v45  ;;  %6639 = vmatpush1.bf16.msra.mxu1 %v8301_v46  ;;  %v702_v45 = vld [vmem:[%s9196_s23 + $0x1058] sm:$0xff]  ;;  %v8187_v46 = vcombine.low %v677_v32, %v685_v33  ;;  %v789_v33 = vld [vmem:[%s9196_s23 + $0x1310] sm:$0xff] }
 0x1b6   : > { %6385 = vmatprep.subr.bf16.mxu0 %v8174_v47  ;;  %6641 = vmatprep.subr.bf16.mxu1 %v8302_v48  ;;  %v8315_v47 = vcombine.low %v678_v35, %v686_v36  ;;  %v8188_v48 = vcombine.high %v693_v41, %v701_v42  ;;  %v8316_v49 = vcombine.high %v694_v44, %v702_v45  ;;  %v797_v35 = vld [vmem:[%s9196_s23 + $0x1350] sm:$0xff]  ;;  %v790_v36 = vld [vmem:[%s9196_s23 + $0x1318] sm:$0xff] }
 0x1b9   : > { %6387 = vmatpush1.bf16.msra.mxu0 %v8175_v26  ;;  %6643 = vmatpush1.bf16.msra.mxu1 %v8303_v55  ;;  %v718_v26 = vld [vmem:[%s9196_s23 + $0x10d8] sm:$0xff]  ;;  %v8189_v55 = vcombine.low %v693_v41, %v701_v42  ;;  %v805_v42 = vld [vmem:[%s9196_s23 + $0x1390] sm:$0xff] }
 0x1ba   : > { %6389 = vmatprep.subr.bf16.mxu0 %v8176_v56  ;;  %6645 = vmatprep.subr.bf16.mxu1 %v8304_v57  ;;  %v8317_v56 = vcombine.low %v694_v44, %v702_v45  ;;  %v8190_v57 = vcombine.high %v709_v50, %v717_v51  ;;  %v8318_v58 = vcombine.high %v710_v52, %v718_v26  ;;  %v813_v44 = vld [vmem:[%s9196_s23 + $0x13d0] sm:$0xff]  ;;  %v806_v45 = vld [vmem:[%s9196_s23 + $0x1398] sm:$0xff] }
 0x1bd   : > { %6391 = vmatpush1.bf16.msra.mxu0 %v8177_v1  ;;  %6647 = vmatpush1.bf16.msra.mxu1 %v8305_v2  ;;  %v734_v1 = vld [vmem:[%s9196_s23 + $0x1158] sm:$0xff]  ;;  %v8191_v2 = vcombine.low %v709_v50, %v717_v51  ;;  %v821_v51 = vld [vmem:[%s9196_s23 + $0x1410] sm:$0xff] }
 0x1be   : > { %6393 = vmatprep.subr.bf16.mxu0 %v8178_v4  ;;  %6649 = vmatprep.subr.bf16.mxu1 %v8306_v5  ;;  %v8319_v4 = vcombine.low %v710_v52, %v718_v26  ;;  %v8192_v5 = vcombine.high %v725_v60, %v733_v61  ;;  %v8320_v6 = vcombine.high %v726_v62, %v734_v1  ;;  %v829_v52 = vld [vmem:[%s9196_s23 + $0x1450] sm:$0xff]  ;;  %v822_v26 = vld [vmem:[%s9196_s23 + $0x1418] sm:$0xff] }
 0x1c1   : > { %6395 = vmatpush1.bf16.msra.mxu0 %v8179_v10  ;;  %6651 = vmatpush1.bf16.msra.mxu1 %v8307_v11  ;;  %v750_v10 = vld [vmem:[%s9196_s23 + $0x11d8] sm:$0xff]  ;;  %v8193_v11 = vcombine.low %v725_v60, %v733_v61  ;;  %v837_v61 = vld [vmem:[%s9196_s23 + $0x1490] sm:$0xff] }
 0x1c2   : > { %6397 = vmatprep.subr.bf16.mxu0 %v8180_v12  ;;  %6653 = vmatprep.subr.bf16.mxu1 %v8308_v13  ;;  %v8321_v12 = vcombine.low %v726_v62, %v734_v1  ;;  %v8194_v13 = vcombine.high %v741_v7, %v749_v8  ;;  %v8322_v14 = vcombine.high %v742_v9, %v750_v10  ;;  %v845_v62 = vld [vmem:[%s9196_s23 + $0x14d0] sm:$0xff]  ;;  %v838_v1 = vld [vmem:[%s9196_s23 + $0x1498] sm:$0xff] }
 0x1c5   : > { %6399 = vmatpush1.bf16.msra.mxu0 %v8181_v18  ;;  %6655 = vmatpush1.bf16.msra.mxu1 %v8309_v19  ;;  %v766_v18 = vld [vmem:[%s9196_s23 + $0x1258] sm:$0xff]  ;;  %v8195_v19 = vcombine.low %v741_v7, %v749_v8  ;;  %v853_v8 = vld [vmem:[%s9196_s23 + $0x1510] sm:$0xff] }
 0x1c6   : > { %6401 = vmatprep.subr.bf16.mxu0 %v8182_v20  ;;  %6657 = vmatprep.subr.bf16.mxu1 %v8310_v21  ;;  %v8323_v20 = vcombine.low %v742_v9, %v750_v10  ;;  %v8196_v21 = vcombine.high %v757_v15, %v765_v16  ;;  %v8324_v59 = vcombine.high %v758_v17, %v766_v18  ;;  %v861_v9 = vld [vmem:[%s9196_s23 + $0x1550] sm:$0xff]  ;;  %v854_v10 = vld [vmem:[%s9196_s23 + $0x1518] sm:$0xff] }
 0x1c9   : > { %6403 = vmatpush1.bf16.msra.mxu0 %v8183_v27  ;;  %6659 = vmatpush1.bf16.msra.mxu1 %v8311_v28  ;;  %v782_v27 = vld [vmem:[%s9196_s23 + $0x12d8] sm:$0xff]  ;;  %v8197_v28 = vcombine.low %v757_v15, %v765_v16  ;;  %v869_v16 = vld [vmem:[%s9196_s23 + $0x1590] sm:$0xff] }
 0x1ca   : > { %6405 = vmatprep.subr.bf16.mxu0 %v8184_v29  ;;  %6661 = vmatprep.subr.bf16.mxu1 %v8312_v31  ;;  %v8325_v29 = vcombine.low %v758_v17, %v766_v18  ;;  %v8198_v31 = vcombine.high %v773_v23, %v781_v24  ;;  %v8326_v32 = vcombine.high %v774_v25, %v782_v27  ;;  %v877_v17 = vld [vmem:[%s9196_s23 + $0x15d0] sm:$0xff]  ;;  %v870_v18 = vld [vmem:[%s9196_s23 + $0x1598] sm:$0xff] }
 0x1cd   : > { %6407 = vmatpush1.bf16.msra.mxu0 %v8185_v37  ;;  %6663 = vmatpush1.bf16.msra.mxu1 %v8313_v38  ;;  %v798_v37 = vld [vmem:[%s9196_s23 + $0x1358] sm:$0xff]  ;;  %v8199_v38 = vcombine.low %v773_v23, %v781_v24  ;;  %v885_v24 = vld [vmem:[%s9196_s23 + $0x1610] sm:$0xff] }
 0x1ce   : > { %6409 = vmatprep.subr.bf16.mxu0 %v8186_v39  ;;  %6665 = vmatprep.subr.bf16.mxu1 %v8314_v40  ;;  %v8327_v39 = vcombine.low %v774_v25, %v782_v27  ;;  %v8200_v40 = vcombine.high %v789_v33, %v797_v35  ;;  %v8328_v41 = vcombine.high %v790_v36, %v798_v37  ;;  %v893_v25 = vld [vmem:[%s9196_s23 + $0x1650] sm:$0xff]  ;;  %v886_v27 = vld [vmem:[%s9196_s23 + $0x1618] sm:$0xff] }
 0x1d1   : > { %6411 = vmatpush1.bf16.msra.mxu0 %v8187_v46  ;;  %6667 = vmatpush1.bf16.msra.mxu1 %v8315_v47  ;;  %v814_v46 = vld [vmem:[%s9196_s23 + $0x13d8] sm:$0xff]  ;;  %v8201_v47 = vcombine.low %v789_v33, %v797_v35  ;;  %v901_v35 = vld [vmem:[%s9196_s23 + $0x1690] sm:$0xff] }
 0x1d2   : > { %6413 = vmatprep.subr.bf16.mxu0 %v8188_v48  ;;  %6669 = vmatprep.subr.bf16.mxu1 %v8316_v49  ;;  %v8329_v48 = vcombine.low %v790_v36, %v798_v37  ;;  %v8202_v49 = vcombine.high %v805_v42, %v813_v44  ;;  %v8330_v50 = vcombine.high %v806_v45, %v814_v46  ;;  %v909_v36 = vld [vmem:[%s9196_s23 + $0x16d0] sm:$0xff]  ;;  %v902_v37 = vld [vmem:[%s9196_s23 + $0x1698] sm:$0xff] }
 0x1d4   : > { %4001 = vmatmul.mubr.f32.vlgmr.msra.gmra.mrb[2].mxu0 %v9289_v22  ;;  %4285 = vmatmul.mubr.f32.vlgmr.msra.gmra.mrb[2].mxu1 %v9289_v22 }
 0x1d5   : > { %6415 = vmatpush1.bf16.msra.mxu0 %v8189_v55  ;;  %6671 = vmatpush1.bf16.msra.mxu1 %v8317_v56  ;;  %v830_v55 = vld [vmem:[%s9196_s23 + $0x1458] sm:$0xff]  ;;  %v8203_v56 = vcombine.low %v805_v42, %v813_v44  ;;  %v917_v44 = vld [vmem:[%s9196_s23 + $0x1710] sm:$0xff] }
 0x1d6   : > { %6417 = vmatprep.subr.bf16.mxu0 %v8190_v57  ;;  %6673 = vmatprep.subr.bf16.mxu1 %v8318_v58  ;;  %v8331_v57 = vcombine.low %v806_v45, %v814_v46  ;;  %v8204_v58 = vcombine.high %v821_v51, %v829_v52  ;;  %v8332_v60 = vcombine.high %v822_v26, %v830_v55  ;;  %v925_v45 = vld [vmem:[%s9196_s23 + $0x1750] sm:$0xff]  ;;  %v918_v46 = vld [vmem:[%s9196_s23 + $0x1718] sm:$0xff] }
 0x1d7   : > { %4071 = vmatprep.mubr.f32.mxu0 %v9375_v43  ;;  %4355 = vmatprep.mubr.f32.mxu1 %v9375_v43 }
 0x1d9   : > { %6419 = vmatpush1.bf16.msra.mxu0 %v8191_v2  ;;  %6675 = vmatpush1.bf16.msra.mxu1 %v8319_v4  ;;  %v846_v2 = vld [vmem:[%s9196_s23 + $0x14d8] sm:$0xff]  ;;  %v8205_v4 = vcombine.low %v821_v51, %v829_v52  ;;  %v933_v52 = vld [vmem:[%s9196_s23 + $0x1790] sm:$0xff] }
 0x1da   : > { %6421 = vmatprep.subr.bf16.mxu0 %v8192_v5  ;;  %6677 = vmatprep.subr.bf16.mxu1 %v8320_v6  ;;  %v8333_v5 = vcombine.low %v822_v26, %v830_v55  ;;  %v8206_v6 = vcombine.high %v837_v61, %v845_v62  ;;  %v8334_v7 = vcombine.high %v838_v1, %v846_v2  ;;  %v941_v26 = vld [vmem:[%s9196_s23 + $0x17d0] sm:$0xff]  ;;  %v934_v55 = vld [vmem:[%s9196_s23 + $0x1798] sm:$0xff] }
 0x1dd   : > { %6423 = vmatpush1.bf16.msra.mxu0 %v8193_v11  ;;  %6679 = vmatpush1.bf16.msra.mxu1 %v8321_v12  ;;  %v862_v11 = vld [vmem:[%s9196_s23 + $0x1558] sm:$0xff]  ;;  %v8207_v12 = vcombine.low %v837_v61, %v845_v62  ;;  %v949_v62 = vld [vmem:[%s9196_s23 + $0x1810] sm:$0xff] }
 0x1de   : > { %6425 = vmatprep.subr.bf16.mxu0 %v8194_v13  ;;  %6681 = vmatprep.subr.bf16.mxu1 %v8322_v14  ;;  %v8335_v13 = vcombine.low %v838_v1, %v846_v2  ;;  %v8208_v14 = vcombine.high %v853_v8, %v861_v9  ;;  %v8336_v15 = vcombine.high %v854_v10, %v862_v11  ;;  %v957_v1 = vld [vmem:[%s9196_s23 + $0x1850] sm:$0xff]  ;;  %v950_v2 = vld [vmem:[%s9196_s23 + $0x1818] sm:$0xff] }
 0x1e1   : > { %6427 = vmatpush1.bf16.msra.mxu0 %v8195_v19  ;;  %6683 = vmatpush1.bf16.msra.mxu1 %v8323_v20  ;;  %v878_v19 = vld [vmem:[%s9196_s23 + $0x15d8] sm:$0xff]  ;;  %v8209_v20 = vcombine.low %v853_v8, %v861_v9  ;;  %v965_v9 = vld [vmem:[%s9196_s23 + $0x1890] sm:$0xff] }
 0x1e2   : > { %6429 = vmatprep.subr.bf16.mxu0 %v8196_v21  ;;  %6685 = vmatprep.subr.bf16.mxu1 %v8324_v59  ;;  %v8337_v21 = vcombine.low %v854_v10, %v862_v11  ;;  %v8210_v59 = vcombine.high %v869_v16, %v877_v17  ;;  %v8338_v23 = vcombine.high %v870_v18, %v878_v19  ;;  %v973_v10 = vld [vmem:[%s9196_s23 + $0x18d0] sm:$0xff]  ;;  %v966_v11 = vld [vmem:[%s9196_s23 + $0x1898] sm:$0xff] }
 0x1e5   : > { %6431 = vmatpush1.bf16.msra.mxu0 %v8197_v28  ;;  %6687 = vmatpush1.bf16.msra.mxu1 %v8325_v29  ;;  %v894_v28 = vld [vmem:[%s9196_s23 + $0x1658] sm:$0xff]  ;;  %v8211_v29 = vcombine.low %v869_v16, %v877_v17  ;;  %v981_v17 = vld [vmem:[%s9196_s23 + $0x1910] sm:$0xff] }
 0x1e6   : > { %6433 = vmatprep.subr.bf16.mxu0 %v8198_v31  ;;  %6689 = vmatprep.subr.bf16.mxu1 %v8326_v32  ;;  %v8339_v31 = vcombine.low %v870_v18, %v878_v19  ;;  %v8212_v32 = vcombine.high %v885_v24, %v893_v25  ;;  %v8340_v33 = vcombine.high %v886_v27, %v894_v28  ;;  %v989_v18 = vld [vmem:[%s9196_s23 + $0x1950] sm:$0xff]  ;;  %v982_v19 = vld [vmem:[%s9196_s23 + $0x1918] sm:$0xff] }
 0x1e9   : > { %6435 = vmatpush1.bf16.msra.mxu0 %v8199_v38  ;;  %6691 = vmatpush1.bf16.msra.mxu1 %v8327_v39  ;;  %v910_v38 = vld [vmem:[%s9196_s23 + $0x16d8] sm:$0xff]  ;;  %v8213_v39 = vcombine.low %v885_v24, %v893_v25  ;;  %v997_v25 = vld [vmem:[%s9196_s23 + $0x1990] sm:$0xff] }
 0x1ea   : > { %6437 = vmatprep.subr.bf16.mxu0 %v8200_v40  ;;  %6693 = vmatprep.subr.bf16.mxu1 %v8328_v41  ;;  %v8341_v40 = vcombine.low %v886_v27, %v894_v28  ;;  %v8214_v41 = vcombine.high %v901_v35, %v909_v36  ;;  %v8342_v42 = vcombine.high %v902_v37, %v910_v38  ;;  %v1005_v27 = vld [vmem:[%s9196_s23 + $0x19d0] sm:$0xff]  ;;  %v998_v28 = vld [vmem:[%s9196_s23 + $0x1998] sm:$0xff] }
 0x1ed   : > { %6439 = vmatpush1.bf16.msra.mxu0 %v8201_v47  ;;  %6695 = vmatpush1.bf16.msra.mxu1 %v8329_v48  ;;  %v926_v47 = vld [vmem:[%s9196_s23 + $0x1758] sm:$0xff]  ;;  %v8215_v48 = vcombine.low %v901_v35, %v909_v36  ;;  %v1013_v36 = vld [vmem:[%s9196_s23 + $0x1a10] sm:$0xff] }
 0x1ee   : > { %6441 = vmatprep.subr.bf16.mxu0 %v8202_v49  ;;  %6697 = vmatprep.subr.bf16.mxu1 %v8330_v50  ;;  %v8343_v49 = vcombine.low %v902_v37, %v910_v38  ;;  %v8216_v50 = vcombine.high %v917_v44, %v925_v45  ;;  %v8344_v51 = vcombine.high %v918_v46, %v926_v47  ;;  %v1021_v37 = vld [vmem:[%s9196_s23 + $0x1a50] sm:$0xff]  ;;  %v1014_v38 = vld [vmem:[%s9196_s23 + $0x1a18] sm:$0xff] }
 0x1f1   : > { %6443 = vmatpush1.bf16.msra.mxu0 %v8203_v56  ;;  %6699 = vmatpush1.bf16.msra.mxu1 %v8331_v57  ;;  %v942_v56 = vld [vmem:[%s9196_s23 + $0x17d8] sm:$0xff]  ;;  %v8217_v57 = vcombine.low %v917_v44, %v925_v45  ;;  %v1029_v45 = vld [vmem:[%s9196_s23 + $0x1a90] sm:$0xff] }
 0x1f2   : > { %6445 = vmatprep.subr.bf16.mxu0 %v8204_v58  ;;  %6701 = vmatprep.subr.bf16.mxu1 %v8332_v60  ;;  %v8345_v58 = vcombine.low %v918_v46, %v926_v47  ;;  %v8218_v60 = vcombine.high %v933_v52, %v941_v26  ;;  %v8346_v61 = vcombine.high %v934_v55, %v942_v56  ;;  %v1037_v46 = vld [vmem:[%s9196_s23 + $0x1ad0] sm:$0xff]  ;;  %v1030_v47 = vld [vmem:[%s9196_s23 + $0x1a98] sm:$0xff] }
 0x1f5   : > { %6447 = vmatpush1.bf16.msra.mxu0 %v8205_v4  ;;  %6703 = vmatpush1.bf16.msra.mxu1 %v8333_v5  ;;  %v958_v4 = vld [vmem:[%s9196_s23 + $0x1858] sm:$0xff]  ;;  %v8219_v5 = vcombine.low %v933_v52, %v941_v26  ;;  %v1045_v26 = vld [vmem:[%s9196_s23 + $0x1b10] sm:$0xff] }
 0x1f6   : > { %6449 = vmatprep.subr.bf16.mxu0 %v8206_v6  ;;  %6705 = vmatprep.subr.bf16.mxu1 %v8334_v7  ;;  %v8347_v6 = vcombine.low %v934_v55, %v942_v56  ;;  %v8220_v7 = vcombine.high %v949_v62, %v957_v1  ;;  %v8348_v8 = vcombine.high %v950_v2, %v958_v4  ;;  %v1053_v55 = vld [vmem:[%s9196_s23 + $0x1b50] sm:$0xff]  ;;  %v1046_v56 = vld [vmem:[%s9196_s23 + $0x1b18] sm:$0xff] }
 0x1f9   : > { %6451 = vmatpush1.bf16.msra.mxu0 %v8207_v12  ;;  %6707 = vmatpush1.bf16.msra.mxu1 %v8335_v13  ;;  %v974_v12 = vld [vmem:[%s9196_s23 + $0x18d8] sm:$0xff]  ;;  %v8221_v13 = vcombine.low %v949_v62, %v957_v1 }
 0x1fa   : > { %6453 = vmatprep.subr.bf16.mxu0 %v8208_v14  ;;  %6709 = vmatprep.subr.bf16.mxu1 %v8336_v15  ;;  %v8349_v14 = vcombine.low %v950_v2, %v958_v4  ;;  %v8222_v15 = vcombine.high %v965_v9, %v973_v10  ;;  %v8350_v16 = vcombine.high %v966_v11, %v974_v12  ;;  %v1061_v2 = vld [vmem:[%s9196_s23 + $0x1b90] sm:$0xff] }
 0x1fb   : > { %v1069_v4 = vld [vmem:[%s9196_s23 + $0x1bd0] sm:$0xff] }
 0x1fd   : > { %6455 = vmatpush1.bf16.msra.mxu0 %v8209_v20  ;;  %6711 = vmatpush1.bf16.msra.mxu1 %v8337_v21  ;;  %v990_v20 = vld [vmem:[%s9196_s23 + $0x1958] sm:$0xff]  ;;  %v8223_v21 = vcombine.low %v965_v9, %v973_v10 }
 0x1fe   : > { %6457 = vmatprep.subr.bf16.mxu0 %v8210_v59  ;;  %6713 = vmatprep.subr.bf16.mxu1 %v8338_v23  ;;  %v8351_v59 = vcombine.low %v966_v11, %v974_v12  ;;  %v8224_v23 = vcombine.high %v981_v17, %v989_v18  ;;  %v8352_v24 = vcombine.high %v982_v19, %v990_v20  ;;  %v1070_v9 = vld [vmem:[%s9196_s23 + $0x1bd8] sm:$0xff] }
 0x201   : > { %6459 = vmatpush1.bf16.msra.mxu0 %v8211_v29  ;;  %6715 = vmatpush1.bf16.msra.mxu1 %v8339_v31  ;;  %v1006_v29 = vld [vmem:[%s9196_s23 + $0x19d8] sm:$0xff]  ;;  %v8225_v31 = vcombine.low %v981_v17, %v989_v18 }
 0x202   : > { %6461 = vmatprep.subr.bf16.mxu0 %v8212_v32  ;;  %6717 = vmatprep.subr.bf16.mxu1 %v8340_v33  ;;  %v8353_v32 = vcombine.low %v982_v19, %v990_v20  ;;  %v8226_v33 = vcombine.high %v997_v25, %v1005_v27  ;;  %v8354_v35 = vcombine.high %v998_v28, %v1006_v29  ;;  %v1077_v19 = vld [vmem:[%s9196_s23 + $0x1c10] sm:$0xff] }
 0x203   : > { %v1085_v20 = vld [vmem:[%s9196_s23 + $0x1c50] sm:$0xff] }
 0x205   : > { %6463 = vmatpush1.bf16.msra.mxu0 %v8213_v39  ;;  %6719 = vmatpush1.bf16.msra.mxu1 %v8341_v40  ;;  %v1022_v39 = vld [vmem:[%s9196_s23 + $0x1a58] sm:$0xff]  ;;  %v8227_v40 = vcombine.low %v997_v25, %v1005_v27  ;;  %v8235_v25 = vcombine.low %v1061_v2, %v1069_v4 }
 0x206   : > { %6465 = vmatprep.subr.bf16.mxu0 %v8214_v41  ;;  %6721 = vmatprep.subr.bf16.mxu1 %v8342_v42  ;;  %v8355_v41 = vcombine.low %v998_v28, %v1006_v29  ;;  %v8228_v42 = vcombine.high %v1013_v36, %v1021_v37  ;;  %v8356_v44 = vcombine.high %v1014_v38, %v1022_v39 }
 0x207   : > { %v8236_v29 = vcombine.high %v1077_v19, %v1085_v20 }
 0x209   : > { %6467 = vmatpush1.bf16.msra.mxu0 %v8215_v48  ;;  %6723 = vmatpush1.bf16.msra.mxu1 %v8343_v49  ;;  %v1038_v48 = vld [vmem:[%s9196_s23 + $0x1ad8] sm:$0xff]  ;;  %v8229_v49 = vcombine.low %v1013_v36, %v1021_v37 }
 0x20a   : > { %6469 = vmatprep.subr.bf16.mxu0 %v8216_v50  ;;  %6725 = vmatprep.subr.bf16.mxu1 %v8344_v51  ;;  %v8357_v50 = vcombine.low %v1014_v38, %v1022_v39  ;;  %v8230_v51 = vcombine.high %v1029_v45, %v1037_v46  ;;  %v8358_v52 = vcombine.high %v1030_v47, %v1038_v48  ;;  %v1094_v36 = vld [vmem:[%s9196_s23 + $0x1c98] sm:$0xff] }
 0x20b   : > { %v1102_v37 = vld [vmem:[%s9196_s23 + $0x1cd8] sm:$0xff]  ;;  %v8237_v38 = vcombine.low %v1077_v19, %v1085_v20 }
 0x20c   : > { %v1182_v19 = vld [vmem:[%s9196_s23 + $0x1f58] sm:$0xff] }
 0x20d   : > { %6471 = vmatpush1.bf16.msra.mxu0 %v8217_v57  ;;  %6727 = vmatpush1.bf16.msra.mxu1 %v8345_v58  ;;  %v1054_v57 = vld [vmem:[%s9196_s23 + $0x1b58] sm:$0xff]  ;;  %v8231_v58 = vcombine.low %v1029_v45, %v1037_v46 }
 0x20e   : > { %6473 = vmatprep.subr.bf16.mxu0 %v8218_v60  ;;  %6729 = vmatprep.subr.bf16.mxu1 %v8346_v61  ;;  %v8359_v60 = vcombine.low %v1030_v47, %v1038_v48  ;;  %v8232_v61 = vcombine.high %v1045_v26, %v1053_v55  ;;  %v8360_v1 = vcombine.high %v1046_v56, %v1054_v57  ;;  %v1110_v45 = vld [vmem:[%s9196_s23 + $0x1d18] sm:$0xff] }
 0x20f   : > { %v1118_v46 = vld [vmem:[%s9196_s23 + $0x1d58] sm:$0xff]  ;;  %v8367_v48 = vcombine.low %v1094_v36, %v1102_v37 }
 0x211   : > { %6475 = vmatpush1.bf16.msra.mxu0 %v8219_v5  ;;  %6731 = vmatpush1.bf16.msra.mxu1 %v8347_v6 }
 0x212   : > { %6477 = vmatprep.subr.bf16.mxu0 %v8220_v7  ;;  %6733 = vmatprep.subr.bf16.mxu1 %v8348_v8  ;;  %v1062_v8 = vld [vmem:[%s9196_s23 + $0x1b98] sm:$0xff] }
 0x213   : > { %v8362_v18 = vcombine.high %v1062_v8, %v1070_v9  ;;  %v8363_v28 = vcombine.low %v1062_v8, %v1070_v9  ;;  %v1157_v8 = vld [vmem:[%s9196_s23 + $0x1e90] sm:$0xff] }
 0x214   : > { %4072 = vmatmul.mubr.f32.vlgmr.msra.gmra.mrb[2].mxu0 %v9367_v34  ;;  %4356 = vmatmul.mubr.f32.vlgmr.msra.gmra.mrb[2].mxu1 %v9367_v34  ;;  %v1165_v9 = vld [vmem:[%s9196_s23 + $0x1ed0] sm:$0xff] }
 0x215   : > { %6479 = vmatpush1.bf16.msra.mxu0 %v8221_v13  ;;  %6735 = vmatpush1.bf16.msra.mxu1 %v8349_v14  ;;  %v8233_v13 = vcombine.low %v1045_v26, %v1053_v55  ;;  %v1126_v26 = vld [vmem:[%s9196_s23 + $0x1d98] sm:$0xff]  ;;  %v8247_v20 = vcombine.low %v1157_v8, %v1165_v9 }
 0x216   : > { %6481 = vmatprep.subr.bf16.mxu0 %v8222_v15  ;;  %6737 = vmatprep.subr.bf16.mxu1 %v8350_v16  ;;  %v8361_v15 = vcombine.low %v1046_v56, %v1054_v57  ;;  %v8234_v16 = vcombine.high %v1061_v2, %v1069_v4  ;;  %v1134_v55 = vld [vmem:[%s9196_s23 + $0x1dd8] sm:$0xff]  ;;  %v8369_v57 = vcombine.low %v1110_v45, %v1118_v46 }
 0x217   : > { %4142 = vmatprep.mubr.f32.mxu0 %v9452_v0  ;;  %4426 = vmatprep.mubr.f32.mxu1 %v9452_v0  ;;  %v1150_v2 = vld [vmem:[%s9196_s23 + $0x1e58] sm:$0xff] }
 0x219   : > { %6483 = vmatpush1.bf16.msra.mxu0 %v8223_v21  ;;  %6739 = vmatpush1.bf16.msra.mxu1 %v8351_v59  ;;  %v1078_v59 = vld [vmem:[%s9196_s23 + $0x1c18] sm:$0xff] }
 0x21a   : > { %6485 = vmatprep.subr.bf16.mxu0 %v8224_v23  ;;  %6741 = vmatprep.subr.bf16.mxu1 %v8352_v24  ;;  %v1086_v23 = vld [vmem:[%s9196_s23 + $0x1c58] sm:$0xff] }
 0x21b   : > { %v8365_v39 = vcombine.low %v1078_v59, %v1086_v23 }
 0x21d   : > { %6487 = vmatpush1.bf16.msra.mxu0 %v8225_v31  ;;  %6743 = vmatpush1.bf16.msra.mxu1 %v8353_v32  ;;  %v8364_v31 = vcombine.high %v1078_v59, %v1086_v23  ;;  %v1093_v32 = vld [vmem:[%s9196_s23 + $0x1c90] sm:$0xff] }
 0x21e   : > { %6489 = vmatprep.subr.bf16.mxu0 %v8226_v33  ;;  %6745 = vmatprep.subr.bf16.mxu1 %v8354_v35  ;;  %v1101_v33 = vld [vmem:[%s9196_s23 + $0x1cd0] sm:$0xff] }
 0x21f   : > { %v8239_v47 = vcombine.low %v1093_v32, %v1101_v33 }
 0x221   : > { %6491 = vmatpush1.bf16.msra.mxu0 %v8227_v40  ;;  %6747 = vmatpush1.bf16.msra.mxu1 %v8355_v41  ;;  %v8238_v40 = vcombine.high %v1093_v32, %v1101_v33  ;;  %v8366_v41 = vcombine.high %v1094_v36, %v1102_v37  ;;  %v191_v36 = vld [vmem:[%s9196_s23 + $0x60] sm:$0xff]  ;;  %v184_v37 = vld [vmem:[%s9196_s23 + $0x28] sm:$0xff] }
 0x222   : > { %6493 = vmatprep.subr.bf16.mxu0 %v8228_v42  ;;  %6749 = vmatprep.subr.bf16.mxu1 %v8356_v44  ;;  %v1109_v42 = vld [vmem:[%s9196_s23 + $0x1d10] sm:$0xff] }
 0x223   : > { %v1117_v44 = vld [vmem:[%s9196_s23 + $0x1d50] sm:$0xff] }
 0x224   : > { %v8241_v56 = vcombine.low %v1109_v42, %v1117_v44 }
 0x225   : > { %6495 = vmatpush1.bf16.msra.mxu0 %v8229_v49  ;;  %6751 = vmatpush1.bf16.msra.mxu1 %v8357_v50  ;;  %v8240_v49 = vcombine.high %v1109_v42, %v1117_v44  ;;  %v8368_v50 = vcombine.high %v1110_v45, %v1118_v46  ;;  %v199_v44 = vld [vmem:[%s9196_s23 + $0xa0] sm:$0xff]  ;;  %v200_v46 = vld [vmem:[%s9196_s23 + $0xa8] sm:$0xff] }
 0x226   : > { %6497 = vmatprep.subr.bf16.mxu0 %v8230_v51  ;;  %6753 = vmatprep.subr.bf16.mxu1 %v8358_v52  ;;  %v1125_v51 = vld [vmem:[%s9196_s23 + $0x1d90] sm:$0xff]  ;;  %v207_v45 = vld [vmem:[%s9196_s23 + $0xe0] sm:$0xff] }
 0x227   : > { %v3576_v62 = vpop.f32.mrb[0].mxu0  ;;  %v3860_v6 = vpop.f32.mrb[0].mxu1  ;;  %v1133_v52 = vld [vmem:[%s9196_s23 + $0x1dd0] sm:$0xff] }
 0x228   : > { %v5569_v5 = vmax.f32 %v3576_v62, 0.0  ;;  %v3578_v7 = vpop.f32.mrb[1].mxu0  ;;  %v5571_v10 = vmax.f32 %v3860_v6, 0.0  ;;  %v3862_v12 = vpop.f32.mrb[1].mxu1  ;;  %v1149_v62 = vld [vmem:[%s9196_s23 + $0x1e50] sm:$0xff]  ;;  %v8243_v4 = vcombine.low %v1125_v51, %v1133_v52 }
 0x229   : > { %v5570_v11 = vmax.f32 %v3578_v7, 0.0  ;;  %6499 = vmatpush1.bf16.msra.mxu0 %v8231_v58  ;;  %v5572_v14 = vmax.f32 %v3862_v12, 0.0  ;;  %6755 = vmatpush1.bf16.msra.mxu1 %v8359_v60  ;;  %v8242_v58 = vcombine.high %v1125_v51, %v1133_v52  ;;  %v8370_v60 = vcombine.high %v1126_v26, %v1134_v55  ;;  %v215_v52 = vld [vmem:[%s9196_s23 + $0x120] sm:$0xff] }
 0x22a   : > { %6501 = vmatprep.subr.bf16.mxu0 %v8232_v61  ;;  %6757 = vmatprep.subr.bf16.mxu1 %v8360_v1  ;;  %v1141_v61 = vld [vmem:[%s9196_s23 + $0x1e10] sm:$0xff]  ;;  %v1142_v1 = vld [vmem:[%s9196_s23 + $0x1e18] sm:$0xff] }
 0x22b   : > { %v5601_v17 = vcombine.low %v5569_v5, %v5570_v11  ;;  %v5602_v21 = vcombine.low %v5571_v10, %v5572_v14  ;;  %v8371_v5 = vcombine.low %v1126_v26, %v1134_v55  ;;  %v8244_v6 = vcombine.high %v1141_v61, %v1149_v62  ;;  %v1158_v10 = vld [vmem:[%s9196_s23 + $0x1e98] sm:$0xff]  ;;  %v223_v26 = vld [vmem:[%s9196_s23 + $0x160] sm:$0xff]  ;;  %v216_v55 = vld [vmem:[%s9196_s23 + $0x128] sm:$0xff] }
 0x22c   : > { %v8372_v7 = vcombine.high %v1142_v1, %v1150_v2  ;;  %v1166_v11 = vld [vmem:[%s9196_s23 + $0x1ed8] sm:$0xff]  ;;  %v8245_v12 = vcombine.low %v1141_v61, %v1149_v62  ;;  %v8246_v14 = vcombine.high %v1157_v8, %v1165_v9  ;;  %v231_v62 = vld [vmem:[%s9196_s23 + $0x1a0] sm:$0xff] }
 0x22d   : > { %v5609_v24 = vrot.slane %v5601_v17, %v9228_v53  ;;  %6503 = vmatpush1.bf16.msra.mxu0 %v8233_v13  ;;  %v5616_v27 = vrot.slane %v5602_v21, %v9228_v53  ;;  %6759 = vmatpush1.bf16.msra.mxu1 %v8361_v15  ;;  %v8373_v13 = vcombine.low %v1142_v1, %v1150_v2  ;;  %v1181_v17 = vld [vmem:[%s9196_s23 + $0x1f50] sm:$0xff]  ;;  %v239_v1 = vld [vmem:[%s9196_s23 + $0x1e0] sm:$0xff]  ;;  %v232_v2 = vld [vmem:[%s9196_s23 + $0x1a8] sm:$0xff] }
 0x22e   : > { %6505 = vmatprep.subr.bf16.mxu0 %v8234_v16  ;;  %6761 = vmatprep.subr.bf16.mxu1 %v8362_v18  ;;  %v8374_v15 = vcombine.high %v1158_v10, %v1166_v11  ;;  %v1173_v16 = vld [vmem:[%s9196_s23 + $0x1f10] sm:$0xff]  ;;  %v1174_v18 = vld [vmem:[%s9196_s23 + $0x1f18] sm:$0xff]  ;;  %v8375_v21 = vcombine.low %v1158_v10, %v1166_v11  ;;  %v247_v9 = vld [vmem:[%s9196_s23 + $0x220] sm:$0xff] }
 0x22f   : > { %v5617_v35 = vcombine.low %v5609_v24, %v5616_v27  ;;  %v8248_v59 = vcombine.high %v1173_v16, %v1181_v17  ;;  %v8376_v23 = vcombine.high %v1174_v18, %v1182_v19  ;;  %v1189_v24 = vld [vmem:[%s9196_s23 + $0x1f90] sm:$0xff]  ;;  %v1190_v27 = vld [vmem:[%s9196_s23 + $0x1f98] sm:$0xff]  ;;  %v255_v10 = vld [vmem:[%s9196_s23 + $0x260] sm:$0xff] }
 0x230   : > { %v248_v11 = vld [vmem:[%s9196_s23 + $0x228] sm:$0xff] }
 0x231   : > { %6507 = vmatpush1.bf16.msra.mxu0 %v8235_v25  ;;  %5673 = vst [vmem:[%s9767_s21] sm:$0xff] %v5617_v35  ;;  %6763 = vmatpush1.bf16.msra.mxu1 %v8363_v28  ;;  %v1197_v25 = vld [vmem:[%s9196_s23 + $0x1fd0] sm:$0xff]  ;;  %v1198_v28 = vld [vmem:[%s9196_s23 + $0x1fd8] sm:$0xff]  ;;  %v183_v35 = vld [vmem:[%s9196_s23 + $0x20] sm:$0xff] }
 0x232   : > { %6509 = vmatprep.subr.bf16.mxu0 %v8236_v29  ;;  %6765 = vmatprep.subr.bf16.mxu1 %v8364_v31  ;;  %v8249_v29 = vcombine.low %v1173_v16, %v1181_v17  ;;  %v8377_v31 = vcombine.low %v1174_v18, %v1182_v19  ;;  %v8250_v32 = vcombine.high %v1189_v24, %v1197_v25  ;;  %v263_v17 = vld [vmem:[%s9196_s23 + $0x2a0] sm:$0xff]  ;;  %v264_v19 = vld [vmem:[%s9196_s23 + $0x2a8] sm:$0xff] }
 0x233   : > { %v8378_v33 = vcombine.high %v1190_v27, %v1198_v28  ;;  %v271_v18 = vld [vmem:[%s9196_s23 + $0x2e0] sm:$0xff] }
 0x235   : > { %6511 = vmatpush1.bf16.msra.mxu0 %v8237_v38  ;;  %6767 = vmatpush1.bf16.msra.mxu1 %v8365_v39  ;;  %v192_v38 = vld [vmem:[%s9196_s23 + $0x68] sm:$0xff]  ;;  %v8251_v39 = vcombine.low %v1189_v24, %v1197_v25  ;;  %v279_v25 = vld [vmem:[%s9196_s23 + $0x320] sm:$0xff] }
 0x236   : > { %6513 = vmatprep.subr.bf16.mxu0 %v8238_v40  ;;  %6769 = vmatprep.subr.bf16.mxu1 %v8366_v41  ;;  %v8379_v40 = vcombine.low %v1190_v27, %v1198_v28  ;;  %v8380_v41 = vcombine.high %v183_v35, %v191_v36  ;;  %v8508_v42 = vcombine.high %v184_v37, %v192_v38  ;;  %v287_v27 = vld [vmem:[%s9196_s23 + $0x360] sm:$0xff]  ;;  %v280_v28 = vld [vmem:[%s9196_s23 + $0x328] sm:$0xff] }
 0x239   : > { %6515 = vmatpush1.bf16.msra.mxu0 %v8239_v47  ;;  %6771 = vmatpush1.bf16.msra.mxu1 %v8367_v48  ;;  %v208_v47 = vld [vmem:[%s9196_s23 + $0xe8] sm:$0xff]  ;;  %v8381_v48 = vcombine.low %v183_v35, %v191_v36  ;;  %v295_v36 = vld [vmem:[%s9196_s23 + $0x3a0] sm:$0xff] }
 0x23a   : > { %6517 = vmatprep.subr.bf16.mxu0 %v8240_v49  ;;  %6773 = vmatprep.subr.bf16.mxu1 %v8368_v50  ;;  %v8509_v49 = vcombine.low %v184_v37, %v192_v38  ;;  %v8382_v50 = vcombine.high %v199_v44, %v207_v45  ;;  %v8510_v51 = vcombine.high %v200_v46, %v208_v47  ;;  %v303_v37 = vld [vmem:[%s9196_s23 + $0x3e0] sm:$0xff]  ;;  %v296_v38 = vld [vmem:[%s9196_s23 + $0x3a8] sm:$0xff] }
 0x23d   : > { %6519 = vmatpush1.bf16.msra.mxu0 %v8241_v56  ;;  %6775 = vmatpush1.bf16.msra.mxu1 %v8369_v57  ;;  %v224_v56 = vld [vmem:[%s9196_s23 + $0x168] sm:$0xff]  ;;  %v8383_v57 = vcombine.low %v199_v44, %v207_v45  ;;  %v311_v45 = vld [vmem:[%s9196_s23 + $0x420] sm:$0xff] }
 0x23e   : > { %6521 = vmatprep.subr.bf16.mxu0 %v8242_v58  ;;  %6777 = vmatprep.subr.bf16.mxu1 %v8370_v60  ;;  %v8511_v58 = vcombine.low %v200_v46, %v208_v47  ;;  %v8384_v60 = vcombine.high %v215_v52, %v223_v26  ;;  %v8512_v61 = vcombine.high %v216_v55, %v224_v56  ;;  %v319_v46 = vld [vmem:[%s9196_s23 + $0x460] sm:$0xff]  ;;  %v312_v47 = vld [vmem:[%s9196_s23 + $0x428] sm:$0xff] }
 0x241   : > { %6523 = vmatpush1.bf16.msra.mxu0 %v8243_v4  ;;  %6779 = vmatpush1.bf16.msra.mxu1 %v8371_v5  ;;  %v240_v4 = vld [vmem:[%s9196_s23 + $0x1e8] sm:$0xff]  ;;  %v8385_v5 = vcombine.low %v215_v52, %v223_v26  ;;  %v327_v26 = vld [vmem:[%s9196_s23 + $0x4a0] sm:$0xff] }
 0x242   : > { %6525 = vmatprep.subr.bf16.mxu0 %v8244_v6  ;;  %6781 = vmatprep.subr.bf16.mxu1 %v8372_v7  ;;  %v8513_v6 = vcombine.low %v216_v55, %v224_v56  ;;  %v8386_v7 = vcombine.high %v231_v62, %v239_v1  ;;  %v8514_v8 = vcombine.high %v232_v2, %v240_v4  ;;  %v335_v55 = vld [vmem:[%s9196_s23 + $0x4e0] sm:$0xff]  ;;  %v328_v56 = vld [vmem:[%s9196_s23 + $0x4a8] sm:$0xff] }
 0x245   : > { %6527 = vmatpush1.bf16.msra.mxu0 %v8245_v12  ;;  %6783 = vmatpush1.bf16.msra.mxu1 %v8373_v13  ;;  %v256_v12 = vld [vmem:[%s9196_s23 + $0x268] sm:$0xff]  ;;  %v8387_v13 = vcombine.low %v231_v62, %v239_v1  ;;  %v343_v1 = vld [vmem:[%s9196_s23 + $0x520] sm:$0xff] }
 0x246   : > { %6529 = vmatprep.subr.bf16.mxu0 %v8246_v14  ;;  %6785 = vmatprep.subr.bf16.mxu1 %v8374_v15  ;;  %v8515_v14 = vcombine.low %v232_v2, %v240_v4  ;;  %v8388_v15 = vcombine.high %v247_v9, %v255_v10  ;;  %v8516_v16 = vcombine.high %v248_v11, %v256_v12  ;;  %v351_v2 = vld [vmem:[%s9196_s23 + $0x560] sm:$0xff]  ;;  %v344_v4 = vld [vmem:[%s9196_s23 + $0x528] sm:$0xff] }
 0x249   : > { %6531 = vmatpush1.bf16.msra.mxu0 %v8247_v20  ;;  %6787 = vmatpush1.bf16.msra.mxu1 %v8375_v21  ;;  %v272_v20 = vld [vmem:[%s9196_s23 + $0x2e8] sm:$0xff]  ;;  %v8389_v21 = vcombine.low %v247_v9, %v255_v10  ;;  %v359_v10 = vld [vmem:[%s9196_s23 + $0x5a0] sm:$0xff] }
 0x24a   : > { %6533 = vmatprep.subr.bf16.mxu0 %v8248_v59  ;;  %6789 = vmatprep.subr.bf16.mxu1 %v8376_v23  ;;  %v8517_v59 = vcombine.low %v248_v11, %v256_v12  ;;  %v8390_v23 = vcombine.high %v263_v17, %v271_v18  ;;  %v8518_v24 = vcombine.high %v264_v19, %v272_v20  ;;  %v367_v11 = vld [vmem:[%s9196_s23 + $0x5e0] sm:$0xff]  ;;  %v360_v12 = vld [vmem:[%s9196_s23 + $0x5a8] sm:$0xff] }
 0x24d   : > { %6535 = vmatpush1.bf16.msra.mxu0 %v8249_v29  ;;  %6791 = vmatpush1.bf16.msra.mxu1 %v8377_v31  ;;  %v288_v29 = vld [vmem:[%s9196_s23 + $0x368] sm:$0xff]  ;;  %v8391_v31 = vcombine.low %v263_v17, %v271_v18  ;;  %v375_v18 = vld [vmem:[%s9196_s23 + $0x620] sm:$0xff] }
 0x24e   : > { %6537 = vmatprep.subr.bf16.mxu0 %v8250_v32  ;;  %6793 = vmatprep.subr.bf16.mxu1 %v8378_v33  ;;  %v8519_v32 = vcombine.low %v264_v19, %v272_v20  ;;  %v8392_v33 = vcombine.high %v279_v25, %v287_v27  ;;  %v8520_v35 = vcombine.high %v280_v28, %v288_v29  ;;  %v383_v19 = vld [vmem:[%s9196_s23 + $0x660] sm:$0xff]  ;;  %v376_v20 = vld [vmem:[%s9196_s23 + $0x628] sm:$0xff] }
 0x251   : > { %6539 = vmatpush1.bf16.msra.mxu0 %v8251_v39  ;;  %6795 = vmatpush1.bf16.msra.mxu1 %v8379_v40  ;;  %v304_v39 = vld [vmem:[%s9196_s23 + $0x3e8] sm:$0xff]  ;;  %v8393_v40 = vcombine.low %v279_v25, %v287_v27  ;;  %v391_v27 = vld [vmem:[%s9196_s23 + $0x6a0] sm:$0xff] }
 0x252   : > { %6797 = vmatprep.subr.bf16.mxu0 %v8380_v41  ;;  %7053 = vmatprep.subr.bf16.mxu1 %v8508_v42  ;;  %v8521_v41 = vcombine.low %v280_v28, %v288_v29  ;;  %v8394_v42 = vcombine.high %v295_v36, %v303_v37  ;;  %v8522_v44 = vcombine.high %v296_v38, %v304_v39  ;;  %v399_v28 = vld [vmem:[%s9196_s23 + $0x6e0] sm:$0xff]  ;;  %v392_v29 = vld [vmem:[%s9196_s23 + $0x6a8] sm:$0xff] }
 0x254   : > { %4143 = vmatmul.mubr.f32.vlgmr.msra.gmra.mrb[2].mxu0 %v9444_v54  ;;  %4427 = vmatmul.mubr.f32.vlgmr.msra.gmra.mrb[2].mxu1 %v9444_v54 }
 0x255   : > { %6799 = vmatpush1.bf16.msra.mxu0 %v8381_v48  ;;  %7055 = vmatpush1.bf16.msra.mxu1 %v8509_v49  ;;  %v320_v48 = vld [vmem:[%s9196_s23 + $0x468] sm:$0xff]  ;;  %v8395_v49 = vcombine.low %v295_v36, %v303_v37  ;;  %v407_v37 = vld [vmem:[%s9196_s23 + $0x720] sm:$0xff] }
 0x256   : > { %6801 = vmatprep.subr.bf16.mxu0 %v8382_v50  ;;  %7057 = vmatprep.subr.bf16.mxu1 %v8510_v51  ;;  %v8523_v50 = vcombine.low %v296_v38, %v304_v39  ;;  %v8396_v51 = vcombine.high %v311_v45, %v319_v46  ;;  %v8524_v52 = vcombine.high %v312_v47, %v320_v48  ;;  %v415_v38 = vld [vmem:[%s9196_s23 + $0x760] sm:$0xff]  ;;  %v408_v39 = vld [vmem:[%s9196_s23 + $0x728] sm:$0xff] }
 0x257   : > { %4497 = vmatprep.mubr.f32.mxu0 %v9244_v3  ;;  %4781 = vmatprep.mubr.f32.mxu1 %v9244_v3 }
 0x259   : > { %6803 = vmatpush1.bf16.msra.mxu0 %v8383_v57  ;;  %7059 = vmatpush1.bf16.msra.mxu1 %v8511_v58  ;;  %v336_v57 = vld [vmem:[%s9196_s23 + $0x4e8] sm:$0xff]  ;;  %v8397_v58 = vcombine.low %v311_v45, %v319_v46  ;;  %v423_v46 = vld [vmem:[%s9196_s23 + $0x7a0] sm:$0xff] }
 0x25a   : > { %6805 = vmatprep.subr.bf16.mxu0 %v8384_v60  ;;  %7061 = vmatprep.subr.bf16.mxu1 %v8512_v61  ;;  %v8525_v60 = vcombine.low %v312_v47, %v320_v48  ;;  %v8398_v61 = vcombine.high %v327_v26, %v335_v55  ;;  %v8526_v62 = vcombine.high %v328_v56, %v336_v57  ;;  %v431_v47 = vld [vmem:[%s9196_s23 + $0x7e0] sm:$0xff]  ;;  %v424_v48 = vld [vmem:[%s9196_s23 + $0x7a8] sm:$0xff] }
 0x25d   : > { %6807 = vmatpush1.bf16.msra.mxu0 %v8385_v5  ;;  %7063 = vmatpush1.bf16.msra.mxu1 %v8513_v6  ;;  %v352_v5 = vld [vmem:[%s9196_s23 + $0x568] sm:$0xff]  ;;  %v8399_v6 = vcombine.low %v327_v26, %v335_v55  ;;  %v439_v55 = vld [vmem:[%s9196_s23 + $0x820] sm:$0xff] }
 0x25e   : > { %6809 = vmatprep.subr.bf16.mxu0 %v8386_v7  ;;  %7065 = vmatprep.subr.bf16.mxu1 %v8514_v8  ;;  %v8527_v7 = vcombine.low %v328_v56, %v336_v57  ;;  %v8400_v8 = vcombine.high %v343_v1, %v351_v2  ;;  %v8528_v9 = vcombine.high %v344_v4, %v352_v5  ;;  %v447_v56 = vld [vmem:[%s9196_s23 + $0x860] sm:$0xff]  ;;  %v440_v57 = vld [vmem:[%s9196_s23 + $0x828] sm:$0xff] }
 0x261   : > { %6811 = vmatpush1.bf16.msra.mxu0 %v8387_v13  ;;  %7067 = vmatpush1.bf16.msra.mxu1 %v8515_v14  ;;  %v368_v13 = vld [vmem:[%s9196_s23 + $0x5e8] sm:$0xff]  ;;  %v8401_v14 = vcombine.low %v343_v1, %v351_v2  ;;  %v455_v2 = vld [vmem:[%s9196_s23 + $0x8a0] sm:$0xff] }
 0x262   : > { %6813 = vmatprep.subr.bf16.mxu0 %v8388_v15  ;;  %7069 = vmatprep.subr.bf16.mxu1 %v8516_v16  ;;  %v8529_v15 = vcombine.low %v344_v4, %v352_v5  ;;  %v8402_v16 = vcombine.high %v359_v10, %v367_v11  ;;  %v8530_v17 = vcombine.high %v360_v12, %v368_v13  ;;  %v463_v4 = vld [vmem:[%s9196_s23 + $0x8e0] sm:$0xff]  ;;  %v456_v5 = vld [vmem:[%s9196_s23 + $0x8a8] sm:$0xff] }
 0x265   : > { %6815 = vmatpush1.bf16.msra.mxu0 %v8389_v21  ;;  %7071 = vmatpush1.bf16.msra.mxu1 %v8517_v59  ;;  %v384_v21 = vld [vmem:[%s9196_s23 + $0x668] sm:$0xff]  ;;  %v8403_v59 = vcombine.low %v359_v10, %v367_v11  ;;  %v471_v11 = vld [vmem:[%s9196_s23 + $0x920] sm:$0xff] }
 0x266   : > { %6817 = vmatprep.subr.bf16.mxu0 %v8390_v23  ;;  %7073 = vmatprep.subr.bf16.mxu1 %v8518_v24  ;;  %v8531_v23 = vcombine.low %v360_v12, %v368_v13  ;;  %v8404_v24 = vcombine.high %v375_v18, %v383_v19  ;;  %v8532_v25 = vcombine.high %v376_v20, %v384_v21  ;;  %v479_v12 = vld [vmem:[%s9196_s23 + $0x960] sm:$0xff]  ;;  %v472_v13 = vld [vmem:[%s9196_s23 + $0x928] sm:$0xff] }
 0x269   : > { %6819 = vmatpush1.bf16.msra.mxu0 %v8391_v31  ;;  %7075 = vmatpush1.bf16.msra.mxu1 %v8519_v32  ;;  %v400_v31 = vld [vmem:[%s9196_s23 + $0x6e8] sm:$0xff]  ;;  %v8405_v32 = vcombine.low %v375_v18, %v383_v19  ;;  %v487_v19 = vld [vmem:[%s9196_s23 + $0x9a0] sm:$0xff] }
 0x26a   : > { %6821 = vmatprep.subr.bf16.mxu0 %v8392_v33  ;;  %7077 = vmatprep.subr.bf16.mxu1 %v8520_v35  ;;  %v8533_v33 = vcombine.low %v376_v20, %v384_v21  ;;  %v8406_v35 = vcombine.high %v391_v27, %v399_v28  ;;  %v8534_v36 = vcombine.high %v392_v29, %v400_v31  ;;  %v495_v20 = vld [vmem:[%s9196_s23 + $0x9e0] sm:$0xff]  ;;  %v488_v21 = vld [vmem:[%s9196_s23 + $0x9a8] sm:$0xff] }
 0x26d   : > { %6823 = vmatpush1.bf16.msra.mxu0 %v8393_v40  ;;  %7079 = vmatpush1.bf16.msra.mxu1 %v8521_v41  ;;  %v416_v40 = vld [vmem:[%s9196_s23 + $0x768] sm:$0xff]  ;;  %v8407_v41 = vcombine.low %v391_v27, %v399_v28  ;;  %v503_v28 = vld [vmem:[%s9196_s23 + $0xa20] sm:$0xff] }
 0x26e   : > { %6825 = vmatprep.subr.bf16.mxu0 %v8394_v42  ;;  %7081 = vmatprep.subr.bf16.mxu1 %v8522_v44  ;;  %v8535_v42 = vcombine.low %v392_v29, %v400_v31  ;;  %v8408_v44 = vcombine.high %v407_v37, %v415_v38  ;;  %v8536_v45 = vcombine.high %v408_v39, %v416_v40  ;;  %v511_v29 = vld [vmem:[%s9196_s23 + $0xa60] sm:$0xff]  ;;  %v504_v31 = vld [vmem:[%s9196_s23 + $0xa28] sm:$0xff] }
 0x271   : > { %6827 = vmatpush1.bf16.msra.mxu0 %v8395_v49  ;;  %7083 = vmatpush1.bf16.msra.mxu1 %v8523_v50  ;;  %v432_v49 = vld [vmem:[%s9196_s23 + $0x7e8] sm:$0xff]  ;;  %v8409_v50 = vcombine.low %v407_v37, %v415_v38  ;;  %v519_v38 = vld [vmem:[%s9196_s23 + $0xaa0] sm:$0xff] }
 0x272   : > { %6829 = vmatprep.subr.bf16.mxu0 %v8396_v51  ;;  %7085 = vmatprep.subr.bf16.mxu1 %v8524_v52  ;;  %v8537_v51 = vcombine.low %v408_v39, %v416_v40  ;;  %v8410_v52 = vcombine.high %v423_v46, %v431_v47  ;;  %v8538_v26 = vcombine.high %v424_v48, %v432_v49  ;;  %v527_v39 = vld [vmem:[%s9196_s23 + $0xae0] sm:$0xff]  ;;  %v520_v40 = vld [vmem:[%s9196_s23 + $0xaa8] sm:$0xff] }
 0x275   : > { %6831 = vmatpush1.bf16.msra.mxu0 %v8397_v58  ;;  %7087 = vmatpush1.bf16.msra.mxu1 %v8525_v60  ;;  %v448_v58 = vld [vmem:[%s9196_s23 + $0x868] sm:$0xff]  ;;  %v8411_v60 = vcombine.low %v423_v46, %v431_v47  ;;  %v535_v47 = vld [vmem:[%s9196_s23 + $0xb20] sm:$0xff] }
 0x276   : > { %6833 = vmatprep.subr.bf16.mxu0 %v8398_v61  ;;  %7089 = vmatprep.subr.bf16.mxu1 %v8526_v62  ;;  %v8539_v61 = vcombine.low %v424_v48, %v432_v49  ;;  %v8412_v62 = vcombine.high %v439_v55, %v447_v56  ;;  %v8540_v1 = vcombine.high %v440_v57, %v448_v58  ;;  %v543_v48 = vld [vmem:[%s9196_s23 + $0xb60] sm:$0xff]  ;;  %v536_v49 = vld [vmem:[%s9196_s23 + $0xb28] sm:$0xff] }
 0x279   : > { %6835 = vmatpush1.bf16.msra.mxu0 %v8399_v6  ;;  %7091 = vmatpush1.bf16.msra.mxu1 %v8527_v7  ;;  %v464_v6 = vld [vmem:[%s9196_s23 + $0x8e8] sm:$0xff]  ;;  %v8413_v7 = vcombine.low %v439_v55, %v447_v56  ;;  %v551_v56 = vld [vmem:[%s9196_s23 + $0xba0] sm:$0xff] }
 0x27a   : > { %6837 = vmatprep.subr.bf16.mxu0 %v8400_v8  ;;  %7093 = vmatprep.subr.bf16.mxu1 %v8528_v9  ;;  %v8541_v8 = vcombine.low %v440_v57, %v448_v58  ;;  %v8414_v9 = vcombine.high %v455_v2, %v463_v4  ;;  %v8542_v10 = vcombine.high %v456_v5, %v464_v6  ;;  %v559_v57 = vld [vmem:[%s9196_s23 + $0xbe0] sm:$0xff]  ;;  %v552_v58 = vld [vmem:[%s9196_s23 + $0xba8] sm:$0xff] }
 0x27d   : > { %6839 = vmatpush1.bf16.msra.mxu0 %v8401_v14  ;;  %7095 = vmatpush1.bf16.msra.mxu1 %v8529_v15  ;;  %v480_v14 = vld [vmem:[%s9196_s23 + $0x968] sm:$0xff]  ;;  %v8415_v15 = vcombine.low %v455_v2, %v463_v4  ;;  %v567_v4 = vld [vmem:[%s9196_s23 + $0xc20] sm:$0xff] }
 0x27e   : > { %6841 = vmatprep.subr.bf16.mxu0 %v8402_v16  ;;  %7097 = vmatprep.subr.bf16.mxu1 %v8530_v17  ;;  %v8543_v16 = vcombine.low %v456_v5, %v464_v6  ;;  %v8416_v17 = vcombine.high %v471_v11, %v479_v12  ;;  %v8544_v18 = vcombine.high %v472_v13, %v480_v14  ;;  %v575_v5 = vld [vmem:[%s9196_s23 + $0xc60] sm:$0xff]  ;;  %v568_v6 = vld [vmem:[%s9196_s23 + $0xc28] sm:$0xff] }
 0x281   : > { %6843 = vmatpush1.bf16.msra.mxu0 %v8403_v59  ;;  %7099 = vmatpush1.bf16.msra.mxu1 %v8531_v23  ;;  %v496_v59 = vld [vmem:[%s9196_s23 + $0x9e8] sm:$0xff]  ;;  %v8417_v23 = vcombine.low %v471_v11, %v479_v12  ;;  %v583_v12 = vld [vmem:[%s9196_s23 + $0xca0] sm:$0xff] }
 0x282   : > { %6845 = vmatprep.subr.bf16.mxu0 %v8404_v24  ;;  %7101 = vmatprep.subr.bf16.mxu1 %v8532_v25  ;;  %v8545_v24 = vcombine.low %v472_v13, %v480_v14  ;;  %v8418_v25 = vcombine.high %v487_v19, %v495_v20  ;;  %v8546_v27 = vcombine.high %v488_v21, %v496_v59  ;;  %v591_v13 = vld [vmem:[%s9196_s23 + $0xce0] sm:$0xff]  ;;  %v584_v14 = vld [vmem:[%s9196_s23 + $0xca8] sm:$0xff] }
 0x285   : > { %6847 = vmatpush1.bf16.msra.mxu0 %v8405_v32  ;;  %7103 = vmatpush1.bf16.msra.mxu1 %v8533_v33  ;;  %v512_v32 = vld [vmem:[%s9196_s23 + $0xa68] sm:$0xff]  ;;  %v8419_v33 = vcombine.low %v487_v19, %v495_v20  ;;  %v599_v20 = vld [vmem:[%s9196_s23 + $0xd20] sm:$0xff] }
 0x286   : > { %6849 = vmatprep.subr.bf16.mxu0 %v8406_v35  ;;  %7105 = vmatprep.subr.bf16.mxu1 %v8534_v36  ;;  %v8547_v35 = vcombine.low %v488_v21, %v496_v59  ;;  %v8420_v36 = vcombine.high %v503_v28, %v511_v29  ;;  %v8548_v37 = vcombine.high %v504_v31, %v512_v32  ;;  %v607_v21 = vld [vmem:[%s9196_s23 + $0xd60] sm:$0xff]  ;;  %v600_v59 = vld [vmem:[%s9196_s23 + $0xd28] sm:$0xff] }
 0x289   : > { %6851 = vmatpush1.bf16.msra.mxu0 %v8407_v41  ;;  %7107 = vmatpush1.bf16.msra.mxu1 %v8535_v42  ;;  %v528_v41 = vld [vmem:[%s9196_s23 + $0xae8] sm:$0xff]  ;;  %v8421_v42 = vcombine.low %v503_v28, %v511_v29  ;;  %v615_v29 = vld [vmem:[%s9196_s23 + $0xda0] sm:$0xff] }
 0x28a   : > { %6853 = vmatprep.subr.bf16.mxu0 %v8408_v44  ;;  %7109 = vmatprep.subr.bf16.mxu1 %v8536_v45  ;;  %v8549_v44 = vcombine.low %v504_v31, %v512_v32  ;;  %v8422_v45 = vcombine.high %v519_v38, %v527_v39  ;;  %v8550_v46 = vcombine.high %v520_v40, %v528_v41  ;;  %v623_v31 = vld [vmem:[%s9196_s23 + $0xde0] sm:$0xff]  ;;  %v616_v32 = vld [vmem:[%s9196_s23 + $0xda8] sm:$0xff] }
 0x28d   : > { %6855 = vmatpush1.bf16.msra.mxu0 %v8409_v50  ;;  %7111 = vmatpush1.bf16.msra.mxu1 %v8537_v51  ;;  %v544_v50 = vld [vmem:[%s9196_s23 + $0xb68] sm:$0xff]  ;;  %v8423_v51 = vcombine.low %v519_v38, %v527_v39  ;;  %v631_v39 = vld [vmem:[%s9196_s23 + $0xe20] sm:$0xff] }
 0x28e   : > { %6857 = vmatprep.subr.bf16.mxu0 %v8410_v52  ;;  %7113 = vmatprep.subr.bf16.mxu1 %v8538_v26  ;;  %v8551_v52 = vcombine.low %v520_v40, %v528_v41  ;;  %v8424_v26 = vcombine.high %v535_v47, %v543_v48  ;;  %v8552_v55 = vcombine.high %v536_v49, %v544_v50  ;;  %v639_v40 = vld [vmem:[%s9196_s23 + $0xe60] sm:$0xff]  ;;  %v632_v41 = vld [vmem:[%s9196_s23 + $0xe28] sm:$0xff] }
 0x291   : > { %6859 = vmatpush1.bf16.msra.mxu0 %v8411_v60  ;;  %7115 = vmatpush1.bf16.msra.mxu1 %v8539_v61  ;;  %v560_v60 = vld [vmem:[%s9196_s23 + $0xbe8] sm:$0xff]  ;;  %v8425_v61 = vcombine.low %v535_v47, %v543_v48  ;;  %v647_v48 = vld [vmem:[%s9196_s23 + $0xea0] sm:$0xff] }
 0x292   : > { %6861 = vmatprep.subr.bf16.mxu0 %v8412_v62  ;;  %7117 = vmatprep.subr.bf16.mxu1 %v8540_v1  ;;  %v8553_v62 = vcombine.low %v536_v49, %v544_v50  ;;  %v8426_v1 = vcombine.high %v551_v56, %v559_v57  ;;  %v8554_v2 = vcombine.high %v552_v58, %v560_v60  ;;  %v655_v49 = vld [vmem:[%s9196_s23 + $0xee0] sm:$0xff]  ;;  %v648_v50 = vld [vmem:[%s9196_s23 + $0xea8] sm:$0xff] }
 0x294   : > { %4498 = vmatmul.mubr.f32.vlgmr.msra.gmra.mrb[4].mxu0 %v9238_v63  ;;  %4782 = vmatmul.mubr.f32.vlgmr.msra.gmra.mrb[4].mxu1 %v9238_v63 }
 0x295   : > { %6863 = vmatpush1.bf16.msra.mxu0 %v8413_v7  ;;  %7119 = vmatpush1.bf16.msra.mxu1 %v8541_v8  ;;  %v576_v7 = vld [vmem:[%s9196_s23 + $0xc68] sm:$0xff]  ;;  %v8427_v8 = vcombine.low %v551_v56, %v559_v57  ;;  %v663_v57 = vld [vmem:[%s9196_s23 + $0xf20] sm:$0xff] }
 0x296   : > { %6865 = vmatprep.subr.bf16.mxu0 %v8414_v9  ;;  %7121 = vmatprep.subr.bf16.mxu1 %v8542_v10  ;;  %v8555_v9 = vcombine.low %v552_v58, %v560_v60  ;;  %v8428_v10 = vcombine.high %v567_v4, %v575_v5  ;;  %v8556_v11 = vcombine.high %v568_v6, %v576_v7  ;;  %v671_v58 = vld [vmem:[%s9196_s23 + $0xf60] sm:$0xff]  ;;  %v664_v60 = vld [vmem:[%s9196_s23 + $0xf28] sm:$0xff] }
 0x297   : > { %4568 = vmatprep.mubr.f32.mxu0 %v9297_v30  ;;  %4852 = vmatprep.mubr.f32.mxu1 %v9297_v30 }
 0x299   : > { %6867 = vmatpush1.bf16.msra.mxu0 %v8415_v15  ;;  %7123 = vmatpush1.bf16.msra.mxu1 %v8543_v16  ;;  %v592_v15 = vld [vmem:[%s9196_s23 + $0xce8] sm:$0xff]  ;;  %v8429_v16 = vcombine.low %v567_v4, %v575_v5  ;;  %v679_v5 = vld [vmem:[%s9196_s23 + $0xfa0] sm:$0xff] }
 0x29a   : > { %6869 = vmatprep.subr.bf16.mxu0 %v8416_v17  ;;  %7125 = vmatprep.subr.bf16.mxu1 %v8544_v18  ;;  %v8557_v17 = vcombine.low %v568_v6, %v576_v7  ;;  %v8430_v18 = vcombine.high %v583_v12, %v591_v13  ;;  %v8558_v19 = vcombine.high %v584_v14, %v592_v15  ;;  %v687_v6 = vld [vmem:[%s9196_s23 + $0xfe0] sm:$0xff]  ;;  %v680_v7 = vld [vmem:[%s9196_s23 + $0xfa8] sm:$0xff] }
 0x29d   : > { %6871 = vmatpush1.bf16.msra.mxu0 %v8417_v23  ;;  %7127 = vmatpush1.bf16.msra.mxu1 %v8545_v24  ;;  %v608_v23 = vld [vmem:[%s9196_s23 + $0xd68] sm:$0xff]  ;;  %v8431_v24 = vcombine.low %v583_v12, %v591_v13  ;;  %v695_v13 = vld [vmem:[%s9196_s23 + $0x1020] sm:$0xff] }
 0x29e   : > { %6873 = vmatprep.subr.bf16.mxu0 %v8418_v25  ;;  %7129 = vmatprep.subr.bf16.mxu1 %v8546_v27  ;;  %v8559_v25 = vcombine.low %v584_v14, %v592_v15  ;;  %v8432_v27 = vcombine.high %v599_v20, %v607_v21  ;;  %v8560_v28 = vcombine.high %v600_v59, %v608_v23  ;;  %v703_v14 = vld [vmem:[%s9196_s23 + $0x1060] sm:$0xff]  ;;  %v696_v15 = vld [vmem:[%s9196_s23 + $0x1028] sm:$0xff] }
 0x2a1   : > { %6875 = vmatpush1.bf16.msra.mxu0 %v8419_v33  ;;  %7131 = vmatpush1.bf16.msra.mxu1 %v8547_v35  ;;  %v624_v33 = vld [vmem:[%s9196_s23 + $0xde8] sm:$0xff]  ;;  %v8433_v35 = vcombine.low %v599_v20, %v607_v21  ;;  %v711_v21 = vld [vmem:[%s9196_s23 + $0x10a0] sm:$0xff] }
 0x2a2   : > { %6877 = vmatprep.subr.bf16.mxu0 %v8420_v36  ;;  %7133 = vmatprep.subr.bf16.mxu1 %v8548_v37  ;;  %v8561_v36 = vcombine.low %v600_v59, %v608_v23  ;;  %v8434_v37 = vcombine.high %v615_v29, %v623_v31  ;;  %v8562_v38 = vcombine.high %v616_v32, %v624_v33  ;;  %v719_v59 = vld [vmem:[%s9196_s23 + $0x10e0] sm:$0xff]  ;;  %v712_v23 = vld [vmem:[%s9196_s23 + $0x10a8] sm:$0xff] }
 0x2a5   : > { %6879 = vmatpush1.bf16.msra.mxu0 %v8421_v42  ;;  %7135 = vmatpush1.bf16.msra.mxu1 %v8549_v44  ;;  %v640_v42 = vld [vmem:[%s9196_s23 + $0xe68] sm:$0xff]  ;;  %v8435_v44 = vcombine.low %v615_v29, %v623_v31  ;;  %v727_v31 = vld [vmem:[%s9196_s23 + $0x1120] sm:$0xff] }
 0x2a6   : > { %6881 = vmatprep.subr.bf16.mxu0 %v8422_v45  ;;  %7137 = vmatprep.subr.bf16.mxu1 %v8550_v46  ;;  %v8563_v45 = vcombine.low %v616_v32, %v624_v33  ;;  %v8436_v46 = vcombine.high %v631_v39, %v639_v40  ;;  %v8564_v47 = vcombine.high %v632_v41, %v640_v42  ;;  %v735_v32 = vld [vmem:[%s9196_s23 + $0x1160] sm:$0xff]  ;;  %v728_v33 = vld [vmem:[%s9196_s23 + $0x1128] sm:$0xff] }
 0x2a9   : > { %6883 = vmatpush1.bf16.msra.mxu0 %v8423_v51  ;;  %7139 = vmatpush1.bf16.msra.mxu1 %v8551_v52  ;;  %v656_v51 = vld [vmem:[%s9196_s23 + $0xee8] sm:$0xff]  ;;  %v8437_v52 = vcombine.low %v631_v39, %v639_v40  ;;  %v743_v40 = vld [vmem:[%s9196_s23 + $0x11a0] sm:$0xff] }
 0x2aa   : > { %6885 = vmatprep.subr.bf16.mxu0 %v8424_v26  ;;  %7141 = vmatprep.subr.bf16.mxu1 %v8552_v55  ;;  %v8565_v26 = vcombine.low %v632_v41, %v640_v42  ;;  %v8438_v55 = vcombine.high %v647_v48, %v655_v49  ;;  %v8566_v56 = vcombine.high %v648_v50, %v656_v51  ;;  %v751_v41 = vld [vmem:[%s9196_s23 + $0x11e0] sm:$0xff]  ;;  %v744_v42 = vld [vmem:[%s9196_s23 + $0x11a8] sm:$0xff] }
 0x2ad   : > { %6887 = vmatpush1.bf16.msra.mxu0 %v8425_v61  ;;  %7143 = vmatpush1.bf16.msra.mxu1 %v8553_v62  ;;  %v672_v61 = vld [vmem:[%s9196_s23 + $0xf68] sm:$0xff]  ;;  %v8439_v62 = vcombine.low %v647_v48, %v655_v49  ;;  %v759_v49 = vld [vmem:[%s9196_s23 + $0x1220] sm:$0xff] }
 0x2ae   : > { %6889 = vmatprep.subr.bf16.mxu0 %v8426_v1  ;;  %7145 = vmatprep.subr.bf16.mxu1 %v8554_v2  ;;  %v8567_v1 = vcombine.low %v648_v50, %v656_v51  ;;  %v8440_v2 = vcombine.high %v663_v57, %v671_v58  ;;  %v8568_v4 = vcombine.high %v664_v60, %v672_v61  ;;  %v767_v50 = vld [vmem:[%s9196_s23 + $0x1260] sm:$0xff]  ;;  %v760_v51 = vld [vmem:[%s9196_s23 + $0x1228] sm:$0xff] }
 0x2b1   : > { %6891 = vmatpush1.bf16.msra.mxu0 %v8427_v8  ;;  %7147 = vmatpush1.bf16.msra.mxu1 %v8555_v9  ;;  %v688_v8 = vld [vmem:[%s9196_s23 + $0xfe8] sm:$0xff]  ;;  %v8441_v9 = vcombine.low %v663_v57, %v671_v58  ;;  %v775_v58 = vld [vmem:[%s9196_s23 + $0x12a0] sm:$0xff] }
 0x2b2   : > { %6893 = vmatprep.subr.bf16.mxu0 %v8428_v10  ;;  %7149 = vmatprep.subr.bf16.mxu1 %v8556_v11  ;;  %v8569_v10 = vcombine.low %v664_v60, %v672_v61  ;;  %v8442_v11 = vcombine.high %v679_v5, %v687_v6  ;;  %v8570_v12 = vcombine.high %v680_v7, %v688_v8  ;;  %v783_v60 = vld [vmem:[%s9196_s23 + $0x12e0] sm:$0xff]  ;;  %v776_v61 = vld [vmem:[%s9196_s23 + $0x12a8] sm:$0xff] }
 0x2b5   : > { %6895 = vmatpush1.bf16.msra.mxu0 %v8429_v16  ;;  %7151 = vmatpush1.bf16.msra.mxu1 %v8557_v17  ;;  %v704_v16 = vld [vmem:[%s9196_s23 + $0x1068] sm:$0xff]  ;;  %v8443_v17 = vcombine.low %v679_v5, %v687_v6  ;;  %v791_v6 = vld [vmem:[%s9196_s23 + $0x1320] sm:$0xff] }
 0x2b6   : > { %6897 = vmatprep.subr.bf16.mxu0 %v8430_v18  ;;  %7153 = vmatprep.subr.bf16.mxu1 %v8558_v19  ;;  %v8571_v18 = vcombine.low %v680_v7, %v688_v8  ;;  %v8444_v19 = vcombine.high %v695_v13, %v703_v14  ;;  %v8572_v20 = vcombine.high %v696_v15, %v704_v16  ;;  %v799_v7 = vld [vmem:[%s9196_s23 + $0x1360] sm:$0xff]  ;;  %v792_v8 = vld [vmem:[%s9196_s23 + $0x1328] sm:$0xff] }
 0x2b9   : > { %6899 = vmatpush1.bf16.msra.mxu0 %v8431_v24  ;;  %7155 = vmatpush1.bf16.msra.mxu1 %v8559_v25  ;;  %v720_v24 = vld [vmem:[%s9196_s23 + $0x10e8] sm:$0xff]  ;;  %v8445_v25 = vcombine.low %v695_v13, %v703_v14  ;;  %v807_v14 = vld [vmem:[%s9196_s23 + $0x13a0] sm:$0xff] }
 0x2ba   : > { %6901 = vmatprep.subr.bf16.mxu0 %v8432_v27  ;;  %7157 = vmatprep.subr.bf16.mxu1 %v8560_v28  ;;  %v8573_v27 = vcombine.low %v696_v15, %v704_v16  ;;  %v8446_v28 = vcombine.high %v711_v21, %v719_v59  ;;  %v8574_v29 = vcombine.high %v712_v23, %v720_v24  ;;  %v815_v15 = vld [vmem:[%s9196_s23 + $0x13e0] sm:$0xff]  ;;  %v808_v16 = vld [vmem:[%s9196_s23 + $0x13a8] sm:$0xff] }
 0x2bd   : > { %6903 = vmatpush1.bf16.msra.mxu0 %v8433_v35  ;;  %7159 = vmatpush1.bf16.msra.mxu1 %v8561_v36  ;;  %v736_v35 = vld [vmem:[%s9196_s23 + $0x1168] sm:$0xff]  ;;  %v8447_v36 = vcombine.low %v711_v21, %v719_v59  ;;  %v823_v59 = vld [vmem:[%s9196_s23 + $0x1420] sm:$0xff] }
 0x2be   : > { %6905 = vmatprep.subr.bf16.mxu0 %v8434_v37  ;;  %7161 = vmatprep.subr.bf16.mxu1 %v8562_v38  ;;  %v8575_v37 = vcombine.low %v712_v23, %v720_v24  ;;  %v8448_v38 = vcombine.high %v727_v31, %v735_v32  ;;  %v8576_v39 = vcombine.high %v728_v33, %v736_v35  ;;  %v831_v23 = vld [vmem:[%s9196_s23 + $0x1460] sm:$0xff]  ;;  %v824_v24 = vld [vmem:[%s9196_s23 + $0x1428] sm:$0xff] }
 0x2c1   : > { %6907 = vmatpush1.bf16.msra.mxu0 %v8435_v44  ;;  %7163 = vmatpush1.bf16.msra.mxu1 %v8563_v45  ;;  %v752_v44 = vld [vmem:[%s9196_s23 + $0x11e8] sm:$0xff]  ;;  %v8449_v45 = vcombine.low %v727_v31, %v735_v32  ;;  %v839_v32 = vld [vmem:[%s9196_s23 + $0x14a0] sm:$0xff] }
 0x2c2   : > { %6909 = vmatprep.subr.bf16.mxu0 %v8436_v46  ;;  %7165 = vmatprep.subr.bf16.mxu1 %v8564_v47  ;;  %v8577_v46 = vcombine.low %v728_v33, %v736_v35  ;;  %v8450_v47 = vcombine.high %v743_v40, %v751_v41  ;;  %v8578_v48 = vcombine.high %v744_v42, %v752_v44  ;;  %v847_v33 = vld [vmem:[%s9196_s23 + $0x14e0] sm:$0xff]  ;;  %v840_v35 = vld [vmem:[%s9196_s23 + $0x14a8] sm:$0xff] }
 0x2c5   : > { %6911 = vmatpush1.bf16.msra.mxu0 %v8437_v52  ;;  %7167 = vmatpush1.bf16.msra.mxu1 %v8565_v26  ;;  %v768_v52 = vld [vmem:[%s9196_s23 + $0x1268] sm:$0xff]  ;;  %v8451_v26 = vcombine.low %v743_v40, %v751_v41  ;;  %v855_v41 = vld [vmem:[%s9196_s23 + $0x1520] sm:$0xff] }
 0x2c6   : > { %6913 = vmatprep.subr.bf16.mxu0 %v8438_v55  ;;  %7169 = vmatprep.subr.bf16.mxu1 %v8566_v56  ;;  %v8579_v55 = vcombine.low %v744_v42, %v752_v44  ;;  %v8452_v56 = vcombine.high %v759_v49, %v767_v50  ;;  %v8580_v57 = vcombine.high %v760_v51, %v768_v52  ;;  %v863_v42 = vld [vmem:[%s9196_s23 + $0x1560] sm:$0xff]  ;;  %v856_v44 = vld [vmem:[%s9196_s23 + $0x1528] sm:$0xff] }
 0x2c9   : > { %6915 = vmatpush1.bf16.msra.mxu0 %v8439_v62  ;;  %7171 = vmatpush1.bf16.msra.mxu1 %v8567_v1  ;;  %v784_v62 = vld [vmem:[%s9196_s23 + $0x12e8] sm:$0xff]  ;;  %v8453_v1 = vcombine.low %v759_v49, %v767_v50  ;;  %v871_v50 = vld [vmem:[%s9196_s23 + $0x15a0] sm:$0xff] }
 0x2ca   : > { %6917 = vmatprep.subr.bf16.mxu0 %v8440_v2  ;;  %7173 = vmatprep.subr.bf16.mxu1 %v8568_v4  ;;  %v8581_v2 = vcombine.low %v760_v51, %v768_v52  ;;  %v8454_v4 = vcombine.high %v775_v58, %v783_v60  ;;  %v8582_v5 = vcombine.high %v776_v61, %v784_v62  ;;  %v879_v51 = vld [vmem:[%s9196_s23 + $0x15e0] sm:$0xff]  ;;  %v872_v52 = vld [vmem:[%s9196_s23 + $0x15a8] sm:$0xff] }
 0x2cd   : > { %6919 = vmatpush1.bf16.msra.mxu0 %v8441_v9  ;;  %7175 = vmatpush1.bf16.msra.mxu1 %v8569_v10  ;;  %v800_v9 = vld [vmem:[%s9196_s23 + $0x1368] sm:$0xff]  ;;  %v8455_v10 = vcombine.low %v775_v58, %v783_v60  ;;  %v887_v60 = vld [vmem:[%s9196_s23 + $0x1620] sm:$0xff] }
 0x2ce   : > { %6921 = vmatprep.subr.bf16.mxu0 %v8442_v11  ;;  %7177 = vmatprep.subr.bf16.mxu1 %v8570_v12  ;;  %v8583_v11 = vcombine.low %v776_v61, %v784_v62  ;;  %v8456_v12 = vcombine.high %v791_v6, %v799_v7  ;;  %v8584_v13 = vcombine.high %v792_v8, %v800_v9  ;;  %v895_v61 = vld [vmem:[%s9196_s23 + $0x1660] sm:$0xff]  ;;  %v888_v62 = vld [vmem:[%s9196_s23 + $0x1628] sm:$0xff] }
 0x2d1   : > { %6923 = vmatpush1.bf16.msra.mxu0 %v8443_v17  ;;  %7179 = vmatpush1.bf16.msra.mxu1 %v8571_v18  ;;  %v816_v17 = vld [vmem:[%s9196_s23 + $0x13e8] sm:$0xff]  ;;  %v8457_v18 = vcombine.low %v791_v6, %v799_v7  ;;  %v903_v7 = vld [vmem:[%s9196_s23 + $0x16a0] sm:$0xff] }
 0x2d2   : > { %6925 = vmatprep.subr.bf16.mxu0 %v8444_v19  ;;  %7181 = vmatprep.subr.bf16.mxu1 %v8572_v20  ;;  %v8585_v19 = vcombine.low %v792_v8, %v800_v9  ;;  %v8458_v20 = vcombine.high %v807_v14, %v815_v15  ;;  %v8586_v21 = vcombine.high %v808_v16, %v816_v17  ;;  %v911_v8 = vld [vmem:[%s9196_s23 + $0x16e0] sm:$0xff]  ;;  %v904_v9 = vld [vmem:[%s9196_s23 + $0x16a8] sm:$0xff] }
 0x2d4   : > { %4569 = vmatmul.mubr.f32.vlgmr.msra.gmra.mrb[4].mxu0 %v9289_v22  ;;  %4853 = vmatmul.mubr.f32.vlgmr.msra.gmra.mrb[4].mxu1 %v9289_v22 }
 0x2d5   : > { %6927 = vmatpush1.bf16.msra.mxu0 %v8445_v25  ;;  %7183 = vmatpush1.bf16.msra.mxu1 %v8573_v27  ;;  %v832_v25 = vld [vmem:[%s9196_s23 + $0x1468] sm:$0xff]  ;;  %v8459_v27 = vcombine.low %v807_v14, %v815_v15  ;;  %v919_v15 = vld [vmem:[%s9196_s23 + $0x1720] sm:$0xff] }
 0x2d6   : > { %6929 = vmatprep.subr.bf16.mxu0 %v8446_v28  ;;  %7185 = vmatprep.subr.bf16.mxu1 %v8574_v29  ;;  %v8587_v28 = vcombine.low %v808_v16, %v816_v17  ;;  %v8460_v29 = vcombine.high %v823_v59, %v831_v23  ;;  %v8588_v31 = vcombine.high %v824_v24, %v832_v25  ;;  %v927_v16 = vld [vmem:[%s9196_s23 + $0x1760] sm:$0xff]  ;;  %v920_v17 = vld [vmem:[%s9196_s23 + $0x1728] sm:$0xff] }
 0x2d7   : > { %4639 = vmatprep.mubr.f32.mxu0 %v9375_v43  ;;  %4923 = vmatprep.mubr.f32.mxu1 %v9375_v43 }
 0x2d9   : > { %6931 = vmatpush1.bf16.msra.mxu0 %v8447_v36  ;;  %7187 = vmatpush1.bf16.msra.mxu1 %v8575_v37  ;;  %v848_v36 = vld [vmem:[%s9196_s23 + $0x14e8] sm:$0xff]  ;;  %v8461_v37 = vcombine.low %v823_v59, %v831_v23  ;;  %v935_v23 = vld [vmem:[%s9196_s23 + $0x17a0] sm:$0xff] }
 0x2da   : > { %6933 = vmatprep.subr.bf16.mxu0 %v8448_v38  ;;  %7189 = vmatprep.subr.bf16.mxu1 %v8576_v39  ;;  %v8589_v38 = vcombine.low %v824_v24, %v832_v25  ;;  %v8462_v39 = vcombine.high %v839_v32, %v847_v33  ;;  %v8590_v40 = vcombine.high %v840_v35, %v848_v36  ;;  %v943_v24 = vld [vmem:[%s9196_s23 + $0x17e0] sm:$0xff]  ;;  %v936_v25 = vld [vmem:[%s9196_s23 + $0x17a8] sm:$0xff] }
 0x2dd   : > { %6935 = vmatpush1.bf16.msra.mxu0 %v8449_v45  ;;  %7191 = vmatpush1.bf16.msra.mxu1 %v8577_v46  ;;  %v864_v45 = vld [vmem:[%s9196_s23 + $0x1568] sm:$0xff]  ;;  %v8463_v46 = vcombine.low %v839_v32, %v847_v33  ;;  %v951_v33 = vld [vmem:[%s9196_s23 + $0x1820] sm:$0xff] }
 0x2de   : > { %6937 = vmatprep.subr.bf16.mxu0 %v8450_v47  ;;  %7193 = vmatprep.subr.bf16.mxu1 %v8578_v48  ;;  %v8591_v47 = vcombine.low %v840_v35, %v848_v36  ;;  %v8464_v48 = vcombine.high %v855_v41, %v863_v42  ;;  %v8592_v49 = vcombine.high %v856_v44, %v864_v45  ;;  %v959_v35 = vld [vmem:[%s9196_s23 + $0x1860] sm:$0xff]  ;;  %v952_v36 = vld [vmem:[%s9196_s23 + $0x1828] sm:$0xff] }
 0x2e1   : > { %6939 = vmatpush1.bf16.msra.mxu0 %v8451_v26  ;;  %7195 = vmatpush1.bf16.msra.mxu1 %v8579_v55  ;;  %v880_v26 = vld [vmem:[%s9196_s23 + $0x15e8] sm:$0xff]  ;;  %v8465_v55 = vcombine.low %v855_v41, %v863_v42  ;;  %v967_v42 = vld [vmem:[%s9196_s23 + $0x18a0] sm:$0xff] }
 0x2e2   : > { %6941 = vmatprep.subr.bf16.mxu0 %v8452_v56  ;;  %7197 = vmatprep.subr.bf16.mxu1 %v8580_v57  ;;  %v8593_v56 = vcombine.low %v856_v44, %v864_v45  ;;  %v8466_v57 = vcombine.high %v871_v50, %v879_v51  ;;  %v8594_v58 = vcombine.high %v872_v52, %v880_v26  ;;  %v975_v44 = vld [vmem:[%s9196_s23 + $0x18e0] sm:$0xff]  ;;  %v968_v45 = vld [vmem:[%s9196_s23 + $0x18a8] sm:$0xff] }
 0x2e5   : > { %6943 = vmatpush1.bf16.msra.mxu0 %v8453_v1  ;;  %7199 = vmatpush1.bf16.msra.mxu1 %v8581_v2  ;;  %v896_v1 = vld [vmem:[%s9196_s23 + $0x1668] sm:$0xff]  ;;  %v8467_v2 = vcombine.low %v871_v50, %v879_v51  ;;  %v983_v51 = vld [vmem:[%s9196_s23 + $0x1920] sm:$0xff] }
 0x2e6   : > { %6945 = vmatprep.subr.bf16.mxu0 %v8454_v4  ;;  %7201 = vmatprep.subr.bf16.mxu1 %v8582_v5  ;;  %v8595_v4 = vcombine.low %v872_v52, %v880_v26  ;;  %v8468_v5 = vcombine.high %v887_v60, %v895_v61  ;;  %v8596_v6 = vcombine.high %v888_v62, %v896_v1  ;;  %v991_v52 = vld [vmem:[%s9196_s23 + $0x1960] sm:$0xff]  ;;  %v984_v26 = vld [vmem:[%s9196_s23 + $0x1928] sm:$0xff] }
 0x2e9   : > { %6947 = vmatpush1.bf16.msra.mxu0 %v8455_v10  ;;  %7203 = vmatpush1.bf16.msra.mxu1 %v8583_v11  ;;  %v912_v10 = vld [vmem:[%s9196_s23 + $0x16e8] sm:$0xff]  ;;  %v8469_v11 = vcombine.low %v887_v60, %v895_v61  ;;  %v999_v61 = vld [vmem:[%s9196_s23 + $0x19a0] sm:$0xff] }
 0x2ea   : > { %6949 = vmatprep.subr.bf16.mxu0 %v8456_v12  ;;  %7205 = vmatprep.subr.bf16.mxu1 %v8584_v13  ;;  %v8597_v12 = vcombine.low %v888_v62, %v896_v1  ;;  %v8470_v13 = vcombine.high %v903_v7, %v911_v8  ;;  %v8598_v14 = vcombine.high %v904_v9, %v912_v10  ;;  %v1007_v62 = vld [vmem:[%s9196_s23 + $0x19e0] sm:$0xff]  ;;  %v1000_v1 = vld [vmem:[%s9196_s23 + $0x19a8] sm:$0xff] }
 0x2ed   : > { %6951 = vmatpush1.bf16.msra.mxu0 %v8457_v18  ;;  %7207 = vmatpush1.bf16.msra.mxu1 %v8585_v19  ;;  %v928_v18 = vld [vmem:[%s9196_s23 + $0x1768] sm:$0xff]  ;;  %v8471_v19 = vcombine.low %v903_v7, %v911_v8  ;;  %v1015_v8 = vld [vmem:[%s9196_s23 + $0x1a20] sm:$0xff] }
 0x2ee   : > { %6953 = vmatprep.subr.bf16.mxu0 %v8458_v20  ;;  %7209 = vmatprep.subr.bf16.mxu1 %v8586_v21  ;;  %v8599_v20 = vcombine.low %v904_v9, %v912_v10  ;;  %v8472_v21 = vcombine.high %v919_v15, %v927_v16  ;;  %v8600_v59 = vcombine.high %v920_v17, %v928_v18  ;;  %v1023_v9 = vld [vmem:[%s9196_s23 + $0x1a60] sm:$0xff]  ;;  %v1016_v10 = vld [vmem:[%s9196_s23 + $0x1a28] sm:$0xff] }
 0x2f1   : > { %6955 = vmatpush1.bf16.msra.mxu0 %v8459_v27  ;;  %7211 = vmatpush1.bf16.msra.mxu1 %v8587_v28  ;;  %v944_v27 = vld [vmem:[%s9196_s23 + $0x17e8] sm:$0xff]  ;;  %v8473_v28 = vcombine.low %v919_v15, %v927_v16  ;;  %v1031_v16 = vld [vmem:[%s9196_s23 + $0x1aa0] sm:$0xff] }
 0x2f2   : > { %6957 = vmatprep.subr.bf16.mxu0 %v8460_v29  ;;  %7213 = vmatprep.subr.bf16.mxu1 %v8588_v31  ;;  %v8601_v29 = vcombine.low %v920_v17, %v928_v18  ;;  %v8474_v31 = vcombine.high %v935_v23, %v943_v24  ;;  %v8602_v32 = vcombine.high %v936_v25, %v944_v27  ;;  %v1039_v17 = vld [vmem:[%s9196_s23 + $0x1ae0] sm:$0xff]  ;;  %v1032_v18 = vld [vmem:[%s9196_s23 + $0x1aa8] sm:$0xff] }
 0x2f5   : > { %6959 = vmatpush1.bf16.msra.mxu0 %v8461_v37  ;;  %7215 = vmatpush1.bf16.msra.mxu1 %v8589_v38  ;;  %v960_v37 = vld [vmem:[%s9196_s23 + $0x1868] sm:$0xff]  ;;  %v8475_v38 = vcombine.low %v935_v23, %v943_v24  ;;  %v1047_v24 = vld [vmem:[%s9196_s23 + $0x1b20] sm:$0xff] }
 0x2f6   : > { %6961 = vmatprep.subr.bf16.mxu0 %v8462_v39  ;;  %7217 = vmatprep.subr.bf16.mxu1 %v8590_v40  ;;  %v8603_v39 = vcombine.low %v936_v25, %v944_v27  ;;  %v8476_v40 = vcombine.high %v951_v33, %v959_v35  ;;  %v8604_v41 = vcombine.high %v952_v36, %v960_v37  ;;  %v1055_v25 = vld [vmem:[%s9196_s23 + $0x1b60] sm:$0xff]  ;;  %v1048_v27 = vld [vmem:[%s9196_s23 + $0x1b28] sm:$0xff] }
 0x2f9   : > { %6963 = vmatpush1.bf16.msra.mxu0 %v8463_v46  ;;  %7219 = vmatpush1.bf16.msra.mxu1 %v8591_v47  ;;  %v976_v46 = vld [vmem:[%s9196_s23 + $0x18e8] sm:$0xff]  ;;  %v8477_v47 = vcombine.low %v951_v33, %v959_v35 }
 0x2fa   : > { %6965 = vmatprep.subr.bf16.mxu0 %v8464_v48  ;;  %7221 = vmatprep.subr.bf16.mxu1 %v8592_v49  ;;  %v8605_v48 = vcombine.low %v952_v36, %v960_v37  ;;  %v8478_v49 = vcombine.high %v967_v42, %v975_v44  ;;  %v8606_v50 = vcombine.high %v968_v45, %v976_v46  ;;  %v1063_v36 = vld [vmem:[%s9196_s23 + $0x1ba0] sm:$0xff] }
 0x2fb   : > { %v1071_v37 = vld [vmem:[%s9196_s23 + $0x1be0] sm:$0xff] }
 0x2fd   : > { %6967 = vmatpush1.bf16.msra.mxu0 %v8465_v55  ;;  %7223 = vmatpush1.bf16.msra.mxu1 %v8593_v56  ;;  %v992_v55 = vld [vmem:[%s9196_s23 + $0x1968] sm:$0xff]  ;;  %v8479_v56 = vcombine.low %v967_v42, %v975_v44 }
 0x2fe   : > { %6969 = vmatprep.subr.bf16.mxu0 %v8466_v57  ;;  %7225 = vmatprep.subr.bf16.mxu1 %v8594_v58  ;;  %v8607_v57 = vcombine.low %v968_v45, %v976_v46  ;;  %v8480_v58 = vcombine.high %v983_v51, %v991_v52  ;;  %v8608_v60 = vcombine.high %v984_v26, %v992_v55  ;;  %v1072_v42 = vld [vmem:[%s9196_s23 + $0x1be8] sm:$0xff] }
 0x301   : > { %6971 = vmatpush1.bf16.msra.mxu0 %v8467_v2  ;;  %7227 = vmatpush1.bf16.msra.mxu1 %v8595_v4  ;;  %v1008_v2 = vld [vmem:[%s9196_s23 + $0x19e8] sm:$0xff]  ;;  %v8481_v4 = vcombine.low %v983_v51, %v991_v52 }
 0x302   : > { %6973 = vmatprep.subr.bf16.mxu0 %v8468_v5  ;;  %7229 = vmatprep.subr.bf16.mxu1 %v8596_v6  ;;  %v8609_v5 = vcombine.low %v984_v26, %v992_v55  ;;  %v8482_v6 = vcombine.high %v999_v61, %v1007_v62  ;;  %v8610_v7 = vcombine.high %v1000_v1, %v1008_v2  ;;  %v1079_v26 = vld [vmem:[%s9196_s23 + $0x1c20] sm:$0xff] }
 0x303   : > { %v1087_v55 = vld [vmem:[%s9196_s23 + $0x1c60] sm:$0xff] }
 0x305   : > { %6975 = vmatpush1.bf16.msra.mxu0 %v8469_v11  ;;  %7231 = vmatpush1.bf16.msra.mxu1 %v8597_v12  ;;  %v1024_v11 = vld [vmem:[%s9196_s23 + $0x1a68] sm:$0xff]  ;;  %v8483_v12 = vcombine.low %v999_v61, %v1007_v62  ;;  %v8491_v61 = vcombine.low %v1063_v36, %v1071_v37 }
 0x306   : > { %6977 = vmatprep.subr.bf16.mxu0 %v8470_v13  ;;  %7233 = vmatprep.subr.bf16.mxu1 %v8598_v14  ;;  %v8611_v13 = vcombine.low %v1000_v1, %v1008_v2  ;;  %v8484_v14 = vcombine.high %v1015_v8, %v1023_v9  ;;  %v8612_v15 = vcombine.high %v1016_v10, %v1024_v11 }
 0x307   : > { %v8492_v2 = vcombine.high %v1079_v26, %v1087_v55 }
 0x309   : > { %6979 = vmatpush1.bf16.msra.mxu0 %v8471_v19  ;;  %7235 = vmatpush1.bf16.msra.mxu1 %v8599_v20  ;;  %v1040_v19 = vld [vmem:[%s9196_s23 + $0x1ae8] sm:$0xff]  ;;  %v8485_v20 = vcombine.low %v1015_v8, %v1023_v9 }
 0x30a   : > { %6981 = vmatprep.subr.bf16.mxu0 %v8472_v21  ;;  %7237 = vmatprep.subr.bf16.mxu1 %v8600_v59  ;;  %v8613_v21 = vcombine.low %v1016_v10, %v1024_v11  ;;  %v8486_v59 = vcombine.high %v1031_v16, %v1039_v17  ;;  %v8614_v23 = vcombine.high %v1032_v18, %v1040_v19  ;;  %v1096_v8 = vld [vmem:[%s9196_s23 + $0x1ca8] sm:$0xff] }
 0x30b   : > { %v1104_v9 = vld [vmem:[%s9196_s23 + $0x1ce8] sm:$0xff]  ;;  %v8493_v10 = vcombine.low %v1079_v26, %v1087_v55 }
 0x30c   : > { %v1184_v26 = vld [vmem:[%s9196_s23 + $0x1f68] sm:$0xff] }
 0x30d   : > { %6983 = vmatpush1.bf16.msra.mxu0 %v8473_v28  ;;  %7239 = vmatpush1.bf16.msra.mxu1 %v8601_v29  ;;  %v1056_v28 = vld [vmem:[%s9196_s23 + $0x1b68] sm:$0xff]  ;;  %v8487_v29 = vcombine.low %v1031_v16, %v1039_v17 }
 0x30e   : > { %6985 = vmatprep.subr.bf16.mxu0 %v8474_v31  ;;  %7241 = vmatprep.subr.bf16.mxu1 %v8602_v32  ;;  %v8615_v31 = vcombine.low %v1032_v18, %v1040_v19  ;;  %v8488_v32 = vcombine.high %v1047_v24, %v1055_v25  ;;  %v8616_v35 = vcombine.high %v1048_v27, %v1056_v28  ;;  %v1112_v16 = vld [vmem:[%s9196_s23 + $0x1d28] sm:$0xff] }
 0x30f   : > { %v1120_v17 = vld [vmem:[%s9196_s23 + $0x1d68] sm:$0xff]  ;;  %v8623_v19 = vcombine.low %v1096_v8, %v1104_v9 }
 0x311   : > { %6987 = vmatpush1.bf16.msra.mxu0 %v8475_v38  ;;  %7243 = vmatpush1.bf16.msra.mxu1 %v8603_v39 }
 0x312   : > { %6989 = vmatprep.subr.bf16.mxu0 %v8476_v40  ;;  %7245 = vmatprep.subr.bf16.mxu1 %v8604_v41  ;;  %v1064_v41 = vld [vmem:[%s9196_s23 + $0x1ba8] sm:$0xff] }
 0x313   : > { %v8618_v52 = vcombine.high %v1064_v41, %v1072_v42  ;;  %v8619_v1 = vcombine.low %v1064_v41, %v1072_v42  ;;  %v1159_v41 = vld [vmem:[%s9196_s23 + $0x1ea0] sm:$0xff] }
 0x314   : > { %4640 = vmatmul.mubr.f32.vlgmr.msra.gmra.mrb[4].mxu0 %v9367_v34  ;;  %4924 = vmatmul.mubr.f32.vlgmr.msra.gmra.mrb[4].mxu1 %v9367_v34  ;;  %v1167_v42 = vld [vmem:[%s9196_s23 + $0x1ee0] sm:$0xff] }
 0x315   : > { %6991 = vmatpush1.bf16.msra.mxu0 %v8477_v47  ;;  %7247 = vmatpush1.bf16.msra.mxu1 %v8605_v48  ;;  %v8489_v47 = vcombine.low %v1047_v24, %v1055_v25  ;;  %v1128_v24 = vld [vmem:[%s9196_s23 + $0x1da8] sm:$0xff]  ;;  %v8503_v55 = vcombine.low %v1159_v41, %v1167_v42 }
 0x316   : > { %6993 = vmatprep.subr.bf16.mxu0 %v8478_v49  ;;  %7249 = vmatprep.subr.bf16.mxu1 %v8606_v50  ;;  %v8617_v49 = vcombine.low %v1048_v27, %v1056_v28  ;;  %v8490_v50 = vcombine.high %v1063_v36, %v1071_v37  ;;  %v1136_v25 = vld [vmem:[%s9196_s23 + $0x1de8] sm:$0xff]  ;;  %v8625_v28 = vcombine.low %v1112_v16, %v1120_v17 }
 0x317   : > { %4710 = vmatprep.mubr.f32.mxu0 %v9452_v0  ;;  %4994 = vmatprep.mubr.f32.mxu1 %v9452_v0  ;;  %v1152_v36 = vld [vmem:[%s9196_s23 + $0x1e68] sm:$0xff] }
 0x319   : > { %6995 = vmatpush1.bf16.msra.mxu0 %v8479_v56  ;;  %7251 = vmatpush1.bf16.msra.mxu1 %v8607_v57  ;;  %v1080_v57 = vld [vmem:[%s9196_s23 + $0x1c28] sm:$0xff] }
 0x31a   : > { %6997 = vmatprep.subr.bf16.mxu0 %v8480_v58  ;;  %7253 = vmatprep.subr.bf16.mxu1 %v8608_v60  ;;  %v1088_v58 = vld [vmem:[%s9196_s23 + $0x1c68] sm:$0xff] }
 0x31b   : > { %v8621_v11 = vcombine.low %v1080_v57, %v1088_v58 }
 0x31d   : > { %6999 = vmatpush1.bf16.msra.mxu0 %v8481_v4  ;;  %7255 = vmatpush1.bf16.msra.mxu1 %v8609_v5  ;;  %v8620_v4 = vcombine.high %v1080_v57, %v1088_v58  ;;  %v1095_v5 = vld [vmem:[%s9196_s23 + $0x1ca0] sm:$0xff] }
 0x31e   : > { %7001 = vmatprep.subr.bf16.mxu0 %v8482_v6  ;;  %7257 = vmatprep.subr.bf16.mxu1 %v8610_v7  ;;  %v1103_v6 = vld [vmem:[%s9196_s23 + $0x1ce0] sm:$0xff] }
 0x31f   : > { %v8495_v18 = vcombine.low %v1095_v5, %v1103_v6 }
 0x321   : > { %7003 = vmatpush1.bf16.msra.mxu0 %v8483_v12  ;;  %7259 = vmatpush1.bf16.msra.mxu1 %v8611_v13  ;;  %v8494_v12 = vcombine.high %v1095_v5, %v1103_v6  ;;  %v8622_v13 = vcombine.high %v1096_v8, %v1104_v9  ;;  %v193_v8 = vld [vmem:[%s9196_s23 + $0x70] sm:$0xff]  ;;  %v186_v9 = vld [vmem:[%s9196_s23 + $0x38] sm:$0xff] }
 0x322   : > { %7005 = vmatprep.subr.bf16.mxu0 %v8484_v14  ;;  %7261 = vmatprep.subr.bf16.mxu1 %v8612_v15  ;;  %v1111_v14 = vld [vmem:[%s9196_s23 + $0x1d20] sm:$0xff] }
 0x323   : > { %v1119_v15 = vld [vmem:[%s9196_s23 + $0x1d60] sm:$0xff] }
 0x324   : > { %v8497_v27 = vcombine.low %v1111_v14, %v1119_v15 }
 0x325   : > { %7007 = vmatpush1.bf16.msra.mxu0 %v8485_v20  ;;  %7263 = vmatpush1.bf16.msra.mxu1 %v8613_v21  ;;  %v8496_v20 = vcombine.high %v1111_v14, %v1119_v15  ;;  %v8624_v21 = vcombine.high %v1112_v16, %v1120_v17  ;;  %v201_v15 = vld [vmem:[%s9196_s23 + $0xb0] sm:$0xff]  ;;  %v202_v17 = vld [vmem:[%s9196_s23 + $0xb8] sm:$0xff] }
 0x326   : > { %7009 = vmatprep.subr.bf16.mxu0 %v8486_v59  ;;  %7265 = vmatprep.subr.bf16.mxu1 %v8614_v23  ;;  %v1127_v59 = vld [vmem:[%s9196_s23 + $0x1da0] sm:$0xff]  ;;  %v209_v16 = vld [vmem:[%s9196_s23 + $0xf0] sm:$0xff] }
 0x327   : > { %v4144_v33 = vpop.f32.mrb[2].mxu0  ;;  %v4428_v39 = vpop.f32.mrb[2].mxu1  ;;  %v1135_v23 = vld [vmem:[%s9196_s23 + $0x1de0] sm:$0xff] }
 0x328   : > { %v5573_v38 = vmax.f32 %v4144_v33, 0.0  ;;  %v4146_v40 = vpop.f32.mrb[3].mxu0  ;;  %v5575_v44 = vmax.f32 %v4428_v39, 0.0  ;;  %v4430_v46 = vpop.f32.mrb[3].mxu1  ;;  %v1151_v33 = vld [vmem:[%s9196_s23 + $0x1e60] sm:$0xff]  ;;  %v8499_v37 = vcombine.low %v1127_v59, %v1135_v23 }
 0x329   : > { %v5574_v45 = vmax.f32 %v4146_v40, 0.0  ;;  %7011 = vmatpush1.bf16.msra.mxu0 %v8487_v29  ;;  %v5576_v48 = vmax.f32 %v4430_v46, 0.0  ;;  %7267 = vmatpush1.bf16.msra.mxu1 %v8615_v31  ;;  %v8498_v29 = vcombine.high %v1127_v59, %v1135_v23  ;;  %v8626_v31 = vcombine.high %v1128_v24, %v1136_v25  ;;  %v217_v23 = vld [vmem:[%s9196_s23 + $0x130] sm:$0xff] }
 0x32a   : > { %7013 = vmatprep.subr.bf16.mxu0 %v8488_v32  ;;  %7269 = vmatprep.subr.bf16.mxu1 %v8616_v35  ;;  %v1143_v32 = vld [vmem:[%s9196_s23 + $0x1e20] sm:$0xff]  ;;  %v1144_v35 = vld [vmem:[%s9196_s23 + $0x1e28] sm:$0xff] }
 0x32b   : > { %v5618_v51 = vcombine.low %v5573_v38, %v5574_v45  ;;  %v5619_v56 = vcombine.low %v5575_v44, %v5576_v48  ;;  %v8627_v38 = vcombine.low %v1128_v24, %v1136_v25  ;;  %v8500_v39 = vcombine.high %v1143_v32, %v1151_v33  ;;  %v1160_v44 = vld [vmem:[%s9196_s23 + $0x1ea8] sm:$0xff]  ;;  %v225_v24 = vld [vmem:[%s9196_s23 + $0x170] sm:$0xff]  ;;  %v218_v25 = vld [vmem:[%s9196_s23 + $0x138] sm:$0xff] }
 0x32c   : > { %v8628_v40 = vcombine.high %v1144_v35, %v1152_v36  ;;  %v1168_v45 = vld [vmem:[%s9196_s23 + $0x1ee8] sm:$0xff]  ;;  %v8501_v46 = vcombine.low %v1143_v32, %v1151_v33  ;;  %v8502_v48 = vcombine.high %v1159_v41, %v1167_v42  ;;  %v233_v33 = vld [vmem:[%s9196_s23 + $0x1b0] sm:$0xff] }
 0x32d   : > { %v5626_v60 = vrot.slane %v5618_v51, %v9228_v53  ;;  %7015 = vmatpush1.bf16.msra.mxu0 %v8489_v47  ;;  %v5633_v62 = vrot.slane %v5619_v56, %v9228_v53  ;;  %7271 = vmatpush1.bf16.msra.mxu1 %v8617_v49  ;;  %v8629_v47 = vcombine.low %v1144_v35, %v1152_v36  ;;  %v1183_v51 = vld [vmem:[%s9196_s23 + $0x1f60] sm:$0xff]  ;;  %v241_v35 = vld [vmem:[%s9196_s23 + $0x1f0] sm:$0xff]  ;;  %v234_v36 = vld [vmem:[%s9196_s23 + $0x1b8] sm:$0xff] }
 0x32e   : > { %7017 = vmatprep.subr.bf16.mxu0 %v8490_v50  ;;  %7273 = vmatprep.subr.bf16.mxu1 %v8618_v52  ;;  %v8630_v49 = vcombine.high %v1160_v44, %v1168_v45  ;;  %v1175_v50 = vld [vmem:[%s9196_s23 + $0x1f20] sm:$0xff]  ;;  %v1176_v52 = vld [vmem:[%s9196_s23 + $0x1f28] sm:$0xff]  ;;  %v8631_v56 = vcombine.low %v1160_v44, %v1168_v45  ;;  %v249_v42 = vld [vmem:[%s9196_s23 + $0x230] sm:$0xff] }
 0x32f   : > { %v5634_v7 = vcombine.low %v5626_v60, %v5633_v62  ;;  %v8504_v57 = vcombine.high %v1175_v50, %v1183_v51  ;;  %v8632_v58 = vcombine.high %v1176_v52, %v1184_v26  ;;  %v1191_v60 = vld [vmem:[%s9196_s23 + $0x1fa0] sm:$0xff]  ;;  %v1192_v62 = vld [vmem:[%s9196_s23 + $0x1fa8] sm:$0xff]  ;;  %v257_v44 = vld [vmem:[%s9196_s23 + $0x270] sm:$0xff] }
 0x330   : > { %v250_v45 = vld [vmem:[%s9196_s23 + $0x238] sm:$0xff] }
 0x331   : > { %7019 = vmatpush1.bf16.msra.mxu0 %v8491_v61  ;;  %5674 = vst [vmem:[%s9767_s21 + $0x8] sm:$0xff] %v5634_v7  ;;  %7275 = vmatpush1.bf16.msra.mxu1 %v8619_v1  ;;  %v1199_v61 = vld [vmem:[%s9196_s23 + $0x1fe0] sm:$0xff]  ;;  %v1200_v1 = vld [vmem:[%s9196_s23 + $0x1fe8] sm:$0xff]  ;;  %v185_v7 = vld [vmem:[%s9196_s23 + $0x30] sm:$0xff] }
 0x332   : > { %7021 = vmatprep.subr.bf16.mxu0 %v8492_v2  ;;  %7277 = vmatprep.subr.bf16.mxu1 %v8620_v4  ;;  %v8505_v2 = vcombine.low %v1175_v50, %v1183_v51  ;;  %v8633_v4 = vcombine.low %v1176_v52, %v1184_v26  ;;  %v8506_v5 = vcombine.high %v1191_v60, %v1199_v61  ;;  %v265_v50 = vld [vmem:[%s9196_s23 + $0x2b0] sm:$0xff]  ;;  %v266_v52 = vld [vmem:[%s9196_s23 + $0x2b8] sm:$0xff] }
 0x333   : > { %v8634_v6 = vcombine.high %v1192_v62, %v1200_v1  ;;  %v273_v51 = vld [vmem:[%s9196_s23 + $0x2f0] sm:$0xff]  ;;  %v274_v26 = vld [vmem:[%s9196_s23 + $0x2f8] sm:$0xff] }
 0x335   : > { %7023 = vmatpush1.bf16.msra.mxu0 %v8493_v10  ;;  %7279 = vmatpush1.bf16.msra.mxu1 %v8621_v11  ;;  %v194_v10 = vld [vmem:[%s9196_s23 + $0x78] sm:$0xff]  ;;  %v8507_v11 = vcombine.low %v1191_v60, %v1199_v61  ;;  %v281_v60 = vld [vmem:[%s9196_s23 + $0x330] sm:$0xff] }
 0x336   : > { %7025 = vmatprep.subr.bf16.mxu0 %v8494_v12  ;;  %7281 = vmatprep.subr.bf16.mxu1 %v8622_v13  ;;  %v8635_v12 = vcombine.low %v1192_v62, %v1200_v1  ;;  %v8636_v13 = vcombine.high %v185_v7, %v193_v8  ;;  %v8764_v14 = vcombine.high %v186_v9, %v194_v10  ;;  %v289_v61 = vld [vmem:[%s9196_s23 + $0x370] sm:$0xff]  ;;  %v282_v62 = vld [vmem:[%s9196_s23 + $0x338] sm:$0xff] }
 0x337   : > { %v290_v1 = vld [vmem:[%s9196_s23 + $0x378] sm:$0xff] }
 0x339   : > { %7027 = vmatpush1.bf16.msra.mxu0 %v8495_v18  ;;  %7283 = vmatpush1.bf16.msra.mxu1 %v8623_v19  ;;  %v210_v18 = vld [vmem:[%s9196_s23 + $0xf8] sm:$0xff]  ;;  %v8637_v19 = vcombine.low %v185_v7, %v193_v8  ;;  %v297_v7 = vld [vmem:[%s9196_s23 + $0x3b0] sm:$0xff] }
 0x33a   : > { %7029 = vmatprep.subr.bf16.mxu0 %v8496_v20  ;;  %7285 = vmatprep.subr.bf16.mxu1 %v8624_v21  ;;  %v8765_v20 = vcombine.low %v186_v9, %v194_v10  ;;  %v8638_v21 = vcombine.high %v201_v15, %v209_v16  ;;  %v8766_v59 = vcombine.high %v202_v17, %v210_v18  ;;  %v305_v8 = vld [vmem:[%s9196_s23 + $0x3f0] sm:$0xff]  ;;  %v298_v9 = vld [vmem:[%s9196_s23 + $0x3b8] sm:$0xff] }
 0x33b   : > { %v306_v10 = vld [vmem:[%s9196_s23 + $0x3f8] sm:$0xff] }
 0x33d   : > { %7031 = vmatpush1.bf16.msra.mxu0 %v8497_v27  ;;  %7287 = vmatpush1.bf16.msra.mxu1 %v8625_v28  ;;  %v226_v27 = vld [vmem:[%s9196_s23 + $0x178] sm:$0xff]  ;;  %v8639_v28 = vcombine.low %v201_v15, %v209_v16  ;;  %v313_v15 = vld [vmem:[%s9196_s23 + $0x430] sm:$0xff] }
 0x33e   : > { %7033 = vmatprep.subr.bf16.mxu0 %v8498_v29  ;;  %7289 = vmatprep.subr.bf16.mxu1 %v8626_v31  ;;  %v8767_v29 = vcombine.low %v202_v17, %v210_v18  ;;  %v8640_v31 = vcombine.high %v217_v23, %v225_v24  ;;  %v8768_v32 = vcombine.high %v218_v25, %v226_v27  ;;  %v321_v16 = vld [vmem:[%s9196_s23 + $0x470] sm:$0xff]  ;;  %v314_v17 = vld [vmem:[%s9196_s23 + $0x438] sm:$0xff] }
 0x33f   : > { %v322_v18 = vld [vmem:[%s9196_s23 + $0x478] sm:$0xff] }
 0x341   : > { %7035 = vmatpush1.bf16.msra.mxu0 %v8499_v37  ;;  %7291 = vmatpush1.bf16.msra.mxu1 %v8627_v38  ;;  %v242_v37 = vld [vmem:[%s9196_s23 + $0x1f8] sm:$0xff]  ;;  %v8641_v38 = vcombine.low %v217_v23, %v225_v24  ;;  %v329_v23 = vld [vmem:[%s9196_s23 + $0x4b0] sm:$0xff] }
 0x342   : > { %7037 = vmatprep.subr.bf16.mxu0 %v8500_v39  ;;  %7293 = vmatprep.subr.bf16.mxu1 %v8628_v40  ;;  %v8769_v39 = vcombine.low %v218_v25, %v226_v27  ;;  %v8642_v40 = vcombine.high %v233_v33, %v241_v35  ;;  %v8770_v41 = vcombine.high %v234_v36, %v242_v37  ;;  %v337_v24 = vld [vmem:[%s9196_s23 + $0x4f0] sm:$0xff]  ;;  %v330_v25 = vld [vmem:[%s9196_s23 + $0x4b8] sm:$0xff] }
 0x343   : > { %v338_v27 = vld [vmem:[%s9196_s23 + $0x4f8] sm:$0xff] }
 0x345   : > { %7039 = vmatpush1.bf16.msra.mxu0 %v8501_v46  ;;  %7295 = vmatpush1.bf16.msra.mxu1 %v8629_v47  ;;  %v258_v46 = vld [vmem:[%s9196_s23 + $0x278] sm:$0xff]  ;;  %v8643_v47 = vcombine.low %v233_v33, %v241_v35  ;;  %v345_v33 = vld [vmem:[%s9196_s23 + $0x530] sm:$0xff] }
 0x346   : > { %7041 = vmatprep.subr.bf16.mxu0 %v8502_v48  ;;  %7297 = vmatprep.subr.bf16.mxu1 %v8630_v49  ;;  %v8644_v48 = vcombine.high %v249_v42, %v257_v44  ;;  %v8772_v49 = vcombine.high %v250_v45, %v258_v46  ;;  %v353_v35 = vld [vmem:[%s9196_s23 + $0x570] sm:$0xff] }
 0x349   : > { %7043 = vmatpush1.bf16.msra.mxu0 %v8503_v55  ;;  %7299 = vmatpush1.bf16.msra.mxu1 %v8631_v56  ;;  %v8645_v55 = vcombine.low %v249_v42, %v257_v44  ;;  %v8773_v56 = vcombine.low %v250_v45, %v258_v46  ;;  %v361_v42 = vld [vmem:[%s9196_s23 + $0x5b0] sm:$0xff]  ;;  %v362_v45 = vld [vmem:[%s9196_s23 + $0x5b8] sm:$0xff] }
 0x34a   : > { %7045 = vmatprep.subr.bf16.mxu0 %v8504_v57  ;;  %7301 = vmatprep.subr.bf16.mxu1 %v8632_v58  ;;  %v8646_v57 = vcombine.high %v265_v50, %v273_v51  ;;  %v8774_v58 = vcombine.high %v266_v52, %v274_v26  ;;  %v369_v44 = vld [vmem:[%s9196_s23 + $0x5f0] sm:$0xff]  ;;  %v370_v46 = vld [vmem:[%s9196_s23 + $0x5f8] sm:$0xff] }
 0x34d   : > { %7047 = vmatpush1.bf16.msra.mxu0 %v8505_v2  ;;  %7303 = vmatpush1.bf16.msra.mxu1 %v8633_v4  ;;  %v8647_v2 = vcombine.low %v265_v50, %v273_v51  ;;  %v8775_v4 = vcombine.low %v266_v52, %v274_v26  ;;  %v377_v50 = vld [vmem:[%s9196_s23 + $0x630] sm:$0xff]  ;;  %v378_v52 = vld [vmem:[%s9196_s23 + $0x638] sm:$0xff] }
 0x34e   : > { %7049 = vmatprep.subr.bf16.mxu0 %v8506_v5  ;;  %7305 = vmatprep.subr.bf16.mxu1 %v8634_v6  ;;  %v8648_v5 = vcombine.high %v281_v60, %v289_v61  ;;  %v8776_v6 = vcombine.high %v282_v62, %v290_v1  ;;  %v385_v51 = vld [vmem:[%s9196_s23 + $0x670] sm:$0xff]  ;;  %v386_v26 = vld [vmem:[%s9196_s23 + $0x678] sm:$0xff] }
 0x351   : > { %7051 = vmatpush1.bf16.msra.mxu0 %v8507_v11  ;;  %7307 = vmatpush1.bf16.msra.mxu1 %v8635_v12  ;;  %v8649_v11 = vcombine.low %v281_v60, %v289_v61  ;;  %v8777_v12 = vcombine.low %v282_v62, %v290_v1  ;;  %v393_v60 = vld [vmem:[%s9196_s23 + $0x6b0] sm:$0xff]  ;;  %v394_v62 = vld [vmem:[%s9196_s23 + $0x6b8] sm:$0xff] }
 0x352   : > { %7309 = vmatprep.subr.bf16.mxu0 %v8636_v13  ;;  %7565 = vmatprep.subr.bf16.mxu1 %v8764_v14  ;;  %v8650_v13 = vcombine.high %v297_v7, %v305_v8  ;;  %v8778_v14 = vcombine.high %v298_v9, %v306_v10  ;;  %v401_v61 = vld [vmem:[%s9196_s23 + $0x6f0] sm:$0xff]  ;;  %v402_v1 = vld [vmem:[%s9196_s23 + $0x6f8] sm:$0xff] }
 0x354   : > { %4711 = vmatmul.mubr.f32.vlgmr.msra.gmra.mrb[4].mxu0 %v9444_v54  ;;  %4995 = vmatmul.mubr.f32.vlgmr.msra.gmra.mrb[4].mxu1 %v9444_v54 }
 0x355   : > { %7311 = vmatpush1.bf16.msra.mxu0 %v8637_v19  ;;  %7567 = vmatpush1.bf16.msra.mxu1 %v8765_v20  ;;  %v8651_v19 = vcombine.low %v297_v7, %v305_v8  ;;  %v8779_v20 = vcombine.low %v298_v9, %v306_v10  ;;  %v409_v7 = vld [vmem:[%s9196_s23 + $0x730] sm:$0xff]  ;;  %v410_v9 = vld [vmem:[%s9196_s23 + $0x738] sm:$0xff] }
 0x356   : > { %7313 = vmatprep.subr.bf16.mxu0 %v8638_v21  ;;  %7569 = vmatprep.subr.bf16.mxu1 %v8766_v59  ;;  %v8652_v21 = vcombine.high %v313_v15, %v321_v16  ;;  %v8780_v59 = vcombine.high %v314_v17, %v322_v18  ;;  %v417_v8 = vld [vmem:[%s9196_s23 + $0x770] sm:$0xff]  ;;  %v418_v10 = vld [vmem:[%s9196_s23 + $0x778] sm:$0xff] }
 0x357   : > { %5065 = vmatprep.mubr.f32.mxu0 %v9244_v3  ;;  %5349 = vmatprep.mubr.f32.mxu1 %v9244_v3  ;;  %v8771_v3 = vcombine.low %v234_v36, %v242_v37  ;;  %v346_v36 = vld [vmem:[%s9196_s23 + $0x538] sm:$0xff] }
 0x358   : > { %v354_v37 = vld [vmem:[%s9196_s23 + $0x578] sm:$0xff] }
 0x359   : > { %7315 = vmatpush1.bf16.msra.mxu0 %v8639_v28  ;;  %7571 = vmatpush1.bf16.msra.mxu1 %v8767_v29  ;;  %v8653_v28 = vcombine.low %v313_v15, %v321_v16  ;;  %v8781_v29 = vcombine.low %v314_v17, %v322_v18  ;;  %v425_v15 = vld [vmem:[%s9196_s23 + $0x7b0] sm:$0xff]  ;;  %v426_v17 = vld [vmem:[%s9196_s23 + $0x7b8] sm:$0xff] }
 0x35a   : > { %7317 = vmatprep.subr.bf16.mxu0 %v8640_v31  ;;  %7573 = vmatprep.subr.bf16.mxu1 %v8768_v32  ;;  %v8654_v31 = vcombine.high %v329_v23, %v337_v24  ;;  %v8782_v32 = vcombine.high %v330_v25, %v338_v27  ;;  %v433_v16 = vld [vmem:[%s9196_s23 + $0x7f0] sm:$0xff]  ;;  %v434_v18 = vld [vmem:[%s9196_s23 + $0x7f8] sm:$0xff] }
 0x35d   : > { %7319 = vmatpush1.bf16.msra.mxu0 %v8641_v38  ;;  %7575 = vmatpush1.bf16.msra.mxu1 %v8769_v39  ;;  %v8655_v38 = vcombine.low %v329_v23, %v337_v24  ;;  %v8783_v39 = vcombine.low %v330_v25, %v338_v27  ;;  %v441_v23 = vld [vmem:[%s9196_s23 + $0x830] sm:$0xff]  ;;  %v442_v25 = vld [vmem:[%s9196_s23 + $0x838] sm:$0xff] }
 0x35e   : > { %7321 = vmatprep.subr.bf16.mxu0 %v8642_v40  ;;  %7577 = vmatprep.subr.bf16.mxu1 %v8770_v41  ;;  %v8656_v40 = vcombine.high %v345_v33, %v353_v35  ;;  %v8784_v41 = vcombine.high %v346_v36, %v354_v37  ;;  %v449_v24 = vld [vmem:[%s9196_s23 + $0x870] sm:$0xff]  ;;  %v450_v27 = vld [vmem:[%s9196_s23 + $0x878] sm:$0xff] }
 0x361   : > { %7323 = vmatpush1.bf16.msra.mxu0 %v8643_v47  ;;  %7579 = vmatpush1.bf16.msra.mxu1 %v8771_v3  ;;  %v8657_v47 = vcombine.low %v345_v33, %v353_v35  ;;  %v8785_v3 = vcombine.low %v346_v36, %v354_v37  ;;  %v457_v33 = vld [vmem:[%s9196_s23 + $0x8b0] sm:$0xff]  ;;  %v458_v36 = vld [vmem:[%s9196_s23 + $0x8b8] sm:$0xff] }
 0x362   : > { %7325 = vmatprep.subr.bf16.mxu0 %v8644_v48  ;;  %7581 = vmatprep.subr.bf16.mxu1 %v8772_v49  ;;  %v8658_v48 = vcombine.high %v361_v42, %v369_v44  ;;  %v8786_v49 = vcombine.high %v362_v45, %v370_v46  ;;  %v465_v35 = vld [vmem:[%s9196_s23 + $0x8f0] sm:$0xff]  ;;  %v466_v37 = vld [vmem:[%s9196_s23 + $0x8f8] sm:$0xff] }
 0x365   : > { %7327 = vmatpush1.bf16.msra.mxu0 %v8645_v55  ;;  %7583 = vmatpush1.bf16.msra.mxu1 %v8773_v56  ;;  %v8659_v55 = vcombine.low %v361_v42, %v369_v44  ;;  %v8787_v56 = vcombine.low %v362_v45, %v370_v46  ;;  %v473_v42 = vld [vmem:[%s9196_s23 + $0x930] sm:$0xff]  ;;  %v474_v45 = vld [vmem:[%s9196_s23 + $0x938] sm:$0xff] }
 0x366   : > { %7329 = vmatprep.subr.bf16.mxu0 %v8646_v57  ;;  %7585 = vmatprep.subr.bf16.mxu1 %v8774_v58  ;;  %v8660_v57 = vcombine.high %v377_v50, %v385_v51  ;;  %v8788_v58 = vcombine.high %v378_v52, %v386_v26  ;;  %v481_v44 = vld [vmem:[%s9196_s23 + $0x970] sm:$0xff]  ;;  %v482_v46 = vld [vmem:[%s9196_s23 + $0x978] sm:$0xff] }
 0x369   : > { %7331 = vmatpush1.bf16.msra.mxu0 %v8647_v2  ;;  %7587 = vmatpush1.bf16.msra.mxu1 %v8775_v4  ;;  %v8661_v2 = vcombine.low %v377_v50, %v385_v51  ;;  %v8789_v4 = vcombine.low %v378_v52, %v386_v26  ;;  %v489_v50 = vld [vmem:[%s9196_s23 + $0x9b0] sm:$0xff]  ;;  %v490_v52 = vld [vmem:[%s9196_s23 + $0x9b8] sm:$0xff] }
 0x36a   : > { %7333 = vmatprep.subr.bf16.mxu0 %v8648_v5  ;;  %7589 = vmatprep.subr.bf16.mxu1 %v8776_v6  ;;  %v8662_v5 = vcombine.high %v393_v60, %v401_v61  ;;  %v8790_v6 = vcombine.high %v394_v62, %v402_v1  ;;  %v497_v51 = vld [vmem:[%s9196_s23 + $0x9f0] sm:$0xff]  ;;  %v498_v26 = vld [vmem:[%s9196_s23 + $0x9f8] sm:$0xff] }
 0x36d   : > { %7335 = vmatpush1.bf16.msra.mxu0 %v8649_v11  ;;  %7591 = vmatpush1.bf16.msra.mxu1 %v8777_v12  ;;  %v8663_v11 = vcombine.low %v393_v60, %v401_v61  ;;  %v8791_v12 = vcombine.low %v394_v62, %v402_v1  ;;  %v513_v60 = vld [vmem:[%s9196_s23 + $0xa70] sm:$0xff]  ;;  %v506_v61 = vld [vmem:[%s9196_s23 + $0xa38] sm:$0xff]  ;;  %v8675_v1 = vcombine.low %v489_v50, %v497_v51 }
 0x36e   : > { %7337 = vmatprep.subr.bf16.mxu0 %v8650_v13  ;;  %7593 = vmatprep.subr.bf16.mxu1 %v8778_v14  ;;  %v8664_v13 = vcombine.high %v409_v7, %v417_v8  ;;  %v8792_v14 = vcombine.high %v410_v9, %v418_v10  ;;  %v514_v62 = vld [vmem:[%s9196_s23 + $0xa78] sm:$0xff] }
 0x371   : > { %7339 = vmatpush1.bf16.msra.mxu0 %v8651_v19  ;;  %7595 = vmatpush1.bf16.msra.mxu1 %v8779_v20  ;;  %v8665_v19 = vcombine.low %v409_v7, %v417_v8  ;;  %v8793_v20 = vcombine.low %v410_v9, %v418_v10  ;;  %v522_v7 = vld [vmem:[%s9196_s23 + $0xab8] sm:$0xff]  ;;  %v8805_v10 = vcombine.low %v506_v61, %v514_v62 }
 0x372   : > { %7341 = vmatprep.subr.bf16.mxu0 %v8652_v21  ;;  %7597 = vmatprep.subr.bf16.mxu1 %v8780_v59  ;;  %v8666_v21 = vcombine.high %v425_v15, %v433_v16  ;;  %v8794_v59 = vcombine.high %v426_v17, %v434_v18  ;;  %v530_v8 = vld [vmem:[%s9196_s23 + $0xaf8] sm:$0xff] }
 0x375   : > { %7343 = vmatpush1.bf16.msra.mxu0 %v8653_v28  ;;  %7599 = vmatpush1.bf16.msra.mxu1 %v8781_v29  ;;  %v8667_v28 = vcombine.low %v425_v15, %v433_v16  ;;  %v8795_v29 = vcombine.low %v426_v17, %v434_v18  ;;  %v538_v15 = vld [vmem:[%s9196_s23 + $0xb38] sm:$0xff]  ;;  %v8807_v18 = vcombine.low %v522_v7, %v530_v8 }
 0x376   : > { %7345 = vmatprep.subr.bf16.mxu0 %v8654_v31  ;;  %7601 = vmatprep.subr.bf16.mxu1 %v8782_v32  ;;  %v8668_v31 = vcombine.high %v441_v23, %v449_v24  ;;  %v8796_v32 = vcombine.high %v442_v25, %v450_v27  ;;  %v546_v16 = vld [vmem:[%s9196_s23 + $0xb78] sm:$0xff] }
 0x379   : > { %7347 = vmatpush1.bf16.msra.mxu0 %v8655_v38  ;;  %7603 = vmatpush1.bf16.msra.mxu1 %v8783_v39  ;;  %v8669_v38 = vcombine.low %v441_v23, %v449_v24  ;;  %v8797_v39 = vcombine.low %v442_v25, %v450_v27  ;;  %v554_v23 = vld [vmem:[%s9196_s23 + $0xbb8] sm:$0xff]  ;;  %v8809_v27 = vcombine.low %v538_v15, %v546_v16 }
 0x37a   : > { %7349 = vmatprep.subr.bf16.mxu0 %v8656_v40  ;;  %7605 = vmatprep.subr.bf16.mxu1 %v8784_v41  ;;  %v8670_v40 = vcombine.high %v457_v33, %v465_v35  ;;  %v8798_v41 = vcombine.high %v458_v36, %v466_v37  ;;  %v562_v24 = vld [vmem:[%s9196_s23 + $0xbf8] sm:$0xff] }
 0x37d   : > { %7351 = vmatpush1.bf16.msra.mxu0 %v8657_v47  ;;  %7607 = vmatpush1.bf16.msra.mxu1 %v8785_v3  ;;  %v8671_v47 = vcombine.low %v457_v33, %v465_v35  ;;  %v8799_v3 = vcombine.low %v458_v36, %v466_v37  ;;  %v570_v33 = vld [vmem:[%s9196_s23 + $0xc38] sm:$0xff]  ;;  %v8811_v37 = vcombine.low %v554_v23, %v562_v24 }
 0x37e   : > { %7353 = vmatprep.subr.bf16.mxu0 %v8658_v48  ;;  %7609 = vmatprep.subr.bf16.mxu1 %v8786_v49  ;;  %v8672_v48 = vcombine.high %v473_v42, %v481_v44  ;;  %v8800_v49 = vcombine.high %v474_v45, %v482_v46  ;;  %v578_v35 = vld [vmem:[%s9196_s23 + $0xc78] sm:$0xff] }
 0x381   : > { %7355 = vmatpush1.bf16.msra.mxu0 %v8659_v55  ;;  %7611 = vmatpush1.bf16.msra.mxu1 %v8787_v56  ;;  %v8801_v55 = vcombine.low %v474_v45, %v482_v46  ;;  %v8674_v56 = vcombine.high %v489_v50, %v497_v51  ;;  %v8813_v46 = vcombine.low %v570_v33, %v578_v35  ;;  %v602_v50 = vld [vmem:[%s9196_s23 + $0xd38] sm:$0xff] }
 0x382   : > { %7357 = vmatprep.subr.bf16.mxu0 %v8660_v57  ;;  %7613 = vmatprep.subr.bf16.mxu1 %v8788_v58  ;;  %v8802_v57 = vcombine.high %v490_v52, %v498_v26  ;;  %v505_v58 = vld [vmem:[%s9196_s23 + $0xa30] sm:$0xff]  ;;  %v610_v51 = vld [vmem:[%s9196_s23 + $0xd78] sm:$0xff] }
 0x383   : > { %v8677_v9 = vcombine.low %v505_v58, %v513_v60 }
 0x385   : > { %7359 = vmatpush1.bf16.msra.mxu0 %v8661_v2  ;;  %7615 = vmatpush1.bf16.msra.mxu1 %v8789_v4  ;;  %v8676_v2 = vcombine.high %v505_v58, %v513_v60  ;;  %v8804_v4 = vcombine.high %v506_v61, %v514_v62  ;;  %v618_v58 = vld [vmem:[%s9196_s23 + $0xdb8] sm:$0xff]  ;;  %v8817_v62 = vcombine.low %v602_v50, %v610_v51 }
 0x386   : > { %7361 = vmatprep.subr.bf16.mxu0 %v8662_v5  ;;  %7617 = vmatprep.subr.bf16.mxu1 %v8790_v6  ;;  %v521_v5 = vld [vmem:[%s9196_s23 + $0xab0] sm:$0xff]  ;;  %v626_v60 = vld [vmem:[%s9196_s23 + $0xdf8] sm:$0xff] }
 0x387   : > { %v529_v6 = vld [vmem:[%s9196_s23 + $0xaf0] sm:$0xff] }
 0x388   : > { %v8679_v17 = vcombine.low %v521_v5, %v529_v6 }
 0x389   : > { %7363 = vmatpush1.bf16.msra.mxu0 %v8663_v11  ;;  %7619 = vmatpush1.bf16.msra.mxu1 %v8791_v12  ;;  %v8678_v11 = vcombine.high %v521_v5, %v529_v6  ;;  %v8806_v12 = vcombine.high %v522_v7, %v530_v8  ;;  %v634_v5 = vld [vmem:[%s9196_s23 + $0xe38] sm:$0xff]  ;;  %v8819_v8 = vcombine.low %v618_v58, %v626_v60 }
 0x38a   : > { %7365 = vmatprep.subr.bf16.mxu0 %v8664_v13  ;;  %7621 = vmatprep.subr.bf16.mxu1 %v8792_v14  ;;  %v537_v13 = vld [vmem:[%s9196_s23 + $0xb30] sm:$0xff]  ;;  %v642_v6 = vld [vmem:[%s9196_s23 + $0xe78] sm:$0xff] }
 0x38b   : > { %v545_v14 = vld [vmem:[%s9196_s23 + $0xb70] sm:$0xff] }
 0x38c   : > { %v8681_v25 = vcombine.low %v537_v13, %v545_v14 }
 0x38d   : > { %7367 = vmatpush1.bf16.msra.mxu0 %v8665_v19  ;;  %7623 = vmatpush1.bf16.msra.mxu1 %v8793_v20  ;;  %v8680_v19 = vcombine.high %v537_v13, %v545_v14  ;;  %v8808_v20 = vcombine.high %v538_v15, %v546_v16  ;;  %v650_v13 = vld [vmem:[%s9196_s23 + $0xeb8] sm:$0xff]  ;;  %v8821_v16 = vcombine.low %v634_v5, %v642_v6 }
 0x38e   : > { %7369 = vmatprep.subr.bf16.mxu0 %v8666_v21  ;;  %7625 = vmatprep.subr.bf16.mxu1 %v8794_v59  ;;  %v553_v21 = vld [vmem:[%s9196_s23 + $0xbb0] sm:$0xff]  ;;  %v658_v14 = vld [vmem:[%s9196_s23 + $0xef8] sm:$0xff] }
 0x38f   : > { %v561_v59 = vld [vmem:[%s9196_s23 + $0xbf0] sm:$0xff] }
 0x390   : > { %v8683_v36 = vcombine.low %v553_v21, %v561_v59 }
 0x391   : > { %7371 = vmatpush1.bf16.msra.mxu0 %v8667_v28  ;;  %7627 = vmatpush1.bf16.msra.mxu1 %v8795_v29  ;;  %v8682_v28 = vcombine.high %v553_v21, %v561_v59  ;;  %v8810_v29 = vcombine.high %v554_v23, %v562_v24  ;;  %v666_v21 = vld [vmem:[%s9196_s23 + $0xf38] sm:$0xff]  ;;  %v8823_v24 = vcombine.low %v650_v13, %v658_v14 }
 0x392   : > { %7373 = vmatprep.subr.bf16.mxu0 %v8668_v31  ;;  %7629 = vmatprep.subr.bf16.mxu1 %v8796_v32  ;;  %v569_v31 = vld [vmem:[%s9196_s23 + $0xc30] sm:$0xff]  ;;  %v674_v59 = vld [vmem:[%s9196_s23 + $0xf78] sm:$0xff] }
 0x393   : > { %v577_v32 = vld [vmem:[%s9196_s23 + $0xc70] sm:$0xff] }
 0x394   : > { %5066 = vmatmul.mubr.f32.vlgmr.msra.gmra.mrb[6].mxu0 %v9238_v63  ;;  %5350 = vmatmul.mubr.f32.vlgmr.msra.gmra.mrb[6].mxu1 %v9238_v63  ;;  %v8673_v63 = vcombine.low %v473_v42, %v481_v44  ;;  %v586_v42 = vld [vmem:[%s9196_s23 + $0xcb8] sm:$0xff]  ;;  %v8685_v45 = vcombine.low %v569_v31, %v577_v32 }
 0x395   : > { %7375 = vmatpush1.bf16.msra.mxu0 %v8669_v38  ;;  %7631 = vmatpush1.bf16.msra.mxu1 %v8797_v39  ;;  %v8684_v38 = vcombine.high %v569_v31, %v577_v32  ;;  %v8812_v39 = vcombine.high %v570_v33, %v578_v35  ;;  %v594_v44 = vld [vmem:[%s9196_s23 + $0xcf8] sm:$0xff]  ;;  %v8825_v35 = vcombine.low %v666_v21, %v674_v59 }
 0x396   : > { %7377 = vmatprep.subr.bf16.mxu0 %v8670_v40  ;;  %7633 = vmatprep.subr.bf16.mxu1 %v8798_v41  ;;  %v585_v40 = vld [vmem:[%s9196_s23 + $0xcb0] sm:$0xff]  ;;  %v682_v31 = vld [vmem:[%s9196_s23 + $0xfb8] sm:$0xff] }
 0x397   : > { %5136 = vmatprep.mubr.f32.mxu0 %v9297_v30  ;;  %5420 = vmatprep.mubr.f32.mxu1 %v9297_v30  ;;  %v8803_v30 = vcombine.low %v490_v52, %v498_v26  ;;  %v593_v41 = vld [vmem:[%s9196_s23 + $0xcf0] sm:$0xff]  ;;  %v8815_v26 = vcombine.low %v586_v42, %v594_v44  ;;  %v690_v32 = vld [vmem:[%s9196_s23 + $0xff8] sm:$0xff] }
 0x398   : > { %v8687_v52 = vcombine.low %v585_v40, %v593_v41 }
 0x399   : > { %7379 = vmatpush1.bf16.msra.mxu0 %v8671_v47  ;;  %7635 = vmatpush1.bf16.msra.mxu1 %v8799_v3  ;;  %v8686_v47 = vcombine.high %v585_v40, %v593_v41  ;;  %v8814_v3 = vcombine.high %v586_v42, %v594_v44  ;;  %v698_v40 = vld [vmem:[%s9196_s23 + $0x1038] sm:$0xff]  ;;  %v8827_v44 = vcombine.low %v682_v31, %v690_v32 }
 0x39a   : > { %7381 = vmatprep.subr.bf16.mxu0 %v8672_v48  ;;  %7637 = vmatprep.subr.bf16.mxu1 %v8800_v49  ;;  %v601_v48 = vld [vmem:[%s9196_s23 + $0xd30] sm:$0xff]  ;;  %v706_v41 = vld [vmem:[%s9196_s23 + $0x1078] sm:$0xff] }
 0x39b   : > { %v609_v49 = vld [vmem:[%s9196_s23 + $0xd70] sm:$0xff] }
 0x39c   : > { %v8689_v61 = vcombine.low %v601_v48, %v609_v49 }
 0x39d   : > { %7383 = vmatpush1.bf16.msra.mxu0 %v8673_v63  ;;  %7639 = vmatpush1.bf16.msra.mxu1 %v8801_v55  ;;  %v8688_v63 = vcombine.high %v601_v48, %v609_v49  ;;  %v8816_v55 = vcombine.high %v602_v50, %v610_v51  ;;  %v714_v48 = vld [vmem:[%s9196_s23 + $0x10b8] sm:$0xff]  ;;  %v8829_v51 = vcombine.low %v698_v40, %v706_v41 }
 0x39e   : > { %7385 = vmatprep.subr.bf16.mxu0 %v8674_v56  ;;  %7641 = vmatprep.subr.bf16.mxu1 %v8802_v57  ;;  %v617_v56 = vld [vmem:[%s9196_s23 + $0xdb0] sm:$0xff]  ;;  %v722_v49 = vld [vmem:[%s9196_s23 + $0x10f8] sm:$0xff] }
 0x39f   : > { %v625_v57 = vld [vmem:[%s9196_s23 + $0xdf0] sm:$0xff] }
 0x3a0   : > { %v8691_v7 = vcombine.low %v617_v56, %v625_v57 }
 0x3a1   : > { %7387 = vmatpush1.bf16.msra.mxu0 %v8675_v1  ;;  %7643 = vmatpush1.bf16.msra.mxu1 %v8803_v30  ;;  %v8690_v1 = vcombine.high %v617_v56, %v625_v57  ;;  %v8818_v30 = vcombine.high %v618_v58, %v626_v60  ;;  %v730_v56 = vld [vmem:[%s9196_s23 + $0x1138] sm:$0xff]  ;;  %v8831_v60 = vcombine.low %v714_v48, %v722_v49 }
 0x3a2   : > { %7389 = vmatprep.subr.bf16.mxu0 %v8676_v2  ;;  %7645 = vmatprep.subr.bf16.mxu1 %v8804_v4  ;;  %v633_v2 = vld [vmem:[%s9196_s23 + $0xe30] sm:$0xff]  ;;  %v738_v57 = vld [vmem:[%s9196_s23 + $0x1178] sm:$0xff] }
 0x3a3   : > { %v641_v4 = vld [vmem:[%s9196_s23 + $0xe70] sm:$0xff] }
 0x3a4   : > { %v8693_v15 = vcombine.low %v633_v2, %v641_v4 }
 0x3a5   : > { %7391 = vmatpush1.bf16.msra.mxu0 %v8677_v9  ;;  %7647 = vmatpush1.bf16.msra.mxu1 %v8805_v10  ;;  %v8692_v9 = vcombine.high %v633_v2, %v641_v4  ;;  %v8820_v10 = vcombine.high %v634_v5, %v642_v6  ;;  %v746_v2 = vld [vmem:[%s9196_s23 + $0x11b8] sm:$0xff]  ;;  %v8833_v5 = vcombine.low %v730_v56, %v738_v57 }
 0x3a6   : > { %7393 = vmatprep.subr.bf16.mxu0 %v8678_v11  ;;  %7649 = vmatprep.subr.bf16.mxu1 %v8806_v12  ;;  %v649_v11 = vld [vmem:[%s9196_s23 + $0xeb0] sm:$0xff]  ;;  %v754_v4 = vld [vmem:[%s9196_s23 + $0x11f8] sm:$0xff] }
 0x3a7   : > { %v657_v12 = vld [vmem:[%s9196_s23 + $0xef0] sm:$0xff] }
 0x3a8   : > { %v8695_v23 = vcombine.low %v649_v11, %v657_v12 }
 0x3a9   : > { %7395 = vmatpush1.bf16.msra.mxu0 %v8679_v17  ;;  %7651 = vmatpush1.bf16.msra.mxu1 %v8807_v18  ;;  %v8694_v17 = vcombine.high %v649_v11, %v657_v12  ;;  %v8822_v18 = vcombine.high %v650_v13, %v658_v14  ;;  %v770_v11 = vld [vmem:[%s9196_s23 + $0x1278] sm:$0xff] }
 0x3aa   : > { %7397 = vmatprep.subr.bf16.mxu0 %v8680_v19  ;;  %7653 = vmatprep.subr.bf16.mxu1 %v8808_v20  ;;  %v665_v19 = vld [vmem:[%s9196_s23 + $0xf30] sm:$0xff] }
 0x3ab   : > { %v673_v20 = vld [vmem:[%s9196_s23 + $0xf70] sm:$0xff] }
 0x3ac   : > { %v8697_v33 = vcombine.low %v665_v19, %v673_v20 }
 0x3ad   : > { %7399 = vmatpush1.bf16.msra.mxu0 %v8681_v25  ;;  %7655 = vmatpush1.bf16.msra.mxu1 %v8809_v27  ;;  %v8696_v25 = vcombine.high %v665_v19, %v673_v20  ;;  %v8824_v27 = vcombine.high %v666_v21, %v674_v59 }
 0x3ae   : > { %7401 = vmatprep.subr.bf16.mxu0 %v8682_v28  ;;  %7657 = vmatprep.subr.bf16.mxu1 %v8810_v29  ;;  %v681_v28 = vld [vmem:[%s9196_s23 + $0xfb0] sm:$0xff] }
 0x3af   : > { %v689_v29 = vld [vmem:[%s9196_s23 + $0xff0] sm:$0xff] }
 0x3b0   : > { %v8699_v42 = vcombine.low %v681_v28, %v689_v29 }
 0x3b1   : > { %7403 = vmatpush1.bf16.msra.mxu0 %v8683_v36  ;;  %7659 = vmatpush1.bf16.msra.mxu1 %v8811_v37  ;;  %v8698_v36 = vcombine.high %v681_v28, %v689_v29  ;;  %v8826_v37 = vcombine.high %v682_v31, %v690_v32 }
 0x3b2   : > { %7405 = vmatprep.subr.bf16.mxu0 %v8684_v38  ;;  %7661 = vmatprep.subr.bf16.mxu1 %v8812_v39  ;;  %v697_v38 = vld [vmem:[%s9196_s23 + $0x1030] sm:$0xff] }
 0x3b3   : > { %v705_v39 = vld [vmem:[%s9196_s23 + $0x1070] sm:$0xff] }
 0x3b4   : > { %v8701_v50 = vcombine.low %v697_v38, %v705_v39 }
 0x3b5   : > { %7407 = vmatpush1.bf16.msra.mxu0 %v8685_v45  ;;  %7663 = vmatpush1.bf16.msra.mxu1 %v8813_v46  ;;  %v8700_v45 = vcombine.high %v697_v38, %v705_v39  ;;  %v8828_v46 = vcombine.high %v698_v40, %v706_v41 }
 0x3b6   : > { %7409 = vmatprep.subr.bf16.mxu0 %v8686_v47  ;;  %7665 = vmatprep.subr.bf16.mxu1 %v8814_v3  ;;  %v713_v47 = vld [vmem:[%s9196_s23 + $0x10b0] sm:$0xff] }
 0x3b7   : > { %v721_v3 = vld [vmem:[%s9196_s23 + $0x10f0] sm:$0xff] }
 0x3b8   : > { %v8703_v58 = vcombine.low %v713_v47, %v721_v3 }
 0x3b9   : > { %7411 = vmatpush1.bf16.msra.mxu0 %v8687_v52  ;;  %7667 = vmatpush1.bf16.msra.mxu1 %v8815_v26  ;;  %v8702_v52 = vcombine.high %v713_v47, %v721_v3  ;;  %v8830_v26 = vcombine.high %v714_v48, %v722_v49 }
 0x3ba   : > { %7413 = vmatprep.subr.bf16.mxu0 %v8688_v63  ;;  %7669 = vmatprep.subr.bf16.mxu1 %v8816_v55  ;;  %v729_v63 = vld [vmem:[%s9196_s23 + $0x1130] sm:$0xff] }
 0x3bb   : > { %v737_v55 = vld [vmem:[%s9196_s23 + $0x1170] sm:$0xff] }
 0x3bd   : > { %7415 = vmatpush1.bf16.msra.mxu0 %v8689_v61  ;;  %7671 = vmatpush1.bf16.msra.mxu1 %v8817_v62  ;;  %v8704_v61 = vcombine.high %v729_v63, %v737_v55  ;;  %v8832_v62 = vcombine.high %v730_v56, %v738_v57 }
 0x3be   : > { %7417 = vmatprep.subr.bf16.mxu0 %v8690_v1  ;;  %7673 = vmatprep.subr.bf16.mxu1 %v8818_v30  ;;  %v745_v1 = vld [vmem:[%s9196_s23 + $0x11b0] sm:$0xff] }
 0x3bf   : > { %v753_v30 = vld [vmem:[%s9196_s23 + $0x11f0] sm:$0xff] }
 0x3c0   : > { %v8706_v6 = vcombine.high %v745_v1, %v753_v30  ;;  %v8707_v12 = vcombine.low %v745_v1, %v753_v30 }
 0x3c1   : > { %7419 = vmatpush1.bf16.msra.mxu0 %v8691_v7  ;;  %7675 = vmatpush1.bf16.msra.mxu1 %v8819_v8  ;;  %v8834_v7 = vcombine.high %v746_v2, %v754_v4  ;;  %v761_v8 = vld [vmem:[%s9196_s23 + $0x1230] sm:$0xff] }
 0x3c2   : > { %7421 = vmatprep.subr.bf16.mxu0 %v8692_v9  ;;  %7677 = vmatprep.subr.bf16.mxu1 %v8820_v10  ;;  %v769_v9 = vld [vmem:[%s9196_s23 + $0x1270] sm:$0xff]  ;;  %v762_v10 = vld [vmem:[%s9196_s23 + $0x1238] sm:$0xff] }
 0x3c3   : > { %v8708_v13 = vcombine.high %v761_v8, %v769_v9  ;;  %v8836_v14 = vcombine.high %v762_v10, %v770_v11  ;;  %v8709_v19 = vcombine.low %v761_v8, %v769_v9  ;;  %v8837_v20 = vcombine.low %v762_v10, %v770_v11 }
 0x3c5   : > { %7423 = vmatpush1.bf16.msra.mxu0 %v8693_v15  ;;  %7679 = vmatpush1.bf16.msra.mxu1 %v8821_v16  ;;  %v777_v15 = vld [vmem:[%s9196_s23 + $0x12b0] sm:$0xff] }
 0x3c6   : > { %7425 = vmatprep.subr.bf16.mxu0 %v8694_v17  ;;  %7681 = vmatprep.subr.bf16.mxu1 %v8822_v18  ;;  %v785_v16 = vld [vmem:[%s9196_s23 + $0x12f0] sm:$0xff]  ;;  %v778_v17 = vld [vmem:[%s9196_s23 + $0x12b8] sm:$0xff] }
 0x3c7   : > { %v786_v18 = vld [vmem:[%s9196_s23 + $0x12f8] sm:$0xff]  ;;  %v8710_v21 = vcombine.high %v777_v15, %v785_v16  ;;  %v8711_v28 = vcombine.low %v777_v15, %v785_v16 }
 0x3c8   : > { %v8838_v59 = vcombine.high %v778_v17, %v786_v18  ;;  %v8839_v29 = vcombine.low %v778_v17, %v786_v18 }
 0x3c9   : > { %7427 = vmatpush1.bf16.msra.mxu0 %v8695_v23  ;;  %7683 = vmatpush1.bf16.msra.mxu1 %v8823_v24  ;;  %v793_v23 = vld [vmem:[%s9196_s23 + $0x1330] sm:$0xff] }
 0x3ca   : > { %7429 = vmatprep.subr.bf16.mxu0 %v8696_v25  ;;  %7685 = vmatprep.subr.bf16.mxu1 %v8824_v27  ;;  %v801_v24 = vld [vmem:[%s9196_s23 + $0x1370] sm:$0xff]  ;;  %v794_v25 = vld [vmem:[%s9196_s23 + $0x1338] sm:$0xff] }
 0x3cb   : > { %v802_v27 = vld [vmem:[%s9196_s23 + $0x1378] sm:$0xff]  ;;  %v8712_v31 = vcombine.high %v793_v23, %v801_v24  ;;  %v8713_v38 = vcombine.low %v793_v23, %v801_v24 }
 0x3cc   : > { %v8840_v32 = vcombine.high %v794_v25, %v802_v27  ;;  %v8841_v39 = vcombine.low %v794_v25, %v802_v27 }
 0x3cd   : > { %7431 = vmatpush1.bf16.msra.mxu0 %v8697_v33  ;;  %7687 = vmatpush1.bf16.msra.mxu1 %v8825_v35  ;;  %v809_v33 = vld [vmem:[%s9196_s23 + $0x13b0] sm:$0xff] }
 0x3ce   : > { %7433 = vmatprep.subr.bf16.mxu0 %v8698_v36  ;;  %7689 = vmatprep.subr.bf16.mxu1 %v8826_v37  ;;  %v817_v35 = vld [vmem:[%s9196_s23 + $0x13f0] sm:$0xff]  ;;  %v810_v36 = vld [vmem:[%s9196_s23 + $0x13b8] sm:$0xff] }
 0x3cf   : > { %v818_v37 = vld [vmem:[%s9196_s23 + $0x13f8] sm:$0xff]  ;;  %v8714_v40 = vcombine.high %v809_v33, %v817_v35  ;;  %v8715_v47 = vcombine.low %v809_v33, %v817_v35 }
 0x3d0   : > { %v8842_v41 = vcombine.high %v810_v36, %v818_v37  ;;  %v8843_v3 = vcombine.low %v810_v36, %v818_v37 }
 0x3d1   : > { %7435 = vmatpush1.bf16.msra.mxu0 %v8699_v42  ;;  %7691 = vmatpush1.bf16.msra.mxu1 %v8827_v44  ;;  %v825_v42 = vld [vmem:[%s9196_s23 + $0x1430] sm:$0xff] }
 0x3d2   : > { %7437 = vmatprep.subr.bf16.mxu0 %v8700_v45  ;;  %7693 = vmatprep.subr.bf16.mxu1 %v8828_v46  ;;  %v833_v44 = vld [vmem:[%s9196_s23 + $0x1470] sm:$0xff]  ;;  %v826_v45 = vld [vmem:[%s9196_s23 + $0x1438] sm:$0xff] }
 0x3d3   : > { %v834_v46 = vld [vmem:[%s9196_s23 + $0x1478] sm:$0xff]  ;;  %v8716_v48 = vcombine.high %v825_v42, %v833_v44 }
 0x3d4   : > { %5137 = vmatmul.mubr.f32.vlgmr.msra.gmra.mrb[6].mxu0 %v9289_v22  ;;  %5421 = vmatmul.mubr.f32.vlgmr.msra.gmra.mrb[6].mxu1 %v9289_v22  ;;  %v8705_v22 = vcombine.low %v729_v63, %v737_v55  ;;  %v8844_v49 = vcombine.high %v826_v45, %v834_v46  ;;  %v8717_v63 = vcombine.low %v825_v42, %v833_v44 }
 0x3d5   : > { %7439 = vmatpush1.bf16.msra.mxu0 %v8701_v50  ;;  %7695 = vmatpush1.bf16.msra.mxu1 %v8829_v51  ;;  %v841_v50 = vld [vmem:[%s9196_s23 + $0x14b0] sm:$0xff]  ;;  %v8845_v55 = vcombine.low %v826_v45, %v834_v46 }
 0x3d6   : > { %7441 = vmatprep.subr.bf16.mxu0 %v8702_v52  ;;  %7697 = vmatprep.subr.bf16.mxu1 %v8830_v26  ;;  %v849_v51 = vld [vmem:[%s9196_s23 + $0x14f0] sm:$0xff]  ;;  %v842_v52 = vld [vmem:[%s9196_s23 + $0x14b8] sm:$0xff] }
 0x3d7   : > { %5207 = vmatprep.mubr.f32.mxu0 %v9375_v43  ;;  %5491 = vmatprep.mubr.f32.mxu1 %v9375_v43  ;;  %v8835_v43 = vcombine.low %v746_v2, %v754_v4  ;;  %v850_v26 = vld [vmem:[%s9196_s23 + $0x14f8] sm:$0xff]  ;;  %v8718_v56 = vcombine.high %v841_v50, %v849_v51  ;;  %v8719_v1 = vcombine.low %v841_v50, %v849_v51 }
 0x3d8   : > { %v8846_v57 = vcombine.high %v842_v52, %v850_v26  ;;  %v8847_v30 = vcombine.low %v842_v52, %v850_v26 }
 0x3d9   : > { %7443 = vmatpush1.bf16.msra.mxu0 %v8703_v58  ;;  %7699 = vmatpush1.bf16.msra.mxu1 %v8831_v60  ;;  %v857_v58 = vld [vmem:[%s9196_s23 + $0x1530] sm:$0xff] }
 0x3da   : > { %7445 = vmatprep.subr.bf16.mxu0 %v8704_v61  ;;  %7701 = vmatprep.subr.bf16.mxu1 %v8832_v62  ;;  %v865_v60 = vld [vmem:[%s9196_s23 + $0x1570] sm:$0xff]  ;;  %v858_v61 = vld [vmem:[%s9196_s23 + $0x1538] sm:$0xff] }
 0x3db   : > { %v866_v62 = vld [vmem:[%s9196_s23 + $0x1578] sm:$0xff]  ;;  %v8720_v2 = vcombine.high %v857_v58, %v865_v60  ;;  %v8721_v8 = vcombine.low %v857_v58, %v865_v60 }
 0x3dc   : > { %v8848_v4 = vcombine.high %v858_v61, %v866_v62  ;;  %v8849_v9 = vcombine.low %v858_v61, %v866_v62 }
 0x3dd   : > { %7447 = vmatpush1.bf16.msra.mxu0 %v8705_v22  ;;  %7703 = vmatpush1.bf16.msra.mxu1 %v8833_v5  ;;  %v873_v22 = vld [vmem:[%s9196_s23 + $0x15b0] sm:$0xff] }
 0x3de   : > { %7449 = vmatprep.subr.bf16.mxu0 %v8706_v6  ;;  %7705 = vmatprep.subr.bf16.mxu1 %v8834_v7  ;;  %v881_v5 = vld [vmem:[%s9196_s23 + $0x15f0] sm:$0xff]  ;;  %v874_v6 = vld [vmem:[%s9196_s23 + $0x15b8] sm:$0xff] }
 0x3df   : > { %v882_v7 = vld [vmem:[%s9196_s23 + $0x15f8] sm:$0xff]  ;;  %v8722_v10 = vcombine.high %v873_v22, %v881_v5  ;;  %v8723_v15 = vcombine.low %v873_v22, %v881_v5 }
 0x3e0   : > { %v8850_v11 = vcombine.high %v874_v6, %v882_v7  ;;  %v8851_v16 = vcombine.low %v874_v6, %v882_v7 }
 0x3e1   : > { %7451 = vmatpush1.bf16.msra.mxu0 %v8707_v12  ;;  %7707 = vmatpush1.bf16.msra.mxu1 %v8835_v43  ;;  %v889_v12 = vld [vmem:[%s9196_s23 + $0x1630] sm:$0xff] }
 0x3e2   : > { %7453 = vmatprep.subr.bf16.mxu0 %v8708_v13  ;;  %7709 = vmatprep.subr.bf16.mxu1 %v8836_v14  ;;  %v897_v43 = vld [vmem:[%s9196_s23 + $0x1670] sm:$0xff]  ;;  %v890_v13 = vld [vmem:[%s9196_s23 + $0x1638] sm:$0xff] }
 0x3e3   : > { %v898_v14 = vld [vmem:[%s9196_s23 + $0x1678] sm:$0xff]  ;;  %v8724_v17 = vcombine.high %v889_v12, %v897_v43  ;;  %v8725_v23 = vcombine.low %v889_v12, %v897_v43 }
 0x3e4   : > { %v8852_v18 = vcombine.high %v890_v13, %v898_v14  ;;  %v8853_v24 = vcombine.low %v890_v13, %v898_v14  ;;  %v1017_v14 = vld [vmem:[%s9196_s23 + $0x1a30] sm:$0xff] }
 0x3e5   : > { %7455 = vmatpush1.bf16.msra.mxu0 %v8709_v19  ;;  %7711 = vmatpush1.bf16.msra.mxu1 %v8837_v20  ;;  %v905_v19 = vld [vmem:[%s9196_s23 + $0x16b0] sm:$0xff] }
 0x3e6   : > { %7457 = vmatprep.subr.bf16.mxu0 %v8710_v21  ;;  %7713 = vmatprep.subr.bf16.mxu1 %v8838_v59  ;;  %v913_v20 = vld [vmem:[%s9196_s23 + $0x16f0] sm:$0xff]  ;;  %v906_v21 = vld [vmem:[%s9196_s23 + $0x16b8] sm:$0xff] }
 0x3e7   : > { %v914_v59 = vld [vmem:[%s9196_s23 + $0x16f8] sm:$0xff]  ;;  %v8726_v25 = vcombine.high %v905_v19, %v913_v20  ;;  %v8727_v33 = vcombine.low %v905_v19, %v913_v20 }
 0x3e8   : > { %v8854_v27 = vcombine.high %v906_v21, %v914_v59  ;;  %v8855_v35 = vcombine.low %v906_v21, %v914_v59  ;;  %v1033_v21 = vld [vmem:[%s9196_s23 + $0x1ab0] sm:$0xff] }
 0x3e9   : > { %7459 = vmatpush1.bf16.msra.mxu0 %v8711_v28  ;;  %7715 = vmatpush1.bf16.msra.mxu1 %v8839_v29  ;;  %v921_v28 = vld [vmem:[%s9196_s23 + $0x1730] sm:$0xff] }
 0x3ea   : > { %7461 = vmatprep.subr.bf16.mxu0 %v8712_v31  ;;  %7717 = vmatprep.subr.bf16.mxu1 %v8840_v32  ;;  %v929_v29 = vld [vmem:[%s9196_s23 + $0x1770] sm:$0xff]  ;;  %v922_v31 = vld [vmem:[%s9196_s23 + $0x1738] sm:$0xff] }
 0x3eb   : > { %v930_v32 = vld [vmem:[%s9196_s23 + $0x1778] sm:$0xff]  ;;  %v8728_v36 = vcombine.high %v921_v28, %v929_v29  ;;  %v8729_v42 = vcombine.low %v921_v28, %v929_v29  ;;  %v1041_v59 = vld [vmem:[%s9196_s23 + $0x1af0] sm:$0xff] }
 0x3ec   : > { %v8856_v37 = vcombine.high %v922_v31, %v930_v32  ;;  %v8857_v44 = vcombine.low %v922_v31, %v930_v32  ;;  %v8742_v28 = vcombine.high %v1033_v21, %v1041_v59  ;;  %v1049_v31 = vld [vmem:[%s9196_s23 + $0x1b30] sm:$0xff] }
 0x3ed   : > { %7463 = vmatpush1.bf16.msra.mxu0 %v8713_v38  ;;  %7719 = vmatpush1.bf16.msra.mxu1 %v8841_v39  ;;  %v937_v38 = vld [vmem:[%s9196_s23 + $0x17b0] sm:$0xff] }
 0x3ee   : > { %7465 = vmatprep.subr.bf16.mxu0 %v8714_v40  ;;  %7721 = vmatprep.subr.bf16.mxu1 %v8842_v41  ;;  %v945_v39 = vld [vmem:[%s9196_s23 + $0x17f0] sm:$0xff]  ;;  %v938_v40 = vld [vmem:[%s9196_s23 + $0x17b8] sm:$0xff] }
 0x3ef   : > { %v946_v41 = vld [vmem:[%s9196_s23 + $0x17f8] sm:$0xff]  ;;  %v8730_v45 = vcombine.high %v937_v38, %v945_v39  ;;  %v8731_v50 = vcombine.low %v937_v38, %v945_v39  ;;  %v1057_v32 = vld [vmem:[%s9196_s23 + $0x1b70] sm:$0xff] }
 0x3f0   : > { %v8858_v46 = vcombine.high %v938_v40, %v946_v41  ;;  %v8859_v51 = vcombine.low %v938_v40, %v946_v41  ;;  %v8744_v38 = vcombine.high %v1049_v31, %v1057_v32  ;;  %v1065_v41 = vld [vmem:[%s9196_s23 + $0x1bb0] sm:$0xff] }
 0x3f1   : > { %7467 = vmatpush1.bf16.msra.mxu0 %v8715_v47  ;;  %7723 = vmatpush1.bf16.msra.mxu1 %v8843_v3  ;;  %v953_v47 = vld [vmem:[%s9196_s23 + $0x1830] sm:$0xff] }
 0x3f2   : > { %7469 = vmatprep.subr.bf16.mxu0 %v8716_v48  ;;  %7725 = vmatprep.subr.bf16.mxu1 %v8844_v49  ;;  %v961_v3 = vld [vmem:[%s9196_s23 + $0x1870] sm:$0xff]  ;;  %v954_v48 = vld [vmem:[%s9196_s23 + $0x1838] sm:$0xff] }
 0x3f3   : > { %v962_v49 = vld [vmem:[%s9196_s23 + $0x1878] sm:$0xff]  ;;  %v8732_v52 = vcombine.high %v953_v47, %v961_v3  ;;  %v8733_v58 = vcombine.low %v953_v47, %v961_v3 }
 0x3f4   : > { %v8860_v26 = vcombine.high %v954_v48, %v962_v49  ;;  %v8861_v60 = vcombine.low %v954_v48, %v962_v49  ;;  %v1066_v47 = vld [vmem:[%s9196_s23 + $0x1bb8] sm:$0xff] }
 0x3f5   : > { %7471 = vmatpush1.bf16.msra.mxu0 %v8717_v63  ;;  %7727 = vmatpush1.bf16.msra.mxu1 %v8845_v55  ;;  %v969_v63 = vld [vmem:[%s9196_s23 + $0x18b0] sm:$0xff]  ;;  %v1074_v3 = vld [vmem:[%s9196_s23 + $0x1bf8] sm:$0xff] }
 0x3f6   : > { %7473 = vmatprep.subr.bf16.mxu0 %v8718_v56  ;;  %7729 = vmatprep.subr.bf16.mxu1 %v8846_v57  ;;  %v977_v55 = vld [vmem:[%s9196_s23 + $0x18f0] sm:$0xff]  ;;  %v970_v56 = vld [vmem:[%s9196_s23 + $0x18b8] sm:$0xff] }
 0x3f7   : > { %v978_v57 = vld [vmem:[%s9196_s23 + $0x18f8] sm:$0xff]  ;;  %v8734_v61 = vcombine.high %v969_v63, %v977_v55  ;;  %v8735_v22 = vcombine.low %v969_v63, %v977_v55 }
 0x3f8   : > { %v8862_v62 = vcombine.high %v970_v56, %v978_v57  ;;  %v8863_v5 = vcombine.low %v970_v56, %v978_v57  ;;  %v8874_v56 = vcombine.high %v1066_v47, %v1074_v3  ;;  %v1081_v57 = vld [vmem:[%s9196_s23 + $0x1c30] sm:$0xff] }
 0x3f9   : > { %7475 = vmatpush1.bf16.msra.mxu0 %v8719_v1  ;;  %7731 = vmatpush1.bf16.msra.mxu1 %v8847_v30  ;;  %v985_v1 = vld [vmem:[%s9196_s23 + $0x1930] sm:$0xff] }
 0x3fa   : > { %7477 = vmatprep.subr.bf16.mxu0 %v8720_v2  ;;  %7733 = vmatprep.subr.bf16.mxu1 %v8848_v4  ;;  %v993_v30 = vld [vmem:[%s9196_s23 + $0x1970] sm:$0xff]  ;;  %v986_v2 = vld [vmem:[%s9196_s23 + $0x1938] sm:$0xff] }
 0x3fb   : > { %v994_v4 = vld [vmem:[%s9196_s23 + $0x1978] sm:$0xff]  ;;  %v8736_v6 = vcombine.high %v985_v1, %v993_v30 }
 0x3fc   : > { %v8864_v7 = vcombine.high %v986_v2, %v994_v4  ;;  %v8865_v12 = vcombine.low %v986_v2, %v994_v4  ;;  %v8875_v4 = vcombine.low %v1066_v47, %v1074_v3  ;;  %v1177_v3 = vld [vmem:[%s9196_s23 + $0x1f30] sm:$0xff] }
 0x3fd   : > { %7479 = vmatpush1.bf16.msra.mxu0 %v8721_v8  ;;  %7735 = vmatpush1.bf16.msra.mxu1 %v8849_v9  ;;  %v1001_v8 = vld [vmem:[%s9196_s23 + $0x19b0] sm:$0xff] }
 0x3fe   : > { %7481 = vmatprep.subr.bf16.mxu0 %v8722_v10  ;;  %7737 = vmatprep.subr.bf16.mxu1 %v8850_v11  ;;  %v1009_v9 = vld [vmem:[%s9196_s23 + $0x19f0] sm:$0xff]  ;;  %v1002_v10 = vld [vmem:[%s9196_s23 + $0x19b8] sm:$0xff] }
 0x3ff   : > { %v1010_v11 = vld [vmem:[%s9196_s23 + $0x19f8] sm:$0xff]  ;;  %v8738_v43 = vcombine.high %v1001_v8, %v1009_v9 }
 0x400   : > { %v8866_v13 = vcombine.high %v1002_v10, %v1010_v11 }
 0x401   : > { %7483 = vmatpush1.bf16.msra.mxu0 %v8723_v15  ;;  %7739 = vmatpush1.bf16.msra.mxu1 %v8851_v16  ;;  %v1025_v15 = vld [vmem:[%s9196_s23 + $0x1a70] sm:$0xff]  ;;  %v1018_v16 = vld [vmem:[%s9196_s23 + $0x1a38] sm:$0xff] }
 0x402   : > { %7485 = vmatprep.subr.bf16.mxu0 %v8724_v17  ;;  %7741 = vmatprep.subr.bf16.mxu1 %v8852_v18  ;;  %v1026_v17 = vld [vmem:[%s9196_s23 + $0x1a78] sm:$0xff]  ;;  %v8739_v18 = vcombine.low %v1001_v8, %v1009_v9  ;;  %v8740_v19 = vcombine.high %v1017_v14, %v1025_v15 }
 0x403   : > { %v8868_v20 = vcombine.high %v1018_v16, %v1026_v17  ;;  %v1098_v9 = vld [vmem:[%s9196_s23 + $0x1cb8] sm:$0xff] }
 0x405   : > { %7487 = vmatpush1.bf16.msra.mxu0 %v8725_v23  ;;  %7743 = vmatpush1.bf16.msra.mxu1 %v8853_v24  ;;  %v1034_v23 = vld [vmem:[%s9196_s23 + $0x1ab8] sm:$0xff] }
 0x406   : > { %7489 = vmatprep.subr.bf16.mxu0 %v8726_v25  ;;  %7745 = vmatprep.subr.bf16.mxu1 %v8854_v27  ;;  %v1042_v24 = vld [vmem:[%s9196_s23 + $0x1af8] sm:$0xff]  ;;  %v8741_v25 = vcombine.low %v1017_v14, %v1025_v15  ;;  %v8869_v27 = vcombine.low %v1018_v16, %v1026_v17  ;;  %v1121_v14 = vld [vmem:[%s9196_s23 + $0x1d70] sm:$0xff] }
 0x407   : > { %v8870_v29 = vcombine.high %v1034_v23, %v1042_v24  ;;  %v1114_v15 = vld [vmem:[%s9196_s23 + $0x1d38] sm:$0xff] }
 0x408   : > { %v1122_v16 = vld [vmem:[%s9196_s23 + $0x1d78] sm:$0xff] }
 0x409   : > { %7491 = vmatpush1.bf16.msra.mxu0 %v8727_v33  ;;  %7747 = vmatpush1.bf16.msra.mxu1 %v8855_v35  ;;  %v1050_v33 = vld [vmem:[%s9196_s23 + $0x1b38] sm:$0xff] }
 0x40a   : > { %7493 = vmatprep.subr.bf16.mxu0 %v8728_v36  ;;  %7749 = vmatprep.subr.bf16.mxu1 %v8856_v37  ;;  %v1058_v35 = vld [vmem:[%s9196_s23 + $0x1b78] sm:$0xff]  ;;  %v8743_v36 = vcombine.low %v1033_v21, %v1041_v59  ;;  %v8871_v37 = vcombine.low %v1034_v23, %v1042_v24  ;;  %v1137_v21 = vld [vmem:[%s9196_s23 + $0x1df0] sm:$0xff] }
 0x40b   : > { %v8872_v40 = vcombine.high %v1050_v33, %v1058_v35  ;;  %v1130_v59 = vld [vmem:[%s9196_s23 + $0x1db8] sm:$0xff] }
 0x40c   : > { %v1138_v23 = vld [vmem:[%s9196_s23 + $0x1df8] sm:$0xff] }
 0x40d   : > { %7495 = vmatpush1.bf16.msra.mxu0 %v8729_v42  ;;  %7751 = vmatpush1.bf16.msra.mxu1 %v8857_v44  ;;  %v1073_v42 = vld [vmem:[%s9196_s23 + $0x1bf0] sm:$0xff] }
 0x40e   : > { %7497 = vmatprep.subr.bf16.mxu0 %v8730_v45  ;;  %7753 = vmatprep.subr.bf16.mxu1 %v8858_v46  ;;  %v8746_v63 = vcombine.high %v1065_v41, %v1073_v42 }
 0x411   : > { %7499 = vmatpush1.bf16.msra.mxu0 %v8731_v50  ;;  %7755 = vmatpush1.bf16.msra.mxu1 %v8859_v51  ;;  %v8745_v51 = vcombine.low %v1049_v31, %v1057_v32  ;;  %v1153_v31 = vld [vmem:[%s9196_s23 + $0x1e70] sm:$0xff]  ;;  %v1146_v32 = vld [vmem:[%s9196_s23 + $0x1e38] sm:$0xff] }
 0x412   : > { %7501 = vmatprep.subr.bf16.mxu0 %v8732_v52  ;;  %7757 = vmatprep.subr.bf16.mxu1 %v8860_v26  ;;  %v8873_v26 = vcombine.low %v1050_v33, %v1058_v35  ;;  %v1154_v33 = vld [vmem:[%s9196_s23 + $0x1e78] sm:$0xff] }
 0x414   : > { %5208 = vmatmul.mubr.f32.vlgmr.msra.gmra.mrb[6].mxu0 %v9367_v34  ;;  %5492 = vmatmul.mubr.f32.vlgmr.msra.gmra.mrb[6].mxu1 %v9367_v34  ;;  %v8737_v34 = vcombine.low %v985_v1, %v993_v30  ;;  %v8747_v30 = vcombine.low %v1065_v41, %v1073_v42  ;;  %v1162_v41 = vld [vmem:[%s9196_s23 + $0x1eb8] sm:$0xff] }
 0x415   : > { %7503 = vmatpush1.bf16.msra.mxu0 %v8733_v58  ;;  %7759 = vmatpush1.bf16.msra.mxu1 %v8861_v60  ;;  %v1089_v58 = vld [vmem:[%s9196_s23 + $0x1c70] sm:$0xff]  ;;  %v1170_v42 = vld [vmem:[%s9196_s23 + $0x1ef8] sm:$0xff] }
 0x416   : > { %7505 = vmatprep.subr.bf16.mxu0 %v8734_v61  ;;  %7761 = vmatprep.subr.bf16.mxu1 %v8862_v62  ;;  %v1082_v61 = vld [vmem:[%s9196_s23 + $0x1c38] sm:$0xff]  ;;  %v8886_v47 = vcombine.high %v1162_v41, %v1170_v42 }
 0x417   : > { %5278 = vmatprep.mubr.f32.mxu0 %v9452_v0  ;;  %5562 = vmatprep.mubr.f32.mxu1 %v9452_v0  ;;  %v8867_v0 = vcombine.low %v1002_v10, %v1010_v11  ;;  %v1090_v62 = vld [vmem:[%s9196_s23 + $0x1c78] sm:$0xff]  ;;  %v8749_v11 = vcombine.low %v1081_v57, %v1089_v58 }
 0x418   : > { %v1106_v10 = vld [vmem:[%s9196_s23 + $0x1cf8] sm:$0xff] }
 0x419   : > { %7507 = vmatpush1.bf16.msra.mxu0 %v8735_v22  ;;  %7763 = vmatpush1.bf16.msra.mxu1 %v8863_v5  ;;  %v8748_v22 = vcombine.high %v1081_v57, %v1089_v58  ;;  %v8876_v5 = vcombine.high %v1082_v61, %v1090_v62  ;;  %v1194_v57 = vld [vmem:[%s9196_s23 + $0x1fb8] sm:$0xff] }
 0x41a   : > { %7509 = vmatprep.subr.bf16.mxu0 %v8736_v6  ;;  %7765 = vmatprep.subr.bf16.mxu1 %v8864_v7  ;;  %v1097_v6 = vld [vmem:[%s9196_s23 + $0x1cb0] sm:$0xff]  ;;  %v1202_v58 = vld [vmem:[%s9196_s23 + $0x1ff8] sm:$0xff] }
 0x41b   : > { %v1105_v7 = vld [vmem:[%s9196_s23 + $0x1cf0] sm:$0xff] }
 0x41c   : > { %v8751_v17 = vcombine.low %v1097_v6, %v1105_v7 }
 0x41d   : > { %7511 = vmatpush1.bf16.msra.mxu0 %v8737_v34  ;;  %7767 = vmatpush1.bf16.msra.mxu1 %v8865_v12  ;;  %v8877_v34 = vcombine.low %v1082_v61, %v1090_v62  ;;  %v8750_v12 = vcombine.high %v1097_v6, %v1105_v7 }
 0x41e   : > { %7513 = vmatprep.subr.bf16.mxu0 %v8738_v43  ;;  %7769 = vmatprep.subr.bf16.mxu1 %v8866_v13  ;;  %v8878_v43 = vcombine.high %v1098_v9, %v1106_v10  ;;  %v1113_v13 = vld [vmem:[%s9196_s23 + $0x1d30] sm:$0xff] }
 0x41f   : > { %v8753_v24 = vcombine.low %v1113_v13, %v1121_v14 }
 0x421   : > { %7515 = vmatpush1.bf16.msra.mxu0 %v8739_v18  ;;  %7771 = vmatpush1.bf16.msra.mxu1 %v8867_v0  ;;  %v8879_v18 = vcombine.low %v1098_v9, %v1106_v10  ;;  %v8752_v0 = vcombine.high %v1113_v13, %v1121_v14 }
 0x422   : > { %7517 = vmatprep.subr.bf16.mxu0 %v8740_v19  ;;  %7773 = vmatprep.subr.bf16.mxu1 %v8868_v20  ;;  %v8880_v19 = vcombine.high %v1114_v15, %v1122_v16  ;;  %v1129_v20 = vld [vmem:[%s9196_s23 + $0x1db0] sm:$0xff] }
 0x423   : > { %v8755_v35 = vcombine.low %v1129_v20, %v1137_v21 }
 0x425   : > { %7519 = vmatpush1.bf16.msra.mxu0 %v8741_v25  ;;  %7775 = vmatpush1.bf16.msra.mxu1 %v8869_v27  ;;  %v8881_v25 = vcombine.low %v1114_v15, %v1122_v16  ;;  %v8754_v27 = vcombine.high %v1129_v20, %v1137_v21 }
 0x426   : > { %7521 = vmatprep.subr.bf16.mxu0 %v8742_v28  ;;  %7777 = vmatprep.subr.bf16.mxu1 %v8870_v29  ;;  %v8882_v28 = vcombine.high %v1130_v59, %v1138_v23  ;;  %v1145_v29 = vld [vmem:[%s9196_s23 + $0x1e30] sm:$0xff] }
 0x427   : > { %v4712_v39 = vpop.f32.mrb[4].mxu0  ;;  %v4996_v45 = vpop.f32.mrb[4].mxu1 }
 0x428   : > { %v5577_v44 = vmax.f32 %v4712_v39, 0.0  ;;  %v4714_v46 = vpop.f32.mrb[5].mxu0  ;;  %v5579_v48 = vmax.f32 %v4996_v45, 0.0  ;;  %v4998_v50 = vpop.f32.mrb[5].mxu1  ;;  %v1161_v39 = vld [vmem:[%s9196_s23 + $0x1eb0] sm:$0xff]  ;;  %v8885_v45 = vcombine.low %v1146_v32, %v1154_v33 }
 0x429   : > { %v5578_v49 = vmax.f32 %v4714_v46, 0.0  ;;  %7523 = vmatpush1.bf16.msra.mxu0 %v8743_v36  ;;  %v5580_v52 = vmax.f32 %v4998_v50, 0.0  ;;  %7779 = vmatpush1.bf16.msra.mxu1 %v8871_v37  ;;  %v8883_v36 = vcombine.low %v1130_v59, %v1138_v23  ;;  %v8756_v37 = vcombine.high %v1145_v29, %v1153_v31  ;;  %v1186_v50 = vld [vmem:[%s9196_s23 + $0x1f78] sm:$0xff] }
 0x42a   : > { %7525 = vmatprep.subr.bf16.mxu0 %v8744_v38  ;;  %7781 = vmatprep.subr.bf16.mxu1 %v8872_v40  ;;  %v8884_v38 = vcombine.high %v1146_v32, %v1154_v33  ;;  %v1169_v40 = vld [vmem:[%s9196_s23 + $0x1ef0] sm:$0xff] }
 0x42b   : > { %v5635_v55 = vcombine.low %v5577_v44, %v5578_v49  ;;  %v5636_v60 = vcombine.low %v5579_v48, %v5580_v52  ;;  %v8757_v44 = vcombine.low %v1145_v29, %v1153_v31  ;;  %v8758_v46 = vcombine.high %v1161_v39, %v1169_v40  ;;  %v1185_v48 = vld [vmem:[%s9196_s23 + $0x1f70] sm:$0xff]  ;;  %v1178_v49 = vld [vmem:[%s9196_s23 + $0x1f38] sm:$0xff] }
 0x42c   : > { %v8887_v52 = vcombine.low %v1162_v41, %v1170_v42  ;;  %v8889_v61 = vcombine.low %v1178_v49, %v1186_v50 }
 0x42d   : > { %v5643_v1 = vrot.slane %v5635_v55, %v9228_v53  ;;  %7527 = vmatpush1.bf16.msra.mxu0 %v8745_v51  ;;  %v5650_v2 = vrot.slane %v5636_v60, %v9228_v53  ;;  %7783 = vmatpush1.bf16.msra.mxu1 %v8873_v26  ;;  %v8759_v51 = vcombine.low %v1161_v39, %v1169_v40  ;;  %v1193_v55 = vld [vmem:[%s9196_s23 + $0x1fb0] sm:$0xff] }
 0x42e   : > { %7529 = vmatprep.subr.bf16.mxu0 %v8746_v63  ;;  %7785 = vmatprep.subr.bf16.mxu1 %v8874_v56  ;;  %v8760_v26 = vcombine.high %v1177_v3, %v1185_v48  ;;  %v8888_v63 = vcombine.high %v1178_v49, %v1186_v50  ;;  %v1201_v56 = vld [vmem:[%s9196_s23 + $0x1ff0] sm:$0xff]  ;;  %v8761_v60 = vcombine.low %v1177_v3, %v1185_v48 }
 0x42f   : > { %v5651_v8 = vcombine.low %v5643_v1, %v5650_v2  ;;  %v8762_v62 = vcombine.high %v1193_v55, %v1201_v56  ;;  %v8890_v1 = vcombine.high %v1194_v57, %v1202_v58  ;;  %v8891_v2 = vcombine.low %v1194_v57, %v1202_v58 }
 0x431   : > { %7531 = vmatpush1.bf16.msra.mxu0 %v8747_v30  ;;  %5675 = vst [vmem:[%s9767_s21 + $0x10] sm:$0xff] %v5651_v8  ;;  %7787 = vmatpush1.bf16.msra.mxu1 %v8875_v4  ;;  %v8763_v30 = vcombine.low %v1193_v55, %v1201_v56 }
 0x432   : > { %7533 = vmatprep.subr.bf16.mxu0 %v8748_v22  ;;  %7789 = vmatprep.subr.bf16.mxu1 %v8876_v5 }
 0x435   : > { %7535 = vmatpush1.bf16.msra.mxu0 %v8749_v11  ;;  %7791 = vmatpush1.bf16.msra.mxu1 %v8877_v34 }
 0x436   : > { %7537 = vmatprep.subr.bf16.mxu0 %v8750_v12  ;;  %7793 = vmatprep.subr.bf16.mxu1 %v8878_v43 }
 0x439   : > { %7539 = vmatpush1.bf16.msra.mxu0 %v8751_v17  ;;  %7795 = vmatpush1.bf16.msra.mxu1 %v8879_v18 }
 0x43a   : > { %7541 = vmatprep.subr.bf16.mxu0 %v8752_v0  ;;  %7797 = vmatprep.subr.bf16.mxu1 %v8880_v19 }
 0x43d   : > { %7543 = vmatpush1.bf16.msra.mxu0 %v8753_v24  ;;  %7799 = vmatpush1.bf16.msra.mxu1 %v8881_v25 }
 0x43e   : > { %7545 = vmatprep.subr.bf16.mxu0 %v8754_v27  ;;  %7801 = vmatprep.subr.bf16.mxu1 %v8882_v28 }
 0x441   : > { %7547 = vmatpush1.bf16.msra.mxu0 %v8755_v35  ;;  %7803 = vmatpush1.bf16.msra.mxu1 %v8883_v36 }
 0x442   : > { %7549 = vmatprep.subr.bf16.mxu0 %v8756_v37  ;;  %7805 = vmatprep.subr.bf16.mxu1 %v8884_v38 }
 0x445   : > { %7551 = vmatpush1.bf16.msra.mxu0 %v8757_v44  ;;  %7807 = vmatpush1.bf16.msra.mxu1 %v8885_v45 }
 0x446   : > { %7553 = vmatprep.subr.bf16.mxu0 %v8758_v46  ;;  %7809 = vmatprep.subr.bf16.mxu1 %v8886_v47 }
 0x449   : > { %7555 = vmatpush1.bf16.msra.mxu0 %v8759_v51  ;;  %7811 = vmatpush1.bf16.msra.mxu1 %v8887_v52 }
 0x44a   : > { %7557 = vmatprep.subr.bf16.mxu0 %v8760_v26  ;;  %7813 = vmatprep.subr.bf16.mxu1 %v8888_v63 }
 0x44d   : > { %7559 = vmatpush1.bf16.msra.mxu0 %v8761_v60  ;;  %7815 = vmatpush1.bf16.msra.mxu1 %v8889_v61 }
 0x44e   : > { %7561 = vmatprep.subr.bf16.mxu0 %v8762_v62  ;;  %7817 = vmatprep.subr.bf16.mxu1 %v8890_v1 }
 0x451   : > { %7563 = vmatpush1.bf16.msra.mxu0 %v8763_v30  ;;  %7819 = vmatpush1.bf16.msra.mxu1 %v8891_v2 }
 0x454   : > { %5279 = vmatmul.mubr.f32.vlgmr.msra.gmra.mrb[6].mxu0 %v9444_v54  ;;  %5563 = vmatmul.mubr.f32.vlgmr.msra.gmra.mrb[6].mxu1 %v9444_v54 }
 0x527   : > { %v5280_v4 = vpop.f32.mrb[6].mxu0  ;;  %v5564_v5 = vpop.f32.mrb[6].mxu1 }
 0x528   : > { %v5581_v22 = vmax.f32 %v5280_v4, 0.0  ;;  %v5282_v6 = vpop.f32.mrb[7].mxu0  ;;  %v5583_v7 = vmax.f32 %v5564_v5, 0.0  ;;  %v5566_v9 = vpop.f32.mrb[7].mxu1 }
 0x529   : > { %v5582_v8 = vmax.f32 %v5282_v6, 0.0  ;;  %v5584_v10 = vmax.f32 %v5566_v9, 0.0 }
 0x52b   : > { %v5652_v11 = vcombine.low %v5581_v22, %v5582_v8  ;;  %v5653_v34 = vcombine.low %v5583_v7, %v5584_v10 }
 0x52d   : > { %v5660_v12 = vrot.slane %v5652_v11, %v9228_v53  ;;  %v5667_v43 = vrot.slane %v5653_v34, %v9228_v53 }
 0x52f   : > { %v5668_v13 = vcombine.low %v5660_v12, %v5667_v43 }
 0x531   : > { %5676 = vst [vmem:[%s9767_s21 + $0x18] sm:$0xff] %v5668_v13 }
 0x532 PF: > { %p13_p3 = scmp.ge.s32.totalorder %s9087_s14, 6   ;;  %s10384_s9 = smov %s9036_s10 }
 0x533   : > { %s10385_s10 = smov %s9040_s11  ;;  %s10386_s11 = smov %s9097_s17 }
 0x534   : > { %s10387_s12 = smov %s9087_s14  ;;  %15 = sbr.rel (!%p13_p3) target bundleno = 4 (0x4), region = 73 }
 0x53b   :  { %5699 = vsyncpa [#allocation3], 1 }
 0x53c   :  { %5701 = vsyncpa [#allocation3 + $0x1], 1 }
 0x53d   :  { %5702 = vsyncpa [#allocation5], 1 }
 0x53e   :  { %5704 = vsyncpa [#allocation5 + $0x1], 1 }

</bundles_post_ra>
